<compile_context>
chip_gen: v7x
topology: tpu7x:2x2x1
jax: 0.10.0
libtpu: 0.0.40
codegen_flags: <defaults>
</compile_context>

<pallas_src>
import functools

import jax
import jax.numpy as jnp
from jax.experimental import pallas as pl
from jax.experimental.pallas import tpu as pltpu

NEG_SLOPE = 0.2      # GATv2Conv default negative_slope
EPS = 1e-5           # GraphNorm default eps
MASK_FILL = -1e30    # additive mask fill; must stay f32 so exp underflows to 0

_VMEM = pl.BlockSpec(memory_space=pltpu.MemorySpace.VMEM)


# ------------------------------ fused kernel ------------------------------- #

def fused_forward_kernel(
    # graph inputs
    x_ref, negf_ref, seg_ref, segt_ref, inv_cnt_ref,
    # conv1 + gn1
    w1_ref, b1_ref, att1_ref, bias1_ref, gn1w_ref, gn1b_ref, gn1ms_ref,
    # conv2 + gn2
    w2_ref, b2_ref, att2_ref, bias2_ref, gn2w_ref, gn2b_ref, gn2ms_ref,
    # conv3 + gn3
    w3_ref, b3_ref, att3_ref, bias3_ref, gn3w_ref, gn3b_ref, gn3ms_ref,
    # head
    lin_w_ref, lin_b_ref,
    # outputs
    logits_ref, feat_ref,
    *, heads, c1, c2, c3):
  neg_fill = negf_ref[...]                       # [N, N] f32 additive mask
  seg = seg_ref[...]                             # [G, N] bf16 (exact 0/1)
  segt = segt_ref[...]                           # [N, G] bf16
  inv_cnt = inv_cnt_ref[...]                     # [G, 1] f32
  n = neg_fill.shape[0]

  def gatv2(x, w_ref, b_ref, att_ref, bias_ref, out_c, concat):
    """One GATv2Conv layer (all heads), value-in / value-out."""
    hc = heads * out_c
    # Fused W_l|W_r projection: one bf16 MXU push, f32 accumulation.
    xlr = jnp.dot(x.astype(jnp.bfloat16), w_ref[...],
                  preferred_element_type=jnp.float32) + b_ref[...]
    xl = xlr[:, :hc]                             # source features  [N, H*C]
    xr = xlr[:, hc:]                             # target features  [N, H*C]
    # Lane-dense broadcast + leaky_relu over all heads at once.
    s = xr[:, None, :] + xl[None, :, :]          # [Ni, Nj, H*C]
    s = jnp.where(s > 0, s, NEG_SLOPE * s)
    # att weighting folded into the channel reduction as ONE MXU matmul
    # against the block-diagonal att matrix [H*C, H]: no [N,N,H*C] "weighted"
    # tensor, no N^2*H*C VPU multiplies.
    e_all = jnp.dot(s.reshape(n * n, hc), att_ref[...],
                    preferred_element_type=jnp.float32).reshape(n, n, heads)
    xl_b = xl.astype(jnp.bfloat16)

    if concat:
      # Identity row-blocks: place each head in its lane-dense output columns
      # via the (otherwise idle) MXU instead of masked sub-lane stores or
      # unaligned minor-dim concatenation.  Cost is only O(N*C*H*C) MACs.
      rows = jax.lax.broadcasted_iota(jnp.int32, (hc, hc), 0)
      cols = jax.lax.broadcasted_iota(jnp.int32, (hc, hc), 1)
      eye = (rows == cols).astype(jnp.float32)

    out = None
    for h in range(heads):
      lo, hi = h * out_c, (h + 1) * out_c
      # per-head masked softmax over source nodes j (axis=1)
      e = jnp.sum(e_all[:, :, h:h + 1], axis=-1) + neg_fill       # [Ni, Nj]
      e = e - jnp.max(e, axis=1, keepdims=True)
      p = jnp.exp(e)                 # masked entries underflow to exactly 0.0
      # approx reciprocal -> EUP slot; ~1e-4 relative drift vs exact softmax.
      alpha = p * pl.reciprocal(jnp.sum(p, axis=1, keepdims=True), approx=True)
      out_h = jnp.dot(alpha.astype(jnp.bfloat16), xl_b[:, lo:hi],
                      preferred_element_type=jnp.float32)          # [N, C]
      if concat:
        out_h = jnp.dot(out_h, eye[lo:hi, :],
                        preferred_element_type=jnp.float32)        # [N, H*C]
      out = out_h if out is None else out + out_h
    if not concat:
      out = out * (1.0 / heads)
    return out + bias_ref[...]          # output bias added once, lane-dense

  def graphnorm_relu(x, w_ref, b_ref, ms_ref):
    xb = x.astype(jnp.bfloat16)
    mean = jnp.dot(seg, xb, preferred_element_type=jnp.float32) * inv_cnt
    mean_n = jnp.dot(segt, mean.astype(jnp.bfloat16),
                     preferred_element_type=jnp.float32)           # [N, F]
    centered = x - mean_n * ms_ref[...]
    sq = (centered * centered).astype(jnp.bfloat16)
    var = jnp.dot(seg, sq, preferred_element_type=jnp.float32) * inv_cnt
    var_n = jnp.dot(segt, var.astype(jnp.bfloat16),
                    preferred_element_type=jnp.float32)            # [N, F]
    y = w_ref[...] * centered * jax.lax.rsqrt(var_n + EPS) + b_ref[...]
    return jnp.maximum(y, 0.0)

  h = gatv2(x_ref[...], w1_ref, b1_ref, att1_ref, bias1_ref, c1, True)
  h = graphnorm_relu(h, gn1w_ref, gn1b_ref, gn1ms_ref)
  h = gatv2(h, w2_ref, b2_ref, att2_ref, bias2_ref, c2, True)
  h = graphnorm_relu(h, gn2w_ref, gn2b_ref, gn2ms_ref)
  h = gatv2(h, w3_ref, b3_ref, att3_ref, bias3_ref, c3, False)
  h = graphnorm_relu(h, gn3w_ref, gn3b_ref, gn3ms_ref)

  # epilogue: global_mean_pool + Linear head (fused, same call)
  pooled = jnp.dot(seg, h.astype(jnp.bfloat16),
                   preferred_element_type=jnp.float32) * inv_cnt   # [G, 16]
  feat_ref[...] = pooled
  logits_ref[...] = (jnp.dot(pooled, lin_w_ref[...],
                             preferred_element_type=jnp.float32)
                     + lin_b_ref[...])


# -------------------------------- wrapper ----------------------------------- #

def simple_gat_forward(x, adj, seg, seg_t, inv_cnt, params, *, num_heads,
                       out_channels):
  g = seg.shape[0]
  p = params

  # ---- host-side prep (per perf review) ------------------------------------
  # Pad Fin to a sublane multiple so the first projection's K dim is not a
  # ragged (8,128) tile; zero-padded rows of W keep the math identical.
  fin = x.shape[1]
  pad = (-fin) % 8
  x_p = jnp.pad(x, ((0, 0), (0, pad))) if pad else x
  w1 = jnp.pad(p["conv1"]["w"], ((0, pad), (0, 0))) if pad else p["conv1"]["w"]
  # Precompute the additive attention mask once (adj itself never enters the
  # kernel); one-hot segment matrices and projection weights travel as bf16.
  neg_fill = jnp.where(adj > 0, 0.0, MASK_FILL).astype(jnp.float32)
  bf16 = lambda a: a.astype(jnp.bfloat16)

  args = (
      x_p, neg_fill, bf16(seg), bf16(seg_t), inv_cnt,
      bf16(w1), p["conv1"]["b"], p["conv1"]["att_bd"], p["conv1"]["bias"],
      p["gn1"]["w"], p["gn1"]["b"], p["gn1"]["ms"],
      bf16(p["conv2"]["w"]), p["conv2"]["b"], p["conv2"]["att_bd"],
      p["conv2"]["bias"], p["gn2"]["w"], p["gn2"]["b"], p["gn2"]["ms"],
      bf16(p["conv3"]["w"]), p["conv3"]["b"], p["conv3"]["att_bd"],
      p["conv3"]["bias"], p["gn3"]["w"], p["gn3"]["b"], p["gn3"]["ms"],
      p["lin_w"], p["lin_b"],
  )
  kern = functools.partial(fused_forward_kernel, heads=num_heads,
                           c1=64, c2=32, c3=16)
  return pl.pallas_call(
      kern,
      out_shape=(jax.ShapeDtypeStruct((g, out_channels), jnp.float32),
                 jax.ShapeDtypeStruct((g, 16), jnp.float32)),
      in_specs=[_VMEM] * len(args),
      out_specs=(_VMEM, _VMEM),
      compiler_params=pltpu.CompilerParams(
          # fully VMEM-resident design: raise the 16/32 MiB scoped default,
          # keep headroom below v7x's 64 MiB physical VMEM.
          vmem_limit_bytes=48 * 1024 * 1024),
  )(*args)


# ------------------------------ param helpers -------------------------------- #

def glorot(key, shape):
  fan_in, fan_out = shape[0], shape[1]
  lim = (6.0 / (fan_in + fan_out)) ** 0.5
  return jax.random.uniform(key, shape, jnp.float32, -lim, lim)


def make_gat_params(key, f_in, c, heads, concat):
  ks = jax.random.split(key, 3)
  hc = heads * c
  out_dim = hc if concat else c
  wl = glorot(ks[0], (f_in, hc))
  wr = glorot(ks[1], (f_in, hc))
  att = glorot(ks[2], (heads, c))
  # Block-diagonal att: column h holds head h's attention vector in rows
  # h*c:(h+1)*c, so leaky(x_l+x_r) @ att_bd yields every head's logit with a
  # single MXU matmul inside the kernel.
  att_bd = jnp.zeros((hc, heads), jnp.float32)
  for h in range(heads):
    att_bd = att_bd.at[h * c:(h + 1) * c, h].set(att[h])
  return dict(
      w=jnp.concatenate([wl, wr], axis=1),          # fused [Fin, 2*H*C]
      b=jnp.zeros((1, 2 * hc), jnp.float32),        # fused projection bias
      att_bd=att_bd,                                # [H*C, H]
      bias=jnp.zeros((1, out_dim), jnp.float32),    # output bias
  )


def make_gn_params(dim):
  # GraphNorm init: weight=1, bias=0, mean_scale=1
  return dict(w=jnp.ones((1, dim), jnp.float32),
              b=jnp.zeros((1, dim), jnp.float32),
              ms=jnp.ones((1, dim), jnp.float32))


# ---------------------------------- main ------------------------------------- #

if __name__ == "__main__":
  key = jax.random.PRNGKey(0)
  N, G = 16, 2                 # 16 nodes, 2 graphs
  in_channels, out_channels, num_heads = 4, 3, 2

  k_x, k_adj, k1, k2, k3, k_lin = jax.random.split(key, 6)

  # node features and graph assignment
  x = jax.random.normal(k_x, (N, in_channels), jnp.float32)
  batch = jnp.concatenate([jnp.zeros(N // 2, jnp.int32),
                           jnp.ones(N - N // 2, jnp.int32)])

  # random intra-graph edges (dense mask) + self-loops (GATv2 default)
  rand_adj = (jax.random.uniform(k_adj, (N, N)) < 0.3).astype(jnp.float32)
  same_graph = (batch[:, None] == batch[None, :]).astype(jnp.float32)
  adj = jnp.maximum(rand_adj * same_graph, jnp.eye(N, dtype=jnp.float32))

  # one-hot segment matrix [G, N], its transpose, and per-graph inverse counts
  seg = jax.nn.one_hot(batch, G, dtype=jnp.float32).T
  seg_t = seg.T
  inv_cnt = 1.0 / jnp.sum(seg, axis=1, keepdims=True)

  params = dict(
      conv1=make_gat_params(k1, in_channels, 64, num_heads, True),
      gn1=make_gn_params(64 * num_heads),
      conv2=make_gat_params(k2, 64 * num_heads, 32, num_heads, True),
      gn2=make_gn_params(32 * num_heads),
      conv3=make_gat_params(k3, 32 * num_heads, 16, num_heads, False),
      gn3=make_gn_params(16),
      lin_w=glorot(k_lin, (16, out_channels)),
      lin_b=jnp.zeros((1, out_channels), jnp.float32),
  )

  fwd = jax.jit(functools.partial(simple_gat_forward, num_heads=num_heads,
                                  out_channels=out_channels))
  logits, features = fwd(x, adj, seg, seg_t, inv_cnt, params)
  jax.block_until_ready((logits, features))

  assert logits.shape == (G, out_channels)
  assert features.shape == (G, 16)
  assert bool(jnp.all(jnp.isfinite(logits))) and bool(jnp.all(jnp.isfinite(features)))
  print("KERNEL_OK")
</pallas_src>

<mosaic_0001>
module attributes {stable_mosaic.version = 11 : i64} {
  func.func @fused_forward_kernel(%arg0: memref<16x8xf32, #tpu.memory_space<vmem>>, %arg1: memref<16x16xf32, #tpu.memory_space<vmem>>, %arg2: memref<2x16xbf16, #tpu.memory_space<vmem>>, %arg3: memref<16x2xbf16, #tpu.memory_space<vmem>>, %arg4: memref<2x1xf32, #tpu.memory_space<vmem>>, %arg5: memref<8x256xbf16, #tpu.memory_space<vmem>>, %arg6: memref<1x256xf32, #tpu.memory_space<vmem>>, %arg7: memref<128x2xf32, #tpu.memory_space<vmem>>, %arg8: memref<1x128xf32, #tpu.memory_space<vmem>>, %arg9: memref<1x128xf32, #tpu.memory_space<vmem>>, %arg10: memref<1x128xf32, #tpu.memory_space<vmem>>, %arg11: memref<1x128xf32, #tpu.memory_space<vmem>>, %arg12: memref<128x128xbf16, #tpu.memory_space<vmem>>, %arg13: memref<1x128xf32, #tpu.memory_space<vmem>>, %arg14: memref<64x2xf32, #tpu.memory_space<vmem>>, %arg15: memref<1x64xf32, #tpu.memory_space<vmem>>, %arg16: memref<1x64xf32, #tpu.memory_space<vmem>>, %arg17: memref<1x64xf32, #tpu.memory_space<vmem>>, %arg18: memref<1x64xf32, #tpu.memory_space<vmem>>, %arg19: memref<64x64xbf16, #tpu.memory_space<vmem>>, %arg20: memref<1x64xf32, #tpu.memory_space<vmem>>, %arg21: memref<32x2xf32, #tpu.memory_space<vmem>>, %arg22: memref<1x16xf32, #tpu.memory_space<vmem>>, %arg23: memref<1x16xf32, #tpu.memory_space<vmem>>, %arg24: memref<1x16xf32, #tpu.memory_space<vmem>>, %arg25: memref<1x16xf32, #tpu.memory_space<vmem>>, %arg26: memref<16x3xf32, #tpu.memory_space<vmem>>, %arg27: memref<1x3xf32, #tpu.memory_space<vmem>>, %arg28: memref<2x3xf32, #tpu.memory_space<vmem>>, %arg29: memref<2x16xf32, #tpu.memory_space<vmem>>) attributes {dimension_semantics = [], scalar_prefetch = 0 : i64, scratch_operands = 0 : i64, tpu.core_type = #tpu.core_type<tc>} {
    %c0 = arith.constant 0 : index
    %c0_0 = arith.constant 0 : index
    %0 = vector.load %arg1[%c0, %c0_0] : memref<16x16xf32, #tpu.memory_space<vmem>>, vector<16x16xf32>
    %c0_1 = arith.constant 0 : index
    %c0_2 = arith.constant 0 : index
    %1 = vector.load %arg2[%c0_1, %c0_2] : memref<2x16xbf16, #tpu.memory_space<vmem>>, vector<2x16xbf16>
    %c0_3 = arith.constant 0 : index
    %c0_4 = arith.constant 0 : index
    %2 = vector.load %arg3[%c0_3, %c0_4] : memref<16x2xbf16, #tpu.memory_space<vmem>>, vector<16x2xbf16>
    %c0_5 = arith.constant 0 : index
    %c0_6 = arith.constant 0 : index
    %3 = vector.load %arg4[%c0_5, %c0_6] : memref<2x1xf32, #tpu.memory_space<vmem>>, vector<2x1xf32>
    %c0_7 = arith.constant 0 : index
    %c0_8 = arith.constant 0 : index
    %4 = vector.load %arg0[%c0_7, %c0_8] : memref<16x8xf32, #tpu.memory_space<vmem>>, vector<16x8xf32>
    %5 = arith.truncf %4 : vector<16x8xf32> to vector<16x8xbf16>
    %c0_9 = arith.constant 0 : index
    %c0_10 = arith.constant 0 : index
    %6 = vector.load %arg5[%c0_9, %c0_10] : memref<8x256xbf16, #tpu.memory_space<vmem>>, vector<8x256xbf16>
    %cst = arith.constant dense<0.000000e+00> : vector<16x256xf32>
    %7 = tpu.matmul %5, %6, %cst {dimension_numbers = #tpu.dot_dimension_numbers<[1], [0], [0], [1], [0, 0, 1, 1], [], []>} : vector<16x8xbf16>, vector<8x256xbf16>, vector<16x256xf32> -> vector<16x256xf32>
    %c0_11 = arith.constant 0 : index
    %c0_12 = arith.constant 0 : index
    %8 = vector.load %arg6[%c0_11, %c0_12] : memref<1x256xf32, #tpu.memory_space<vmem>>, vector<1x256xf32>
    %9 = vector.broadcast %8 : vector<1x256xf32> to vector<16x256xf32>
    %10 = arith.addf %7, %9 : vector<16x256xf32>
    %11 = vector.extract_strided_slice %10 {offsets = [0, 0], sizes = [16, 128], strides = [1, 1]} : vector<16x256xf32> to vector<16x128xf32>
    %12 = vector.extract_strided_slice %10 {offsets = [0, 128], sizes = [16, 128], strides = [1, 1]} : vector<16x256xf32> to vector<16x128xf32>
    %13 = vector.shape_cast %12 : vector<16x128xf32> to vector<16x1x128xf32>
    %14 = vector.shape_cast %11 : vector<16x128xf32> to vector<1x16x128xf32>
    %15 = vector.broadcast %13 : vector<16x1x128xf32> to vector<16x16x128xf32>
    %16 = vector.broadcast %14 : vector<1x16x128xf32> to vector<16x16x128xf32>
    %17 = arith.addf %15, %16 : vector<16x16x128xf32>
    %cst_13 = arith.constant 0.000000e+00 : f32
    %18 = vector.broadcast %cst_13 : f32 to vector<16x16x128xf32>
    %19 = arith.cmpf ogt, %17, %18 : vector<16x16x128xf32>
    %cst_14 = arith.constant 2.000000e-01 : f32
    %20 = vector.broadcast %cst_14 : f32 to vector<16x16x128xf32>
    %21 = arith.mulf %20, %17 : vector<16x16x128xf32>
    %22 = arith.select %19, %17, %21 : vector<16x16x128xi1>, vector<16x16x128xf32>
    %23 = vector.shape_cast %22 : vector<16x16x128xf32> to vector<256x128xf32>
    %c0_15 = arith.constant 0 : index
    %c0_16 = arith.constant 0 : index
    %24 = vector.load %arg7[%c0_15, %c0_16] : memref<128x2xf32, #tpu.memory_space<vmem>>, vector<128x2xf32>
    %cst_17 = arith.constant dense<0.000000e+00> : vector<256x2xf32>
    %25 = tpu.matmul %23, %24, %cst_17 {dimension_numbers = #tpu.dot_dimension_numbers<[1], [0], [0], [1], [0, 0, 1, 1], [], []>} : vector<256x128xf32>, vector<128x2xf32>, vector<256x2xf32> -> vector<256x2xf32>
    %26 = vector.shape_cast %25 : vector<256x2xf32> to vector<16x16x2xf32>
    %27 = arith.truncf %11 : vector<16x128xf32> to vector<16x128xbf16>
    %28 = tpu.iota {dimensions = array<i32: 0>} : vector<128x128xi32>
    %29 = tpu.iota {dimensions = array<i32: 1>} : vector<128x128xi32>
    %30 = arith.cmpi eq, %28, %29 : vector<128x128xi32>
    %31 = arith.extui %30 : vector<128x128xi1> to vector<128x128xi32>
    %32 = arith.sitofp %31 : vector<128x128xi32> to vector<128x128xf32>
    %33 = vector.extract_strided_slice %26 {offsets = [0, 0, 0], sizes = [16, 16, 1], strides = [1, 1, 1]} : vector<16x16x2xf32> to vector<16x16x1xf32>
    %cst_18 = arith.constant dense<0.000000e+00> : vector<16x16xf32>
    %34 = vector.multi_reduction <add>, %33, %cst_18 [2] : vector<16x16x1xf32> to vector<16x16xf32>
    %35 = arith.addf %34, %0 : vector<16x16xf32>
    %cst_19 = arith.constant dense<0xFF800000> : vector<16xf32>
    %36 = vector.multi_reduction <maximumf>, %35, %cst_19 [1] : vector<16x16xf32> to vector<16xf32>
    %37 = vector.shape_cast %36 : vector<16xf32> to vector<16x1xf32>
    %38 = vector.broadcast %37 : vector<16x1xf32> to vector<16x16xf32>
    %39 = arith.subf %35, %38 : vector<16x16xf32>
    %40 = math.exp %39 : vector<16x16xf32>
    %cst_20 = arith.constant dense<0.000000e+00> : vector<16xf32>
    %41 = vector.multi_reduction <add>, %40, %cst_20 [1] : vector<16x16xf32> to vector<16xf32>
    %42 = vector.shape_cast %41 : vector<16xf32> to vector<16x1xf32>
    %43 = tpu.reciprocal %42 {approx = true} : vector<16x1xf32> -> vector<16x1xf32>
    %44 = vector.broadcast %43 : vector<16x1xf32> to vector<16x16xf32>
    %45 = arith.mulf %40, %44 : vector<16x16xf32>
    %46 = arith.truncf %45 : vector<16x16xf32> to vector<16x16xbf16>
    %47 = vector.extract_strided_slice %27 {offsets = [0, 0], sizes = [16, 64], strides = [1, 1]} : vector<16x128xbf16> to vector<16x64xbf16>
    %cst_21 = arith.constant dense<0.000000e+00> : vector<16x64xf32>
    %48 = tpu.matmul %46, %47, %cst_21 {dimension_numbers = #tpu.dot_dimension_numbers<[1], [0], [0], [1], [0, 0, 1, 1], [], []>} : vector<16x16xbf16>, vector<16x64xbf16>, vector<16x64xf32> -> vector<16x64xf32>
    %49 = vector.extract_strided_slice %32 {offsets = [0, 0], sizes = [64, 128], strides = [1, 1]} : vector<128x128xf32> to vector<64x128xf32>
    %cst_22 = arith.constant dense<0.000000e+00> : vector<16x128xf32>
    %50 = tpu.matmul %48, %49, %cst_22 {dimension_numbers = #tpu.dot_dimension_numbers<[1], [0], [0], [1], [0, 0, 1, 1], [], []>} : vector<16x64xf32>, vector<64x128xf32>, vector<16x128xf32> -> vector<16x128xf32>
    %51 = vector.extract_strided_slice %26 {offsets = [0, 0, 1], sizes = [16, 16, 1], strides = [1, 1, 1]} : vector<16x16x2xf32> to vector<16x16x1xf32>
    %cst_23 = arith.constant dense<0.000000e+00> : vector<16x16xf32>
    %52 = vector.multi_reduction <add>, %51, %cst_23 [2] : vector<16x16x1xf32> to vector<16x16xf32>
    %53 = arith.addf %52, %0 : vector<16x16xf32>
    %cst_24 = arith.constant dense<0xFF800000> : vector<16xf32>
    %54 = vector.multi_reduction <maximumf>, %53, %cst_24 [1] : vector<16x16xf32> to vector<16xf32>
    %55 = vector.shape_cast %54 : vector<16xf32> to vector<16x1xf32>
    %56 = vector.broadcast %55 : vector<16x1xf32> to vector<16x16xf32>
    %57 = arith.subf %53, %56 : vector<16x16xf32>
    %58 = math.exp %57 : vector<16x16xf32>
    %cst_25 = arith.constant dense<0.000000e+00> : vector<16xf32>
    %59 = vector.multi_reduction <add>, %58, %cst_25 [1] : vector<16x16xf32> to vector<16xf32>
    %60 = vector.shape_cast %59 : vector<16xf32> to vector<16x1xf32>
    %61 = tpu.reciprocal %60 {approx = true} : vector<16x1xf32> -> vector<16x1xf32>
    %62 = vector.broadcast %61 : vector<16x1xf32> to vector<16x16xf32>
    %63 = arith.mulf %58, %62 : vector<16x16xf32>
    %64 = arith.truncf %63 : vector<16x16xf32> to vector<16x16xbf16>
    %65 = vector.extract_strided_slice %27 {offsets = [0, 64], sizes = [16, 64], strides = [1, 1]} : vector<16x128xbf16> to vector<16x64xbf16>
    %cst_26 = arith.constant dense<0.000000e+00> : vector<16x64xf32>
    %66 = tpu.matmul %64, %65, %cst_26 {dimension_numbers = #tpu.dot_dimension_numbers<[1], [0], [0], [1], [0, 0, 1, 1], [], []>} : vector<16x16xbf16>, vector<16x64xbf16>, vector<16x64xf32> -> vector<16x64xf32>
    %67 = vector.extract_strided_slice %32 {offsets = [64, 0], sizes = [64, 128], strides = [1, 1]} : vector<128x128xf32> to vector<64x128xf32>
    %cst_27 = arith.constant dense<0.000000e+00> : vector<16x128xf32>
    %68 = tpu.matmul %66, %67, %cst_27 {dimension_numbers = #tpu.dot_dimension_numbers<[1], [0], [0], [1], [0, 0, 1, 1], [], []>} : vector<16x64xf32>, vector<64x128xf32>, vector<16x128xf32> -> vector<16x128xf32>
    %69 = arith.addf %50, %68 : vector<16x128xf32>
    %c0_28 = arith.constant 0 : index
    %c0_29 = arith.constant 0 : index
    %70 = vector.load %arg8[%c0_28, %c0_29] : memref<1x128xf32, #tpu.memory_space<vmem>>, vector<1x128xf32>
    %71 = vector.broadcast %70 : vector<1x128xf32> to vector<16x128xf32>
    %72 = arith.addf %69, %71 : vector<16x128xf32>
    %73 = arith.truncf %72 : vector<16x128xf32> to vector<16x128xbf16>
    %cst_30 = arith.constant dense<0.000000e+00> : vector<2x128xf32>
    %74 = tpu.matmul %1, %73, %cst_30 {dimension_numbers = #tpu.dot_dimension_numbers<[1], [0], [0], [1], [0, 0, 1, 1], [], []>} : vector<2x16xbf16>, vector<16x128xbf16>, vector<2x128xf32> -> vector<2x128xf32>
    %75 = vector.broadcast %3 : vector<2x1xf32> to vector<2x128xf32>
    %76 = arith.mulf %74, %75 : vector<2x128xf32>
    %77 = arith.truncf %76 : vector<2x128xf32> to vector<2x128xbf16>
    %cst_31 = arith.constant dense<0.000000e+00> : vector<16x128xf32>
    %78 = tpu.matmul %2, %77, %cst_31 {dimension_numbers = #tpu.dot_dimension_numbers<[1], [0], [0], [1], [0, 0, 1, 1], [], []>} : vector<16x2xbf16>, vector<2x128xbf16>, vector<16x128xf32> -> vector<16x128xf32>
    %c0_32 = arith.constant 0 : index
    %c0_33 = arith.constant 0 : index
    %79 = vector.load %arg11[%c0_32, %c0_33] : memref<1x128xf32, #tpu.memory_space<vmem>>, vector<1x128xf32>
    %80 = vector.broadcast %79 : vector<1x128xf32> to vector<16x128xf32>
    %81 = arith.mulf %78, %80 : vector<16x128xf32>
    %82 = arith.subf %72, %81 : vector<16x128xf32>
    %83 = arith.mulf %82, %82 : vector<16x128xf32>
    %84 = arith.truncf %83 : vector<16x128xf32> to vector<16x128xbf16>
    %cst_34 = arith.constant dense<0.000000e+00> : vector<2x128xf32>
    %85 = tpu.matmul %1, %84, %cst_34 {dimension_numbers = #tpu.dot_dimension_numbers<[1], [0], [0], [1], [0, 0, 1, 1], [], []>} : vector<2x16xbf16>, vector<16x128xbf16>, vector<2x128xf32> -> vector<2x128xf32>
    %86 = vector.broadcast %3 : vector<2x1xf32> to vector<2x128xf32>
    %87 = arith.mulf %85, %86 : vector<2x128xf32>
    %88 = arith.truncf %87 : vector<2x128xf32> to vector<2x128xbf16>
    %cst_35 = arith.constant dense<0.000000e+00> : vector<16x128xf32>
    %89 = tpu.matmul %2, %88, %cst_35 {dimension_numbers = #tpu.dot_dimension_numbers<[1], [0], [0], [1], [0, 0, 1, 1], [], []>} : vector<16x2xbf16>, vector<2x128xbf16>, vector<16x128xf32> -> vector<16x128xf32>
    %c0_36 = arith.constant 0 : index
    %c0_37 = arith.constant 0 : index
    %90 = vector.load %arg9[%c0_36, %c0_37] : memref<1x128xf32, #tpu.memory_space<vmem>>, vector<1x128xf32>
    %91 = vector.broadcast %90 : vector<1x128xf32> to vector<16x128xf32>
    %92 = arith.mulf %91, %82 : vector<16x128xf32>
    %cst_38 = arith.constant 9.99999974E-6 : f32
    %93 = vector.broadcast %cst_38 : f32 to vector<16x128xf32>
    %94 = arith.addf %89, %93 : vector<16x128xf32>
    %95 = math.rsqrt %94 : vector<16x128xf32>
    %96 = arith.mulf %92, %95 : vector<16x128xf32>
    %c0_39 = arith.constant 0 : index
    %c0_40 = arith.constant 0 : index
    %97 = vector.load %arg10[%c0_39, %c0_40] : memref<1x128xf32, #tpu.memory_space<vmem>>, vector<1x128xf32>
    %98 = vector.broadcast %97 : vector<1x128xf32> to vector<16x128xf32>
    %99 = arith.addf %96, %98 : vector<16x128xf32>
    %cst_41 = arith.constant 0.000000e+00 : f32
    %100 = vector.broadcast %cst_41 : f32 to vector<16x128xf32>
    %101 = arith.maximumf %99, %100 : vector<16x128xf32>
    %102 = arith.truncf %101 : vector<16x128xf32> to vector<16x128xbf16>
    %c0_42 = arith.constant 0 : index
    %c0_43 = arith.constant 0 : index
    %103 = vector.load %arg12[%c0_42, %c0_43] : memref<128x128xbf16, #tpu.memory_space<vmem>>, vector<128x128xbf16>
    %cst_44 = arith.constant dense<0.000000e+00> : vector<16x128xf32>
    %104 = tpu.matmul %102, %103, %cst_44 {dimension_numbers = #tpu.dot_dimension_numbers<[1], [0], [0], [1], [0, 0, 1, 1], [], []>} : vector<16x128xbf16>, vector<128x128xbf16>, vector<16x128xf32> -> vector<16x128xf32>
    %c0_45 = arith.constant 0 : index
    %c0_46 = arith.constant 0 : index
    %105 = vector.load %arg13[%c0_45, %c0_46] : memref<1x128xf32, #tpu.memory_space<vmem>>, vector<1x128xf32>
    %106 = vector.broadcast %105 : vector<1x128xf32> to vector<16x128xf32>
    %107 = arith.addf %104, %106 : vector<16x128xf32>
    %108 = vector.extract_strided_slice %107 {offsets = [0, 0], sizes = [16, 64], strides = [1, 1]} : vector<16x128xf32> to vector<16x64xf32>
    %109 = vector.extract_strided_slice %107 {offsets = [0, 64], sizes = [16, 64], strides = [1, 1]} : vector<16x128xf32> to vector<16x64xf32>
    %110 = vector.shape_cast %109 : vector<16x64xf32> to vector<16x1x64xf32>
    %111 = vector.shape_cast %108 : vector<16x64xf32> to vector<1x16x64xf32>
    %112 = vector.broadcast %110 : vector<16x1x64xf32> to vector<16x16x64xf32>
    %113 = vector.broadcast %111 : vector<1x16x64xf32> to vector<16x16x64xf32>
    %114 = arith.addf %112, %113 : vector<16x16x64xf32>
    %cst_47 = arith.constant 0.000000e+00 : f32
    %115 = vector.broadcast %cst_47 : f32 to vector<16x16x64xf32>
    %116 = arith.cmpf ogt, %114, %115 : vector<16x16x64xf32>
    %cst_48 = arith.constant 2.000000e-01 : f32
    %117 = vector.broadcast %cst_48 : f32 to vector<16x16x64xf32>
    %118 = arith.mulf %117, %114 : vector<16x16x64xf32>
    %119 = arith.select %116, %114, %118 : vector<16x16x64xi1>, vector<16x16x64xf32>
    %120 = vector.shape_cast %119 : vector<16x16x64xf32> to vector<256x64xf32>
    %c0_49 = arith.constant 0 : index
    %c0_50 = arith.constant 0 : index
    %121 = vector.load %arg14[%c0_49, %c0_50] : memref<64x2xf32, #tpu.memory_space<vmem>>, vector<64x2xf32>
    %cst_51 = arith.constant dense<0.000000e+00> : vector<256x2xf32>
    %122 = tpu.matmul %120, %121, %cst_51 {dimension_numbers = #tpu.dot_dimension_numbers<[1], [0], [0], [1], [0, 0, 1, 1], [], []>} : vector<256x64xf32>, vector<64x2xf32>, vector<256x2xf32> -> vector<256x2xf32>
    %123 = vector.shape_cast %122 : vector<256x2xf32> to vector<16x16x2xf32>
    %124 = arith.truncf %108 : vector<16x64xf32> to vector<16x64xbf16>
    %125 = tpu.iota {dimensions = array<i32: 0>} : vector<64x64xi32>
    %126 = tpu.iota {dimensions = array<i32: 1>} : vector<64x64xi32>
    %127 = arith.cmpi eq, %125, %126 : vector<64x64xi32>
    %128 = arith.extui %127 : vector<64x64xi1> to vector<64x64xi32>
    %129 = arith.sitofp %128 : vector<64x64xi32> to vector<64x64xf32>
    %130 = vector.extract_strided_slice %123 {offsets = [0, 0, 0], sizes = [16, 16, 1], strides = [1, 1, 1]} : vector<16x16x2xf32> to vector<16x16x1xf32>
    %cst_52 = arith.constant dense<0.000000e+00> : vector<16x16xf32>
    %131 = vector.multi_reduction <add>, %130, %cst_52 [2] : vector<16x16x1xf32> to vector<16x16xf32>
    %132 = arith.addf %131, %0 : vector<16x16xf32>
    %cst_53 = arith.constant dense<0xFF800000> : vector<16xf32>
    %133 = vector.multi_reduction <maximumf>, %132, %cst_53 [1] : vector<16x16xf32> to vector<16xf32>
    %134 = vector.shape_cast %133 : vector<16xf32> to vector<16x1xf32>
    %135 = vector.broadcast %134 : vector<16x1xf32> to vector<16x16xf32>
    %136 = arith.subf %132, %135 : vector<16x16xf32>
    %137 = math.exp %136 : vector<16x16xf32>
    %cst_54 = arith.constant dense<0.000000e+00> : vector<16xf32>
    %138 = vector.multi_reduction <add>, %137, %cst_54 [1] : vector<16x16xf32> to vector<16xf32>
    %139 = vector.shape_cast %138 : vector<16xf32> to vector<16x1xf32>
    %140 = tpu.reciprocal %139 {approx = true} : vector<16x1xf32> -> vector<16x1xf32>
    %141 = vector.broadcast %140 : vector<16x1xf32> to vector<16x16xf32>
    %142 = arith.mulf %137, %141 : vector<16x16xf32>
    %143 = arith.truncf %142 : vector<16x16xf32> to vector<16x16xbf16>
    %144 = vector.extract_strided_slice %124 {offsets = [0, 0], sizes = [16, 32], strides = [1, 1]} : vector<16x64xbf16> to vector<16x32xbf16>
    %cst_55 = arith.constant dense<0.000000e+00> : vector<16x32xf32>
    %145 = tpu.matmul %143, %144, %cst_55 {dimension_numbers = #tpu.dot_dimension_numbers<[1], [0], [0], [1], [0, 0, 1, 1], [], []>} : vector<16x16xbf16>, vector<16x32xbf16>, vector<16x32xf32> -> vector<16x32xf32>
    %146 = vector.extract_strided_slice %129 {offsets = [0, 0], sizes = [32, 64], strides = [1, 1]} : vector<64x64xf32> to vector<32x64xf32>
    %cst_56 = arith.constant dense<0.000000e+00> : vector<16x64xf32>
    %147 = tpu.matmul %145, %146, %cst_56 {dimension_numbers = #tpu.dot_dimension_numbers<[1], [0], [0], [1], [0, 0, 1, 1], [], []>} : vector<16x32xf32>, vector<32x64xf32>, vector<16x64xf32> -> vector<16x64xf32>
    %148 = vector.extract_strided_slice %123 {offsets = [0, 0, 1], sizes = [16, 16, 1], strides = [1, 1, 1]} : vector<16x16x2xf32> to vector<16x16x1xf32>
    %cst_57 = arith.constant dense<0.000000e+00> : vector<16x16xf32>
    %149 = vector.multi_reduction <add>, %148, %cst_57 [2] : vector<16x16x1xf32> to vector<16x16xf32>
    %150 = arith.addf %149, %0 : vector<16x16xf32>
    %cst_58 = arith.constant dense<0xFF800000> : vector<16xf32>
    %151 = vector.multi_reduction <maximumf>, %150, %cst_58 [1] : vector<16x16xf32> to vector<16xf32>
    %152 = vector.shape_cast %151 : vector<16xf32> to vector<16x1xf32>
    %153 = vector.broadcast %152 : vector<16x1xf32> to vector<16x16xf32>
    %154 = arith.subf %150, %153 : vector<16x16xf32>
    %155 = math.exp %154 : vector<16x16xf32>
    %cst_59 = arith.constant dense<0.000000e+00> : vector<16xf32>
    %156 = vector.multi_reduction <add>, %155, %cst_59 [1] : vector<16x16xf32> to vector<16xf32>
    %157 = vector.shape_cast %156 : vector<16xf32> to vector<16x1xf32>
    %158 = tpu.reciprocal %157 {approx = true} : vector<16x1xf32> -> vector<16x1xf32>
    %159 = vector.broadcast %158 : vector<16x1xf32> to vector<16x16xf32>
    %160 = arith.mulf %155, %159 : vector<16x16xf32>
    %161 = arith.truncf %160 : vector<16x16xf32> to vector<16x16xbf16>
    %162 = vector.extract_strided_slice %124 {offsets = [0, 32], sizes = [16, 32], strides = [1, 1]} : vector<16x64xbf16> to vector<16x32xbf16>
    %cst_60 = arith.constant dense<0.000000e+00> : vector<16x32xf32>
    %163 = tpu.matmul %161, %162, %cst_60 {dimension_numbers = #tpu.dot_dimension_numbers<[1], [0], [0], [1], [0, 0, 1, 1], [], []>} : vector<16x16xbf16>, vector<16x32xbf16>, vector<16x32xf32> -> vector<16x32xf32>
    %164 = vector.extract_strided_slice %129 {offsets = [32, 0], sizes = [32, 64], strides = [1, 1]} : vector<64x64xf32> to vector<32x64xf32>
    %cst_61 = arith.constant dense<0.000000e+00> : vector<16x64xf32>
    %165 = tpu.matmul %163, %164, %cst_61 {dimension_numbers = #tpu.dot_dimension_numbers<[1], [0], [0], [1], [0, 0, 1, 1], [], []>} : vector<16x32xf32>, vector<32x64xf32>, vector<16x64xf32> -> vector<16x64xf32>
    %166 = arith.addf %147, %165 : vector<16x64xf32>
    %c0_62 = arith.constant 0 : index
    %c0_63 = arith.constant 0 : index
    %167 = vector.load %arg15[%c0_62, %c0_63] : memref<1x64xf32, #tpu.memory_space<vmem>>, vector<1x64xf32>
    %168 = vector.broadcast %167 : vector<1x64xf32> to vector<16x64xf32>
    %169 = arith.addf %166, %168 : vector<16x64xf32>
    %170 = arith.truncf %169 : vector<16x64xf32> to vector<16x64xbf16>
    %cst_64 = arith.constant dense<0.000000e+00> : vector<2x64xf32>
    %171 = tpu.matmul %1, %170, %cst_64 {dimension_numbers = #tpu.dot_dimension_numbers<[1], [0], [0], [1], [0, 0, 1, 1], [], []>} : vector<2x16xbf16>, vector<16x64xbf16>, vector<2x64xf32> -> vector<2x64xf32>
    %172 = vector.broadcast %3 : vector<2x1xf32> to vector<2x64xf32>
    %173 = arith.mulf %171, %172 : vector<2x64xf32>
    %174 = arith.truncf %173 : vector<2x64xf32> to vector<2x64xbf16>
    %cst_65 = arith.constant dense<0.000000e+00> : vector<16x64xf32>
    %175 = tpu.matmul %2, %174, %cst_65 {dimension_numbers = #tpu.dot_dimension_numbers<[1], [0], [0], [1], [0, 0, 1, 1], [], []>} : vector<16x2xbf16>, vector<2x64xbf16>, vector<16x64xf32> -> vector<16x64xf32>
    %c0_66 = arith.constant 0 : index
    %c0_67 = arith.constant 0 : index
    %176 = vector.load %arg18[%c0_66, %c0_67] : memref<1x64xf32, #tpu.memory_space<vmem>>, vector<1x64xf32>
    %177 = vector.broadcast %176 : vector<1x64xf32> to vector<16x64xf32>
    %178 = arith.mulf %175, %177 : vector<16x64xf32>
    %179 = arith.subf %169, %178 : vector<16x64xf32>
    %180 = arith.mulf %179, %179 : vector<16x64xf32>
    %181 = arith.truncf %180 : vector<16x64xf32> to vector<16x64xbf16>
    %cst_68 = arith.constant dense<0.000000e+00> : vector<2x64xf32>
    %182 = tpu.matmul %1, %181, %cst_68 {dimension_numbers = #tpu.dot_dimension_numbers<[1], [0], [0], [1], [0, 0, 1, 1], [], []>} : vector<2x16xbf16>, vector<16x64xbf16>, vector<2x64xf32> -> vector<2x64xf32>
    %183 = vector.broadcast %3 : vector<2x1xf32> to vector<2x64xf32>
    %184 = arith.mulf %182, %183 : vector<2x64xf32>
    %185 = arith.truncf %184 : vector<2x64xf32> to vector<2x64xbf16>
    %cst_69 = arith.constant dense<0.000000e+00> : vector<16x64xf32>
    %186 = tpu.matmul %2, %185, %cst_69 {dimension_numbers = #tpu.dot_dimension_numbers<[1], [0], [0], [1], [0, 0, 1, 1], [], []>} : vector<16x2xbf16>, vector<2x64xbf16>, vector<16x64xf32> -> vector<16x64xf32>
    %c0_70 = arith.constant 0 : index
    %c0_71 = arith.constant 0 : index
    %187 = vector.load %arg16[%c0_70, %c0_71] : memref<1x64xf32, #tpu.memory_space<vmem>>, vector<1x64xf32>
    %188 = vector.broadcast %187 : vector<1x64xf32> to vector<16x64xf32>
    %189 = arith.mulf %188, %179 : vector<16x64xf32>
    %cst_72 = arith.constant 9.99999974E-6 : f32
    %190 = vector.broadcast %cst_72 : f32 to vector<16x64xf32>
    %191 = arith.addf %186, %190 : vector<16x64xf32>
    %192 = math.rsqrt %191 : vector<16x64xf32>
    %193 = arith.mulf %189, %192 : vector<16x64xf32>
    %c0_73 = arith.constant 0 : index
    %c0_74 = arith.constant 0 : index
    %194 = vector.load %arg17[%c0_73, %c0_74] : memref<1x64xf32, #tpu.memory_space<vmem>>, vector<1x64xf32>
    %195 = vector.broadcast %194 : vector<1x64xf32> to vector<16x64xf32>
    %196 = arith.addf %193, %195 : vector<16x64xf32>
    %cst_75 = arith.constant 0.000000e+00 : f32
    %197 = vector.broadcast %cst_75 : f32 to vector<16x64xf32>
    %198 = arith.maximumf %196, %197 : vector<16x64xf32>
    %199 = arith.truncf %198 : vector<16x64xf32> to vector<16x64xbf16>
    %c0_76 = arith.constant 0 : index
    %c0_77 = arith.constant 0 : index
    %200 = vector.load %arg19[%c0_76, %c0_77] : memref<64x64xbf16, #tpu.memory_space<vmem>>, vector<64x64xbf16>
    %cst_78 = arith.constant dense<0.000000e+00> : vector<16x64xf32>
    %201 = tpu.matmul %199, %200, %cst_78 {dimension_numbers = #tpu.dot_dimension_numbers<[1], [0], [0], [1], [0, 0, 1, 1], [], []>} : vector<16x64xbf16>, vector<64x64xbf16>, vector<16x64xf32> -> vector<16x64xf32>
    %c0_79 = arith.constant 0 : index
    %c0_80 = arith.constant 0 : index
    %202 = vector.load %arg20[%c0_79, %c0_80] : memref<1x64xf32, #tpu.memory_space<vmem>>, vector<1x64xf32>
    %203 = vector.broadcast %202 : vector<1x64xf32> to vector<16x64xf32>
    %204 = arith.addf %201, %203 : vector<16x64xf32>
    %205 = vector.extract_strided_slice %204 {offsets = [0, 0], sizes = [16, 32], strides = [1, 1]} : vector<16x64xf32> to vector<16x32xf32>
    %206 = vector.extract_strided_slice %204 {offsets = [0, 32], sizes = [16, 32], strides = [1, 1]} : vector<16x64xf32> to vector<16x32xf32>
    %207 = vector.shape_cast %206 : vector<16x32xf32> to vector<16x1x32xf32>
    %208 = vector.shape_cast %205 : vector<16x32xf32> to vector<1x16x32xf32>
    %209 = vector.broadcast %207 : vector<16x1x32xf32> to vector<16x16x32xf32>
    %210 = vector.broadcast %208 : vector<1x16x32xf32> to vector<16x16x32xf32>
    %211 = arith.addf %209, %210 : vector<16x16x32xf32>
    %cst_81 = arith.constant 0.000000e+00 : f32
    %212 = vector.broadcast %cst_81 : f32 to vector<16x16x32xf32>
    %213 = arith.cmpf ogt, %211, %212 : vector<16x16x32xf32>
    %cst_82 = arith.constant 2.000000e-01 : f32
    %214 = vector.broadcast %cst_82 : f32 to vector<16x16x32xf32>
    %215 = arith.mulf %214, %211 : vector<16x16x32xf32>
    %216 = arith.select %213, %211, %215 : vector<16x16x32xi1>, vector<16x16x32xf32>
    %217 = vector.shape_cast %216 : vector<16x16x32xf32> to vector<256x32xf32>
    %c0_83 = arith.constant 0 : index
    %c0_84 = arith.constant 0 : index
    %218 = vector.load %arg21[%c0_83, %c0_84] : memref<32x2xf32, #tpu.memory_space<vmem>>, vector<32x2xf32>
    %cst_85 = arith.constant dense<0.000000e+00> : vector<256x2xf32>
    %219 = tpu.matmul %217, %218, %cst_85 {dimension_numbers = #tpu.dot_dimension_numbers<[1], [0], [0], [1], [0, 0, 1, 1], [], []>} : vector<256x32xf32>, vector<32x2xf32>, vector<256x2xf32> -> vector<256x2xf32>
    %220 = vector.shape_cast %219 : vector<256x2xf32> to vector<16x16x2xf32>
    %221 = arith.truncf %205 : vector<16x32xf32> to vector<16x32xbf16>
    %222 = vector.extract_strided_slice %220 {offsets = [0, 0, 0], sizes = [16, 16, 1], strides = [1, 1, 1]} : vector<16x16x2xf32> to vector<16x16x1xf32>
    %cst_86 = arith.constant dense<0.000000e+00> : vector<16x16xf32>
    %223 = vector.multi_reduction <add>, %222, %cst_86 [2] : vector<16x16x1xf32> to vector<16x16xf32>
    %224 = arith.addf %223, %0 : vector<16x16xf32>
    %cst_87 = arith.constant dense<0xFF800000> : vector<16xf32>
    %225 = vector.multi_reduction <maximumf>, %224, %cst_87 [1] : vector<16x16xf32> to vector<16xf32>
    %226 = vector.shape_cast %225 : vector<16xf32> to vector<16x1xf32>
    %227 = vector.broadcast %226 : vector<16x1xf32> to vector<16x16xf32>
    %228 = arith.subf %224, %227 : vector<16x16xf32>
    %229 = math.exp %228 : vector<16x16xf32>
    %cst_88 = arith.constant dense<0.000000e+00> : vector<16xf32>
    %230 = vector.multi_reduction <add>, %229, %cst_88 [1] : vector<16x16xf32> to vector<16xf32>
    %231 = vector.shape_cast %230 : vector<16xf32> to vector<16x1xf32>
    %232 = tpu.reciprocal %231 {approx = true} : vector<16x1xf32> -> vector<16x1xf32>
    %233 = vector.broadcast %232 : vector<16x1xf32> to vector<16x16xf32>
    %234 = arith.mulf %229, %233 : vector<16x16xf32>
    %235 = arith.truncf %234 : vector<16x16xf32> to vector<16x16xbf16>
    %236 = vector.extract_strided_slice %221 {offsets = [0, 0], sizes = [16, 16], strides = [1, 1]} : vector<16x32xbf16> to vector<16x16xbf16>
    %cst_89 = arith.constant dense<0.000000e+00> : vector<16x16xf32>
    %237 = tpu.matmul %235, %236, %cst_89 {dimension_numbers = #tpu.dot_dimension_numbers<[1], [0], [0], [1], [0, 0, 1, 1], [], []>} : vector<16x16xbf16>, vector<16x16xbf16>, vector<16x16xf32> -> vector<16x16xf32>
    %238 = vector.extract_strided_slice %220 {offsets = [0, 0, 1], sizes = [16, 16, 1], strides = [1, 1, 1]} : vector<16x16x2xf32> to vector<16x16x1xf32>
    %cst_90 = arith.constant dense<0.000000e+00> : vector<16x16xf32>
    %239 = vector.multi_reduction <add>, %238, %cst_90 [2] : vector<16x16x1xf32> to vector<16x16xf32>
    %240 = arith.addf %239, %0 : vector<16x16xf32>
    %cst_91 = arith.constant dense<0xFF800000> : vector<16xf32>
    %241 = vector.multi_reduction <maximumf>, %240, %cst_91 [1] : vector<16x16xf32> to vector<16xf32>
    %242 = vector.shape_cast %241 : vector<16xf32> to vector<16x1xf32>
    %243 = vector.broadcast %242 : vector<16x1xf32> to vector<16x16xf32>
    %244 = arith.subf %240, %243 : vector<16x16xf32>
    %245 = math.exp %244 : vector<16x16xf32>
    %cst_92 = arith.constant dense<0.000000e+00> : vector<16xf32>
    %246 = vector.multi_reduction <add>, %245, %cst_92 [1] : vector<16x16xf32> to vector<16xf32>
    %247 = vector.shape_cast %246 : vector<16xf32> to vector<16x1xf32>
    %248 = tpu.reciprocal %247 {approx = true} : vector<16x1xf32> -> vector<16x1xf32>
    %249 = vector.broadcast %248 : vector<16x1xf32> to vector<16x16xf32>
    %250 = arith.mulf %245, %249 : vector<16x16xf32>
    %251 = arith.truncf %250 : vector<16x16xf32> to vector<16x16xbf16>
    %252 = vector.extract_strided_slice %221 {offsets = [0, 16], sizes = [16, 16], strides = [1, 1]} : vector<16x32xbf16> to vector<16x16xbf16>
    %cst_93 = arith.constant dense<0.000000e+00> : vector<16x16xf32>
    %253 = tpu.matmul %251, %252, %cst_93 {dimension_numbers = #tpu.dot_dimension_numbers<[1], [0], [0], [1], [0, 0, 1, 1], [], []>} : vector<16x16xbf16>, vector<16x16xbf16>, vector<16x16xf32> -> vector<16x16xf32>
    %254 = arith.addf %237, %253 : vector<16x16xf32>
    %cst_94 = arith.constant 5.000000e-01 : f32
    %255 = vector.broadcast %cst_94 : f32 to vector<16x16xf32>
    %256 = arith.mulf %254, %255 : vector<16x16xf32>
    %c0_95 = arith.constant 0 : index
    %c0_96 = arith.constant 0 : index
    %257 = vector.load %arg22[%c0_95, %c0_96] : memref<1x16xf32, #tpu.memory_space<vmem>>, vector<1x16xf32>
    %258 = vector.broadcast %257 : vector<1x16xf32> to vector<16x16xf32>
    %259 = arith.addf %256, %258 : vector<16x16xf32>
    %260 = arith.truncf %259 : vector<16x16xf32> to vector<16x16xbf16>
    %cst_97 = arith.constant dense<0.000000e+00> : vector<2x16xf32>
    %261 = tpu.matmul %1, %260, %cst_97 {dimension_numbers = #tpu.dot_dimension_numbers<[1], [0], [0], [1], [0, 0, 1, 1], [], []>} : vector<2x16xbf16>, vector<16x16xbf16>, vector<2x16xf32> -> vector<2x16xf32>
    %262 = vector.broadcast %3 : vector<2x1xf32> to vector<2x16xf32>
    %263 = arith.mulf %261, %262 : vector<2x16xf32>
    %264 = arith.truncf %263 : vector<2x16xf32> to vector<2x16xbf16>
    %cst_98 = arith.constant dense<0.000000e+00> : vector<16x16xf32>
    %265 = tpu.matmul %2, %264, %cst_98 {dimension_numbers = #tpu.dot_dimension_numbers<[1], [0], [0], [1], [0, 0, 1, 1], [], []>} : vector<16x2xbf16>, vector<2x16xbf16>, vector<16x16xf32> -> vector<16x16xf32>
    %c0_99 = arith.constant 0 : index
    %c0_100 = arith.constant 0 : index
    %266 = vector.load %arg25[%c0_99, %c0_100] : memref<1x16xf32, #tpu.memory_space<vmem>>, vector<1x16xf32>
    %267 = vector.broadcast %266 : vector<1x16xf32> to vector<16x16xf32>
    %268 = arith.mulf %265, %267 : vector<16x16xf32>
    %269 = arith.subf %259, %268 : vector<16x16xf32>
    %270 = arith.mulf %269, %269 : vector<16x16xf32>
    %271 = arith.truncf %270 : vector<16x16xf32> to vector<16x16xbf16>
    %cst_101 = arith.constant dense<0.000000e+00> : vector<2x16xf32>
    %272 = tpu.matmul %1, %271, %cst_101 {dimension_numbers = #tpu.dot_dimension_numbers<[1], [0], [0], [1], [0, 0, 1, 1], [], []>} : vector<2x16xbf16>, vector<16x16xbf16>, vector<2x16xf32> -> vector<2x16xf32>
    %273 = vector.broadcast %3 : vector<2x1xf32> to vector<2x16xf32>
    %274 = arith.mulf %272, %273 : vector<2x16xf32>
    %275 = arith.truncf %274 : vector<2x16xf32> to vector<2x16xbf16>
    %cst_102 = arith.constant dense<0.000000e+00> : vector<16x16xf32>
    %276 = tpu.matmul %2, %275, %cst_102 {dimension_numbers = #tpu.dot_dimension_numbers<[1], [0], [0], [1], [0, 0, 1, 1], [], []>} : vector<16x2xbf16>, vector<2x16xbf16>, vector<16x16xf32> -> vector<16x16xf32>
    %c0_103 = arith.constant 0 : index
    %c0_104 = arith.constant 0 : index
    %277 = vector.load %arg23[%c0_103, %c0_104] : memref<1x16xf32, #tpu.memory_space<vmem>>, vector<1x16xf32>
    %278 = vector.broadcast %277 : vector<1x16xf32> to vector<16x16xf32>
    %279 = arith.mulf %278, %269 : vector<16x16xf32>
    %cst_105 = arith.constant 9.99999974E-6 : f32
    %280 = vector.broadcast %cst_105 : f32 to vector<16x16xf32>
    %281 = arith.addf %276, %280 : vector<16x16xf32>
    %282 = math.rsqrt %281 : vector<16x16xf32>
    %283 = arith.mulf %279, %282 : vector<16x16xf32>
    %c0_106 = arith.constant 0 : index
    %c0_107 = arith.constant 0 : index
    %284 = vector.load %arg24[%c0_106, %c0_107] : memref<1x16xf32, #tpu.memory_space<vmem>>, vector<1x16xf32>
    %285 = vector.broadcast %284 : vector<1x16xf32> to vector<16x16xf32>
    %286 = arith.addf %283, %285 : vector<16x16xf32>
    %cst_108 = arith.constant 0.000000e+00 : f32
    %287 = vector.broadcast %cst_108 : f32 to vector<16x16xf32>
    %288 = arith.maximumf %286, %287 : vector<16x16xf32>
    %289 = arith.truncf %288 : vector<16x16xf32> to vector<16x16xbf16>
    %cst_109 = arith.constant dense<0.000000e+00> : vector<2x16xf32>
    %290 = tpu.matmul %1, %289, %cst_109 {dimension_numbers = #tpu.dot_dimension_numbers<[1], [0], [0], [1], [0, 0, 1, 1], [], []>} : vector<2x16xbf16>, vector<16x16xbf16>, vector<2x16xf32> -> vector<2x16xf32>
    %291 = vector.broadcast %3 : vector<2x1xf32> to vector<2x16xf32>
    %292 = arith.mulf %290, %291 : vector<2x16xf32>
    %c0_110 = arith.constant 0 : index
    %c0_111 = arith.constant 0 : index
    %293 = vector.load %arg29[%c0_110, %c0_111] : memref<2x16xf32, #tpu.memory_space<vmem>>, vector<2x16xf32>
    tpu.vector_store %arg29[%c0_110, %c0_111], %292 {strides = array<i32>} : memref<2x16xf32, #tpu.memory_space<vmem>>, vector<2x16xf32>,
    %c0_112 = arith.constant 0 : index
    %c0_113 = arith.constant 0 : index
    %294 = vector.load %arg26[%c0_112, %c0_113] : memref<16x3xf32, #tpu.memory_space<vmem>>, vector<16x3xf32>
    %cst_114 = arith.constant dense<0.000000e+00> : vector<2x3xf32>
    %295 = tpu.matmul %292, %294, %cst_114 {dimension_numbers = #tpu.dot_dimension_numbers<[1], [0], [0], [1], [0, 0, 1, 1], [], []>} : vector<2x16xf32>, vector<16x3xf32>, vector<2x3xf32> -> vector<2x3xf32>
    %c0_115 = arith.constant 0 : index
    %c0_116 = arith.constant 0 : index
    %296 = vector.load %arg27[%c0_115, %c0_116] : memref<1x3xf32, #tpu.memory_space<vmem>>, vector<1x3xf32>
    %297 = vector.broadcast %296 : vector<1x3xf32> to vector<2x3xf32>
    %298 = arith.addf %295, %297 : vector<2x3xf32>
    %c0_117 = arith.constant 0 : index
    %c0_118 = arith.constant 0 : index
    %299 = vector.load %arg28[%c0_117, %c0_118] : memref<2x3xf32, #tpu.memory_space<vmem>>, vector<2x3xf32>
    tpu.vector_store %arg28[%c0_117, %c0_118], %298 {strides = array<i32>} : memref<2x3xf32, #tpu.memory_space<vmem>>, vector<2x3xf32>,
    return
  }
}

</mosaic_0001>

<bundles_post_ra>
// kernel: simple_gat_forward.1
= control target key start
LH: loop header
LB: loop body
LE: loop exit
PB: predicated region body
PF: predicated region fallthrough
CT: control target
= control target key end

     0   :  { %s13080_s6 = smov 1   ;;  %s13081_s10 = smov 2   ;;  %s17735_s0 = inlined_call_operand.smem [shape: u32[30], index: -1, kind: input, shape index: {}] }
   0x1   :  { %s13130_s5 = sld [smem:[%s17735_s0]]   ;;  %s13082_s14 = smov 3  }
   0x2   :  { %s13135_s9 = sld [smem:[%s17735_s0 + %s13080_s6]]   ;;  %s13083_s18 = smov 4  }
   0x3   :  { %s13140_s13 = sld [smem:[%s17735_s0 + %s13081_s10]]   ;;  %s13084_s22 = smov 5  }
   0x4   :  { %s13145_s17 = sld [smem:[%s17735_s0 + %s13082_s14]]   ;;  %s13085_s26 = smov 6  }
   0x5   :  { %s13150_s21 = sld [smem:[%s17735_s0 + %s13083_s18]]   ;;  %s13086_s30 = smov 7  }
   0x6   :  { %s13155_s25 = sld [smem:[%s17735_s0 + %s13084_s22]]   ;;  %s13087_s4 = smov 8  }
   0x7   :  { %s13160_s29 = sld [smem:[%s17735_s0 + %s13085_s26]]   ;;  %s13088_s10 = smov 9  }
   0x8   :  { %s13165_s3 = sld [smem:[%s17735_s0 + %s13086_s30]]   ;;  %s13089_s15 = smov 10  }
   0x9   :  { %s13170_s8 = sld [smem:[%s17735_s0 + %s13087_s4]]   ;;  %s13090_s20 = smov 11  }
   0xa   :  { %s13175_s14 = sld [smem:[%s17735_s0 + %s13088_s10]]   ;;  %s13091_s26 = smov 12  }
   0xb   :  { %s13180_s19 = sld [smem:[%s17735_s0 + %s13089_s15]]   ;;  %s13092_s1 = smov 13  }
   0xc   :  { %s13185_s24 = sld [smem:[%s17735_s0 + %s13090_s20]]   ;;  %s13093_s7 = smov 14  }
   0xd   :  { %s13190_s30 = sld [smem:[%s17735_s0 + %s13091_s26]]   ;;  %s13094_s15 = smov 15  }
   0xe   :  { %s13195_s6 = sld [smem:[%s17735_s0 + %s13092_s1]]   ;;  %s13095_s22 = smov 16  }
   0xf   :  { %s13200_s12 = sld [smem:[%s17735_s0 + %s13093_s7]]   ;;  %s13096_s28 = smov 17  }
  0x10   :  { %s13205_s20 = sld [smem:[%s17735_s0 + %s13094_s15]]   ;;  %s13097_s7 = smov 18  }
  0x11   :  { %s13210_s27 = sld [smem:[%s17735_s0 + %s13095_s22]]   ;;  %s13098_s15 = smov 19  }
  0x12   :  { %s13215_s4 = sld [smem:[%s17735_s0 + %s13096_s28]]   ;;  %s13099_s22 = smov 20  }
  0x13   :  { %s13100_s28 = smov 21  }
  0x15   :  { %18088 = sst [smem:[#allocation8_spill]] %s13200_s12 }
  0x16   :  { %18089 = sst [smem:[#allocation9_spill]] %s13205_s20 }
  0x17   :  { %18090 = sst [smem:[#allocation10_spill]] %s13210_s27 }
  0x18   :  { %18091 = sst [smem:[#allocation11_spill]] %s13215_s4 }
  0x19   :  { %s13220_s12 = sld [smem:[%s17735_s0 + %s13097_s7]]   ;;  %s13101_s7 = smov 22  }
  0x1a   :  { %s13225_s20 = sld [smem:[%s17735_s0 + %s13098_s15]]   ;;  %s13102_s15 = smov 23  }
  0x1b   :  { %s13230_s27 = sld [smem:[%s17735_s0 + %s13099_s22]]   ;;  %s13103_s22 = smov 24  }
  0x1c   :  { %s13235_s4 = sld [smem:[%s17735_s0 + %s13100_s28]]   ;;  %s13104_s28 = smov 25  }
  0x1f   :  { %18092 = sst [smem:[#allocation12_spill]] %s13220_s12 }
  0x20   :  { %18093 = sst [smem:[#allocation13_spill]] %s13225_s20 }
  0x21   :  { %18094 = sst [smem:[#allocation14_spill]] %s13230_s27 }
  0x22   :  { %18095 = sst [smem:[#allocation15_spill]] %s13235_s4 }
  0x23   :  { %s13240_s12 = sld [smem:[%s17735_s0 + %s13101_s7]]   ;;  %s13105_s7 = smov 26  }
  0x24   :  { %s13245_s20 = sld [smem:[%s17735_s0 + %s13102_s15]]   ;;  %s13106_s15 = smov 27  }
  0x25   :  { %s13250_s27 = sld [smem:[%s17735_s0 + %s13103_s22]]   ;;  %s13107_s22 = smov 28  }
  0x26   :  { %s13255_s4 = sld [smem:[%s17735_s0 + %s13104_s28]]   ;;  %s13108_s28 = smov 29  }
  0x29   :  { %18096 = sst [smem:[#allocation16_spill]] %s13240_s12 }
  0x2a   :  { %18097 = sst [smem:[#allocation17_spill]] %s13245_s20 }
  0x2b   :  { %18098 = sst [smem:[#allocation18_spill]] %s13250_s27 }
  0x2c   :  { %18099 = sst [smem:[#allocation19_spill]] %s13255_s4 }
  0x2d   :  { %s13260_s12 = sld [smem:[%s17735_s0 + %s13105_s7]]  }
  0x2e   :  { %s13265_s20 = sld [smem:[%s17735_s0 + %s13106_s15]]  }
  0x2f   :  { %s13270_s27 = sld [smem:[%s17735_s0 + %s13107_s22]]  }
  0x30   :  { %s13275_s4 = sld [smem:[%s17735_s0 + %s13108_s28]]  }
  0x31   :  { %65 = vsyncpa [#allocation3], 0  ;;  %v133_v0 = vld [vmem:[%s13155_s25] sm:$0xff]  ;;  %vm155_vm0 = vcmask 1043456   ;;  %v131_v2 = vld [vmem:[%s13130_s5 + $0x8] sm:$0xff]  ;;  %v17815_v5 = vmov 0  }
  0x32   :  { %v130_v1 = vld [vmem:[%s13130_s5] sm:$0xff]  ;;  %v11421_v3 = vcombine.high %v133_v0, %v133_v0  ;;  %v11420_v4 = vcombine.low %v133_v0, %v133_v0  ;;  %194 = vmatprep.mubr.bf16.mxu0 %v17815_v5  ;;  %v514_v7 = vld [vmem:[%s13165_s3 + $0x8] sm:$0xff]  ;;  %v515_v8 = vld [vmem:[%s13165_s3 + $0x10] sm:$0xff]  ;;  %12366 = vset.pattern.permute.xlu1 %v17815_v5  ;;  %vm151_vm1 = vcmask 64512  }
  0x33   :  { %v513_v6 = vld [vmem:[%s13165_s3] sm:$0xff]  ;;  %v516_v10 = vld [vmem:[%s13165_s3 + $0x18] sm:$0xff]  ;;  %v132_v12 = vpack.c.bf16 %v131_v2, %v130_v1  ;;  %v518_v15 = vld [vmem:[%s13165_s3 + $0x28] sm:$0xff] }
  0x34   :  { %v12209_v9 = vpack.c.bf16 %v514_v7, %v513_v6  ;;  %11422 = vmatprep.subr.msk.bf16.mxu0 %vm155_vm0, %v11421_v3  ;;  %v157_v11 = vsel %vm155_vm0, %v11420_v4, 0  ;;  %v12213_v13 = vpack.c.bf16 %v516_v10, %v515_v8  ;;  %v517_v14 = vld [vmem:[%s13165_s3 + $0x20] sm:$0xff]  ;;  %v519_v16 = vld [vmem:[%s13165_s3 + $0x30] sm:$0xff]  ;;  %v520_v17 = vld [vmem:[%s13165_s3 + $0x38] sm:$0xff] }
  0x35   :  { %163 = vmatpush1.bf16.msra.mxu0 %v157_v11  ;;  %v12217_v18 = vpack.c.bf16 %v518_v15, %v517_v14  ;;  %v12221_v19 = vpack.c.bf16 %v520_v17, %v519_v16 }
  0x36   :  { %12210 = vmatprep.subr.bf16.mxu1 %v12209_v9 }
  0x37   :  { %12212 = vmatpush3.bf16.msra.mxu1 %v12209_v9 }
  0x38   :  { %12214 = vmatprep.subr.bf16.mxu1 %v12213_v13  ;;  %11423 = vmatmul.mubr.msk.bf16.vlgmr.msra.gmra.mrb[0].mxu0 %vm151_vm1, %v132_v12 }
  0x3b   :  { %12216 = vmatpush3.bf16.msra.mxu1 %v12213_v13 }
  0x3c   :  { %12218 = vmatprep.subr.bf16.mxu1 %v12217_v18 }
  0x3f   :  { %12220 = vmatpush3.bf16.msra.mxu1 %v12217_v18 }
  0x40   :  { %66 = vsyncpa [#allocation5], 0  ;;  %12222 = vmatprep.subr.bf16.mxu1 %v12221_v19  ;;  %v521_v20 = vld [vmem:[%s13165_s3 + $0x40] sm:$0xff]  ;;  %v522_v21 = vld [vmem:[%s13165_s3 + $0x48] sm:$0xff]  ;;  %v17739_v28 = vmov 0.0   ;;  %v17741_v33 = vlaneseq  ;;  %s13114_s0 = smov 64  }
  0x41   :  { %v12225_v22 = vpack.c.bf16 %v522_v21, %v521_v20  ;;  %v523_v23 = vld [vmem:[%s13165_s3 + $0x50] sm:$0xff]  ;;  %v524_v24 = vld [vmem:[%s13165_s3 + $0x58] sm:$0xff]  ;;  %v525_v26 = vld [vmem:[%s13165_s3 + $0x60] sm:$0xff]  ;;  %11876 = vmatprep.subr.bf16.mxu0 %v17739_v28  ;;  %v13111_v54 = vmov 1966171168   ;;  %s18288_s5 = sld [smem:[#allocation8_spill]] }
  0x42   :  { %v12229_v25 = vpack.c.bf16 %v524_v24, %v523_v23  ;;  %v526_v27 = vld [vmem:[%s13165_s3 + $0x68] sm:$0xff]  ;;  %v527_v30 = vld [vmem:[%s13165_s3 + $0x70] sm:$0xff]  ;;  %v528_v31 = vld [vmem:[%s13165_s3 + $0x78] sm:$0xff]  ;;  %v13301_v34 = vshrl.u32 %v17741_v33, 7  ;;  %v209_v55 = vunpack.c.l.s4 %v13111_v54  ;;  %s18499_s25 = sld [smem:[#allocation12_spill]]  ;;  %s18506_s3 = sld [smem:[#allocation10_spill]] }
  0x43   :  { %12224 = vmatpush3.bf16.msra.mxu1 %v12221_v19  ;;  %v12233_v29 = vpack.c.bf16 %v526_v27, %v525_v26  ;;  %v12237_v32 = vpack.c.bf16 %v528_v31, %v527_v30  ;;  %v13310_v37 = vld [vmem:[%s13135_s9] sm:$0xff]  ;;  %v13317_v40 = vld [vmem:[%s13135_s9 + $0x8] sm:$0xff]  ;;  %s13116_s9 = smov 96   ;;  %s18738_s7 = sld [smem:[#allocation19_spill]] }
  0x44   :  { %12226 = vmatprep.subr.bf16.mxu1 %v12225_v22  ;;  %18100 = vst [vmem:[#allocation20_spill] sm:$0xff] %v13301_v34  ;;  %v13304_v35 = vsub.s32 0, %v13301_v34  ;;  %v13307_v36 = vsub.s32 1, %v13301_v34  ;;  %v13324_v43 = vsub.s32 2, %v13301_v34  ;;  %v13331_v46 = vsub.s32 3, %v13301_v34  ;;  %s13120_s10 = smov [#allocation4]  }
  0x45   :  { %v13338_v49 = vsub.s32 4, %v13301_v34  ;;  %v13345_v52 = vsub.s32 5, %v13301_v34  ;;  %v13352_v57 = vsub.s32 6, %v13301_v34  ;;  %v134_v58 = vld [vmem:[%s13160_s29] sm:$0x3]  ;;  %v210_v59 = vunpack.c.0.s8 %v209_v55  ;;  %s18504_s29 = sld [smem:[#allocation13_spill]] }
  0x46   :  { %v870_v38 = vrot.slane %v13310_v37, %v13307_v36  ;;  %v859_v39 = vrot.slane %v13310_v37, %v13304_v35  ;;  %v947_v41 = vrot.slane %v13317_v40, %v13304_v35  ;;  %v958_v42 = vrot.slane %v13317_v40, %v13307_v36  ;;  %s11379_s11 = sshll.u32 %s13120_s10, 4  ;;  %s11380_s11 = int_to_ptr.vmem [resolvable:$true] %s11379_s11 }
  0x47   :  { %12228 = vmatpush3.bf16.msra.mxu1 %v12225_v22  ;;  %v881_v44 = vrot.slane %v13310_v37, %v13324_v43  ;;  %v969_v45 = vrot.slane %v13317_v40, %v13324_v43  ;;  %v892_v47 = vrot.slane %v13310_v37, %v13331_v46  ;;  %v980_v48 = vrot.slane %v13317_v40, %v13331_v46  ;;  %s13032_s15 = scalar_lea.vmem %s11380_s11, 32  ;;  %p13037_p1 = scmp.lt.s32.totalorder %s11380_s11, %s11380_s11 }
  0x48   :  { %12230 = vmatprep.subr.bf16.mxu1 %v12229_v25  ;;  %872 = vbcast.lane.b32.xlu1 %v870_v38, 256  ;;  %18101 = vst [vmem:[#allocation21_spill] sm:$0xff] %v13338_v49  ;;  %v903_v50 = vrot.slane %v13310_v37, %v13338_v49  ;;  %v991_v51 = vrot.slane %v13317_v40, %v13338_v49  ;;  %18102 = vst [vmem:[#allocation22_spill] sm:$0xff] %v13345_v52  ;;  %v13365_v3 = vsub.s32 7, %v13301_v34  ;;  %p13033_p0 = scmp.ne.s32.totalorder %s11380_s11, %s13032_s15  ;;  %p13038_p2 = scmp.lt.s32.totalorder %s13032_s15, %s13032_s15 }
  0x49   :  { %861 = vbcast.lane.b32.xlu0 %v859_v39, 256  ;;  %v914_v53 = vrot.slane %v13310_v37, %v13345_v52  ;;  %v1002_v56 = vrot.slane %v13317_v40, %v13345_v52  ;;  %18103 = vst [vmem:[#allocation23_spill] sm:$0xff] %v13352_v57  ;;  %v925_v60 = vrot.slane %v13310_v37, %v13352_v57 }
  0x4a   :  { %v143_v61 = vrot.slane %v134_v58, %v13307_v36  ;;  %v139_v62 = vrot.slane %v134_v58, %v13304_v35  ;;  %v13360_v0 = vsub.s32 %v210_v59, %v13301_v34  ;;  %v1013_v2 = vrot.slane %v13317_v40, %v13352_v57  ;;  %18105 = vst [vmem:[#allocation25_spill] sm:$0xff] %v13365_v3  ;;  %p13039_p3 = por %p13038_p2, %p13037_p1 }
  0x4b   :  { %12232 = vmatpush3.bf16.msra.mxu1 %v12229_v25  ;;  %v936_v14 = vrot.slane %v13310_v37, %v13365_v3  ;;  %v1024_v22 = vrot.slane %v13317_v40, %v13365_v3 }
  0x4c   :  { %12234 = vmatprep.subr.bf16.mxu1 %v12233_v29  ;;  %876 = vbcast.lane.b32.xlu1 %v870_v38, 264  ;;  %18104 = vst [vmem:[#allocation24_spill] sm:$0xff] %v13360_v0  ;;  %p13040_p4 = pnand %p13039_p3, %p13033_p0 }
  0x4d   :  { %865 = vbcast.lane.b32.xlu0 %v859_v39, 264 }
  0x4f   :  { %12236 = vmatpush3.bf16.msra.mxu1 %v12233_v29 }
  0x50   :  { %12238 = vmatprep.subr.bf16.mxu1 %v12237_v32  ;;  %953 = vbcast.lane.b32.xlu1 %v947_v41, 264 }
  0x51   :  { %949 = vbcast.lane.b32.xlu0 %v947_v41, 256 }
  0x53   :  { %12240 = vmatpush3.bf16.msra.mxu1 %v12237_v32 }
  0x54   :  { %11950 = vmatprep.subr.bf16.mxu1 %v17739_v28  ;;  %964 = vbcast.lane.b32.xlu1 %v958_v42, 264 }
  0x55   :  { %960 = vbcast.lane.b32.xlu0 %v958_v42, 256 }
  0x58   :  { %887 = vbcast.lane.b32.xlu1 %v881_v44, 264 }
  0x59   :  { %883 = vbcast.lane.b32.xlu0 %v881_v44, 256 }
  0x5c   :  { %975 = vbcast.lane.b32.xlu1 %v969_v45, 264 }
  0x5d   :  { %971 = vbcast.lane.b32.xlu0 %v969_v45, 256 }
  0x60   :  { %898 = vbcast.lane.b32.xlu1 %v892_v47, 264 }
  0x61   :  { %894 = vbcast.lane.b32.xlu0 %v892_v47, 256 }
  0x64   :  { %986 = vbcast.lane.b32.xlu1 %v980_v48, 264 }
  0x65   :  { %982 = vbcast.lane.b32.xlu0 %v980_v48, 256 }
  0x68   :  { %909 = vbcast.lane.b32.xlu1 %v903_v50, 264 }
  0x69   :  { %905 = vbcast.lane.b32.xlu0 %v903_v50, 256 }
  0x6c   :  { %997 = vbcast.lane.b32.xlu1 %v991_v51, 264 }
  0x6d   :  { %993 = vbcast.lane.b32.xlu0 %v991_v51, 256 }
  0x70   :  { %920 = vbcast.lane.b32.xlu1 %v914_v53, 264 }
  0x71   :  { %916 = vbcast.lane.b32.xlu0 %v914_v53, 256 }
  0x74   :  { %1008 = vbcast.lane.b32.xlu1 %v1002_v56, 264 }
  0x75   :  { %1004 = vbcast.lane.b32.xlu0 %v1002_v56, 256 }
  0x78   :  { %931 = vbcast.lane.b32.xlu1 %v925_v60, 264 }
  0x79   :  { %927 = vbcast.lane.b32.xlu0 %v925_v60, 256 }
  0x7c   :  { %1019 = vbcast.lane.b32.xlu1 %v1013_v2, 264 }
  0x7d   :  { %1015 = vbcast.lane.b32.xlu0 %v1013_v2, 256 }
  0x80   :  { %942 = vbcast.lane.b32.xlu1 %v936_v14, 264 }
  0x81   :  { %938 = vbcast.lane.b32.xlu0 %v936_v14, 256 }
  0x84   :  { %1030 = vbcast.lane.b32.xlu1 %v1024_v22, 264 }
  0x85   :  { %1026 = vbcast.lane.b32.xlu0 %v1024_v22, 256 }
 0x10b   :  { %v196_v63 = vpop.f32.mrb[0].mxu0 }
 0x10c   :  { %v198_v1 = vpop.f32.mrb[1].mxu0  ;;  %v13367_v7 = vadd.f32 %v196_v63, %v139_v62 }
 0x10d   :  { %v199_v4 = vadd.f32 %v198_v1, %v143_v61  ;;  %v200_v6 = vpop.f32.mrb[2].mxu0 }
 0x10e   :  { %v13369_v8 = vadd.f32 %v200_v6, %v139_v62  ;;  %v202_v9 = vpop.f32.mrb[3].mxu0 }
 0x10f   :  { %v207_v10 = vcombine.high %v199_v4, %v199_v4  ;;  %v214_v11 = vrot.slane %v199_v4, %v13360_v0  ;;  %v203_v12 = vadd.f32 %v202_v9, %v143_v61 }
 0x110   :  { %v13374_v13 = vpack.c.bf16 %v13369_v8, %v13367_v7 }
 0x111   :  { %v221_v15 = vrot.slane %v207_v10, %v13360_v0  ;;  %v222_v16 = vcombine.high %v214_v11, %v214_v11  ;;  %v230_v17 = vrot.slane %v214_v11, %v13360_v0  ;;  %v263_v20 = vrot.slane %v203_v12, %v13360_v0 }
 0x112   :  { %18106 = vst [vmem:[#allocation26_spill] sm:$0xff] %v13374_v13  ;;  %11877 = vmatpush3.bf16.msra.mxu0 %v13374_v13  ;;  %v256_v25 = vcombine.high %v203_v12, %v203_v12 }
 0x113   :  { %v244_v18 = vrot.slane %v222_v16, %v13360_v0  ;;  %11882 = vmatprep.subr.bf16.mxu0 %v17739_v28  ;;  %v223_v19 = vcombine.high %v221_v15, %v221_v15  ;;  %v308_v21 = vrot.slane %v230_v17, %v13304_v35  ;;  %v252_v24 = vcombine.high %v230_v17, %v230_v17 }
 0x114   :  { %v237_v31 = vrot.slane %v221_v15, %v13360_v0  ;;  %v271_v37 = vcombine.high %v263_v20, %v263_v20  ;;  %v13395_v41 = vrot.slane %v263_v20, %v13360_v0  ;;  %v270_v1 = vrot.slane %v256_v25, %v13360_v0 }
 0x115   :  { %v312_v23 = vrot.slane %v244_v18, %v13304_v35  ;;  %v254_v26 = vcombine.high %v244_v18, %v244_v18  ;;  %v385_v27 = vadd.f32 %v308_v21, %v13367_v7  ;;  %v386_v29 = vadd.f32 %v308_v21, %v13369_v8 }
 0x116   :  { %v251_v32 = vrot.slane %v223_v19, %v13360_v0  ;;  %v316_v47 = vrot.slane %v252_v24, %v13304_v35  ;;  %v324_v53 = vrot.slane %v237_v31, %v13304_v35  ;;  %v253_v4 = vcombine.high %v237_v31, %v237_v31 }
 0x117   :  { %v387_v30 = vadd.f32 %v312_v23, %v13367_v7  ;;  %v388_v38 = vadd.f32 %v312_v23, %v13369_v8  ;;  %vm417_vm2 = vcmp.gt.f32.partialorder %v385_v27, 0.0  ;;  %v449_v39 = vmul.f32 0.2, %v385_v27 }
 0x118   :  { %vm418_vm3 = vcmp.gt.f32.partialorder %v386_v29, 0.0  ;;  %v450_v40 = vmul.f32 0.2, %v386_v29  ;;  %v320_v48 = vrot.slane %v254_v26, %v13304_v35  ;;  %v328_v54 = vrot.slane %v251_v32, %v13304_v35 }
 0x119   :  { %vm419_vm4 = vcmp.gt.f32.partialorder %v387_v30, 0.0  ;;  %v451_v42 = vmul.f32 0.2, %v387_v30  ;;  %vm420_vm5 = vcmp.gt.f32.partialorder %v388_v38, 0.0  ;;  %v481_v44 = vsel %vm417_vm2, %v385_v27, %v449_v39 }
 0x11a   :  { %v482_v45 = vsel %vm418_vm3, %v386_v29, %v450_v40  ;;  %11828 = vmatprep.mubr.f32.mxu1 %v481_v44  ;;  %v452_v51 = vmul.f32 0.2, %v388_v38  ;;  %v389_v55 = vadd.f32 %v316_v47, %v13367_v7  ;;  %v390_v56 = vadd.f32 %v316_v47, %v13369_v8 }
 0x11b   :  { %v483_v50 = vsel %vm419_vm4, %v387_v30, %v451_v42  ;;  %11829 = vmatmul.mubr.f32.vlgmr.msra.gmra.mrb[0].mxu1 %v482_v45  ;;  %v391_v58 = vadd.f32 %v320_v48, %v13367_v7  ;;  %v392_v59 = vadd.f32 %v320_v48, %v13369_v8  ;;  %v393_v60 = vadd.f32 %v324_v53, %v13367_v7 }
 0x11c   :  { %11831 = vmatprep.mubr.f32.mxu1 %v483_v50  ;;  %v394_v61 = vadd.f32 %v324_v53, %v13369_v8  ;;  %v395_v62 = vadd.f32 %v328_v54, %v13367_v7  ;;  %v396_v63 = vadd.f32 %v328_v54, %v13369_v8  ;;  %vm421_vm6 = vcmp.gt.f32.partialorder %v389_v55, 0.0 }
 0x11d   :  { %v453_v2 = vmul.f32 0.2, %v389_v55  ;;  %v484_v6 = vsel %vm420_vm5, %v388_v38, %v452_v51  ;;  %v454_v9 = vmul.f32 0.2, %v390_v56  ;;  %v340_v10 = vrot.slane %v13395_v41, %v13304_v35 }
 0x11e   :  { %vm422_vm7 = vcmp.gt.f32.partialorder %v390_v56, 0.0  ;;  %v455_v12 = vmul.f32 0.2, %v391_v58  ;;  %v293_v14 = vrot.slane %v271_v37, %v13360_v0  ;;  %vm423_vm8 = vcmp.gt.f32.partialorder %v391_v58, 0.0 }
 0x11f   :  { %11832 = vmatmul.mubr.f32.gmra.mrb[2].mxu1 %v484_v6  ;;  %v485_v11 = vsel %vm421_vm6, %v389_v55, %v453_v2  ;;  %v272_v15 = vcombine.high %v270_v1, %v270_v1  ;;  %vm424_vm9 = vcmp.gt.f32.partialorder %v392_v59, 0.0  ;;  %v456_v16 = vmul.f32 0.2, %v392_v59 }
 0x120   :  { %11834 = vmatprep.mubr.f32.mxu1 %v485_v11  ;;  %v486_v17 = vsel %vm422_vm7, %v390_v56, %v454_v9  ;;  %v457_v18 = vmul.f32 0.2, %v393_v60  ;;  %v332_v19 = vrot.slane %v253_v4, %v13304_v35  ;;  %v255_v20 = vcombine.high %v251_v32, %v251_v32 }
 0x121   :  { %v487_v21 = vsel %vm423_vm8, %v391_v58, %v455_v12  ;;  %vm425_vm10 = vcmp.gt.f32.partialorder %v393_v60, 0.0  ;;  %v13416_v22 = vadd.f32 %v340_v10, %v13367_v7  ;;  %v13419_v23 = vadd.f32 %v340_v10, %v13369_v8 }
 0x122   :  { %v397_v24 = vadd.f32 %v332_v19, %v13367_v7  ;;  %v398_v25 = vadd.f32 %v332_v19, %v13369_v8  ;;  %v336_v26 = vrot.slane %v255_v20, %v13304_v35  ;;  %v344_v27 = vrot.slane %v293_v14, %v13304_v35 }
 0x123   :  { %11835 = vmatmul.mubr.f32.gmra.mrb[4].mxu1 %v486_v17  ;;  %v286_v29 = vrot.slane %v270_v1, %v13360_v0  ;;  %v301_v30 = vcombine.high %v13395_v41, %v13395_v41  ;;  %v303_v31 = vcombine.high %v293_v14, %v293_v14  ;;  %v488_v32 = vsel %vm424_vm9, %v392_v59, %v456_v16 }
 0x124   :  { %11837 = vmatprep.mubr.f32.mxu1 %v487_v21  ;;  %v489_v37 = vsel %vm425_vm10, %v393_v60, %v457_v18  ;;  %vm426_vm11 = vcmp.gt.f32.partialorder %v394_v61, 0.0  ;;  %v458_v38 = vmul.f32 0.2, %v394_v61  ;;  %v459_v39 = vmul.f32 0.2, %v395_v62 }
 0x125   :  { %vm427_vm12 = vcmp.gt.f32.partialorder %v395_v62, 0.0  ;;  %v460_v40 = vmul.f32 0.2, %v396_v63  ;;  %v399_v42 = vadd.f32 %v336_v26, %v13367_v7  ;;  %v400_v44 = vadd.f32 %v336_v26, %v13369_v8 }
 0x126   :  { %v300_v45 = vrot.slane %v272_v15, %v13360_v0  ;;  %vm428_vm13 = vcmp.gt.f32.partialorder %v396_v63, 0.0  ;;  %v403_v41 = vadd.f32 %v344_v27, %v13367_v7  ;;  %v404_v47 = vadd.f32 %v344_v27, %v13369_v8 }
 0x127   :  { %11838 = vmatmul.mubr.f32.gmra.mrb[6].mxu1 %v488_v32  ;;  %v490_v48 = vsel %vm426_vm11, %v394_v61, %v458_v38  ;;  %v491_v50 = vsel %vm427_vm12, %v395_v62, %v459_v39  ;;  %v492_v51 = vsel %vm428_vm13, %v396_v63, %v460_v40  ;;  %v461_v53 = vmul.f32 0.2, %v397_v24 }
 0x128   :  { %11840 = vmatprep.mubr.f32.mxu1 %v489_v37  ;;  %v348_v54 = vrot.slane %v301_v30, %v13304_v35  ;;  %v352_v55 = vrot.slane %v303_v31, %v13304_v35  ;;  %vm429_vm14 = vcmp.gt.f32.partialorder %v397_v24, 0.0  ;;  %v462_v56 = vmul.f32 0.2, %v398_v25 }
 0x129   :  { %v356_v58 = vrot.slane %v286_v29, %v13304_v35  ;;  %v360_v59 = vrot.slane %v300_v45, %v13304_v35  ;;  %v493_v9 = vsel %vm429_vm14, %v397_v24, %v461_v53  ;;  %vm430_vm15 = vcmp.gt.f32.partialorder %v398_v25, 0.0 }
 0x12a   :  { %v405_v60 = vadd.f32 %v348_v54, %v13367_v7  ;;  %v406_v1 = vadd.f32 %v348_v54, %v13369_v8  ;;  %v407_v61 = vadd.f32 %v352_v55, %v13367_v7  ;;  %v408_v62 = vadd.f32 %v352_v55, %v13369_v8 }
 0x12b   :  { %11841 = vmatmul.mubr.f32.gmra.mrb[8].mxu1 %v490_v48  ;;  %v409_v63 = vadd.f32 %v356_v58, %v13367_v7  ;;  %v13444_v2 = vadd.f32 %v356_v58, %v13369_v8  ;;  %v13447_v4 = vadd.f32 %v360_v59, %v13367_v7  ;;  %v13450_v6 = vadd.f32 %v360_v59, %v13369_v8 }
 0x12c   :  { %11843 = vmatprep.mubr.f32.mxu1 %v491_v50  ;;  %v463_v10 = vmul.f32 0.2, %v399_v42  ;;  %v302_v11 = vcombine.high %v286_v29, %v286_v29  ;;  %vm431_vm0 = vcmp.gt.f32.partialorder %v399_v42, 0.0  ;;  %v494_v12 = vsel %vm430_vm15, %v398_v25, %v462_v56 }
 0x12d   :  { %v464_v14 = vmul.f32 0.2, %v400_v44  ;;  %vm432_vm1 = vcmp.gt.f32.partialorder %v400_v44, 0.0  ;;  %v465_v16 = vmul.f32 0.2, %v13416_v22  ;;  %vm433_vm2 = vcmp.gt.f32.partialorder %v13416_v22, 0.0 }
 0x12e   :  { %v495_v15 = vsel %vm431_vm0, %v399_v42, %v463_v10  ;;  %v364_v17 = vrot.slane %v302_v11, %v13304_v35  ;;  %v304_v18 = vcombine.high %v300_v45, %v300_v45  ;;  %v466_v19 = vmul.f32 0.2, %v13419_v23 }
 0x12f   :  { %11844 = vmatmul.mubr.f32.gmra.mrb[10].mxu1 %v492_v51  ;;  %v496_v20 = vsel %vm432_vm1, %v400_v44, %v464_v14  ;;  %v497_v26 = vsel %vm433_vm2, %v13416_v22, %v465_v16  ;;  %vm434_vm3 = vcmp.gt.f32.partialorder %v13419_v23, 0.0  ;;  %v467_v27 = vmul.f32 0.2, %v403_v41 }
 0x130   :  { %11846 = vmatprep.mubr.f32.mxu1 %v493_v9  ;;  %v413_v21 = vadd.f32 %v364_v17, %v13367_v7  ;;  %v414_v24 = vadd.f32 %v364_v17, %v13369_v8  ;;  %v368_v25 = vrot.slane %v304_v18, %v13304_v35  ;;  %vm435_vm4 = vcmp.gt.f32.partialorder %v403_v41, 0.0 }
 0x131   :  { %v498_v31 = vsel %vm434_vm3, %v13419_v23, %v466_v19  ;;  %v468_v32 = vmul.f32 0.2, %v404_v47  ;;  %v499_v37 = vsel %vm435_vm4, %v403_v41, %v467_v27  ;;  %vm436_vm5 = vcmp.gt.f32.partialorder %v404_v47, 0.0 }
 0x132   :  { %v415_v29 = vadd.f32 %v368_v25, %v13367_v7  ;;  %v416_v30 = vadd.f32 %v368_v25, %v13369_v8  ;;  %v469_v38 = vmul.f32 0.2, %v405_v60  ;;  %vm437_vm6 = vcmp.gt.f32.partialorder %v405_v60, 0.0 }
 0x133   :  { %11847 = vmatmul.mubr.f32.gmra.mrb[12].mxu1 %v494_v12  ;;  %v500_v39 = vsel %vm436_vm5, %v404_v47, %v468_v32  ;;  %v470_v22 = vmul.f32 0.2, %v406_v1  ;;  %vm438_vm7 = vcmp.gt.f32.partialorder %v406_v1, 0.0  ;;  %v471_v42 = vmul.f32 0.2, %v407_v61 }
 0x134   :  { %11849 = vmatprep.mubr.f32.mxu1 %v495_v15  ;;  %v501_v40 = vsel %vm437_vm6, %v405_v60, %v469_v38  ;;  %vm439_vm8 = vcmp.gt.f32.partialorder %v407_v61, 0.0  ;;  %v472_v44 = vmul.f32 0.2, %v408_v62  ;;  %vm440_vm9 = vcmp.gt.f32.partialorder %v408_v62, 0.0 }
 0x135   :  { %v502_v7 = vsel %vm438_vm7, %v406_v1, %v470_v22  ;;  %v503_v8 = vsel %vm439_vm8, %v407_v61, %v471_v42  ;;  %v473_v23 = vmul.f32 0.2, %v409_v63  ;;  %vm441_vm10 = vcmp.gt.f32.partialorder %v409_v63, 0.0 }
 0x136   :  { %v504_v45 = vsel %vm440_vm9, %v408_v62, %v472_v44  ;;  %v474_v41 = vmul.f32 0.2, %v13444_v2  ;;  %vm442_vm11 = vcmp.gt.f32.partialorder %v13444_v2, 0.0  ;;  %v475_v48 = vmul.f32 0.2, %v13447_v4 }
 0x137   :  { %11850 = vmatmul.mubr.f32.gmra.mrb[14].mxu1 %v496_v20  ;;  %v505_v47 = vsel %vm441_vm10, %v409_v63, %v473_v23  ;;  %vm443_vm12 = vcmp.gt.f32.partialorder %v13447_v4, 0.0  ;;  %v476_v51 = vmul.f32 0.2, %v13450_v6  ;;  %vm444_vm13 = vcmp.gt.f32.partialorder %v13450_v6, 0.0 }
 0x138   :  { %11852 = vmatprep.mubr.f32.mxu1 %v497_v26  ;;  %v506_v50 = vsel %vm442_vm11, %v13444_v2, %v474_v41  ;;  %v507_v53 = vsel %vm443_vm12, %v13447_v4, %v475_v48  ;;  %v477_v54 = vmul.f32 0.2, %v413_v21  ;;  %vm445_vm14 = vcmp.gt.f32.partialorder %v413_v21, 0.0  ;;  %v13474_v2 = vpop.permute.xlu1 %872  ;;  %v13476_v4 = vpop.permute.xlu0 %861 }
 0x139   :  { %v508_v55 = vsel %vm444_vm13, %v13450_v6, %v476_v51  ;;  %v478_v56 = vmul.f32 0.2, %v414_v24  ;;  %vm446_vm15 = vcmp.gt.f32.partialorder %v414_v24, 0.0  ;;  %v479_v59 = vmul.f32 0.2, %v415_v29  ;;  %18107 = vst [vmem:[#allocation27_spill] sm:$0xff] %v13474_v2 }
 0x13a   :  { %v509_v58 = vsel %vm445_vm14, %v413_v21, %v477_v54  ;;  %vm447_vm0 = vcmp.gt.f32.partialorder %v415_v29, 0.0  ;;  %v480_v1 = vmul.f32 0.2, %v416_v30  ;;  %vm448_vm1 = vcmp.gt.f32.partialorder %v416_v30, 0.0  ;;  %18108 = vst [vmem:[#allocation28_spill] sm:$0xff] %v13476_v4 }
 0x13b   :  { %11853 = vmatmul.mubr.f32.gmra.mrb[16].mxu1 %v498_v31  ;;  %v510_v60 = vsel %vm446_vm15, %v414_v24, %v478_v56  ;;  %v511_v61 = vsel %vm447_vm0, %v415_v29, %v479_v59  ;;  %v17806_v63 = vmov 1   ;;  %vm1233_vm2 = vcmask 130112  }
 0x13c   :  { %11855 = vmatprep.mubr.f32.mxu1 %v499_v37  ;;  %v512_v62 = vsel %vm448_vm1, %v416_v30, %v480_v1  ;;  %12367 = vset.pattern.permute.xlu0 %v17806_v63  ;;  %v13478_v6 = vpop.permute.xlu1 %876  ;;  %v13480_v9 = vpop.permute.xlu0 %865  ;;  %vm1370_vm3 = vcmask 1041409   ;;  %vm1372_vm4 = vcmask 1042434   ;;  %vm1374_vm5 = vcmask 1043459  }
 0x13d   :  { %18109 = vst [vmem:[#allocation29_spill] sm:$0xff] %v13478_v6  ;;  %18110 = vst [vmem:[#allocation30_spill] sm:$0xff] %v13480_v9  ;;  %vm17957_vm6 = vcmask 1044484   ;;  %vm17909_vm7 = vcmask 1045509   ;;  %vm17908_vm8 = vcmask 1046534   ;;  %vm17907_vm9 = vcmask 1047559  }
 0x13e   :  { %vm17912_vm10 = vcmask 130048   ;;  %vm17955_vm11 = vmmov 0  }
 0x13f   :  { %11856 = vmatmul.mubr.f32.gmra.mrb[18].mxu1 %v500_v39 }
 0x140   :  { %11858 = vmatprep.mubr.f32.mxu1 %v501_v40  ;;  %v13482_v10 = vpop.permute.xlu1 %953  ;;  %v13484_v11 = vpop.permute.xlu0 %949 }
 0x141   :  { %18111 = vst [vmem:[#allocation31_spill] sm:$0xff] %v13482_v10  ;;  %18112 = vst [vmem:[#allocation32_spill] sm:$0xff] %v13484_v11 }
 0x143   :  { %11859 = vmatmul.mubr.f32.gmra.mrb[20].mxu1 %v502_v7 }
 0x144   :  { %11861 = vmatprep.mubr.f32.mxu1 %v503_v8  ;;  %v13486_v12 = vpop.permute.xlu1 %964  ;;  %v13488_v14 = vpop.permute.xlu0 %960 }
 0x145   :  { %18113 = vst [vmem:[#allocation33_spill] sm:$0xff] %v13486_v12  ;;  %18114 = vst [vmem:[#allocation34_spill] sm:$0xff] %v13488_v14 }
 0x147   :  { %11862 = vmatmul.mubr.f32.gmra.mrb[22].mxu1 %v504_v45 }
 0x148   :  { %11864 = vmatprep.mubr.f32.mxu1 %v505_v47  ;;  %v13490_v16 = vpop.permute.xlu1 %887  ;;  %v13497_v21 = vpop.permute.xlu0 %883 }
 0x149   :  { %18115 = vst [vmem:[#allocation35_spill] sm:$0xff] %v13490_v16  ;;  %18116 = vst [vmem:[#allocation36_spill] sm:$0xff] %v13497_v21 }
 0x14b   :  { %11865 = vmatmul.mubr.f32.gmra.mrb[24].mxu1 %v506_v50 }
 0x14c   :  { %11867 = vmatprep.mubr.f32.mxu1 %v507_v53  ;;  %v13502_v25 = vpop.permute.xlu1 %975  ;;  %v13511_v30 = vpop.permute.xlu0 %971 }
 0x14d   :  { %18117 = vst [vmem:[#allocation37_spill] sm:$0xff] %v13502_v25  ;;  %18118 = vst [vmem:[#allocation38_spill] sm:$0xff] %v13511_v30 }
 0x14f   :  { %11868 = vmatmul.mubr.f32.gmra.mrb[26].mxu1 %v508_v55 }
 0x150   :  { %11870 = vmatprep.mubr.f32.mxu1 %v509_v58  ;;  %v13515_v32 = vpop.permute.xlu1 %898  ;;  %v13526_v42 = vpop.permute.xlu0 %894 }
 0x151   :  { %18119 = vst [vmem:[#allocation39_spill] sm:$0xff] %v13515_v32  ;;  %18120 = vst [vmem:[#allocation40_spill] sm:$0xff] %v13526_v42 }
 0x153   :  { %11871 = vmatmul.mubr.f32.gmra.mrb[28].mxu1 %v510_v60 }
 0x154   :  { %11873 = vmatprep.mubr.f32.mxu1 %v511_v61  ;;  %v13528_v7 = vpop.permute.xlu1 %986  ;;  %v13537_v45 = vpop.permute.xlu0 %982 }
 0x155   :  { %18121 = vst [vmem:[#allocation41_spill] sm:$0xff] %v13528_v7  ;;  %18122 = vst [vmem:[#allocation42_spill] sm:$0xff] %v13537_v45 }
 0x157   :  { %11874 = vmatmul.mubr.f32.gmra.mrb[30].mxu1 %v512_v62 }
 0x158   :  { %v13542_v48 = vpop.permute.xlu1 %909  ;;  %v13554_v55 = vpop.permute.xlu0 %905 }
 0x159   :  { %18123 = vst [vmem:[#allocation43_spill] sm:$0xff] %v13542_v48  ;;  %18124 = vst [vmem:[#allocation44_spill] sm:$0xff] %v13554_v55 }
 0x15c   :  { %v13558_v56 = vpop.permute.xlu1 %997  ;;  %v13571_v1 = vpop.permute.xlu0 %993 }
 0x15d   :  { %18125 = vst [vmem:[#allocation45_spill] sm:$0xff] %v13558_v56  ;;  %18126 = vst [vmem:[#allocation46_spill] sm:$0xff] %v13571_v1 }
 0x160   :  { %v13577_v62 = vpop.permute.xlu1 %920 }
 0x161   :  { %18127 = vst [vmem:[#allocation47_spill] sm:$0xff] %v13577_v62 }
 0x1ee   :  { %v11830_v15 = vpop.f32.mrb[0].mxu1 }
 0x1ef   :  { %v13493_v17 = vadd.f32 %v11830_v15, %v13480_v9  ;;  %v595_v18 = vpop.f32.mrb[1].mxu1 }
 0x1f0   :  { %v13500_v24 = vadd.f32 %v13476_v4, %v595_v18 }
 0x1f1   :  { %2355 = vperm.xlu0 %12367, %v13493_v17   ;;  %1132 = vperm.xlu1 %12366, %v13493_v17  }
 0x1f2   :  { %v11833_v19 = vpop.f32.mrb[2].mxu1 }
 0x1f3   :  { %v605_v20 = vpop.f32.mrb[3].mxu1  ;;  %v13509_v29 = vadd.f32 %v11833_v19, %v13478_v6 }
 0x1f4   :  { %v13521_v39 = vadd.f32 %v13474_v2, %v605_v20 }
 0x1f5   :  { %12368 = vset.pattern.permute.xlu0 %v17815_v5  ;;  %12369 = vset.pattern.permute.xlu1 %v17806_v63 }
 0x1f6   :  { %v11836_v26 = vpop.f32.mrb[4].mxu1  ;;  %1129 = vperm.xlu0 %12368, %v13500_v24   ;;  %2352 = vperm.xlu1 %12369, %v13500_v24  }
 0x1f7   :  { %v615_v27 = vpop.f32.mrb[5].mxu1  ;;  %v13518_v38 = vadd.f32 %v11836_v26, %v13490_v16  ;;  %v13592_v26 = vpop.permute.xlu0 %916 }
 0x1f8   :  { %v13531_v44 = vadd.f32 %v13497_v21, %v615_v27  ;;  %18128 = vst [vmem:[#allocation48_spill] sm:$0xff] %v13592_v26  ;;  %v13594_v27 = vpop.permute.xlu1 %1008 }
 0x1f9   :  { %18129 = vst [vmem:[#allocation49_spill] sm:$0xff] %v13594_v27 }
 0x1fa   :  { %v11839_v31 = vpop.f32.mrb[6].mxu1  ;;  %1138 = vperm.xlu0 %12368, %v13509_v29   ;;  %2361 = vperm.xlu1 %12369, %v13509_v29  }
 0x1fb   :  { %v625_v37 = vpop.f32.mrb[7].mxu1  ;;  %v13540_v41 = vadd.f32 %v11839_v31, %v13515_v32 }
 0x1fc   :  { %v13550_v53 = vadd.f32 %v13526_v42, %v625_v37  ;;  %v13611_v33 = vpop.permute.xlu1 %931 }
 0x1fd   :  { %18131 = vst [vmem:[#allocation51_spill] sm:$0xff] %v13611_v33 }
 0x1fe   :  { %v11842_v22 = vpop.f32.mrb[8].mxu1  ;;  %1144 = vperm.xlu0 %12368, %v13518_v38   ;;  %12370 = vset.pattern.permute.xlu1 %v17815_v5 }
 0x1ff   :  { %v635_v40 = vpop.f32.mrb[9].mxu1  ;;  %1135 = vperm.xlu1 %12370, %v13521_v39   ;;  %v13567_v60 = vadd.f32 %v11842_v22, %v13542_v48 }
 0x200   :  { %v13582_v18 = vadd.f32 %v13554_v55, %v635_v40  ;;  %v13607_v40 = vpop.permute.xlu0 %1004 }
 0x201   :  { %18130 = vst [vmem:[#allocation50_spill] sm:$0xff] %v13607_v40 }
 0x202   :  { %v11845_v8 = vpop.f32.mrb[10].mxu1  ;;  %12373 = vset.pattern.permute.xlu0 %v17806_v63 }
 0x203   :  { %v645_v23 = vpop.f32.mrb[11].mxu1  ;;  %12371 = vset.pattern.permute.xlu1 %v17806_v63  ;;  %2364 = vperm.xlu0 %12373, %v13531_v44   ;;  %v13597_v31 = vadd.f32 %v11845_v8, %v13577_v62 }
 0x204   :  { %2358 = vperm.xlu1 %12371, %v13521_v39   ;;  %v13614_v8 = vadd.f32 %v13592_v26, %v645_v23  ;;  %v13626_v42 = vpop.permute.xlu0 %927  ;;  %v13631_v23 = vpop.permute.xlu1 %1019 }
 0x205   :  { %18132 = vst [vmem:[#allocation52_spill] sm:$0xff] %v13626_v42  ;;  %18133 = vst [vmem:[#allocation53_spill] sm:$0xff] %v13631_v23 }
 0x206   :  { %v11848_v47 = vpop.f32.mrb[12].mxu1 }
 0x207   :  { %v655_v50 = vpop.f32.mrb[13].mxu1  ;;  %12374 = vset.pattern.permute.xlu0 %v17815_v5  ;;  %v13629_v32 = vadd.f32 %v11848_v47, %v13611_v33 }
 0x208   :  { %2367 = vperm.xlu1 %12371, %v13518_v38   ;;  %1150 = vperm.xlu0 %12374, %v13540_v41   ;;  %v13642_v16 = vadd.f32 %v13626_v42, %v655_v50  ;;  %v13644_v2 = vpop.permute.xlu0 %1015  ;;  %v13650_v33 = vpop.permute.xlu1 %942 }
 0x209   :  { %18134 = vst [vmem:[#allocation54_spill] sm:$0xff] %v13644_v2  ;;  %18135 = vst [vmem:[#allocation55_spill] sm:$0xff] %v13650_v33 }
 0x20a   :  { %v13547_v51 = vpop.f32.mrb[14].mxu1 }
 0x20b   :  { %v13552_v54 = vpop.f32.mrb[15].mxu1  ;;  %v13658_v50 = vadd.f32 %v13547_v51, %v13650_v33 }
 0x20c   :  { %12372 = vset.pattern.permute.xlu1 %v17815_v5  ;;  %12377 = vset.pattern.permute.xlu0 %v17806_v63  ;;  %v13662_v42 = vpop.permute.xlu0 %938 }
 0x20d   :  { %1141 = vperm.xlu1 %12372, %v13531_v44   ;;  %2370 = vperm.xlu0 %12377, %v13550_v53   ;;  %18136 = vst [vmem:[#allocation56_spill] sm:$0xff] %v13658_v50  ;;  %18137 = vst [vmem:[#allocation57_spill] sm:$0xff] %v13662_v42  ;;  %v13668_v4 = vadd.f32 %v13662_v42, %v13552_v54 }
 0x20e   :  { %v13562_v58 = vpop.f32.mrb[16].mxu1 }
 0x20f   :  { %v13564_v59 = vpop.f32.mrb[17].mxu1  ;;  %v13676_v51 = vadd.f32 %v13562_v58, %v13482_v10 }
 0x210   :  { %v13684_v54 = vadd.f32 %v13484_v11, %v13564_v59 }
 0x211   :  { %12375 = vset.pattern.permute.xlu1 %v17806_v63  ;;  %12378 = vset.pattern.permute.xlu0 %v17815_v5  ;;  %18138 = vst [vmem:[#allocation58_spill] sm:$0xff] %v13676_v51 }
 0x212   :  { %v13573_v61 = vpop.f32.mrb[18].mxu1  ;;  %2373 = vperm.xlu1 %12375, %v13540_v41   ;;  %1156 = vperm.xlu0 %12378, %v13567_v60   ;;  %18139 = vst [vmem:[#allocation59_spill] sm:$0xff] %v13684_v54 }
 0x213   :  { %v13579_v15 = vpop.f32.mrb[19].mxu1  ;;  %v13692_v58 = vadd.f32 %v13573_v61, %v13486_v12 }
 0x214   :  { %v13700_v59 = vadd.f32 %v13488_v14, %v13579_v15 }
 0x215   :  { %18140 = vst [vmem:[#allocation60_spill] sm:$0xff] %v13692_v58 }
 0x216   :  { %v13584_v19 = vpop.f32.mrb[20].mxu1  ;;  %12376 = vset.pattern.permute.xlu1 %v17815_v5  ;;  %12381 = vset.pattern.permute.xlu0 %v17806_v63  ;;  %18141 = vst [vmem:[#allocation61_spill] sm:$0xff] %v13700_v59 }
 0x217   :  { %v13588_v20 = vpop.f32.mrb[21].mxu1  ;;  %1147 = vperm.xlu1 %12376, %v13550_v53   ;;  %2376 = vperm.xlu0 %12381, %v13582_v18   ;;  %v13708_v61 = vadd.f32 %v13584_v19, %v13502_v25 }
 0x218   :  { %v13716_v15 = vadd.f32 %v13511_v30, %v13588_v20 }
 0x219   :  { %18142 = vst [vmem:[#allocation62_spill] sm:$0xff] %v13708_v61 }
 0x21a   :  { %v13599_v37 = vpop.f32.mrb[22].mxu1  ;;  %18143 = vst [vmem:[#allocation63_spill] sm:$0xff] %v13716_v15 }
 0x21b   :  { %v13601_v22 = vpop.f32.mrb[23].mxu1  ;;  %12379 = vset.pattern.permute.xlu1 %v17806_v63  ;;  %12382 = vset.pattern.permute.xlu0 %v17815_v5  ;;  %v13724_v19 = vadd.f32 %v13599_v37, %v13528_v7 }
 0x21c   :  { %2379 = vperm.xlu1 %12379, %v13567_v60   ;;  %1162 = vperm.xlu0 %12382, %v13597_v31   ;;  %v13732_v20 = vadd.f32 %v13537_v45, %v13601_v22 }
 0x21d   :  { %18144 = vst [vmem:[#allocation64_spill] sm:$0xff] %v13724_v19 }
 0x21e   :  { %v13609_v28 = vpop.f32.mrb[24].mxu1  ;;  %18145 = vst [vmem:[#allocation65_spill] sm:$0xff] %v13732_v20 }
 0x21f   :  { %v13616_v62 = vpop.f32.mrb[25].mxu1  ;;  %v13740_v37 = vadd.f32 %v13609_v28, %v13558_v56  ;;  %v13760_v56 = vpop.permute.xlu1 %1030 }
 0x220   :  { %12380 = vset.pattern.permute.xlu1 %v17815_v5  ;;  %12385 = vset.pattern.permute.xlu0 %v17806_v63  ;;  %v13748_v22 = vadd.f32 %v13571_v1, %v13616_v62  ;;  %18149 = vst [vmem:[#allocation69_spill] sm:$0xff] %v13760_v56  ;;  %v13762_v62 = vpop.permute.xlu0 %1026 }
 0x221   :  { %1153 = vperm.xlu1 %12380, %v13582_v18   ;;  %2382 = vperm.xlu0 %12385, %v13614_v8   ;;  %18146 = vst [vmem:[#allocation66_spill] sm:$0xff] %v13740_v37  ;;  %18150 = vst [vmem:[#allocation70_spill] sm:$0xff] %v13762_v62 }
 0x222   :  { %v13622_v55 = vpop.f32.mrb[26].mxu1  ;;  %18147 = vst [vmem:[#allocation67_spill] sm:$0xff] %v13748_v22 }
 0x223   :  { %v13624_v48 = vpop.f32.mrb[27].mxu1  ;;  %v13756_v28 = vadd.f32 %v13622_v55, %v13594_v27 }
 0x224   :  { %v13768_v1 = vadd.f32 %v13607_v40, %v13624_v48 }
 0x225   :  { %12383 = vset.pattern.permute.xlu1 %v17806_v63  ;;  %12386 = vset.pattern.permute.xlu0 %v17815_v5  ;;  %18148 = vst [vmem:[#allocation68_spill] sm:$0xff] %v13756_v28 }
 0x226   :  { %v13635_v26 = vpop.f32.mrb[28].mxu1  ;;  %2385 = vperm.xlu1 %12383, %v13597_v31   ;;  %1168 = vperm.xlu0 %12386, %v13629_v32   ;;  %18151 = vst [vmem:[#allocation71_spill] sm:$0xff] %v13768_v1 }
 0x227   :  { %v13639_v21 = vpop.f32.mrb[29].mxu1  ;;  %v13780_v27 = vadd.f32 %v13635_v26, %v13631_v23 }
 0x228   :  { %v13792_v40 = vadd.f32 %v13644_v2, %v13639_v21 }
 0x229   :  { %18152 = vst [vmem:[#allocation72_spill] sm:$0xff] %v13780_v27 }
 0x22a   :  { %v13646_v47 = vpop.f32.mrb[30].mxu1  ;;  %12384 = vset.pattern.permute.xlu1 %v17815_v5  ;;  %12389 = vset.pattern.permute.xlu0 %v17806_v63  ;;  %18153 = vst [vmem:[#allocation73_spill] sm:$0xff] %v13792_v40 }
 0x22b   :  { %v13652_v6 = vpop.f32.mrb[31].mxu1  ;;  %1159 = vperm.xlu1 %12384, %v13614_v8   ;;  %2388 = vperm.xlu0 %12389, %v13642_v16   ;;  %v13806_v25 = vadd.f32 %v13646_v47, %v13760_v56 }
 0x22c   :  { %v13814_v14 = vadd.f32 %v13762_v62, %v13652_v6 }
 0x22d   :  { %18154 = vst [vmem:[#allocation74_spill] sm:$0xff] %v13806_v25 }
 0x22e   :  { %18155 = vst [vmem:[#allocation75_spill] sm:$0xff] %v13814_v14 }
 0x22f   :  { %12387 = vset.pattern.permute.xlu1 %v17806_v63  ;;  %12390 = vset.pattern.permute.xlu0 %v17815_v5 }
 0x230   :  { %2391 = vperm.xlu1 %12387, %v13629_v32   ;;  %1174 = vperm.xlu0 %12390, %v13658_v50  }
 0x234   :  { %12388 = vset.pattern.permute.xlu1 %v17815_v5  ;;  %12393 = vset.pattern.permute.xlu0 %v17806_v63 }
 0x235   :  { %1165 = vperm.xlu1 %12388, %v13642_v16   ;;  %2394 = vperm.xlu0 %12393, %v13668_v4  }
 0x239   :  { %12391 = vset.pattern.permute.xlu1 %v17806_v63  ;;  %12394 = vset.pattern.permute.xlu0 %v17815_v5 }
 0x23a   :  { %2397 = vperm.xlu1 %12391, %v13658_v50   ;;  %1180 = vperm.xlu0 %12394, %v13676_v51  }
 0x23e   :  { %12392 = vset.pattern.permute.xlu1 %v17815_v5  ;;  %12397 = vset.pattern.permute.xlu0 %v17806_v63 }
 0x23f   :  { %2400 = vperm.xlu0 %12397, %v13684_v54   ;;  %1171 = vperm.xlu1 %12392, %v13668_v4  }
 0x243   :  { %12398 = vset.pattern.permute.xlu0 %v17815_v5  ;;  %12395 = vset.pattern.permute.xlu1 %v17806_v63 }
 0x244   :  { %1186 = vperm.xlu0 %12398, %v13692_v58   ;;  %2403 = vperm.xlu1 %12395, %v13676_v51  }
 0x248   :  { %12401 = vset.pattern.permute.xlu0 %v17806_v63  ;;  %12396 = vset.pattern.permute.xlu1 %v17815_v5 }
 0x249   :  { %2406 = vperm.xlu0 %12401, %v13700_v59   ;;  %1177 = vperm.xlu1 %12396, %v13684_v54  }
 0x24d   :  { %12402 = vset.pattern.permute.xlu0 %v17815_v5  ;;  %12399 = vset.pattern.permute.xlu1 %v17806_v63 }
 0x24e   :  { %1192 = vperm.xlu0 %12402, %v13708_v61   ;;  %2409 = vperm.xlu1 %12399, %v13692_v58  }
 0x252   :  { %12405 = vset.pattern.permute.xlu0 %v17806_v63  ;;  %12400 = vset.pattern.permute.xlu1 %v17815_v5 }
 0x253   :  { %2412 = vperm.xlu0 %12405, %v13716_v15   ;;  %1183 = vperm.xlu1 %12400, %v13700_v59  }
 0x257   :  { %12406 = vset.pattern.permute.xlu0 %v17815_v5  ;;  %12403 = vset.pattern.permute.xlu1 %v17806_v63 }
 0x258   :  { %1198 = vperm.xlu0 %12406, %v13724_v19   ;;  %2415 = vperm.xlu1 %12403, %v13708_v61  }
 0x25c   :  { %12409 = vset.pattern.permute.xlu0 %v17806_v63  ;;  %12404 = vset.pattern.permute.xlu1 %v17815_v5 }
 0x25d   :  { %2418 = vperm.xlu0 %12409, %v13732_v20   ;;  %1189 = vperm.xlu1 %12404, %v13716_v15  }
 0x261   :  { %12410 = vset.pattern.permute.xlu0 %v17815_v5  ;;  %12407 = vset.pattern.permute.xlu1 %v17806_v63 }
 0x262   :  { %1204 = vperm.xlu0 %12410, %v13740_v37   ;;  %2421 = vperm.xlu1 %12407, %v13724_v19  }
 0x266   :  { %12413 = vset.pattern.permute.xlu0 %v17806_v63  ;;  %12408 = vset.pattern.permute.xlu1 %v17815_v5 }
 0x267   :  { %2424 = vperm.xlu0 %12413, %v13748_v22   ;;  %1195 = vperm.xlu1 %12408, %v13732_v20  }
 0x26b   :  { %12414 = vset.pattern.permute.xlu0 %v17815_v5  ;;  %12411 = vset.pattern.permute.xlu1 %v17806_v63 }
 0x26c   :  { %1210 = vperm.xlu0 %12414, %v13756_v28   ;;  %2427 = vperm.xlu1 %12411, %v13740_v37  }
 0x270   :  { %v13770_v45 = vpop.permute.xlu1 %1132  ;;  %12417 = vset.pattern.permute.xlu0 %v17806_v63  ;;  %12412 = vset.pattern.permute.xlu1 %v17815_v5  ;;  %v13774_v55 = vpop.permute.xlu0 %2355 }
 0x271   :  { %2430 = vperm.xlu0 %12417, %v13768_v1   ;;  %1201 = vperm.xlu1 %12412, %v13748_v22  }
 0x275   :  { %v13782_v7 = vpop.permute.xlu1 %2352  ;;  %12418 = vset.pattern.permute.xlu0 %v17815_v5  ;;  %12415 = vset.pattern.permute.xlu1 %v17806_v63  ;;  %v13786_v48 = vpop.permute.xlu0 %1129 }
 0x276   :  { %1216 = vperm.xlu0 %12418, %v13780_v27   ;;  %2433 = vperm.xlu1 %12415, %v13756_v28  }
 0x279   :  { %v13794_v30 = vpop.permute.xlu1 %2361  ;;  %v13796_v26 = vpop.permute.xlu0 %1138 }
 0x27a   :  { %12421 = vset.pattern.permute.xlu0 %v17806_v63  ;;  %12416 = vset.pattern.permute.xlu1 %v17815_v5 }
 0x27b   :  { %2436 = vperm.xlu0 %12421, %v13792_v40   ;;  %1207 = vperm.xlu1 %12416, %v13768_v1  }
 0x27d   :  { %v13802_v23 = vpop.permute.xlu0 %1144 }
 0x27e   :  { %v1136_v21 = vpop.permute.xlu1 %1135 }
 0x27f   :  { %12422 = vset.pattern.permute.xlu0 %v17815_v5  ;;  %12419 = vset.pattern.permute.xlu1 %v17806_v63 }
 0x280   :  { %1222 = vperm.xlu0 %12422, %v13806_v25   ;;  %2439 = vperm.xlu1 %12419, %v13780_v27  }
 0x282   :  { %v2365_v2 = vpop.permute.xlu0 %2364 }
 0x283   :  { %v2359_v12 = vpop.permute.xlu1 %2358 }
 0x284   :  { %12425 = vset.pattern.permute.xlu0 %v17806_v63  ;;  %12420 = vset.pattern.permute.xlu1 %v17815_v5 }
 0x285   :  { %1213 = vperm.xlu1 %12420, %v13792_v40   ;;  %2442 = vperm.xlu0 %12425, %v13814_v14  }
 0x287   :  { %v2368_v47 = vpop.permute.xlu1 %2367  ;;  %v13820_v56 = vpop.permute.xlu0 %1150 }
 0x289   :  { %12423 = vset.pattern.permute.xlu1 %v17806_v63  ;;  %12426 = vset.pattern.permute.xlu0 %v17815_v5 }
 0x28a   :  { %2445 = vperm.xlu1 %12423, %v13806_v25  }
 0x28c   :  { %v1142_v6 = vpop.permute.xlu1 %1141  ;;  %v13825_v62 = vpop.permute.xlu0 %2370 }
 0x28e   :  { %12424 = vset.pattern.permute.xlu1 %v17815_v5  ;;  %v18156_v5 = vlaneseq }
 0x28f   :  { %1219 = vperm.xlu1 %12424, %v13814_v14  }
 0x290   :  { %v13846_v28 = vand.u32 127, %v18156_v5 }
 0x291   :  { %v13829_v11 = vpop.permute.xlu1 %2373  ;;  %v13831_v10 = vpop.permute.xlu0 %1156 }
 0x292   :  { %18157 = vst [vmem:[#allocation76_spill] sm:$0xff] %v13846_v28  ;;  %v1228_v40 = vadd.s32 4294967288, %v13846_v28  ;;  %v13853_v19 = vsub.s32 %v13846_v28, %v13301_v34 }
 0x294   :  { %v13860_v22 = vsub.s32 %v1228_v40, %v13301_v34  ;;  %v2459_v58 = vrot.slane %v2359_v12, %v13853_v19  ;;  %v1238_v5 = vrot.slane %v1136_v21, %v13853_v19  ;;  %v2450_v59 = vrot.slane %v13782_v7, %v13853_v19 }
 0x295   :  { %v1227_v28 = vrot.slane %v13786_v48, %v13853_v19  ;;  %v2468_v12 = vrot.slane %v2365_v2, %v13853_v19  ;;  %v1247_v34 = vrot.slane %v1142_v6, %v13853_v19 }
 0x296   :  { %v1148_v42 = vpop.permute.xlu1 %1147  ;;  %v13833_v33 = vpop.permute.xlu0 %2376  ;;  %v2472_v20 = vrot.slane %v2368_v47, %v13860_v22  ;;  %v2463_v15 = vrot.slane %v13794_v30, %v13860_v22  ;;  %v1242_v40 = vrot.slane %v13796_v26, %v13860_v22  ;;  %v1232_v7 = vrot.slane %v13770_v45, %v13860_v22 }
 0x297   :  { %v2454_v48 = vrot.slane %v13774_v55, %v13860_v22  ;;  %v1251_v30 = vrot.slane %v13802_v23, %v13860_v22  ;;  %v1256_v6 = vrot.slane %v1148_v42, %v13853_v19 }
 0x298   :  { %v2464_v51 = vsel %vm1233_vm2, %v2463_v15, %v2459_v58  ;;  %v1243_v26 = vsel %vm1233_vm2, %v1242_v40, %v1238_v5  ;;  %v2473_v2 = vsel %vm1233_vm2, %v2472_v20, %v2468_v12  ;;  %v1234_v50 = vsel %vm1233_vm2, %v1232_v7, %v1227_v28 }
 0x299   :  { %v2455_v54 = vsel %vm1233_vm2, %v2454_v48, %v2450_v59  ;;  %v1260_v58 = vrot.slane %v13820_v56, %v13860_v22  ;;  %v1252_v23 = vsel %vm1233_vm2, %v1251_v30, %v1247_v34  ;;  %v2481_v15 = vrot.slane %v13829_v11, %v13860_v22 }
 0x29a   :  { %v2591_v55 = vsel %vm1370_vm3, %v2464_v51, %v2455_v54  ;;  %v1371_v42 = vsel %vm1370_vm3, %v1243_v26, %v1234_v50  ;;  %v1269_v20 = vrot.slane %v13831_v10, %v13860_v22  ;;  %v2477_v56 = vrot.slane %v13825_v62, %v13853_v19 }
 0x29b   :  { %v13835_v9 = vpop.permute.xlu1 %2379  ;;  %v13837_v63 = vpop.permute.xlu0 %1162  ;;  %v2592_v59 = vsel %vm1372_vm4, %v2473_v2, %v2591_v55  ;;  %v1261_v34 = vsel %vm1233_vm2, %v1260_v58, %v1256_v6  ;;  %v1373_v54 = vsel %vm1372_vm4, %v1252_v23, %v1371_v42  ;;  %v2486_v62 = vrot.slane %v13833_v33, %v13853_v19 }
 0x29c   :  { %v2490_v11 = vrot.slane %v13835_v9, %v13860_v22  ;;  %v1278_v10 = vrot.slane %v13837_v63, %v13860_v22  ;;  %v2482_v40 = vsel %vm1233_vm2, %v2481_v15, %v2477_v56 }
 0x29d   :  { %v2593_v55 = vsel %vm1374_vm5, %v2482_v40, %v2592_v59 }
 0x29e   :  { %v2491_v48 = vsel %vm1233_vm2, %v2490_v11, %v2486_v62 }
 0x2a0   :  { %v1154_v0 = vpop.permute.xlu1 %1153  ;;  %v13839_v13 = vpop.permute.xlu0 %2382 }
 0x2a1   :  { %v1265_v45 = vrot.slane %v1154_v0, %v13853_v19  ;;  %v2495_v63 = vrot.slane %v13839_v13, %v13853_v19 }
 0x2a5   :  { %v13841_v25 = vpop.permute.xlu1 %2385  ;;  %v13843_v27 = vpop.permute.xlu0 %1168 }
 0x2a6   :  { %v2499_v5 = vrot.slane %v13841_v25, %v13860_v22  ;;  %v1287_v9 = vrot.slane %v13843_v27, %v13860_v22 }
 0x2a8   :  { %v2500_v2 = vsel %vm1233_vm2, %v2499_v5, %v2495_v63 }
 0x2aa   :  { %v1160_v14 = vpop.permute.xlu1 %1159  ;;  %v13848_v37 = vpop.permute.xlu0 %2388 }
 0x2ab   :  { %v1274_v0 = vrot.slane %v1160_v14, %v13853_v19  ;;  %v1270_v14 = vsel %vm1233_vm2, %v1269_v20, %v1265_v45  ;;  %v2504_v33 = vrot.slane %v13848_v37, %v13853_v19  ;;  %v2594_v20 = vsel %vm17957_vm6, %v2491_v48, %v2593_v55 }
 0x2ad   :  { %v1279_v7 = vsel %vm1233_vm2, %v1278_v10, %v1274_v0 }
 0x2af   :  { %v13855_v1 = vpop.permute.xlu1 %2391  ;;  %v13857_v61 = vpop.permute.xlu0 %1174 }
 0x2b0   :  { %v2508_v12 = vrot.slane %v13855_v1, %v13860_v22  ;;  %v1296_v13 = vrot.slane %v13857_v61, %v13860_v22 }
 0x2b2   :  { %v2509_v37 = vsel %vm1233_vm2, %v2508_v12, %v2504_v33 }
 0x2b4   :  { %v1166_v21 = vpop.permute.xlu1 %1165  ;;  %v2395_v47 = vpop.permute.xlu0 %2394 }
 0x2b5   :  { %v1283_v50 = vrot.slane %v1166_v21, %v13853_v19  ;;  %v1375_v21 = vsel %vm1374_vm5, %v1261_v34, %v1373_v54  ;;  %v2513_v6 = vrot.slane %v2395_v47, %v13853_v19  ;;  %v2595_v47 = vsel %vm17909_vm7, %v2500_v2, %v2594_v20 }
 0x2b6   :  { %v1377_v1 = vsel %vm17957_vm6, %v1270_v14, %v1375_v21  ;;  %v2596_v56 = vsel %vm17908_vm8, %v2509_v37, %v2595_v47 }
 0x2b7   :  { %v1288_v27 = vsel %vm1233_vm2, %v1287_v9, %v1283_v50  ;;  %v1379_v58 = vsel %vm17909_vm7, %v1279_v7, %v1377_v1 }
 0x2b8   :  { %v1381_v15 = vsel %vm17908_vm8, %v1288_v27, %v1379_v58 }
 0x2b9   :  { %v2398_v28 = vpop.permute.xlu1 %2397  ;;  %v13899_v51 = vpop.permute.xlu0 %1180 }
 0x2ba   :  { %v2517_v25 = vrot.slane %v2398_v28, %v13860_v22  ;;  %v1305_v47 = vrot.slane %v13899_v51, %v13860_v22 }
 0x2bc   :  { %v2518_v42 = vsel %vm1233_vm2, %v2517_v25, %v2513_v6 }
 0x2bd   :  { %v2597_v34 = vsel %vm17907_vm9, %v2518_v42, %v2596_v56 }
 0x2be   :  { %v1172_v30 = vpop.permute.xlu1 %1171  ;;  %v2401_v26 = vpop.permute.xlu0 %2400  ;;  %v2607_v11 = vsel %vm17912_vm10, %v2597_v34, -inf }
 0x2bf   :  { %v1292_v45 = vrot.slane %v1172_v30, %v13853_v19 }
 0x2c1   :  { %v1297_v23 = vsel %vm1233_vm2, %v1296_v13, %v1292_v45 }
 0x2c2   :  { %v1383_v61 = vsel %vm17907_vm9, %v1297_v23, %v1381_v15  ;;  %v2522_v15 = vrot.slane %v2401_v26, %v13853_v19 }
 0x2c3   :  { %v2404_v0 = vpop.permute.xlu1 %2403  ;;  %v1187_v59 = vpop.permute.xlu0 %1186  ;;  %v1394_v28 = vsel %vm17912_vm10, %v1383_v61, -inf }
 0x2c4   :  { %1395 = vmax.xlane.f32.xlu0 %v1394_v28  ;;  %v2526_v55 = vrot.slane %v2404_v0, %v13860_v22  ;;  %v1314_v28 = vrot.slane %v1187_v59, %v13860_v22 }
 0x2c6   :  { %v2527_v34 = vsel %vm1233_vm2, %v2526_v55, %v2522_v15 }
 0x2c8   :  { %v1178_v50 = vpop.permute.xlu1 %1177  ;;  %2608 = vmax.xlane.f32.xlu0 %v2607_v11  ;;  %v2407_v54 = vpop.permute.xlu0 %2406 }
 0x2c9   :  { %v1301_v23 = vrot.slane %v1178_v50, %v13853_v19  ;;  %v2531_v42 = vrot.slane %v2407_v54, %v13853_v19 }
 0x2cb   :  { %v1306_v54 = vsel %vm1233_vm2, %v1305_v47, %v1301_v23 }
 0x2cd   :  { %v2410_v10 = vpop.permute.xlu1 %2409  ;;  %v1193_v14 = vpop.permute.xlu0 %1192 }
 0x2ce   :  { %v2535_v58 = vrot.slane %v2410_v10, %v13860_v22 }
 0x2d0   :  { %v2536_v11 = vsel %vm1233_vm2, %v2535_v58, %v2531_v42 }
 0x2d2   :  { %v1184_v5 = vpop.permute.xlu1 %1183  ;;  %v2413_v40 = vpop.permute.xlu0 %2412 }
 0x2d3   :  { %v1310_v56 = vrot.slane %v1184_v5, %v13853_v19  ;;  %v2540_v26 = vrot.slane %v2413_v40, %v13853_v19  ;;  %v1323_v5 = vrot.slane %v1193_v14, %v13860_v22  ;;  %v2598_v40 = vsel %vm1370_vm3, %v2536_v11, %v2527_v34 }
 0x2d7   :  { %v2416_v62 = vpop.permute.xlu1 %2415  ;;  %v13948_v9 = vpop.permute.xlu0 %1198 }
 0x2d8   :  { %v2544_v20 = vrot.slane %v2416_v62, %v13860_v22 }
 0x2dc   :  { %v1190_v12 = vpop.permute.xlu1 %1189  ;;  %v2419_v21 = vpop.permute.xlu0 %2418 }
 0x2dd   :  { %v1319_v10 = vrot.slane %v1190_v12, %v13853_v19  ;;  %v2549_v51 = vrot.slane %v2419_v21, %v13853_v19  ;;  %v1332_v21 = vrot.slane %v13948_v9, %v13860_v22 }
 0x2df   :  { %v1324_v42 = vsel %vm1233_vm2, %v1323_v5, %v1319_v10 }
 0x2e1   :  { %v2422_v63 = vpop.permute.xlu1 %2421  ;;  %v13950_v7 = vpop.permute.xlu0 %1204 }
 0x2e2   :  { %v2553_v0 = vrot.slane %v2422_v63, %v13860_v22  ;;  %v2545_v63 = vsel %vm1233_vm2, %v2544_v20, %v2540_v26  ;;  %v1341_v9 = vrot.slane %v13950_v7, %v13860_v22 }
 0x2e4   :  { %v2554_v23 = vsel %vm1233_vm2, %v2553_v0, %v2549_v51 }
 0x2e6   :  { %v1196_v25 = vpop.permute.xlu1 %1195  ;;  %v2425_v48 = vpop.permute.xlu0 %2424 }
 0x2e7   :  { %v2558_v55 = vrot.slane %v2425_v48, %v13853_v19 }
 0x2eb   :  { %v2428_v33 = vpop.permute.xlu1 %2427  ;;  %v13952_v30 = vpop.permute.xlu0 %1210 }
 0x2ec   :  { %v2562_v50 = vrot.slane %v2428_v33, %v13860_v22  ;;  %v1315_v33 = vsel %vm1233_vm2, %v1314_v28, %v1310_v56  ;;  %v1350_v7 = vrot.slane %v13952_v30, %v13860_v22 }
 0x2ed   :  { %v1384_v11 = vsel %vm1370_vm3, %v1315_v33, %v1306_v54 }
 0x2ee   :  { %v2563_v14 = vsel %vm1233_vm2, %v2562_v50, %v2558_v55 }
 0x2f0   :  { %v1202_v27 = vpop.permute.xlu1 %1201  ;;  %v2431_v1 = vpop.permute.xlu0 %2430 }
 0x2f1   :  { %v2567_v12 = vrot.slane %v2431_v1, %v13853_v19  ;;  %v1337_v20 = vrot.slane %v1202_v27, %v13853_v19 }
 0x2f3   :  { %v1342_v50 = vsel %vm1233_vm2, %v1341_v9, %v1337_v20 }
 0x2f5   :  { %v2434_v2 = vpop.permute.xlu1 %2433  ;;  %v13954_v13 = vpop.permute.xlu0 %1216 }
 0x2f6   :  { %v2571_v59 = vrot.slane %v2434_v2, %v13860_v22  ;;  %v1328_v2 = vrot.slane %v1196_v25, %v13853_v19  ;;  %v1359_v10 = vrot.slane %v13954_v13, %v13860_v22 }
 0x2f8   :  { %v2572_v47 = vsel %vm1233_vm2, %v2571_v59, %v2567_v12  ;;  %v1333_v26 = vsel %vm1233_vm2, %v1332_v21, %v1328_v2 }
 0x2fa   :  { %v1208_v6 = vpop.permute.xlu1 %1207  ;;  %v2437_v45 = vpop.permute.xlu0 %2436 }
 0x2fb   :  { %v2576_v15 = vrot.slane %v2437_v45, %v13853_v19  ;;  %v1346_v25 = vrot.slane %v1208_v6, %v13853_v19 }
 0x2fd   :  { %v1351_v54 = vsel %vm1233_vm2, %v1350_v7, %v1346_v25 }
 0x2ff   :  { %v2440_v37 = vpop.permute.xlu1 %2439  ;;  %v1223_v61 = vpop.permute.xlu0 %1222 }
 0x300   :  { %v2580_v58 = vrot.slane %v2440_v37, %v13860_v22  ;;  %v2599_v37 = vsel %vm1372_vm4, %v2545_v63, %v2598_v40  ;;  %v1368_v13 = vrot.slane %v1223_v61, %v13860_v22 }
 0x301   :  { %v2600_v1 = vsel %vm1374_vm5, %v2554_v23, %v2599_v37 }
 0x302   :  { %v2581_v28 = vsel %vm1233_vm2, %v2580_v58, %v2576_v15  ;;  %v2601_v45 = vsel %vm17957_vm6, %v2563_v14, %v2600_v1 }
 0x303   :  { %v2602_v6 = vsel %vm17909_vm7, %v2572_v47, %v2601_v45 }
 0x304   :  { %v1214_v62 = vpop.permute.xlu1 %1213  ;;  %v2443_v48 = vpop.permute.xlu0 %2442  ;;  %v2603_v59 = vsel %vm17908_vm8, %v2581_v28, %v2602_v6 }
 0x305   :  { %v1355_v0 = vrot.slane %v1214_v62, %v13853_v19  ;;  %v2585_v34 = vrot.slane %v2443_v48, %v13853_v19  ;;  %v1385_v62 = vsel %vm1372_vm4, %v1324_v42, %v1384_v11 }
 0x306   :  { %v1386_v63 = vsel %vm1374_vm5, %v1333_v26, %v1385_v62 }
 0x307   :  { %v1360_v30 = vsel %vm1233_vm2, %v1359_v10, %v1355_v0  ;;  %v1387_v40 = vsel %vm17957_vm6, %v1342_v50, %v1386_v63 }
 0x308   :  { %v1388_v23 = vsel %vm17909_vm7, %v1351_v54, %v1387_v40 }
 0x309   :  { %v2446_v56 = vpop.permute.xlu1 %2445  ;;  %v1389_v21 = vsel %vm17908_vm8, %v1360_v30, %v1388_v23 }
 0x30a   :  { %v2589_v27 = vrot.slane %v2446_v56, %v13860_v22 }
 0x30c   :  { %v2590_v51 = vsel %vm1233_vm2, %v2589_v27, %v2585_v34 }
 0x30d   :  { %v2604_v5 = vsel %vm17907_vm9, %v2590_v51, %v2603_v59 }
 0x30e   :  { %v1220_v55 = vpop.permute.xlu1 %1219  ;;  %v2610_v58 = vsel %vm17912_vm10, %v2604_v5, -inf }
 0x30f   :  { %v1364_v33 = vrot.slane %v1220_v55, %v13853_v19  ;;  %2611 = vmax.xlane.f32.xlu0 %v2610_v58 }
 0x311   :  { %v1369_v12 = vsel %vm1233_vm2, %v1368_v13, %v1364_v33 }
 0x312   :  { %v1390_v2 = vsel %vm17907_vm9, %v1369_v12, %v1389_v21 }
 0x313   :  { %v1397_v14 = vsel %vm17912_vm10, %v1390_v2, -inf }
 0x314   :  { %1398 = vmax.xlane.f32.xlu1 %v1397_v14 }
 0x351   :  { %v1396_v15 = vpop.xlane.xlu0 %1395 }
 0x352   :  { %v1405_v48 = vrot.slane %v1396_v15, %v13304_v35  ;;  %v1409_v37 = vrot.slane %v1396_v15, %v13307_v36  ;;  %v1417_v61 = vrot.slane %v1396_v15, %v13331_v46  ;;  %v1421_v1 = vrot.slane %v1396_v15, %v13338_v49 }
 0x353   :  { %v1413_v56 = vrot.slane %v1396_v15, %v13324_v43  ;;  %v1425_v34 = vrot.slane %v1396_v15, %v13345_v52  ;;  %v1429_v6 = vrot.slane %v1396_v15, %v13352_v57  ;;  %v14044_v54 = vrot.slane %v1396_v15, %v13365_v3 }
 0x354   :  { %v1482_v42 = vsub.f32 %v13500_v24, %v1405_v48  ;;  %v1483_v20 = vsub.f32 %v13493_v17, %v1405_v48  ;;  %v1484_v47 = vsub.f32 %v13521_v39, %v1409_v37  ;;  %v1488_v9 = vsub.f32 %v13550_v53, %v1417_v61 }
 0x355   :  { %v1485_v45 = vsub.f32 %v13509_v29, %v1409_v37  ;;  %v1490_v27 = vsub.f32 %v13582_v18, %v1421_v1  ;;  %v1486_v26 = vsub.f32 %v13531_v44, %v1413_v56  ;;  %v1492_v50 = vsub.f32 %v13614_v8, %v1425_v34  ;;  %v14051_v40 = vpop.xlane.xlu0 %2608 }
 0x356   :  { %v1514_v25 = vmul.f32 1.442695, %v1482_v42  ;;  %v1516_v28 = vmul.f32 1.442695, %v1483_v20  ;;  %v1518_v0 = vmul.f32 1.442695, %v1484_v47  ;;  %v1487_v51 = vsub.f32 %v13518_v38, %v1413_v56 }
 0x357   :  { %v1526_v11 = vmul.f32 1.442695, %v1488_v9  ;;  %v1520_v7 = vmul.f32 1.442695, %v1485_v45  ;;  %v1530_v10 = vmul.f32 1.442695, %v1490_v27  ;;  %v1494_v5 = vsub.f32 %v13642_v16, %v1429_v6 }
 0x358   :  { %12608 = vpow2.f32 %v1514_v25  ;;  %v1522_v59 = vmul.f32 1.442695, %v1486_v26  ;;  %v1534_v63 = vmul.f32 1.442695, %v1492_v50  ;;  %v1489_v55 = vsub.f32 %v13540_v41, %v1417_v61  ;;  %v18158_v26 = vld [vmem:[#allocation56_spill] sm:$0xff] }
 0x359   :  { %12610 = vpow2.f32 %v1516_v28  ;;  %v1524_v58 = vmul.f32 1.442695, %v1487_v51  ;;  %v1496_v33 = vsub.f32 %v13668_v4, %v14044_v54  ;;  %v1538_v23 = vmul.f32 1.442695, %v1494_v5 }
 0x35a   :  { %12612 = vpow2.f32 %v1518_v0  ;;  %v2618_v12 = vrot.slane %v14051_v40, %v13304_v35  ;;  %v1491_v2 = vsub.f32 %v13567_v60, %v1421_v1  ;;  %v1528_v14 = vmul.f32 1.442695, %v1489_v55 }
 0x35b   :  { %12614 = vpow2.f32 %v1526_v11  ;;  %v1542_v48 = vmul.f32 1.442695, %v1496_v33  ;;  %v2622_v37 = vrot.slane %v14051_v40, %v13307_v36  ;;  %v1493_v20 = vsub.f32 %v13597_v31, %v1425_v34 }
 0x35c   :  { %12616 = vpow2.f32 %v1520_v7  ;;  %v2695_v61 = vsub.f32 %v13500_v24, %v2618_v12  ;;  %v1532_v47 = vmul.f32 1.442695, %v1491_v2  ;;  %v14079_v9 = vrot.slane %v14051_v40, %v13324_v43 }
 0x35d   :  { %12618 = vpow2.f32 %v1530_v10  ;;  %v2698_v25 = vsub.f32 %v13509_v29, %v2622_v37  ;;  %v1495_v56 = vsub.f32 %v13629_v32, %v1429_v6  ;;  %v1536_v45 = vmul.f32 1.442695, %v1493_v20 }
 0x35e   :  { %12620 = vpow2.f32 %v1522_v59  ;;  %v2727_v24 = vmul.f32 1.442695, %v2695_v61  ;;  %v14091_v34 = vrot.slane %v14051_v40, %v13331_v46  ;;  %v2700_v29 = vsub.f32 %v13518_v38, %v14079_v9 }
 0x35f   :  { %12622 = vpow2.f32 %v1534_v63  ;;  %v2733_v27 = vmul.f32 1.442695, %v2698_v25  ;;  %v1497_v7 = vsub.f32 %v18158_v26, %v14044_v54  ;;  %v1540_v6 = vmul.f32 1.442695, %v1495_v56 }
 0x360   :  { %12624 = vpow2.f32 %v1524_v58  ;;  %v2634_v10 = vrot.slane %v14051_v40, %v13338_v49  ;;  %v2702_v38 = vsub.f32 %v13540_v41, %v14091_v34  ;;  %v2737_v51 = vmul.f32 1.442695, %v2700_v29 }
 0x361   :  { %12626 = vpow2.f32 %v1538_v23  ;;  %v1544_v54 = vmul.f32 1.442695, %v1497_v7  ;;  %v2696_v5 = vsub.f32 %v13493_v17, %v2618_v12  ;;  %v2638_v55 = vrot.slane %v14051_v40, %v13345_v52 }
 0x362   :  { %v14041_v62 = vpop.eup %12608  ;;  %12628 = vpow2.f32 %v1528_v14  ;;  %v2704_v58 = vsub.f32 %v13567_v60, %v2634_v10  ;;  %v2741_v41 = vmul.f32 1.442695, %v2702_v38  ;;  %v2697_v23 = vsub.f32 %v13521_v39, %v2622_v37 }
 0x363   :  { %v14047_v30 = vpop.eup %12610  ;;  %1611 = vperm.xlu1 %12424, %v14041_v62   ;;  %12630 = vpow2.f32 %v1542_v48  ;;  %v2729_v2 = vmul.f32 1.442695, %v2696_v5  ;;  %v18159_v17 = vmov 1   ;;  %v2642_v14 = vrot.slane %v14051_v40, %v13352_v57 }
 0x364   :  { %1614 = vperm.xlu0 %12426, %v14047_v30   ;;  %v14054_v13 = vpop.eup %12612  ;;  %12632 = vpow2.f32 %v1532_v47  ;;  %v2706_v60 = vsub.f32 %v13597_v31, %v2638_v55  ;;  %v2745_v48 = vmul.f32 1.442695, %v2704_v58  ;;  %v2699_v39 = vsub.f32 %v13531_v44, %v14079_v9 }
 0x365   :  { %v14061_v21 = vpop.eup %12614  ;;  %12634 = vpow2.f32 %v2727_v24  ;;  %v2731_v37 = vmul.f32 1.442695, %v2697_v23  ;;  %v2646_v47 = vrot.slane %v14051_v40, %v13365_v3  ;;  %v2708_v31 = vsub.f32 %v13629_v32, %v2642_v14 }
 0x366   :  { %v14065_v15 = vpop.eup %12616  ;;  %12636 = vpow2.f32 %v1536_v45  ;;  %v2749_v25 = vmul.f32 1.442695, %v2706_v60  ;;  %v2701_v44 = vsub.f32 %v13550_v53, %v14091_v34  ;;  %v2735_v9 = vmul.f32 1.442695, %v2699_v39 }
 0x367   :  { %1617 = vperm.xlu1 %12424, %v14054_v13   ;;  %v14071_v42 = vpop.eup %12618  ;;  %12638 = vpow2.f32 %v2733_v27  ;;  %v2710_v45 = vsub.f32 %v18158_v26, %v2646_v47  ;;  %v2753_v40 = vmul.f32 1.442695, %v2708_v31  ;;  %v2703_v29 = vsub.f32 %v13582_v18, %v2634_v10 }
 0x368   :  { %1629 = vperm.xlu0 %12426, %v14061_v21   ;;  %v14075_v1 = vpop.eup %12620  ;;  %12640 = vpow2.f32 %v1540_v6  ;;  %v2739_v27 = vmul.f32 1.442695, %v2701_v44  ;;  %v2705_v7 = vsub.f32 %v13614_v8, %v2638_v55  ;;  %v2707_v38 = vsub.f32 %v13642_v16, %v2642_v14  ;;  %v18176_v44 = vld [vmem:[#allocation58_spill] sm:$0xff] }
 0x369   :  { %v14083_v28 = vpop.eup %12622  ;;  %12642 = vpow2.f32 %v2737_v51  ;;  %v2757_v34 = vmul.f32 1.442695, %v2710_v45  ;;  %v2743_v6 = vmul.f32 1.442695, %v2703_v29  ;;  %v2709_v5 = vsub.f32 %v13668_v4, %v2646_v47  ;;  %v18175_v47 = vld [vmem:[#allocation59_spill] sm:$0xff] }
 0x36a   :  { %v14087_v0 = vpop.eup %12624  ;;  %12644 = vpow2.f32 %v1544_v54  ;;  %v2747_v51 = vmul.f32 1.442695, %v2705_v7  ;;  %v2751_v55 = vmul.f32 1.442695, %v2707_v38  ;;  %v18171_v4 = vmov 0  }
 0x36b   :  { %1620 = vperm.xlu1 %12424, %v14065_v15   ;;  %v14096_v11 = vpop.eup %12626  ;;  %12646 = vpow2.f32 %v2741_v41  ;;  %v2755_v41 = vmul.f32 1.442695, %v2709_v5 }
 0x36c   :  { %1635 = vperm.xlu0 %12426, %v14071_v42   ;;  %v14101_v50 = vpop.eup %12628  ;;  %12648 = vpow2.f32 %v2729_v2 }
 0x36d   :  { %v14108_v59 = vpop.eup %12630  ;;  %12650 = vpow2.f32 %v2745_v48 }
 0x36e   :  { %v14112_v63 = vpop.eup %12632  ;;  %12652 = vpow2.f32 %v2731_v37 }
 0x36f   :  { %1623 = vperm.xlu1 %12424, %v14075_v1   ;;  %v14118_v33 = vpop.eup %12634  ;;  %12654 = vpow2.f32 %v2749_v25 }
 0x370   :  { %1641 = vperm.xlu0 %12426, %v14083_v28   ;;  %v14122_v12 = vpop.eup %12636  ;;  %12656 = vpow2.f32 %v2735_v9 }
 0x371   :  { %v14129_v61 = vpop.eup %12638  ;;  %12658 = vpow2.f32 %v2753_v40  ;;  %v18177_v40 = vld [vmem:[#allocation63_spill] sm:$0xff] }
 0x372   :  { %18160 = vst [vmem:[#allocation56_spill] sm:$0xff] %v14129_v61  ;;  %v14133_v20 = vpop.eup %12640  ;;  %12660 = vpow2.f32 %v2739_v27 }
 0x373   :  { %1626 = vperm.xlu1 %12424, %v14087_v0   ;;  %v14140_v24 = vpop.eup %12642  ;;  %12662 = vpow2.f32 %v2757_v34  ;;  %v18178_v34 = vld [vmem:[#allocation61_spill] sm:$0xff] }
 0x374   :  { %1647 = vperm.xlu0 %12426, %v14096_v11   ;;  %18161 = vst [vmem:[#allocation77_spill] sm:$0xff] %v14140_v24  ;;  %v14144_v56 = vpop.eup %12644  ;;  %12664 = vpow2.f32 %v2743_v6 }
 0x375   :  { %v14149_v32 = vpop.eup %12646  ;;  %12666 = vpow2.f32 %v2747_v51  ;;  %v18179_v51 = vld [vmem:[#allocation65_spill] sm:$0xff] }
 0x376   :  { %18162 = vst [vmem:[#allocation78_spill] sm:$0xff] %v14149_v32  ;;  %v14153_v53 = vpop.eup %12648  ;;  %12668 = vpow2.f32 %v2751_v55 }
 0x377   :  { %1632 = vperm.xlu1 %12424, %v14101_v50   ;;  %v14157_v26 = vpop.eup %12650  ;;  %12670 = vpow2.f32 %v2755_v41  ;;  %v18180_v41 = vld [vmem:[#allocation60_spill] sm:$0xff] }
 0x378   :  { %1653 = vperm.xlu0 %12426, %v14108_v59   ;;  %18163 = vst [vmem:[#allocation79_spill] sm:$0xff] %v14157_v26  ;;  %v14161_v18 = vpop.eup %12652 }
 0x379   :  { %18164 = vst [vmem:[#allocation80_spill] sm:$0xff] %v14161_v18  ;;  %v14164_v10 = vpop.eup %12654 }
 0x37a   :  { %18165 = vst [vmem:[#allocation81_spill] sm:$0xff] %v14164_v10  ;;  %v14168_v54 = vpop.eup %12656 }
 0x37b   :  { %1638 = vperm.xlu1 %12424, %v14112_v63   ;;  %18166 = vst [vmem:[#allocation82_spill] sm:$0xff] %v14168_v54  ;;  %v14171_v8 = vpop.eup %12658 }
 0x37c   :  { %12427 = vset.pattern.permute.xlu0 %v18159_v17  ;;  %18167 = vst [vmem:[#allocation83_spill] sm:$0xff] %v14171_v8  ;;  %v14175_v58 = vpop.eup %12660 }
 0x37d   :  { %2824 = vperm.xlu0 %12427, %v14118_v33   ;;  %18168 = vst [vmem:[#allocation84_spill] sm:$0xff] %v14175_v58  ;;  %v14178_v16 = vpop.eup %12662 }
 0x37e   :  { %18169 = vst [vmem:[#allocation85_spill] sm:$0xff] %v14178_v16  ;;  %v14181_v23 = vpop.eup %12664 }
 0x37f   :  { %1644 = vperm.xlu1 %12424, %v14122_v12   ;;  %18170 = vst [vmem:[#allocation86_spill] sm:$0xff] %v14181_v23  ;;  %v14185_v2 = vpop.eup %12666 }
 0x380   :  { %18172 = vst [vmem:[#allocation87_spill] sm:$0xff] %v14185_v2  ;;  %v14188_v14 = vpop.eup %12668 }
 0x381   :  { %2833 = vperm.xlu0 %12427, %v14129_v61   ;;  %18173 = vst [vmem:[#allocation88_spill] sm:$0xff] %v14188_v14  ;;  %v14191_v48 = vpop.eup %12670 }
 0x382   :  { %18174 = vst [vmem:[#allocation89_spill] sm:$0xff] %v14191_v48 }
 0x383   :  { %1650 = vperm.xlu1 %12424, %v14133_v20  }
 0x385   :  { %2839 = vperm.xlu0 %12427, %v14140_v24  }
 0x387   :  { %1656 = vperm.xlu1 %12424, %v14144_v56  }
 0x389   :  { %2845 = vperm.xlu0 %12427, %v14149_v32  }
 0x38b   :  { %12428 = vset.pattern.permute.xlu1 %v18159_v17 }
 0x38c   :  { %2827 = vperm.xlu1 %12428, %v14153_v53  }
 0x38d   :  { %2851 = vperm.xlu0 %12427, %v14157_v26  }
 0x390   :  { %2830 = vperm.xlu1 %12428, %v14161_v18  }
 0x391   :  { %2857 = vperm.xlu0 %12427, %v14164_v10  }
 0x394   :  { %2836 = vperm.xlu1 %12428, %v14168_v54  }
 0x395   :  { %2863 = vperm.xlu0 %12427, %v14171_v8   ;;  %v18181_v8 = vld [vmem:[#allocation67_spill] sm:$0xff] }
 0x398   :  { %2842 = vperm.xlu1 %12428, %v14175_v58  }
 0x399   :  { %2869 = vperm.xlu0 %12427, %v14178_v16  }
 0x39c   :  { %2848 = vperm.xlu1 %12428, %v14181_v23   ;;  %v18183_v23 = vld [vmem:[#allocation71_spill] sm:$0xff] }
 0x39d   :  { %12430 = vset.pattern.permute.xlu0 %v18171_v4 }
 0x3a0   :  { %2854 = vperm.xlu1 %12428, %v14185_v2  }
 0x3a1   :  { %v1399_v60 = vpop.xlane.xlu1 %1398 }
 0x3a2   :  { %v1437_v39 = vrot.slane %v1399_v60, %v13304_v35  ;;  %v1445_v37 = vrot.slane %v1399_v60, %v13324_v43  ;;  %v1441_v25 = vrot.slane %v1399_v60, %v13307_v36  ;;  %v1449_v45 = vrot.slane %v1399_v60, %v13331_v46 }
 0x3a3   :  { %v1453_v38 = vrot.slane %v1399_v60, %v13338_v49  ;;  %v1461_v26 = vrot.slane %v1399_v60, %v13352_v57 }
 0x3a4   :  { %2860 = vperm.xlu1 %12428, %v14188_v14   ;;  %v1498_v31 = vsub.f32 %v18175_v47, %v1437_v39  ;;  %v1499_v9 = vsub.f32 %v18176_v44, %v1437_v39  ;;  %v1502_v29 = vsub.f32 %v18177_v40, %v1445_v37  ;;  %v1500_v7 = vsub.f32 %v18178_v34, %v1441_v25 }
 0x3a5   :  { %v1504_v5 = vsub.f32 %v18179_v51, %v1449_v45  ;;  %v1501_v16 = vsub.f32 %v18180_v41, %v1441_v25  ;;  %v1457_v39 = vrot.slane %v1399_v60, %v13345_v52  ;;  %v1506_v14 = vsub.f32 %v18181_v8, %v1453_v38  ;;  %v18185_v25 = vld [vmem:[#allocation64_spill] sm:$0xff] }
 0x3a6   :  { %v1546_v27 = vmul.f32 1.442695, %v1498_v31  ;;  %v1548_v6 = vmul.f32 1.442695, %v1499_v9  ;;  %v1554_v55 = vmul.f32 1.442695, %v1502_v29 }
 0x3a7   :  { %v1558_v10 = vmul.f32 1.442695, %v1504_v5  ;;  %v18182_v31 = vld [vmem:[#allocation62_spill] sm:$0xff]  ;;  %v1552_v9 = vmul.f32 1.442695, %v1501_v16  ;;  %v1508_v32 = vsub.f32 %v18183_v23, %v1457_v39  ;;  %v1465_v5 = vrot.slane %v1399_v60, %v13365_v3 }
 0x3a8   :  { %2866 = vperm.xlu1 %12428, %v14191_v48   ;;  %12672 = vpow2.f32 %v1546_v27  ;;  %v1550_v48 = vmul.f32 1.442695, %v1500_v7  ;;  %v1503_v2 = vsub.f32 %v18182_v31, %v1445_v37  ;;  %v1562_v29 = vmul.f32 1.442695, %v1506_v14  ;;  %v18189_v14 = vld [vmem:[#allocation66_spill] sm:$0xff] }
 0x3a9   :  { %12674 = vpow2.f32 %v1548_v6  ;;  %v1505_v7 = vsub.f32 %v18185_v25, %v1449_v45  ;;  %v1566_v16 = vmul.f32 1.442695, %v1508_v32  ;;  %v1507_v24 = vsub.f32 %v18189_v14, %v1453_v38  ;;  %v18193_v38 = vld [vmem:[#allocation68_spill] sm:$0xff] }
 0x3aa   :  { %12676 = vpow2.f32 %v1554_v55  ;;  %v1556_v6 = vmul.f32 1.442695, %v1503_v2  ;;  %v18186_v55 = vld [vmem:[#allocation73_spill] sm:$0xff]  ;;  %v18190_v2 = vld [vmem:[#allocation75_spill] sm:$0xff] }
 0x3ab   :  { %12678 = vpow2.f32 %v1550_v48  ;;  %v1510_v37 = vsub.f32 %v18186_v55, %v1461_v26  ;;  %v1560_v45 = vmul.f32 1.442695, %v1505_v7  ;;  %v1512_v60 = vsub.f32 %v18190_v2, %v1465_v5 }
 0x3ac   :  { %12429 = vset.pattern.permute.xlu1 %v18171_v4  ;;  %12680 = vpow2.f32 %v1558_v10  ;;  %v14221_v10 = vpop.xlane.xlu0 %2611  ;;  %v1564_v54 = vmul.f32 1.442695, %v1507_v24  ;;  %v1509_v7 = vsub.f32 %v18193_v38, %v1457_v39  ;;  %v18196_v24 = vld [vmem:[#allocation72_spill] sm:$0xff] }
 0x3ad   :  { %12682 = vpow2.f32 %v1552_v9  ;;  %v1570_v9 = vmul.f32 1.442695, %v1510_v37  ;;  %v2650_v32 = vrot.slane %v14221_v10, %v13304_v35  ;;  %v2654_v37 = vrot.slane %v14221_v10, %v13307_v36 }
 0x3ae   :  { %12684 = vpow2.f32 %v1562_v29 }
 0x3af   :  { %12686 = vpow2.f32 %v1556_v6  ;;  %v1574_v6 = vmul.f32 1.442695, %v1512_v60  ;;  %v2658_v60 = vrot.slane %v14221_v10, %v13324_v43 }
 0x3b0   :  { %12688 = vpow2.f32 %v1566_v16  ;;  %v2712_v16 = vsub.f32 %v18176_v44, %v2650_v32 }
 0x3b1   :  { %12690 = vpow2.f32 %v1560_v45  ;;  %v1511_v45 = vsub.f32 %v18196_v24, %v1461_v26 }
 0x3b2   :  { %v14211_v27 = vpop.eup %12672  ;;  %12692 = vpow2.f32 %v1570_v9  ;;  %v2714_v9 = vsub.f32 %v18180_v41, %v2654_v37 }
 0x3b3   :  { %18184 = vst [vmem:[#allocation59_spill] sm:$0xff] %v14211_v27  ;;  %1659 = vperm.xlu1 %12429, %v14211_v27   ;;  %v14217_v48 = vpop.eup %12674  ;;  %12694 = vpow2.f32 %v1564_v54  ;;  %v18199_v54 = vld [vmem:[#allocation74_spill] sm:$0xff]  ;;  %v1572_v26 = vmul.f32 1.442695, %v1511_v45  ;;  %v2666_v45 = vrot.slane %v14221_v10, %v13338_v49 }
 0x3b4   :  { %18187 = vst [vmem:[#allocation58_spill] sm:$0xff] %v14217_v48  ;;  %v14219_v58 = vpop.eup %12676  ;;  %12696 = vpow2.f32 %v1574_v6  ;;  %v2662_v6 = vrot.slane %v14221_v10, %v13331_v46  ;;  %v2765_v41 = vmul.f32 1.442695, %v2714_v9  ;;  %v2713_v9 = vsub.f32 %v18178_v34, %v2654_v37 }
 0x3b5   :  { %18188 = vst [vmem:[#allocation63_spill] sm:$0xff] %v14219_v58  ;;  %1671 = vperm.xlu0 %12430, %v14219_v58   ;;  %v14227_v29 = vpop.eup %12678  ;;  %v2674_v37 = vrot.slane %v14221_v10, %v13352_v57 }
 0x3b6   :  { %18191 = vst [vmem:[#allocation61_spill] sm:$0xff] %v14227_v29  ;;  %v14231_v27 = vpop.eup %12680  ;;  %v2763_v34 = vmul.f32 1.442695, %v2713_v9 }
 0x3b7   :  { %1662 = vperm.xlu1 %12429, %v14217_v48   ;;  %18192 = vst [vmem:[#allocation65_spill] sm:$0xff] %v14231_v27  ;;  %v14236_v48 = vpop.eup %12682  ;;  %v2724_v9 = vsub.f32 %v18196_v24, %v2674_v37 }
 0x3b8   :  { %18194 = vst [vmem:[#allocation60_spill] sm:$0xff] %v14236_v48  ;;  %v14241_v58 = vpop.eup %12684 }
 0x3b9   :  { %1677 = vperm.xlu0 %12430, %v14231_v27   ;;  %18195 = vst [vmem:[#allocation67_spill] sm:$0xff] %v14241_v58  ;;  %v14246_v39 = vpop.eup %12686  ;;  %v2761_v27 = vmul.f32 1.442695, %v2712_v16  ;;  %v2785_v24 = vmul.f32 1.442695, %v2724_v9 }
 0x3ba   :  { %18197 = vst [vmem:[#allocation62_spill] sm:$0xff] %v14246_v39  ;;  %v14251_v44 = vpop.eup %12688 }
 0x3bb   :  { %1665 = vperm.xlu1 %12429, %v14227_v29   ;;  %v1568_v29 = vmul.f32 1.442695, %v1509_v7  ;;  %18198 = vst [vmem:[#allocation71_spill] sm:$0xff] %v14251_v44  ;;  %v14256_v7 = vpop.eup %12690 }
 0x3bc   :  { %18200 = vst [vmem:[#allocation64_spill] sm:$0xff] %v14256_v7  ;;  %v14261_v16 = vpop.eup %12692 }
 0x3bd   :  { %1683 = vperm.xlu0 %12430, %v14241_v58   ;;  %12698 = vpow2.f32 %v1568_v29  ;;  %v2716_v58 = vsub.f32 %v18182_v31, %v2658_v60  ;;  %18201 = vst [vmem:[#allocation73_spill] sm:$0xff] %v14261_v16  ;;  %v14266_v29 = vpop.eup %12694 }
 0x3be   :  { %12700 = vpow2.f32 %v2761_v27  ;;  %18202 = vst [vmem:[#allocation66_spill] sm:$0xff] %v14266_v29  ;;  %v14271_v27 = vpop.eup %12696 }
 0x3bf   :  { %1668 = vperm.xlu1 %12429, %v14236_v48   ;;  %v1513_v48 = vsub.f32 %v18199_v54, %v1465_v5  ;;  %12702 = vpow2.f32 %v1572_v26  ;;  %v2769_v31 = vmul.f32 1.442695, %v2716_v58  ;;  %18203 = vst [vmem:[#allocation75_spill] sm:$0xff] %v14271_v27 }
 0x3c0   :  { %12704 = vpow2.f32 %v2765_v41  ;;  %v2715_v41 = vsub.f32 %v18177_v40, %v2658_v60  ;;  %v2678_v60 = vrot.slane %v14221_v10, %v13365_v3 }
 0x3c1   :  { %1689 = vperm.xlu0 %12430, %v14251_v44   ;;  %v2711_v44 = vsub.f32 %v18175_v47, %v2650_v32  ;;  %v1576_v5 = vmul.f32 1.442695, %v1513_v48  ;;  %v2670_v48 = vrot.slane %v14221_v10, %v13345_v52  ;;  %v2720_v32 = vsub.f32 %v18189_v14, %v2666_v45 }
 0x3c2   :  { %v2767_v40 = vmul.f32 1.442695, %v2715_v41  ;;  %v2726_v10 = vsub.f32 %v18199_v54, %v2678_v60 }
 0x3c3   :  { %1674 = vperm.xlu1 %12429, %v14246_v39   ;;  %v2718_v39 = vsub.f32 %v18185_v25, %v2662_v6  ;;  %v2759_v47 = vmul.f32 1.442695, %v2711_v44  ;;  %12706 = vpow2.f32 %v1576_v5  ;;  %v2722_v14 = vsub.f32 %v18193_v38, %v2670_v48 }
 0x3c4   :  { %12708 = vpow2.f32 %v2769_v31  ;;  %v2717_v31 = vsub.f32 %v18179_v51, %v2662_v6  ;;  %v2719_v51 = vsub.f32 %v18181_v8, %v2666_v45  ;;  %v2721_v45 = vsub.f32 %v18183_v23, %v2670_v48 }
 0x3c5   :  { %1695 = vperm.xlu0 %12430, %v14261_v16   ;;  %v2773_v26 = vmul.f32 1.442695, %v2718_v39  ;;  %12710 = vpow2.f32 %v2759_v47  ;;  %v2777_v39 = vmul.f32 1.442695, %v2720_v32  ;;  %v2781_v38 = vmul.f32 1.442695, %v2722_v14 }
 0x3c6   :  { %v2771_v6 = vmul.f32 1.442695, %v2717_v31  ;;  %v2775_v8 = vmul.f32 1.442695, %v2719_v51  ;;  %v2789_v54 = vmul.f32 1.442695, %v2726_v10  ;;  %v2723_v51 = vsub.f32 %v18186_v55, %v2674_v37 }
 0x3c7   :  { %1680 = vperm.xlu1 %12429, %v14256_v7   ;;  %v14279_v25 = vpop.eup %12698  ;;  %12712 = vpow2.f32 %v2773_v26 }
 0x3c8   :  { %18204 = vst [vmem:[#allocation68_spill] sm:$0xff] %v14279_v25  ;;  %v14281_v58 = vpop.eup %12700  ;;  %12714 = vpow2.f32 %v2763_v34 }
 0x3c9   :  { %1701 = vperm.xlu0 %12430, %v14271_v27   ;;  %18205 = vst [vmem:[#allocation72_spill] sm:$0xff] %v14281_v58  ;;  %v14290_v44 = vpop.eup %12702  ;;  %12716 = vpow2.f32 %v2777_v39 }
 0x3ca   :  { %18206 = vst [vmem:[#allocation74_spill] sm:$0xff] %v14290_v44  ;;  %v14292_v5 = vpop.eup %12704  ;;  %12718 = vpow2.f32 %v2767_v40 }
 0x3cb   :  { %1686 = vperm.xlu1 %12429, %v14266_v29   ;;  %18207 = vst [vmem:[#allocation90_spill] sm:$0xff] %v14292_v5  ;;  %12720 = vpow2.f32 %v2781_v38 }
 0x3cc   :  { %12722 = vpow2.f32 %v2771_v6  ;;  %v2779_v6 = vmul.f32 1.442695, %v2721_v45 }
 0x3cd   :  { %12432 = vset.pattern.permute.xlu0 %v18159_v17  ;;  %v14300_v47 = vpop.eup %12706  ;;  %12724 = vpow2.f32 %v2785_v24 }
 0x3ce   :  { %2875 = vperm.xlu0 %12432, %v14281_v58   ;;  %18208 = vst [vmem:[#allocation91_spill] sm:$0xff] %v14300_v47  ;;  %v14302_v32 = vpop.eup %12708  ;;  %12726 = vpow2.f32 %v2775_v8  ;;  %v2725_v8 = vsub.f32 %v18190_v2, %v2678_v60 }
 0x3cf   :  { %1692 = vperm.xlu1 %12429, %v14279_v25   ;;  %18209 = vst [vmem:[#allocation92_spill] sm:$0xff] %v14302_v32  ;;  %v14312_v34 = vpop.eup %12710  ;;  %12728 = vpow2.f32 %v2789_v54 }
 0x3d0   :  { %18210 = vst [vmem:[#allocation93_spill] sm:$0xff] %v14312_v34  ;;  %12730 = vpow2.f32 %v2779_v6  ;;  %v2787_v54 = vmul.f32 1.442695, %v2725_v8 }
 0x3d1   :  { %v14314_v14 = vpop.eup %12712 }
 0x3d2   :  { %2881 = vperm.xlu0 %12432, %v14292_v5   ;;  %18211 = vst [vmem:[#allocation94_spill] sm:$0xff] %v14314_v14  ;;  %v14324_v40 = vpop.eup %12714 }
 0x3d3   :  { %1698 = vperm.xlu1 %12429, %v14290_v44   ;;  %18212 = vst [vmem:[#allocation95_spill] sm:$0xff] %v14324_v40  ;;  %v14326_v9 = vpop.eup %12716 }
 0x3d4   :  { %18213 = vst [vmem:[#allocation96_spill] sm:$0xff] %v14326_v9  ;;  %v14335_v48 = vpop.eup %12718 }
 0x3d5   :  { %18214 = vst [vmem:[#allocation97_spill] sm:$0xff] %v14335_v48  ;;  %v14337_v10 = vpop.eup %12720 }
 0x3d6   :  { %2887 = vperm.xlu0 %12432, %v14302_v32   ;;  %18215 = vst [vmem:[#allocation98_spill] sm:$0xff] %v14337_v10  ;;  %v14344_v55 = vpop.eup %12722 }
 0x3d7   :  { %1704 = vperm.xlu1 %12429, %v14300_v47   ;;  %18216 = vst [vmem:[#allocation99_spill] sm:$0xff] %v14344_v55  ;;  %v14346_v37 = vpop.eup %12724 }
 0x3d8   :  { %18217 = vst [vmem:[#allocation100_spill] sm:$0xff] %v14346_v37  ;;  %v14350_v32 = vpop.eup %12726 }
 0x3d9   :  { %18218 = vst [vmem:[#allocation101_spill] sm:$0xff] %v14350_v32 }
 0x3da   :  { %2893 = vperm.xlu0 %12432, %v14314_v14  }
 0x3db   :  { %12431 = vset.pattern.permute.xlu1 %v18159_v17 }
 0x3dc   :  { %2872 = vperm.xlu1 %12431, %v14312_v34  }
 0x3de   :  { %2899 = vperm.xlu0 %12432, %v14326_v9   ;;  %v2783_v9 = vmul.f32 1.442695, %v2723_v51 }
 0x3e0   :  { %2878 = vperm.xlu1 %12431, %v14324_v40   ;;  %12732 = vpow2.f32 %v2783_v9 }
 0x3e1   :  { %12734 = vpow2.f32 %v2787_v54 }
 0x3e2   :  { %v14305_v26 = vpop.permute.xlu1 %1611  ;;  %2905 = vperm.xlu0 %12432, %v14337_v10  }
 0x3e3   :  { %v14309_v41 = vpop.permute.xlu0 %1614  ;;  %v1709_v44 = vrot.slane %v14305_v26, %v13853_v19 }
 0x3e4   :  { %2884 = vperm.xlu1 %12431, %v14335_v48   ;;  %v14352_v48 = vpop.eup %12728 }
 0x3e5   :  { %18219 = vst [vmem:[#allocation102_spill] sm:$0xff] %v14352_v48  ;;  %v14356_v51 = vpop.eup %12730 }
 0x3e6   :  { %v14317_v39 = vpop.permute.xlu1 %1617  ;;  %2911 = vperm.xlu0 %12432, %v14346_v37   ;;  %18220 = vst [vmem:[#allocation103_spill] sm:$0xff] %v14356_v51 }
 0x3e7   :  { %v14322_v31 = vpop.permute.xlu0 %1629  ;;  %v1718_v16 = vrot.slane %v14317_v39, %v13853_v19 }
 0x3e8   :  { %2890 = vperm.xlu1 %12431, %v14344_v55  }
 0x3ea   :  { %v14328_v38 = vpop.permute.xlu1 %1620  ;;  %2917 = vperm.xlu0 %12432, %v14352_v48   ;;  %v14362_v8 = vpop.eup %12732 }
 0x3eb   :  { %v14333_v23 = vpop.permute.xlu0 %1635  ;;  %18221 = vst [vmem:[#allocation104_spill] sm:$0xff] %v14362_v8  ;;  %v14365_v48 = vpop.eup %12734  ;;  %v1722_v27 = vrot.slane %v14328_v38, %v13860_v22  ;;  %v1736_v38 = vrot.slane %v14322_v31, %v13853_v19 }
 0x3ec   :  { %2896 = vperm.xlu1 %12431, %v14350_v32   ;;  %18222 = vst [vmem:[#allocation105_spill] sm:$0xff] %v14365_v48  ;;  %v1745_v26 = vrot.slane %v14333_v23, %v13853_v19 }
 0x3ee   :  { %v1624_v24 = vpop.permute.xlu1 %1623  ;;  %12433 = vset.pattern.permute.xlu0 %v18171_v4 }
 0x3ef   :  { %v14342_v14 = vpop.permute.xlu0 %1641 }
 0x3f0   :  { %2902 = vperm.xlu1 %12431, %v14356_v51  }
 0x3f2   :  { %v1627_v45 = vpop.permute.xlu1 %1626 }
 0x3f3   :  { %v1648_v10 = vpop.permute.xlu0 %1647 }
 0x3f4   :  { %2908 = vperm.xlu1 %12431, %v14362_v8   ;;  %v1731_v8 = vrot.slane %v1627_v45, %v13860_v22  ;;  %v1723_v45 = vsel %vm1233_vm2, %v1722_v27, %v1718_v16  ;;  %v1754_v16 = vrot.slane %v14342_v14, %v13853_v19  ;;  %v1763_v23 = vrot.slane %v1648_v10, %v13853_v19 }
 0x3f6   :  { %v1633_v2 = vpop.permute.xlu1 %1632 }
 0x3f7   :  { %v1654_v60 = vpop.permute.xlu0 %1653  ;;  %v1740_v25 = vrot.slane %v1633_v2, %v13860_v22 }
 0x3f8   :  { %2914 = vperm.xlu1 %12431, %v14365_v48   ;;  %v1713_v48 = vrot.slane %v14309_v41, %v13860_v22 }
 0x3f9   :  { %v1741_v61 = vsel %vm1233_vm2, %v1740_v25, %v1736_v38  ;;  %v1772_v25 = vrot.slane %v1654_v60, %v13853_v19 }
 0x3fa   :  { %v1639_v6 = vpop.permute.xlu1 %1638  ;;  %v1714_v2 = vsel %vm1233_vm2, %v1713_v48, %v1709_v44 }
 0x3fb   :  { %v1749_v7 = vrot.slane %v1639_v6, %v13860_v22  ;;  %v1850_v18 = vsel %vm1370_vm3, %v1723_v45, %v1714_v2 }
 0x3fc   :  { %v14360_v9 = vpop.permute.xlu0 %2824  ;;  %12434 = vset.pattern.permute.xlu1 %v18171_v4  ;;  %v1727_v4 = vrot.slane %v1624_v24, %v13853_v19 }
 0x3fd   :  { %v1750_v27 = vsel %vm1233_vm2, %v1749_v7, %v1745_v26  ;;  %v2922_v38 = vrot.slane %v14360_v9, %v13853_v19 }
 0x3fe   :  { %v1645_v37 = vpop.permute.xlu1 %1644  ;;  %v1732_v41 = vsel %vm1233_vm2, %v1731_v8, %v1727_v4 }
 0x3ff   :  { %v1758_v39 = vrot.slane %v1645_v37, %v13860_v22  ;;  %v1851_v4 = vsel %vm1372_vm4, %v1732_v41, %v1850_v18 }
 0x400   :  { %v2834_v55 = vpop.permute.xlu0 %2833  ;;  %v1852_v44 = vsel %vm1374_vm5, %v1741_v61, %v1851_v4 }
 0x401   :  { %v1853_v37 = vsel %vm17957_vm6, %v1750_v27, %v1852_v44  ;;  %v2935_v18 = vrot.slane %v2834_v55, %v13860_v22 }
 0x402   :  { %v1651_v32 = vpop.permute.xlu1 %1650 }
 0x403   :  { %v1767_v24 = vrot.slane %v1651_v32, %v13860_v22  ;;  %v1759_v32 = vsel %vm1233_vm2, %v1758_v39, %v1754_v16 }
 0x404   :  { %v2840_v5 = vpop.permute.xlu0 %2839  ;;  %v1854_v26 = vsel %vm17909_vm7, %v1759_v32, %v1853_v37 }
 0x405   :  { %v1768_v14 = vsel %vm1233_vm2, %v1767_v24, %v1763_v23 }
 0x406   :  { %v1657_v54 = vpop.permute.xlu1 %1656  ;;  %v1855_v55 = vsel %vm17908_vm8, %v1768_v14, %v1854_v26 }
 0x407   :  { %v1776_v31 = vrot.slane %v1657_v54, %v13860_v22 }
 0x408   :  { %v2846_v40 = vpop.permute.xlu0 %2845 }
 0x409   :  { %v1777_v60 = vsel %vm1233_vm2, %v1776_v31, %v1772_v25 }
 0x40a   :  { %v1856_v9 = vsel %vm17907_vm9, %v1777_v60, %v1855_v55 }
 0x40b   :  { %v2828_v51 = vpop.permute.xlu1 %2827  ;;  %v1866_v23 = vsel %vm17912_vm10, %v1856_v9, 0.0 }
 0x40c   :  { %v2852_v34 = vpop.permute.xlu0 %2851  ;;  %v2926_v10 = vrot.slane %v2828_v51, %v13860_v22 }
 0x40f   :  { %v2831_v58 = vpop.permute.xlu1 %2830 }
 0x410   :  { %v2858_v17 = vpop.permute.xlu0 %2857  ;;  %v2931_v48 = vrot.slane %v2831_v58, %v13853_v19  ;;  %v2944_v58 = vrot.slane %v2840_v5, %v13860_v22  ;;  %v2927_v5 = vsel %vm1233_vm2, %v2926_v10, %v2922_v38 }
 0x411   :  { %v2971_v24 = vrot.slane %v2858_v17, %v13860_v22 }
 0x412   :  { %v2936_v41 = vsel %vm1233_vm2, %v2935_v18, %v2931_v48 }
 0x413   :  { %v2837_v47 = vpop.permute.xlu1 %2836  ;;  %v3063_v16 = vsel %vm1370_vm3, %v2936_v41, %v2927_v5 }
 0x414   :  { %v2940_v7 = vrot.slane %v2837_v47, %v13853_v19  ;;  %v2864_v8 = vpop.permute.xlu0 %2863  ;;  %v2953_v47 = vrot.slane %v2846_v40, %v13860_v22 }
 0x415   :  { %v2980_v27 = vrot.slane %v2864_v8, %v13860_v22 }
 0x416   :  { %v2945_v39 = vsel %vm1233_vm2, %v2944_v58, %v2940_v7 }
 0x417   :  { %v2843_v29 = vpop.permute.xlu1 %2842  ;;  %v3064_v4 = vsel %vm1372_vm4, %v2945_v39, %v3063_v16 }
 0x418   :  { %v2949_v61 = vrot.slane %v2843_v29, %v13853_v19  ;;  %v2962_v29 = vrot.slane %v2852_v34, %v13860_v22  ;;  %v2870_v31 = vpop.permute.xlu0 %2869 }
 0x419   :  { %v2989_v48 = vrot.slane %v2870_v31, %v13860_v22 }
 0x41b   :  { %v2849_v6 = vpop.permute.xlu1 %2848 }
 0x41c   :  { %v2958_v45 = vrot.slane %v2849_v6, %v13853_v19  ;;  %v2954_v6 = vsel %vm1233_vm2, %v2953_v47, %v2949_v61  ;;  %1867 = vadd.xlane.f32.xlu1 %v1866_v23 }
 0x41d   :  { %v3065_v25 = vsel %vm1374_vm5, %v2954_v6, %v3064_v4 }
 0x41e   :  { %v2963_v34 = vsel %vm1233_vm2, %v2962_v29, %v2958_v45 }
 0x41f   :  { %v2855_v54 = vpop.permute.xlu1 %2854  ;;  %v3066_v37 = vsel %vm17957_vm6, %v2963_v34, %v3065_v25 }
 0x420   :  { %v2967_v51 = vrot.slane %v2855_v54, %v13853_v19 }
 0x422   :  { %v2972_v44 = vsel %vm1233_vm2, %v2971_v24, %v2967_v51 }
 0x423   :  { %v2861_v2 = vpop.permute.xlu1 %2860  ;;  %v3067_v7 = vsel %vm17909_vm7, %v2972_v44, %v3066_v37 }
 0x424   :  { %v2976_v40 = vrot.slane %v2861_v2, %v13853_v19 }
 0x426   :  { %v2981_v17 = vsel %vm1233_vm2, %v2980_v27, %v2976_v40 }
 0x427   :  { %v2867_v32 = vpop.permute.xlu1 %2866  ;;  %v3068_v54 = vsel %vm17908_vm8, %v2981_v17, %v3067_v7 }
 0x428   :  { %v2985_v14 = vrot.slane %v2867_v32, %v13853_v19 }
 0x42a   :  { %v2990_v8 = vsel %vm1233_vm2, %v2989_v48, %v2985_v14 }
 0x42b   :  { %v3069_v18 = vsel %vm17907_vm9, %v2990_v8, %v3068_v54 }
 0x42c   :  { %v3079_v10 = vsel %vm17912_vm10, %v3069_v18, 0.0 }
 0x42d   :  { %3080 = vadd.xlane.f32.xlu0 %v3079_v10 }
 0x432   :  { %v1660_v61 = vpop.permute.xlu1 %1659 }
 0x433   :  { %v1781_v4 = vrot.slane %v1660_v61, %v13853_v19 }
 0x434   :  { %v1672_v60 = vpop.permute.xlu0 %1671 }
 0x435   :  { %v1799_v31 = vrot.slane %v1672_v60, %v13853_v19 }
 0x436   :  { %v1663_v38 = vpop.permute.xlu1 %1662 }
 0x437   :  { %v1785_v6 = vrot.slane %v1663_v38, %v13860_v22 }
 0x438   :  { %v1678_v58 = vpop.permute.xlu0 %1677 }
 0x439   :  { %v1808_v23 = vrot.slane %v1678_v58, %v13853_v19  ;;  %v1786_v37 = vsel %vm1233_vm2, %v1785_v6, %v1781_v4 }
 0x43a   :  { %v1666_v45 = vpop.permute.xlu1 %1665 }
 0x43b   :  { %v1790_v40 = vrot.slane %v1666_v45, %v13853_v19 }
 0x43c   :  { %v1684_v26 = vpop.permute.xlu0 %1683 }
 0x43d   :  { %v1817_v17 = vrot.slane %v1684_v26, %v13853_v19 }
 0x43e   :  { %v1669_v47 = vpop.permute.xlu1 %1668 }
 0x43f   :  { %v1794_v2 = vrot.slane %v1669_v47, %v13860_v22 }
 0x440   :  { %v1690_v41 = vpop.permute.xlu0 %1689 }
 0x441   :  { %v1795_v44 = vsel %vm1233_vm2, %v1794_v2, %v1790_v40  ;;  %v1826_v14 = vrot.slane %v1690_v41, %v13853_v19 }
 0x442   :  { %v1675_v55 = vpop.permute.xlu1 %1674  ;;  %v1857_v18 = vsel %vm1370_vm3, %v1795_v44, %v1786_v37 }
 0x443   :  { %v1803_v5 = vrot.slane %v1675_v55, %v13860_v22 }
 0x444   :  { %v1696_v51 = vpop.permute.xlu0 %1695 }
 0x445   :  { %v1804_v32 = vsel %vm1233_vm2, %v1803_v5, %v1799_v31  ;;  %v1835_v10 = vrot.slane %v1696_v51, %v13853_v19 }
 0x446   :  { %v1681_v29 = vpop.permute.xlu1 %1680  ;;  %v1858_v60 = vsel %vm1372_vm4, %v1804_v32, %v1857_v18 }
 0x447   :  { %v1812_v16 = vrot.slane %v1681_v29, %v13860_v22 }
 0x448   :  { %v1702_v39 = vpop.permute.xlu0 %1701 }
 0x449   :  { %v1813_v7 = vsel %vm1233_vm2, %v1812_v16, %v1808_v23  ;;  %v1844_v47 = vrot.slane %v1702_v39, %v13853_v19 }
 0x44a   :  { %v1687_v9 = vpop.permute.xlu1 %1686  ;;  %v1859_v58 = vsel %vm1374_vm5, %v1813_v7, %v1858_v60 }
 0x44b   :  { %v1821_v34 = vrot.slane %v1687_v9, %v13860_v22 }
 0x44d   :  { %v2876_v27 = vpop.permute.xlu0 %2875  ;;  %v1822_v61 = vsel %vm1233_vm2, %v1821_v34, %v1817_v17 }
 0x44e   :  { %v1693_v24 = vpop.permute.xlu1 %1692  ;;  %v1860_v41 = vsel %vm17957_vm6, %v1822_v61, %v1859_v58  ;;  %v2998_v18 = vrot.slane %v2876_v27, %v13860_v22 }
 0x44f   :  { %v1830_v25 = vrot.slane %v1693_v24, %v13860_v22 }
 0x451   :  { %v2882_v8 = vpop.permute.xlu0 %2881  ;;  %v1831_v38 = vsel %vm1233_vm2, %v1830_v25, %v1826_v14 }
 0x452   :  { %v1699_v48 = vpop.permute.xlu1 %1698  ;;  %v1861_v51 = vsel %vm17909_vm7, %v1831_v38, %v1860_v41 }
 0x453   :  { %v1839_v54 = vrot.slane %v1699_v48, %v13860_v22  ;;  %v3007_v48 = vrot.slane %v2882_v8, %v13860_v22 }
 0x455   :  { %v1840_v45 = vsel %vm1233_vm2, %v1839_v54, %v1835_v10  ;;  %v2888_v55 = vpop.permute.xlu0 %2887 }
 0x456   :  { %v1705_v26 = vpop.permute.xlu1 %1704  ;;  %v1862_v2 = vsel %vm17908_vm8, %v1840_v45, %v1861_v51  ;;  %v3016_v7 = vrot.slane %v2888_v55, %v13860_v22 }
 0x457   :  { %v1848_v29 = vrot.slane %v1705_v26, %v13860_v22 }
 0x459   :  { %v1849_v9 = vsel %vm1233_vm2, %v1848_v29, %v1844_v47  ;;  %v2894_v40 = vpop.permute.xlu0 %2893 }
 0x45a   :  { %v1863_v5 = vsel %vm17907_vm9, %v1849_v9, %v1862_v2  ;;  %v3025_v10 = vrot.slane %v2894_v40, %v13860_v22 }
 0x45b   :  { %v2873_v24 = vpop.permute.xlu1 %2872  ;;  %v1869_v6 = vsel %vm17912_vm10, %v1863_v5, 0.0 }
 0x45c   :  { %1870 = vadd.xlane.f32.xlu0 %v1869_v6  ;;  %v2994_v37 = vrot.slane %v2873_v24, %v13853_v19 }
 0x45d   :  { %v2900_v39 = vpop.permute.xlu0 %2899 }
 0x45e   :  { %v3034_v38 = vrot.slane %v2900_v39, %v13860_v22  ;;  %v2999_v45 = vsel %vm1233_vm2, %v2998_v18, %v2994_v37 }
 0x45f   :  { %v2879_v16 = vpop.permute.xlu1 %2878 }
 0x460   :  { %v3003_v44 = vrot.slane %v2879_v16, %v13853_v19 }
 0x461   :  { %v2906_v4 = vpop.permute.xlu0 %2905 }
 0x462   :  { %v3008_v61 = vsel %vm1233_vm2, %v3007_v48, %v3003_v44  ;;  %v3043_v26 = vrot.slane %v2906_v4, %v13860_v22 }
 0x463   :  { %v2885_v31 = vpop.permute.xlu1 %2884  ;;  %v3070_v27 = vsel %vm1370_vm3, %v3008_v61, %v2999_v45 }
 0x464   :  { %v3012_v25 = vrot.slane %v2885_v31, %v13853_v19 }
 0x465   :  { %v2912_v17 = vpop.permute.xlu0 %2911 }
 0x466   :  { %v3017_v8 = vsel %vm1233_vm2, %v3016_v7, %v3012_v25  ;;  %v3052_v55 = vrot.slane %v2912_v17, %v13860_v22 }
 0x467   :  { %v2891_v34 = vpop.permute.xlu1 %2890  ;;  %v3071_v9 = vsel %vm1372_vm4, %v3017_v8, %v3070_v27 }
 0x468   :  { %v3021_v14 = vrot.slane %v2891_v34, %v13853_v19 }
 0x469   :  { %v2918_v29 = vpop.permute.xlu0 %2917 }
 0x46a   :  { %v3026_v47 = vsel %vm1233_vm2, %v3025_v10, %v3021_v14  ;;  %v3061_v40 = vrot.slane %v2918_v29, %v13860_v22 }
 0x46b   :  { %v2897_v23 = vpop.permute.xlu1 %2896  ;;  %v3072_v5 = vsel %vm1374_vm5, %v3026_v47, %v3071_v9 }
 0x46c   :  { %v3030_v54 = vrot.slane %v2897_v23, %v13853_v19 }
 0x46e   :  { %v3035_v51 = vsel %vm1233_vm2, %v3034_v38, %v3030_v54 }
 0x46f   :  { %v2903_v32 = vpop.permute.xlu1 %2902  ;;  %v3073_v16 = vsel %vm17957_vm6, %v3035_v51, %v3072_v5 }
 0x470   :  { %v3039_v60 = vrot.slane %v2903_v32, %v13853_v19 }
 0x472   :  { %v3044_v2 = vsel %vm1233_vm2, %v3043_v26, %v3039_v60 }
 0x473   :  { %v2909_v58 = vpop.permute.xlu1 %2908  ;;  %v3074_v31 = vsel %vm17909_vm7, %v3044_v2, %v3073_v16 }
 0x474   :  { %v3048_v41 = vrot.slane %v2909_v58, %v13853_v19 }
 0x476   :  { %v3053_v24 = vsel %vm1233_vm2, %v3052_v55, %v3048_v41 }
 0x477   :  { %v2915_v6 = vpop.permute.xlu1 %2914  ;;  %v3075_v4 = vsel %vm17908_vm8, %v3053_v24, %v3074_v31 }
 0x478   :  { %v3057_v39 = vrot.slane %v2915_v6, %v13853_v19 }
 0x47a   :  { %v3062_v34 = vsel %vm1233_vm2, %v3061_v40, %v3057_v39 }
 0x47b   :  { %v3076_v23 = vsel %vm17907_vm9, %v3062_v34, %v3075_v4 }
 0x47c   :  { %v3082_v44 = vsel %vm17912_vm10, %v3076_v23, 0.0 }
 0x47d   :  { %3083 = vadd.xlane.f32.xlu1 %v3082_v44 }
 0x4a9   :  { %v1868_v25 = vpop.xlane.xlu1 %1867 }
 0x4aa   :  { %12736 = vrcp.f32 %v1868_v25 }
 0x4b4   :  { %v12737_v17 = vpop.eup %12736 }
 0x4b5   :  { %v1879_v32 = vrot.slane %v12737_v17, %v13304_v35  ;;  %v1887_v48 = vrot.slane %v12737_v17, %v13324_v43  ;;  %v1883_v37 = vrot.slane %v12737_v17, %v13307_v36  ;;  %v1891_v14 = vrot.slane %v12737_v17, %v13331_v46 }
 0x4b6   :  { %v1895_v45 = vrot.slane %v12737_v17, %v13338_v49  ;;  %v1903_v55 = vrot.slane %v12737_v17, %v13352_v57  ;;  %v1907_v5 = vrot.slane %v12737_v17, %v13365_v3 }
 0x4b7   :  { %v1956_v7 = vmul.f32 %v14041_v62, %v1879_v32  ;;  %v1957_v54 = vmul.f32 %v14047_v30, %v1879_v32  ;;  %v1960_v18 = vmul.f32 %v14075_v1, %v1887_v48  ;;  %v1961_v10 = vmul.f32 %v14087_v0, %v1887_v48 }
 0x4b8   :  { %v1958_v61 = vmul.f32 %v14054_v13, %v1883_v37  ;;  %v1959_v60 = vmul.f32 %v14065_v15, %v1883_v37  ;;  %v1962_v8 = vmul.f32 %v14061_v21, %v1891_v14  ;;  %v1963_v58 = vmul.f32 %v14101_v50, %v1891_v14  ;;  %v18223_v37 = vld [vmem:[#allocation80_spill] sm:$0xff] }
 0x4b9   :  { %v1988_v38 = vpack.c.bf16 %v1957_v54, %v1956_v7  ;;  %v1990_v41 = vpack.c.bf16 %v1961_v10, %v1960_v18  ;;  %v1964_v1 = vmul.f32 %v14071_v42, %v1895_v45  ;;  %v1899_v13 = vrot.slane %v12737_v17, %v13345_v52  ;;  %v18224_v14 = vld [vmem:[#allocation56_spill] sm:$0xff] }
 0x4ba   :  { %v3081_v26 = vpop.xlane.xlu0 %3080  ;;  %v1989_v30 = vpack.c.bf16 %v1959_v60, %v1958_v61  ;;  %v1991_v27 = vpack.c.bf16 %v1963_v58, %v1962_v8  ;;  %v1965_v21 = vmul.f32 %v14112_v63, %v1895_v45  ;;  %v1968_v63 = vmul.f32 %v14096_v11, %v1903_v55  ;;  %v18225_v61 = vld [vmem:[#allocation82_spill] sm:$0xff] }
 0x4bb   :  { %v2020_v47 = vunpack.c.l.b16 %v1988_v38  ;;  %v2021_v62 = vunpack.c.h.b16 %v1988_v38  ;;  %12738 = vrcp.f32 %v3081_v26  ;;  %v2024_v15 = vunpack.c.l.b16 %v1990_v41  ;;  %v18226_v38 = vld [vmem:[#allocation77_spill] sm:$0xff]  ;;  %v18228_v26 = vld [vmem:[#allocation84_spill] sm:$0xff] }
 0x4bc   :  { %v2022_v0 = vunpack.c.l.b16 %v1989_v30  ;;  %v1966_v50 = vmul.f32 %v14083_v28, %v1899_v13  ;;  %v2026_v29 = vunpack.c.l.b16 %v1991_v27  ;;  %v2023_v51 = vunpack.c.h.b16 %v1989_v30  ;;  %v18229_v30 = vld [vmem:[#allocation78_spill] sm:$0xff] }
 0x4bd   :  { %2053 = vperm.xlu0 %12433, %v2020_v47   ;;  %2056 = vperm.xlu1 %12434, %v2021_v62   ;;  %v1992_v9 = vpack.c.bf16 %v1965_v21, %v1964_v1  ;;  %v1967_v2 = vmul.f32 %v14122_v12, %v1899_v13  ;;  %v2025_v42 = vunpack.c.h.b16 %v1990_v41  ;;  %v1969_v40 = vmul.f32 %v14133_v20, %v1903_v55 }
 0x4be   :  { %v2027_v28 = vunpack.c.h.b16 %v1991_v27  ;;  %v1970_v34 = vmul.f32 %v14108_v59, %v1907_v5  ;;  %v1971_v12 = vmul.f32 %v14144_v56, %v1907_v5  ;;  %v18227_v58 = vmov 1  }
 0x4bf   :  { %v2028_v24 = vunpack.c.l.b16 %v1992_v9  ;;  %v1993_v6 = vpack.c.bf16 %v1967_v2, %v1966_v50  ;;  %v1994_v31 = vpack.c.bf16 %v1969_v40, %v1968_v63  ;;  %v2029_v44 = vunpack.c.h.b16 %v1992_v9  ;;  %v18230_v50 = vld [vmem:[#allocation86_spill] sm:$0xff]  ;;  %v18232_v2 = vld [vmem:[#allocation87_spill] sm:$0xff] }
 0x4c0   :  { %v1995_v25 = vpack.c.bf16 %v1971_v12, %v1970_v34  ;;  %v18234_v12 = vld [vmem:[#allocation88_spill] sm:$0xff] }
 0x4c1   :  { %2065 = vperm.xlu0 %12433, %v2024_v15   ;;  %2059 = vperm.xlu1 %12434, %v2022_v0   ;;  %v2030_v39 = vunpack.c.l.b16 %v1993_v6  ;;  %v2032_v23 = vunpack.c.l.b16 %v1994_v31  ;;  %v2031_v48 = vunpack.c.h.b16 %v1993_v6  ;;  %v2033_v18 = vunpack.c.h.b16 %v1994_v31  ;;  %v18233_v6 = vld [vmem:[#allocation81_spill] sm:$0xff] }
 0x4c2   :  { %v2034_v32 = vunpack.c.l.b16 %v1995_v25  ;;  %v2035_v45 = vunpack.c.h.b16 %v1995_v25 }
 0x4c5   :  { %2071 = vperm.xlu0 %12433, %v2026_v29   ;;  %2062 = vperm.xlu1 %12434, %v2023_v51   ;;  %v12739_v16 = vpop.eup %12738  ;;  %v18231_v29 = vld [vmem:[#allocation79_spill] sm:$0xff] }
 0x4c6   :  { %v3092_v4 = vrot.slane %v12739_v16, %v13304_v35  ;;  %v3096_v17 = vrot.slane %v12739_v16, %v13307_v36  ;;  %v3100_v54 = vrot.slane %v12739_v16, %v13324_v43  ;;  %v3108_v13 = vrot.slane %v12739_v16, %v13338_v49 }
 0x4c7   :  { %v3112_v0 = vrot.slane %v12739_v16, %v13345_v52  ;;  %v3116_v40 = vrot.slane %v12739_v16, %v13352_v57 }
 0x4c8   :  { %v3169_v11 = vmul.f32 %v14118_v33, %v3092_v4  ;;  %v3170_v20 = vmul.f32 %v14153_v53, %v3092_v4  ;;  %v3171_v56 = vmul.f32 %v18223_v37, %v3096_v17  ;;  %v3172_v7 = vmul.f32 %v18224_v14, %v3096_v17 }
 0x4c9   :  { %2077 = vperm.xlu0 %12433, %v2028_v24   ;;  %2068 = vperm.xlu1 %12434, %v2025_v42   ;;  %v3104_v33 = vrot.slane %v12739_v16, %v13331_v46  ;;  %v3173_v60 = vmul.f32 %v18225_v61, %v3100_v54  ;;  %v3174_v8 = vmul.f32 %v18226_v38, %v3100_v54 }
 0x4ca   :  { %v3201_v59 = vpack.c.bf16 %v3170_v20, %v3169_v11  ;;  %v3202_v53 = vpack.c.bf16 %v3172_v7, %v3171_v56  ;;  %v3177_v55 = vmul.f32 %v18230_v50, %v3108_v13  ;;  %v3178_v51 = vmul.f32 %v18231_v29, %v3108_v13  ;;  %v18242_v13 = vld [vmem:[#allocation59_spill] sm:$0xff] }
 0x4cb   :  { %v3175_v47 = vmul.f32 %v18228_v26, %v3104_v33  ;;  %v3203_v41 = vpack.c.bf16 %v3174_v8, %v3173_v60  ;;  %v3176_v1 = vmul.f32 %v18229_v30, %v3104_v33  ;;  %v3179_v42 = vmul.f32 %v18232_v2, %v3112_v0  ;;  %v18238_v60 = vld [vmem:[#allocation63_spill] sm:$0xff]  ;;  %v18239_v8 = vld [vmem:[#allocation62_spill] sm:$0xff]  ;;  %v18240_v26 = vld [vmem:[#allocation65_spill] sm:$0xff] }
 0x4cc   :  { %v3233_v10 = vunpack.c.l.b16 %v3201_v59  ;;  %v3236_v62 = vunpack.c.h.b16 %v3202_v53  ;;  %v3234_v15 = vunpack.c.h.b16 %v3201_v59  ;;  %v3235_v9 = vunpack.c.l.b16 %v3202_v53  ;;  %v18237_v59 = vld [vmem:[#allocation85_spill] sm:$0xff]  ;;  %v18246_v2 = vld [vmem:[#allocation66_spill] sm:$0xff] }
 0x4cd   :  { %2083 = vperm.xlu0 %12433, %v2030_v39   ;;  %2074 = vperm.xlu1 %12434, %v2027_v28   ;;  %v3238_v27 = vunpack.c.h.b16 %v3203_v41  ;;  %v3204_v21 = vpack.c.bf16 %v3176_v1, %v3175_v47  ;;  %v3205_v24 = vpack.c.bf16 %v3178_v51, %v3177_v55  ;;  %v3180_v63 = vmul.f32 %v18233_v6, %v3112_v0  ;;  %v18243_v0 = vld [vmem:[#allocation58_spill] sm:$0xff]  ;;  %v18245_v51 = vld [vmem:[#allocation67_spill] sm:$0xff] }
 0x4ce   :  { %v3237_v28 = vunpack.c.l.b16 %v3203_v41  ;;  %v3120_v39 = vrot.slane %v12739_v16, %v13365_v3  ;;  %v3181_v4 = vmul.f32 %v18234_v12, %v3116_v40 }
 0x4cf   :  { %v3240_v5 = vunpack.c.h.b16 %v3204_v21  ;;  %v3242_v31 = vunpack.c.h.b16 %v3205_v24  ;;  %v3206_v34 = vpack.c.bf16 %v3180_v63, %v3179_v42  ;;  %v3239_v11 = vunpack.c.l.b16 %v3204_v21  ;;  %v18247_v63 = vld [vmem:[#allocation71_spill] sm:$0xff] }
 0x4d0   :  { %v3184_v37 = vmul.f32 %v18237_v59, %v3120_v39  ;;  %v3241_v16 = vunpack.c.l.b16 %v3205_v24  ;;  %v18244_v21 = vmov 0   ;;  %v18252_v59 = vld [vmem:[#allocation74_spill] sm:$0xff] }
 0x4d1   :  { %2089 = vperm.xlu0 %12433, %v2032_v23   ;;  %2080 = vperm.xlu1 %12434, %v2029_v44   ;;  %v18235_v23 = vld [vmem:[#allocation83_spill] sm:$0xff]  ;;  %v3244_v20 = vunpack.c.h.b16 %v3206_v34  ;;  %v3243_v54 = vunpack.c.l.b16 %v3206_v34 }
 0x4d2   :  { %v3182_v44 = vmul.f32 %v18235_v23, %v3116_v40  ;;  %v18249_v23 = vld [vmem:[#allocation61_spill] sm:$0xff] }
 0x4d4   :  { %v3207_v17 = vpack.c.bf16 %v3182_v44, %v3181_v4 }
 0x4d5   :  { %2095 = vperm.xlu0 %12433, %v2034_v32   ;;  %2086 = vperm.xlu1 %12434, %v2031_v48   ;;  %v18236_v32 = vld [vmem:[#allocation89_spill] sm:$0xff] }
 0x4d6   :  { %v3183_v48 = vmul.f32 %v18236_v32, %v3120_v39  ;;  %v3246_v56 = vunpack.c.h.b16 %v3207_v17  ;;  %v3245_v30 = vunpack.c.l.b16 %v3207_v17  ;;  %v18251_v32 = vld [vmem:[#allocation73_spill] sm:$0xff] }
 0x4d8   :  { %v3208_v14 = vpack.c.bf16 %v3184_v37, %v3183_v48 }
 0x4d9   :  { %12435 = vset.pattern.permute.xlu0 %v18227_v58  ;;  %2092 = vperm.xlu1 %12434, %v2033_v18  }
 0x4da   :  { %3266 = vperm.xlu0 %12435, %v3233_v10   ;;  %v3248_v18 = vunpack.c.h.b16 %v3208_v14 }
 0x4dd   :  { %2098 = vperm.xlu1 %12434, %v2035_v45  }
 0x4de   :  { %3275 = vperm.xlu0 %12435, %v3236_v62   ;;  %v18241_v62 = vld [vmem:[#allocation64_spill] sm:$0xff] }
 0x4e1   :  { %12436 = vset.pattern.permute.xlu1 %v18227_v58 }
 0x4e2   :  { %3269 = vperm.xlu1 %12436, %v3234_v15   ;;  %3281 = vperm.xlu0 %12435, %v3238_v27  }
 0x4e6   :  { %3272 = vperm.xlu1 %12436, %v3235_v9   ;;  %3287 = vperm.xlu0 %12435, %v3240_v5   ;;  %v3247_v5 = vunpack.c.l.b16 %v3208_v14 }
 0x4e9   :  { %v1871_v25 = vpop.xlane.xlu0 %1870 }
 0x4ea   :  { %12740 = vrcp.f32 %v1871_v25  ;;  %3278 = vperm.xlu1 %12436, %v3237_v28   ;;  %3293 = vperm.xlu0 %12435, %v3242_v31   ;;  %v18248_v28 = vld [vmem:[#allocation68_spill] sm:$0xff] }
 0x4eb   :  { %v18250_v25 = vld [vmem:[#allocation60_spill] sm:$0xff] }
 0x4ee   :  { %3284 = vperm.xlu1 %12436, %v3239_v11   ;;  %3299 = vperm.xlu0 %12435, %v3244_v20  }
 0x4f2   :  { %3290 = vperm.xlu1 %12436, %v3241_v16   ;;  %3305 = vperm.xlu0 %12435, %v3246_v56  }
 0x4f4   :  { %v12741_v7 = vpop.eup %12740 }
 0x4f5   :  { %v1919_v33 = vrot.slane %v12741_v7, %v13324_v43  ;;  %v1923_v10 = vrot.slane %v12741_v7, %v13331_v46  ;;  %v1911_v53 = vrot.slane %v12741_v7, %v13304_v35  ;;  %v1927_v61 = vrot.slane %v12741_v7, %v13338_v49 }
 0x4f6   :  { %3296 = vperm.xlu1 %12436, %v3243_v54   ;;  %3311 = vperm.xlu0 %12435, %v3248_v18   ;;  %v1931_v50 = vrot.slane %v12741_v7, %v13345_v52  ;;  %v1915_v6 = vrot.slane %v12741_v7, %v13307_v36  ;;  %v1935_v12 = vrot.slane %v12741_v7, %v13352_v57 }
 0x4f7   :  { %v1976_v38 = vmul.f32 %v18238_v60, %v1919_v33  ;;  %v1977_v45 = vmul.f32 %v18239_v8, %v1919_v33  ;;  %v1978_v47 = vmul.f32 %v18240_v26, %v1923_v10  ;;  %v1979_v41 = vmul.f32 %v18241_v62, %v1923_v10  ;;  %v18253_v33 = vld [vmem:[#allocation75_spill] sm:$0xff] }
 0x4f8   :  { %v1972_v15 = vmul.f32 %v18242_v13, %v1911_v53  ;;  %v1973_v27 = vmul.f32 %v18243_v0, %v1911_v53  ;;  %v1980_v9 = vmul.f32 %v18245_v51, %v1927_v61  ;;  %v1981_v42 = vmul.f32 %v18246_v2, %v1927_v61  ;;  %v18254_v53 = vld [vmem:[#allocation91_spill] sm:$0xff]  ;;  %v18255_v0 = vld [vmem:[#allocation93_spill] sm:$0xff]  ;;  %v18258_v2 = vld [vmem:[#allocation90_spill] sm:$0xff] }
 0x4f9   :  { %v1998_v1 = vpack.c.bf16 %v1977_v45, %v1976_v38  ;;  %v1999_v29 = vpack.c.bf16 %v1979_v41, %v1978_v47  ;;  %v1982_v40 = vmul.f32 %v18247_v63, %v1931_v50  ;;  %v1983_v39 = vmul.f32 %v18248_v28, %v1931_v50  ;;  %v18256_v50 = vld [vmem:[#allocation72_spill] sm:$0xff]  ;;  %v18257_v51 = vld [vmem:[#allocation95_spill] sm:$0xff]  ;;  %v18259_v63 = vld [vmem:[#allocation97_spill] sm:$0xff] }
 0x4fa   :  { %3302 = vperm.xlu1 %12436, %v3245_v30   ;;  %12438 = vset.pattern.permute.xlu0 %v18244_v21  ;;  %v1996_v24 = vpack.c.bf16 %v1973_v27, %v1972_v15  ;;  %v2000_v34 = vpack.c.bf16 %v1981_v42, %v1980_v9  ;;  %v1974_v44 = vmul.f32 %v18249_v23, %v1915_v6  ;;  %v18260_v28 = vld [vmem:[#allocation92_spill] sm:$0xff] }
 0x4fb   :  { %v2040_v55 = vunpack.c.l.b16 %v1998_v1  ;;  %v2042_v31 = vunpack.c.l.b16 %v1999_v29  ;;  %v1975_v11 = vmul.f32 %v18250_v25, %v1915_v6  ;;  %v2001_v20 = vpack.c.bf16 %v1983_v39, %v1982_v40 }
 0x4fc   :  { %v2036_v4 = vunpack.c.l.b16 %v1996_v24  ;;  %v2044_v17 = vunpack.c.l.b16 %v2000_v34  ;;  %v1984_v48 = vmul.f32 %v18251_v32, %v1935_v12  ;;  %v1985_v37 = vmul.f32 %v18252_v59, %v1935_v12 }
 0x4fd   :  { %2113 = vperm.xlu0 %12438, %v2040_v55   ;;  %v1939_v16 = vrot.slane %v12741_v7, %v13365_v3  ;;  %v2037_v56 = vunpack.c.h.b16 %v1996_v24  ;;  %v1997_v14 = vpack.c.bf16 %v1975_v11, %v1974_v44  ;;  %v2046_v54 = vunpack.c.l.b16 %v2001_v20  ;;  %v18261_v44 = vld [vmem:[#allocation99_spill] sm:$0xff] }
 0x4fe   :  { %3308 = vperm.xlu1 %12436, %v3247_v5   ;;  %v2002_v18 = vpack.c.bf16 %v1985_v37, %v1984_v48  ;;  %v2041_v47 = vunpack.c.h.b16 %v1998_v1  ;;  %v2043_v41 = vunpack.c.h.b16 %v1999_v29  ;;  %v2045_v42 = vunpack.c.h.b16 %v2000_v34  ;;  %v18262_v34 = vld [vmem:[#allocation94_spill] sm:$0xff]  ;;  %v18263_v37 = vld [vmem:[#allocation101_spill] sm:$0xff] }
 0x4ff   :  { %v1986_v10 = vmul.f32 %v18253_v33, %v1939_v16  ;;  %v1987_v61 = vmul.f32 %v18254_v53, %v1939_v16  ;;  %v2038_v60 = vunpack.c.l.b16 %v1997_v14  ;;  %v2039_v26 = vunpack.c.h.b16 %v1997_v14  ;;  %v18265_v53 = vld [vmem:[#allocation103_spill] sm:$0xff] }
 0x500   :  { %v2048_v8 = vunpack.c.l.b16 %v2002_v18 }
 0x501   :  { %2119 = vperm.xlu0 %12438, %v2042_v31   ;;  %v2003_v45 = vpack.c.bf16 %v1987_v61, %v1986_v10  ;;  %v2047_v31 = vunpack.c.h.b16 %v2001_v20  ;;  %v18264_v20 = vld [vmem:[#allocation96_spill] sm:$0xff] }
 0x502   :  { %12437 = vset.pattern.permute.xlu1 %v18244_v21 }
 0x503   :  { %2101 = vperm.xlu1 %12437, %v2036_v4   ;;  %v2050_v7 = vunpack.c.l.b16 %v2003_v45  ;;  %v2051_v14 = vunpack.c.h.b16 %v2003_v45  ;;  %v18267_v45 = vld [vmem:[#allocation104_spill] sm:$0xff] }
 0x505   :  { %2125 = vperm.xlu0 %12438, %v2044_v17   ;;  %v2049_v17 = vunpack.c.h.b16 %v2002_v18  ;;  %v18266_v18 = vld [vmem:[#allocation98_spill] sm:$0xff] }
 0x507   :  { %2104 = vperm.xlu1 %12437, %v2037_v56  }
 0x509   :  { %2131 = vperm.xlu0 %12438, %v2046_v54  }
 0x50a   :  { %v3084_v38 = vpop.xlane.xlu1 %3083 }
 0x50b   :  { %12742 = vrcp.f32 %v3084_v38  ;;  %2107 = vperm.xlu1 %12437, %v2038_v60  }
 0x50d   :  { %2137 = vperm.xlu0 %12438, %v2048_v8  }
 0x50f   :  { %2110 = vperm.xlu1 %12437, %v2039_v26  }
 0x511   :  { %2143 = vperm.xlu0 %12438, %v2050_v7  }
 0x513   :  { %2116 = vperm.xlu1 %12437, %v2041_v47  }
 0x515   :  { %v12743_v62 = vpop.eup %12742  ;;  %12440 = vset.pattern.permute.xlu0 %v18227_v58 }
 0x516   :  { %v3124_v30 = vrot.slane %v12743_v62, %v13304_v35  ;;  %v3128_v13 = vrot.slane %v12743_v62, %v13307_v36  ;;  %v3132_v15 = vrot.slane %v12743_v62, %v13324_v43  ;;  %v3136_v29 = vrot.slane %v12743_v62, %v13331_v46 }
 0x517   :  { %2122 = vperm.xlu1 %12437, %v2043_v41   ;;  %v3140_v12 = vrot.slane %v12743_v62, %v13338_v49  ;;  %v3144_v32 = vrot.slane %v12743_v62, %v13345_v52  ;;  %v3148_v54 = vrot.slane %v12743_v62, %v13352_v57  ;;  %v3152_v8 = vrot.slane %v12743_v62, %v13365_v3  ;;  %v18268_v41 = vld [vmem:[#allocation100_spill] sm:$0xff]  ;;  %v18270_v62 = vld [vmem:[#allocation105_spill] sm:$0xff] }
 0x518   :  { %v3185_v27 = vmul.f32 %v18255_v0, %v3124_v30  ;;  %v3186_v55 = vmul.f32 %v18256_v50, %v3124_v30  ;;  %v3187_v9 = vmul.f32 %v18257_v51, %v3128_v13  ;;  %v3188_v1 = vmul.f32 %v18258_v2, %v3128_v13 }
 0x519   :  { %v3189_v40 = vmul.f32 %v18259_v63, %v3132_v15  ;;  %v3190_v39 = vmul.f32 %v18260_v28, %v3132_v15  ;;  %v3191_v25 = vmul.f32 %v18261_v44, %v3136_v29  ;;  %v3192_v11 = vmul.f32 %v18262_v34, %v3136_v29  ;;  %v18272_v34 = vld [vmem:[#allocation26_spill] sm:$0xff] }
 0x51a   :  { %v3209_v5 = vpack.c.bf16 %v3186_v55, %v3185_v27  ;;  %v3210_v6 = vpack.c.bf16 %v3188_v1, %v3187_v9  ;;  %v3193_v16 = vmul.f32 %v18263_v37, %v3140_v12  ;;  %v3194_v56 = vmul.f32 %v18264_v20, %v3140_v12  ;;  %v18271_v55 = vld [vmem:[#allocation102_spill] sm:$0xff] }
 0x51b   :  { %2128 = vperm.xlu1 %12437, %v2045_v42   ;;  %v3211_v23 = vpack.c.bf16 %v3190_v39, %v3189_v40  ;;  %v3212_v59 = vpack.c.bf16 %v3192_v11, %v3191_v25  ;;  %v3195_v61 = vmul.f32 %v18265_v53, %v3144_v32  ;;  %v3196_v60 = vmul.f32 %v18266_v18, %v3144_v32 }
 0x51c   :  { %v3250_v24 = vunpack.c.h.b16 %v3209_v5  ;;  %v3252_v4 = vunpack.c.h.b16 %v3210_v6  ;;  %v3213_v10 = vpack.c.bf16 %v3194_v56, %v3193_v16  ;;  %v3249_v38 = vunpack.c.l.b16 %v3209_v5 }
 0x51d   :  { %v3254_v48 = vunpack.c.h.b16 %v3211_v23  ;;  %v3256_v33 = vunpack.c.h.b16 %v3212_v59  ;;  %v3214_v7 = vpack.c.bf16 %v3196_v60, %v3195_v61  ;;  %v3197_v47 = vmul.f32 %v18267_v45, %v3148_v54 }
 0x51e   :  { %3317 = vperm.xlu0 %12440, %v3250_v24   ;;  %v3258_v26 = vunpack.c.h.b16 %v3213_v10  ;;  %v3198_v30 = vmul.f32 %v18268_v41, %v3148_v54  ;;  %v3251_v13 = vunpack.c.l.b16 %v3210_v6  ;;  %v18269_v15 = vmov 0.0  }
 0x51f   :  { %2134 = vperm.xlu1 %12437, %v2047_v31   ;;  %11878 = vmatprep.mubr.msk.bf16.mxu0 %vm17955_vm11, %v18269_v15  ;;  %v3260_v0 = vunpack.c.h.b16 %v3214_v7  ;;  %v3199_v50 = vmul.f32 %v18270_v62, %v3152_v8  ;;  %v3200_v51 = vmul.f32 %v18271_v55, %v3152_v8  ;;  %v3253_v9 = vunpack.c.l.b16 %v3211_v23 }
 0x520   :  { %11966 = vmatprep.mubr.msk.bf16.mxu1 %vm17955_vm11, %v18269_v15  ;;  %v3215_v27 = vpack.c.bf16 %v3198_v30, %v3197_v47  ;;  %v3255_v42 = vunpack.c.l.b16 %v3212_v59  ;;  %v3257_v29 = vunpack.c.l.b16 %v3213_v10  ;;  %v3259_v63 = vunpack.c.l.b16 %v3214_v7 }
 0x521   :  { %v3216_v1 = vpack.c.bf16 %v3200_v51, %v3199_v50 }
 0x522   :  { %3323 = vperm.xlu0 %12440, %v3252_v4   ;;  %v3262_v2 = vunpack.c.h.b16 %v3215_v27  ;;  %v3261_v39 = vunpack.c.l.b16 %v3215_v27 }
 0x523   :  { %2140 = vperm.xlu1 %12437, %v2049_v17   ;;  %v3264_v5 = vunpack.c.h.b16 %v3216_v1  ;;  %v3263_v4 = vunpack.c.l.b16 %v3216_v1 }
 0x526   :  { %3329 = vperm.xlu0 %12440, %v3254_v48  }
 0x527   :  { %2146 = vperm.xlu1 %12437, %v2051_v14  }
 0x52a   :  { %3335 = vperm.xlu0 %12440, %v3256_v33  }
 0x52b   :  { %12439 = vset.pattern.permute.xlu1 %v18227_v58 }
 0x52c   :  { %3314 = vperm.xlu1 %12439, %v3249_v38  }
 0x52e   :  { %3341 = vperm.xlu0 %12440, %v3258_v26  }
 0x530   :  { %3320 = vperm.xlu1 %12439, %v3251_v13  }
 0x532   :  { %3347 = vperm.xlu0 %12440, %v3260_v0  }
 0x534   :  { %3326 = vperm.xlu1 %12439, %v3253_v9  }
 0x536   :  { %3353 = vperm.xlu0 %12440, %v3262_v2  }
 0x538   :  { %3332 = vperm.xlu1 %12439, %v3255_v42  }
 0x53a   :  { %3359 = vperm.xlu0 %12440, %v3264_v5  }
 0x53c   :  { %v14611_v24 = vpop.permute.xlu1 %2056  ;;  %3338 = vperm.xlu1 %12439, %v3257_v29   ;;  %v14613_v6 = vpop.permute.xlu0 %2053 }
 0x53d   :  { %v2155_v5 = vrot.slane %v14611_v24, %v13860_v22  ;;  %v2151_v29 = vrot.slane %v14613_v6, %v13853_v19 }
 0x53e   :  { %12441 = vset.pattern.permute.xlu0 %v18244_v21 }
 0x53f   :  { %v2156_v52 = vsel %vm1233_vm2, %v2155_v5, %v2151_v29 }
 0x540   :  { %v2060_v40 = vpop.permute.xlu1 %2059  ;;  %3344 = vperm.xlu1 %12439, %v3259_v63   ;;  %v2066_v28 = vpop.permute.xlu0 %2065 }
 0x541   :  { %v2160_v63 = vrot.slane %v2060_v40, %v13853_v19 }
 0x544   :  { %v2063_v31 = vpop.permute.xlu1 %2062  ;;  %3350 = vperm.xlu1 %12439, %v3261_v39   ;;  %v2072_v12 = vpop.permute.xlu0 %2071 }
 0x545   :  { %v2164_v2 = vrot.slane %v2063_v31, %v13860_v22  ;;  %v2178_v31 = vrot.slane %v2072_v12, %v13853_v19 }
 0x547   :  { %v2165_v3 = vsel %vm1233_vm2, %v2164_v2, %v2160_v63 }
 0x548   :  { %v2069_v23 = vpop.permute.xlu1 %2068  ;;  %3356 = vperm.xlu1 %12439, %v3263_v4   ;;  %v14616_v44 = vpop.permute.xlu0 %2077  ;;  %v2169_v4 = vrot.slane %v2066_v28, %v13853_v19  ;;  %v2292_v40 = vsel %vm1370_vm3, %v2165_v3, %v2156_v52 }
 0x549   :  { %v2173_v42 = vrot.slane %v2069_v23, %v13860_v22  ;;  %v2187_v12 = vrot.slane %v14616_v44, %v13853_v19 }
 0x54b   :  { %v2174_v23 = vsel %vm1233_vm2, %v2173_v42, %v2169_v4 }
 0x54c   :  { %v2075_v25 = vpop.permute.xlu1 %2074  ;;  %3521 = vrot.lane.b32.xlu1 %v18272_v34, %s13114_s0  ;;  %v14620_v11 = vpop.permute.xlu0 %2083  ;;  %v2293_v28 = vsel %vm1372_vm4, %v2174_v23, %v2292_v40 }
 0x54d   :  { %12442 = vset.pattern.permute.xlu1 %v18244_v21  ;;  %v2182_v39 = vrot.slane %v2075_v25, %v13860_v22  ;;  %v2196_v2 = vrot.slane %v14620_v11, %v13853_v19 }
 0x54f   :  { %v2183_v24 = vsel %vm1233_vm2, %v2182_v39, %v2178_v31 }
 0x550   :  { %v2081_v17 = vpop.permute.xlu1 %2080  ;;  %v14623_v32 = vpop.permute.xlu0 %2089  ;;  %v2294_v29 = vsel %vm1374_vm5, %v2183_v24, %v2293_v28 }
 0x551   :  { %v2191_v6 = vrot.slane %v2081_v17, %v13860_v22 }
 0x554   :  { %v14625_v48 = vpop.permute.xlu1 %2086  ;;  %v14627_v59 = vpop.permute.xlu0 %2095 }
 0x555   :  { %v2200_v63 = vrot.slane %v14625_v48, %v13860_v22 }
 0x557   :  { %v2201_v40 = vsel %vm1233_vm2, %v2200_v63, %v2196_v2 }
 0x558   :  { %v14629_v37 = vpop.permute.xlu1 %2092 }
 0x559   :  { %v14631_v16 = vpop.permute.xlu0 %3266 }
 0x55c   :  { %v14633_v20 = vpop.permute.xlu1 %2098 }
 0x55d   :  { %v14635_v56 = vpop.permute.xlu0 %3275  ;;  %v2218_v48 = vrot.slane %v14633_v20, %v13860_v22 }
 0x561   :  { %v14637_v14 = vpop.permute.xlu1 %3269  ;;  %v14639_v54 = vpop.permute.xlu0 %3281 }
 0x565   :  { %v14641_v33 = vpop.permute.xlu1 %3272  ;;  %v14643_v10 = vpop.permute.xlu0 %3287 }
 0x569   :  { %v14645_v53 = vpop.permute.xlu1 %3278  ;;  %v14647_v61 = vpop.permute.xlu0 %3293 }
 0x56d   :  { %v14649_v18 = vpop.permute.xlu1 %3284  ;;  %v14651_v60 = vpop.permute.xlu0 %3299 }
 0x571   :  { %v14653_v38 = vpop.permute.xlu1 %3290  ;;  %v14655_v8 = vpop.permute.xlu0 %3305 }
 0x575   :  { %v14657_v26 = vpop.permute.xlu1 %3296  ;;  %v14659_v7 = vpop.permute.xlu0 %3311 }
 0x579   :  { %v14661_v45 = vpop.permute.xlu1 %3302 }
 0x57c   :  { %v2114_v47 = vpop.permute.xlu0 %2113 }
 0x57d   :  { %v14663_v41 = vpop.permute.xlu1 %3308  ;;  %v2241_v44 = vrot.slane %v2114_v47, %v13853_v19 }
 0x580   :  { %v2120_v30 = vpop.permute.xlu0 %2119 }
 0x582   :  { %v2102_v13 = vpop.permute.xlu1 %2101 }
 0x583   :  { %v2223_v39 = vrot.slane %v2102_v13, %v13853_v19 }
 0x584   :  { %v2126_v27 = vpop.permute.xlu0 %2125 }
 0x585   :  { %v2259_v47 = vrot.slane %v2126_v27, %v13853_v19 }
 0x586   :  { %v2105_v0 = vpop.permute.xlu1 %2104 }
 0x587   :  { %v2227_v17 = vrot.slane %v2105_v0, %v13860_v22 }
 0x588   :  { %v2132_v50 = vpop.permute.xlu0 %2131 }
 0x589   :  { %v2268_v13 = vrot.slane %v2132_v50, %v13853_v19 }
 0x58a   :  { %v2108_v62 = vpop.permute.xlu1 %2107 }
 0x58b   :  { %v2232_v52 = vrot.slane %v2108_v62, %v13853_v19 }
 0x58c   :  { %v2138_v9 = vpop.permute.xlu0 %2137 }
 0x58e   :  { %v2111_v55 = vpop.permute.xlu1 %2110 }
 0x58f   :  { %v2236_v25 = vrot.slane %v2111_v55, %v13860_v22  ;;  %v2192_v55 = vsel %vm1233_vm2, %v2191_v6, %v2187_v12  ;;  %v2205_v6 = vrot.slane %v14623_v32, %v13853_v19 }
 0x590   :  { %v2144_v34 = vpop.permute.xlu0 %2143  ;;  %v2295_v12 = vsel %vm17957_vm6, %v2192_v55, %v2294_v29 }
 0x591   :  { %v2237_v4 = vsel %vm1233_vm2, %v2236_v25, %v2232_v52  ;;  %v2214_v25 = vrot.slane %v14627_v59, %v13853_v19  ;;  %v2286_v2 = vrot.slane %v2144_v34, %v13853_v19  ;;  %v2296_v63 = vsel %vm17909_vm7, %v2201_v40, %v2295_v12 }
 0x592   :  { %v2117_v51 = vpop.permute.xlu1 %2116 }
 0x593   :  { %v2245_v42 = vrot.slane %v2117_v51, %v13860_v22  ;;  %v2250_v51 = vrot.slane %v2120_v30, %v13853_v19  ;;  %v2228_v30 = vsel %vm1233_vm2, %v2227_v17, %v2223_v39  ;;  %v2219_v17 = vsel %vm1233_vm2, %v2218_v48, %v2214_v25 }
 0x594   :  { %v2299_v20 = vsel %vm1370_vm3, %v2237_v4, %v2228_v30  ;;  %v3382_v30 = vrot.slane %v14645_v53, %v13853_v19  ;;  %v3395_v53 = vrot.slane %v14643_v10, %v13860_v22  ;;  %v3413_v10 = vrot.slane %v14651_v60, %v13860_v22 }
 0x596   :  { %v2123_v1 = vpop.permute.xlu1 %2122 }
 0x597   :  { %v2254_v3 = vrot.slane %v2123_v1, %v13860_v22  ;;  %v2209_v1 = vrot.slane %v14629_v37, %v13860_v22  ;;  %v2277_v37 = vrot.slane %v2138_v9, %v13853_v19 }
 0x599   :  { %v2255_v23 = vsel %vm1233_vm2, %v2254_v3, %v2250_v51 }
 0x59a   :  { %v2129_v57 = vpop.permute.xlu1 %2128 }
 0x59b   :  { %v2263_v11 = vrot.slane %v2129_v57, %v13860_v22  ;;  %v2246_v57 = vsel %vm1233_vm2, %v2245_v42, %v2241_v44  ;;  %v2210_v42 = vsel %vm1233_vm2, %v2209_v1, %v2205_v6 }
 0x59c   :  { %v2300_v50 = vsel %vm1372_vm4, %v2246_v57, %v2299_v20  ;;  %v2297_v55 = vsel %vm17908_vm8, %v2210_v42, %v2296_v63  ;;  %v3373_v57 = vrot.slane %v14641_v33, %v13853_v19  ;;  %v3364_v33 = vrot.slane %v14631_v16, %v13853_v19 }
 0x59d   :  { %v14682_v49 = vpop.permute.xlu0 %3317  ;;  %v2264_v27 = vsel %vm1233_vm2, %v2263_v11, %v2259_v47  ;;  %v2301_v32 = vsel %vm1374_vm5, %v2255_v23, %v2300_v50  ;;  %v2298_v51 = vsel %vm17907_vm9, %v2219_v17, %v2297_v55  ;;  %v3368_v23 = vrot.slane %v14637_v14, %v13860_v22 }
 0x59e   :  { %v2135_v5 = vpop.permute.xlu1 %2134  ;;  %v2302_v52 = vsel %vm17957_vm6, %v2264_v27, %v2301_v32  ;;  %v3404_v50 = vrot.slane %v14647_v61, %v13860_v22  ;;  %v3409_v61 = vrot.slane %v14657_v26, %v13853_v19  ;;  %v3427_v55 = vrot.slane %v14663_v41, %v13853_v19 }
 0x59f   :  { %v2272_v0 = vrot.slane %v2135_v5, %v13860_v22  ;;  %v3369_v14 = vsel %vm1233_vm2, %v3368_v23, %v3364_v33 }
 0x5a1   :  { %v14703_v62 = vpop.permute.xlu0 %3323  ;;  %v2273_v28 = vsel %vm1233_vm2, %v2272_v0, %v2268_v13  ;;  %v3377_v13 = vrot.slane %v14635_v56, %v13860_v22 }
 0x5a2   :  { %v2141_v31 = vpop.permute.xlu1 %2140  ;;  %v2303_v29 = vsel %vm17909_vm7, %v2273_v28, %v2302_v52  ;;  %v3440_v52 = vrot.slane %v14682_v49, %v13860_v22 }
 0x5a3   :  { %v2281_v24 = vrot.slane %v2141_v31, %v13860_v22  ;;  %v3378_v20 = vsel %vm1233_vm2, %v3377_v13, %v3373_v57 }
 0x5a5   :  { %v2282_v9 = vsel %vm1233_vm2, %v2281_v24, %v2277_v37  ;;  %v3330_v59 = vpop.permute.xlu0 %3329  ;;  %v3391_v24 = vrot.slane %v14649_v18, %v13853_v19  ;;  %v3386_v37 = vrot.slane %v14639_v54, %v13860_v22  ;;  %v3400_v18 = vrot.slane %v14653_v38, %v13853_v19 }
 0x5a6   :  { %v2147_v5 = vpop.permute.xlu1 %2146  ;;  %v2304_v44 = vsel %vm17908_vm8, %v2282_v9, %v2303_v29  ;;  %v3505_v54 = vsel %vm1370_vm3, %v3378_v20, %v3369_v14  ;;  %v3449_v38 = vrot.slane %v14703_v62, %v13860_v22  ;;  %v3458_v60 = vrot.slane %v3330_v59, %v13860_v22 }
 0x5a7   :  { %v2290_v3 = vrot.slane %v2147_v5, %v13860_v22  ;;  %v3387_v56 = vsel %vm1233_vm2, %v3386_v37, %v3382_v30  ;;  %v3396_v40 = vsel %vm1233_vm2, %v3395_v53, %v3391_v24  ;;  %v3405_v17 = vsel %vm1233_vm2, %v3404_v50, %v3400_v18 }
 0x5a8   :  { %v3506_v16 = vsel %vm1372_vm4, %v3387_v56, %v3505_v54  ;;  %v3418_v29 = vrot.slane %v14661_v45, %v13853_v19 }
 0x5a9   :  { %v2291_v11 = vsel %vm1233_vm2, %v2290_v3, %v2286_v2  ;;  %v3336_v0 = vpop.permute.xlu0 %3335  ;;  %v3507_v32 = vsel %vm1374_vm5, %v3396_v40, %v3506_v16 }
 0x5aa   :  { %v2305_v39 = vsel %vm17907_vm9, %v2291_v11, %v2304_v44  ;;  %v3467_v3 = vrot.slane %v3336_v0, %v13860_v22 }
 0x5ab   :  { %v2306_v34 = vpack.c.b16 %v2305_v39, %v2298_v51  ;;  %v3315_v4 = vpop.permute.xlu1 %3314 }
 0x5ac   :  { %v3436_v9 = vrot.slane %v3315_v4, %v13853_v19 }
 0x5ad   :  { %11879 = vmatmul.mubr.msk.bf16.vlgmr.msra.gmra.mrb[4].mxu0 %vm17912_vm10, %v2306_v34  ;;  %v3342_v48 = vpop.permute.xlu0 %3341  ;;  %v3422_v34 = vrot.slane %v14655_v8, %v13860_v22 }
 0x5ae   :  { %11884 = vmatprep.mubr.msk.bf16.mxu0 %vm17955_vm11, %v18269_v15  ;;  %v3476_v26 = vrot.slane %v3342_v48, %v13860_v22  ;;  %v3441_v11 = vsel %vm1233_vm2, %v3440_v52, %v3436_v9  ;;  %v3431_v48 = vrot.slane %v14659_v7, %v13860_v22 }
 0x5af   :  { %v3321_v1 = vpop.permute.xlu1 %3320  ;;  %v3423_v8 = vsel %vm1233_vm2, %v3422_v34, %v3418_v29  ;;  %v18281_v34 = vmov 0 }
 0x5b0   :  { %v3445_v25 = vrot.slane %v3321_v1, %v13853_v19  ;;  %v3414_v1 = vsel %vm1233_vm2, %v3413_v10, %v3409_v61  ;;  %v3432_v24 = vsel %vm1233_vm2, %v3431_v48, %v3427_v55  ;;  %v18275_v61 = vmov 0 }
 0x5b1   :  { %v3348_v6 = vpop.permute.xlu0 %3347 }
 0x5b2   :  { %v3450_v62 = vsel %vm1233_vm2, %v3449_v38, %v3445_v25  ;;  %v3485_v49 = vrot.slane %v3348_v6, %v13860_v22  ;;  %v18273_v25 = vld [vmem:[#allocation20_spill] sm:$0xff]  ;;  %v17913_v38 = vmov 1.0|1.0  }
 0x5b3   :  { %v3327_v47 = vpop.permute.xlu1 %3326  ;;  %v3512_v45 = vsel %vm1370_vm3, %v3450_v62, %v3441_v11  ;;  %v764_v16 = vadd.s32 64, %v18273_v25  ;;  %v765_v50 = vadd.s32 72, %v18273_v25  ;;  %v766_v10 = vadd.s32 80, %v18273_v25 }
 0x5b4   :  { %v3454_v28 = vrot.slane %v3327_v47, %v13853_v19  ;;  %v770_v9 = vadd.s32 112, %v18273_v25  ;;  %v758_v62 = vadd.s32 16, %v18273_v25  ;;  %v760_v29 = vadd.s32 32, %v18273_v25 }
 0x5b5   :  { %v3354_v12 = vpop.permute.xlu0 %3353  ;;  %v761_v55 = vadd.s32 40, %v18273_v25  ;;  %v18278_v11 = vmov 0 }
 0x5b6   :  { %v3459_v59 = vsel %vm1233_vm2, %v3458_v60, %v3454_v28  ;;  %v3494_v41 = vrot.slane %v3354_v12, %v13860_v22  ;;  %v767_v28 = vadd.s32 88, %v18273_v25  ;;  %v768_v12 = vadd.s32 96, %v18273_v25 }
 0x5b7   :  { %v3333_v31 = vpop.permute.xlu1 %3332  ;;  %v3513_v47 = vsel %vm1372_vm4, %v3459_v59, %v3512_v45  ;;  %v18284_v45 = vmov 0 }
 0x5b8   :  { %v3463_v5 = vrot.slane %v3333_v31, %v13853_v19  ;;  %v3508_v31 = vsel %vm17957_vm6, %v3405_v17, %v3507_v32  ;;  %v18274_v32 = vld [vmem:[#allocation76_spill] sm:$0xff]  ;;  %v757_v17 = vadd.s32 8, %v18273_v25 }
 0x5b9   :  { %v3360_v4 = vpop.permute.xlu0 %3359  ;;  %v3509_v33 = vsel %vm17909_vm7, %v3414_v1, %v3508_v31  ;;  %vm782_vm12 = vcmp.eq.s32.totalorder %v764_v16, %v18274_v32  ;;  %vm783_vm13 = vcmp.eq.s32.totalorder %v765_v50, %v18274_v32  ;;  %vm784_vm14 = vcmp.eq.s32.totalorder %v766_v10, %v18274_v32  ;;  %v126_v31 = vld [vmem:[%s13140_s13] sm:$0x1] }
 0x5ba   :  { %v3468_v51 = vsel %vm1233_vm2, %v3467_v3, %v3463_v5  ;;  %v3503_v6 = vrot.slane %v3360_v4, %v13860_v22  ;;  %v3510_v53 = vsel %vm17908_vm8, %v3423_v8, %v3509_v33  ;;  %vm12241_vm15 = vmpackc.low %vm783_vm13, %vm782_vm12  ;;  %vm785_vm0 = vcmp.eq.s32.totalorder %v767_v28, %v18274_v32  ;;  %v11462_v4 = vld [vmem:[%s13170_s8] ss:$0 sm:$0xff]  ;;  %s18509_s8 = sld [smem:[#allocation11_spill]] }
 0x5bb   :  { %v3339_v27 = vpop.permute.xlu1 %3338  ;;  %v3514_v30 = vsel %vm1374_vm5, %v3468_v51, %v3513_v47  ;;  %v3511_v14 = vsel %vm17907_vm9, %v3432_v24, %v3510_v53  ;;  %vm12245_vm1 = vmpackc.low %vm785_vm0, %vm784_vm14  ;;  %v771_v5 = vadd.s32 120, %v18273_v25  ;;  %vm788_vm12 = vcmp.eq.s32.totalorder %v770_v9, %v18274_v32  ;;  %v12595_v33 = vld [vmem:[%s13145_s17] sm:$0xff]  }
 0x5bc   :  { %v3472_v2 = vrot.slane %v3339_v27, %v13853_v19  ;;  %vm776_vm0 = vcmp.eq.s32.totalorder %v758_v62, %v18274_v32  ;;  %v762_v51 = vadd.s32 48, %v18273_v25  ;;  %v12596_v28 = vld [vmem:[%s13190_s30] sm:$0xff]  }
 0x5bd   :  { %vm789_vm13 = vcmp.eq.s32.totalorder %v771_v5, %v18274_v32  ;;  %11951 = vmatpush3.bf16.msra.mxu1 %v12596_v28  ;;  %v12600_v9 = vld [vmem:[%s13190_s30 + $0x20] sm:$0xff]   ;;  %v4401_v28 = vld [vmem:[%s18288_s5 + $0x28] sm:$0xff] }
 0x5be   :  { %v3477_v0 = vsel %vm1233_vm2, %v3476_v26, %v3472_v2  ;;  %vm12253_vm14 = vmpackc.low %vm789_vm13, %vm788_vm12  ;;  %vm778_vm13 = vcmp.eq.s32.totalorder %v760_v29, %v18274_v32  ;;  %11952 = vmatprep.subr.bf16.mxu1 %v18269_v15  ;;  %v12602_v29 = vld [vmem:[%s13190_s30 + $0x30] sm:$0xff]  }
 0x5bf   :  { %v3345_v42 = vpop.permute.xlu1 %3344  ;;  %v3515_v37 = vsel %vm17957_vm6, %v3477_v0, %v3514_v30 }
 0x5c0   :  { %v3481_v63 = vrot.slane %v3345_v42, %v13853_v19  ;;  %v769_v42 = vadd.s32 104, %v18273_v25 }
 0x5c2   :  { %v3486_v57 = vsel %vm1233_vm2, %v3485_v49, %v3481_v63  ;;  %v759_v63 = vadd.s32 24, %v18273_v25 }
 0x5c3   :  { %v3351_v44 = vpop.permute.xlu1 %3350  ;;  %v3516_v20 = vsel %vm17909_vm7, %v3486_v57, %v3515_v37 }
 0x5c4   :  { %v3490_v39 = vrot.slane %v3351_v44, %v13853_v19 }
 0x5c6   :  { %v3495_v13 = vsel %vm1233_vm2, %v3494_v41, %v3490_v39  ;;  %v763_v39 = vadd.s32 56, %v18273_v25  ;;  %v129_v41 = vld [vmem:[%s13150_s21] sm:$0x3]  ;;  %s18497_s21 = sld [smem:[#allocation9_spill]] }
 0x5c7   :  { %v3357_v23 = vpop.permute.xlu1 %3356  ;;  %v3517_v27 = vsel %vm17908_vm8, %v3495_v13, %v3516_v20  ;;  %vm787_vm8 = vcmp.eq.s32.totalorder %v769_v42, %v18274_v32  ;;  %3786 = vperm.xlu0 %12441, %v129_v41   ;;  %v11466_v20 = vld [vmem:[%s13185_s24] ss:$0 sm:$0xff]  ;;  %v12598_v42 = vld [vmem:[%s13190_s30 + $0x10] sm:$0xff]   ;;  %s13117_s24 = smov 32  }
 0x5c8   :  { %v3499_v7 = vrot.slane %v3357_v23, %v13853_v19  ;;  %v11468_v41 = vld [vmem:[%s13175_s14] ss:$0 sm:$0xff]  ;;  %s18510_s14 = sld [smem:[#allocation14_spill]] }
 0x5ca   :  { %v3504_v56 = vsel %vm1233_vm2, %v3503_v6, %v3499_v7 }
 0x5cb   :  { %v3518_v40 = vsel %vm17907_vm9, %v3504_v56, %v3517_v27  ;;  %v3522_v18 = vpop.permute.xlu1 %3521  ;;  %vm786_vm9 = vcmp.eq.s32.totalorder %v768_v12, %v18274_v32  ;;  %v12597_v12 = vld [vmem:[%s13190_s30 + $0x8] sm:$0xff]  }
 0x5cc   :  { %v3519_v54 = vpack.c.b16 %v3518_v40, %v3511_v14  ;;  %11883 = vmatpush3.bf16.msra.mxu0 %v3522_v18  ;;  %vm12249_vm7 = vmpackc.low %vm787_vm8, %vm786_vm9  ;;  %vm774_vm8 = vcmp.eq.s32.totalorder %v18273_v25, %v18274_v32  ;;  %vm775_vm9 = vcmp.eq.s32.totalorder %v757_v17, %v18274_v32  ;;  %11953 = vmatpush3.bf16.msra.mxu1 %v12597_v12 }
 0x5cd   :  { %12242 = vmatprep.subr.msk.bf16.mxu0 %vm12241_vm15, %v17913_v38  ;;  %11954 = vmatprep.subr.bf16.mxu1 %v18269_v15 }
 0x5cf   :  { %11885 = vmatmul.mubr.msk.bf16.vlgmr.msra.gmra.mrb[8].mxu0 %vm17912_vm10, %v3519_v54 }
 0x5d0   :  { %12244 = vmatpush3.bf16.msk.msra.mxu0 %vm12241_vm15, %v17913_v38  ;;  %vm14852_vm15 = vmpackc.low %vm775_vm9, %vm774_vm8  ;;  %vm780_vm9 = vcmp.eq.s32.totalorder %v762_v51, %v18274_v32  ;;  %11955 = vmatpush3.bf16.msra.mxu1 %v12598_v42  ;;  %v18290_v42 = vld [vmem:[#allocation24_spill] sm:$0xff] }
 0x5d1   :  { %12246 = vmatprep.subr.msk.bf16.mxu0 %vm12245_vm1, %v17913_v38  ;;  %v18276_v61 = vsel %vm14852_vm15, 4294967295, %v18275_v61  ;;  %11956 = vmatprep.subr.bf16.mxu1 %v18269_v15 }
 0x5d2   :  { %18277 = vst [vmem:[#allocation80_spill] sm:$0xff] %v18276_v61 }
 0x5d4   :  { %12248 = vmatpush3.bf16.msk.msra.mxu0 %vm12245_vm1, %v17913_v38  ;;  %vm777_vm1 = vcmp.eq.s32.totalorder %v759_v63, %v18274_v32  ;;  %v12601_v63 = vld [vmem:[%s13190_s30 + $0x28] sm:$0xff]  }
 0x5d5   :  { %12250 = vmatprep.subr.msk.bf16.mxu0 %vm12249_vm7, %v17913_v38  ;;  %vm14866_vm12 = vmpackc.low %vm777_vm1, %vm776_vm0  ;;  %vm781_vm0 = vcmp.eq.s32.totalorder %v763_v39, %v18274_v32 }
 0x5d6   :  { %v18279_v11 = vsel %vm14866_vm12, 4294967295, %v18278_v11  ;;  %vm14894_vm1 = vmpackc.low %vm781_vm0, %vm780_vm9 }
 0x5d7   :  { %18280 = vst [vmem:[#allocation56_spill] sm:$0xff] %v18279_v11  ;;  %v18285_v45 = vsel %vm14894_vm1, 4294967295, %v18284_v45 }
 0x5d8   :  { %12252 = vmatpush3.bf16.msk.msra.mxu0 %vm12249_vm7, %v17913_v38  ;;  %vm17954_vm7 = vcmask 523264   ;;  %18286 = vst [vmem:[#allocation77_spill] sm:$0xff] %v18285_v45 }
 0x5d9   :  { %12254 = vmatprep.subr.msk.bf16.mxu0 %vm12253_vm14, %v17913_v38 }
 0x5dc   :  { %12256 = vmatpush3.bf16.msk.msra.mxu0 %vm12253_vm14, %v17913_v38  ;;  %vm779_vm14 = vcmp.eq.s32.totalorder %v761_v55, %v18274_v32  ;;  %v12599_v32 = vld [vmem:[%s13190_s30 + $0x18] sm:$0xff]  }
 0x5dd   :  { %12258 = vmatprep.subr.msk.bf16.mxu0 %vm14852_vm15, %v17913_v38  ;;  %vm14882_vm8 = vmpackc.low %vm779_vm14, %vm778_vm13  ;;  %vm17911_vm13 = vcmask 1040384   ;;  %vm17910_vm14 = vcmask 15360   ;;  %11957 = vmatpush3.bf16.msra.mxu1 %v12599_v32  ;;  %v12603_v55 = vld [vmem:[%s13190_s30 + $0x38] sm:$0xff]   ;;  %s13118_s30 = smov 112  }
 0x5de   :  { %v18282_v34 = vsel %vm14882_vm8, 4294967295, %v18281_v34  ;;  %11958 = vmatprep.subr.bf16.mxu1 %v18269_v15 }
 0x5df   :  { %18283 = vst [vmem:[#allocation82_spill] sm:$0xff] %v18282_v34 }
 0x5e1   :  { %11959 = vmatpush3.bf16.msra.mxu1 %v12600_v9 }
 0x5e2   :  { %11960 = vmatprep.subr.bf16.mxu1 %v18269_v15 }
 0x5e5   :  { %11961 = vmatpush3.bf16.msra.mxu1 %v12601_v63 }
 0x5e6   :  { %11962 = vmatprep.subr.bf16.mxu1 %v18269_v15 }
 0x5e9   :  { %11963 = vmatpush3.bf16.msra.mxu1 %v12602_v29 }
 0x5ea   :  { %11964 = vmatprep.subr.bf16.mxu1 %v18269_v15 }
 0x5ed   :  { %11965 = vmatpush3.bf16.msra.mxu1 %v12603_v55 }
 0x5ee   :  { %12034 = vmatprep.subr.bf16.mxu1 %v18269_v15 }
 0x646   :  { %v14918_v8 = vpop.permute.xlu0 %3786 }
 0x647   :  { %18287 = vst [vmem:[#allocation84_spill] sm:$0xff] %v14918_v8 }
 0x680   :  { %v2344_v60 = vpop.f32.mrb[4].mxu0 }
 0x681   :  { %v11880_v2 = vpop.f32.mrb[5].mxu0 }
 0x682   :  { %v2347_v52 = vpop.f32.mrb[6].mxu0 }
 0x683   :  { %v11881_v3 = vpop.f32.mrb[7].mxu0 }
 0x6a2   :  { %v3561_v26 = vpop.f32.mrb[8].mxu0 }
 0x6a3   :  { %v11886_v59 = vpop.f32.mrb[9].mxu0  ;;  %11904 = vmatprep.mubr.msk.f32.mxu0 %vm17954_vm7, %v3561_v26 }
 0x6a4   :  { %v3564_v44 = vpop.f32.mrb[10].mxu0 }
 0x6a5   :  { %v11887_v49 = vpop.f32.mrb[11].mxu0  ;;  %11905 = vmatmul.mubr.msk.f32.vlgmr.msra.gmra.mrb[12].mxu0 %vm17954_vm7, %v3564_v44 }
 0x6a6   :  { %12260 = vmatpush3.bf16.msk.msra.mxu0 %vm14852_vm15, %v17913_v38  ;;  %11923 = vmatprep.mubr.msk.f32.mxu0 %vm17954_vm7, %v2344_v60 }
 0x6a7   :  { %12262 = vmatprep.subr.msk.bf16.mxu0 %vm14866_vm12, %v17913_v38 }
 0x6aa   :  { %12264 = vmatpush3.bf16.msk.msra.mxu0 %vm14866_vm12, %v17913_v38 }
 0x6ab   :  { %12266 = vmatprep.subr.msk.bf16.mxu0 %vm14882_vm8, %v17913_v38 }
 0x6ae   :  { %12268 = vmatpush3.bf16.msk.msra.mxu0 %vm14882_vm8, %v17913_v38 }
 0x6af   :  { %12270 = vmatprep.subr.msk.bf16.mxu0 %vm14894_vm1, %v17913_v38 }
 0x6b2   :  { %12272 = vmatpush3.bf16.msk.msra.mxu0 %vm14894_vm1, %v17913_v38 }
 0x6b3   :  { %11926 = vmatprep.subr.bf16.mxu0 %v18269_v15 }
 0x6b5   :  { %11924 = vmatmul.mubr.msk.f32.vlgmr.msra.gmra.mrb[12].mxu0 %vm17954_vm7, %v2347_v52 }
 0x6b6   :  { %11928 = vmatprep.mubr.msk.bf16.mxu0 %vm17955_vm11, %v18269_v15 }
 0x788   :  { %v11925_v0 = vpop.f32.mrb[12].mxu0 }
 0x789   :  { %v3739_v1 = vadd.f32 %v11925_v0, %v11462_v4  ;;  %v3722_v48 = vpop.f32.mrb[13].mxu0 }
 0x78a   :  { %v3738_v47 = vadd.f32 %v11462_v4, %v3722_v48 }
 0x78c   :  { %v3740_v57 = vpack.c.bf16 %v3739_v1, %v3738_v47 }
 0x78e   :  { %11927 = vmatpush3.bf16.msra.mxu0 %v3740_v57 }
 0x78f   :  { %11932 = vmatprep.subr.bf16.mxu0 %v18269_v15 }
 0x791   :  { %11929 = vmatmul.mubr.msk.bf16.vlgmr.msra.gmra.mrb[16].mxu0 %vm17912_vm10, %v126_v31 }
 0x792   :  { %11934 = vmatprep.mubr.msk.bf16.mxu0 %vm17955_vm11, %v18269_v15 }
 0x864   :  { %v3778_v30 = vpop.f32.mrb[16].mxu0 }
 0x865   :  { %v11930_v13 = vpop.f32.mrb[17].mxu0  ;;  %v3789_v23 = vmul.f32 %v14918_v8, %v3778_v30 }
 0x866   :  { %v3781_v24 = vpop.f32.mrb[18].mxu0 }
 0x867   :  { %v11931_v6 = vpop.f32.mrb[19].mxu0  ;;  %v3790_v37 = vpack.c.bf16 %v3789_v23, %v3789_v23 }
 0x869   :  { %v3802_v7 = vsel %vm17911_vm13, %v3790_v37, 0  ;;  %v11471_v37 = vld [vmem:[%s13195_s6] ss:$0 sm:$0xff]  ;;  %s18732_s6 = sld [smem:[#allocation16_spill]] }
 0x86a   :  { %11933 = vmatpush3.bf16.msra.mxu0 %v3802_v7 }
 0x86b   :  { %11938 = vmatprep.subr.bf16.mxu0 %v18269_v15 }
 0x86d   :  { %11935 = vmatmul.mubr.msk.bf16.vlgmr.msra.gmra.mrb[20].mxu0 %vm17910_vm14, %v12595_v33 }
 0x86e   :  { %11940 = vmatprep.mubr.msk.bf16.mxu0 %vm17955_vm11, %v18269_v15 }
 0x940   :  { %v3838_v53 = vpop.f32.mrb[20].mxu0 }
 0x941   :  { %v3852_v27 = vmul.f32 %v11466_v20, %v3838_v53  ;;  %v11936_v56 = vpop.f32.mrb[21].mxu0 }
 0x942   :  { %v3841_v14 = vpop.f32.mrb[22].mxu0 }
 0x943   :  { %v3854_v40 = vsub.f32 %v3738_v47, %v3852_v27  ;;  %v3853_v18 = vmul.f32 %v11466_v20, %v3841_v14  ;;  %v11937_v54 = vpop.f32.mrb[23].mxu0 }
 0x944   :  { %v4398_v54 = vld [vmem:[%s18288_s5 + $0x10] sm:$0xff] }
 0x945   :  { %v3855_v25 = vsub.f32 %v3739_v1, %v3853_v18  ;;  %v3856_v16 = vmul.f32 %v3854_v40, %v3854_v40  ;;  %v3908_v4 = vmul.f32 %v11468_v41, %v3854_v40  ;;  %v11470_v1 = vld [vmem:[%s13180_s19] ss:$0 sm:$0xff]  ;;  %v4397_v18 = vld [vmem:[%s18288_s5 + $0x8] sm:$0xff]  ;;  %s18511_s19 = sld [smem:[#allocation15_spill]] }
 0x946   :  { %v4396_v40 = vld [vmem:[%s18288_s5] sm:$0xff] }
 0x947   :  { %v3857_v50 = vmul.f32 %v3855_v25, %v3855_v25  ;;  %v3909_v48 = vmul.f32 %v11468_v41, %v3855_v25  ;;  %v12273_v25 = vpack.c.bf16 %v4397_v18, %v4396_v40 }
 0x949   :  { %v3858_v10 = vpack.c.bf16 %v3857_v50, %v3856_v16  ;;  %v4399_v16 = vld [vmem:[%s18288_s5 + $0x18] sm:$0xff] }
 0x94a   :  { %v12277_v50 = vpack.c.bf16 %v4399_v16, %v4398_v54 }
 0x94b   :  { %11939 = vmatpush3.bf16.msra.mxu0 %v3858_v10  ;;  %v4400_v10 = vld [vmem:[%s18288_s5 + $0x20] sm:$0xff] }
 0x94c   :  { %11944 = vmatprep.subr.bf16.mxu0 %v18269_v15  ;;  %v12281_v12 = vpack.c.bf16 %v4401_v28, %v4400_v10 }
 0x94e   :  { %11941 = vmatmul.mubr.msk.bf16.vlgmr.msra.gmra.mrb[24].mxu0 %vm17912_vm10, %v126_v31 }
 0x94f   :  { %11946 = vmatprep.mubr.msk.bf16.mxu0 %vm17955_vm11, %v18269_v15 }
 0xa21   :  { %v3893_v5 = vpop.f32.mrb[24].mxu0 }
 0xa22   :  { %v3899_v17 = vmul.f32 %v3893_v5, %v14918_v8  ;;  %v11942_v60 = vpop.f32.mrb[25].mxu0  ;;  %v4402_v5 = vld [vmem:[%s18288_s5 + $0x30] sm:$0xff] }
 0xa23   :  { %v3896_v2 = vpop.f32.mrb[26].mxu0 }
 0xa24   :  { %v3900_v52 = vpack.c.bf16 %v3899_v17, %v3899_v17  ;;  %v11943_v3 = vpop.f32.mrb[27].mxu0  ;;  %v4403_v17 = vld [vmem:[%s18288_s5 + $0x38] sm:$0xff] }
 0xa25   :  { %v12285_v60 = vpack.c.bf16 %v4403_v17, %v4402_v5 }
 0xa26   :  { %v3911_v62 = vsel %vm17911_vm13, %v3900_v52, 0 }
 0xa27   :  { %11945 = vmatpush3.bf16.msra.mxu0 %v3911_v62 }
 0xa28   :  { %12274 = vmatprep.subr.bf16.mxu0 %v12273_v25 }
 0xa2a   :  { %11947 = vmatmul.mubr.msk.bf16.vlgmr.msra.gmra.mrb[28].mxu0 %vm17910_vm14, %v12595_v33 }
 0xa2b   :  { %12276 = vmatpush3.bf16.msra.mxu0 %v12273_v25 }
 0xa2c   :  { %12278 = vmatprep.subr.bf16.mxu0 %v12277_v50 }
 0xa2f   :  { %12280 = vmatpush3.bf16.msra.mxu0 %v12277_v50 }
 0xa30   :  { %12282 = vmatprep.subr.bf16.mxu0 %v12281_v12 }
 0xa33   :  { %12284 = vmatpush3.bf16.msra.mxu0 %v12281_v12 }
 0xa34   :  { %12286 = vmatprep.subr.bf16.mxu0 %v12285_v60 }
 0xa37   :  { %12288 = vmatpush3.bf16.msra.mxu0 %v12285_v60 }
 0xa38   :  { %12092 = vmatprep.subr.bf16.mxu0 %v18269_v15 }
 0xafd   :  { %v3947_v26 = vpop.f32.mrb[28].mxu0 }
 0xafe   :  { %v3948_v59 = vadd.f32 1e-05, %v3947_v26  ;;  %v11948_v44 = vpop.f32.mrb[29].mxu0 }
 0xaff   :  { %v3950_v49 = vpop.f32.mrb[30].mxu0 }
 0xb00   :  { %12744 = vrsqrt.f32 %v3948_v59  ;;  %v3951_v51 = vadd.f32 1e-05, %v3950_v49  ;;  %v11949_v39 = vpop.f32.mrb[31].mxu0 }
 0xb02   :  { %12746 = vrsqrt.f32 %v3951_v51 }
 0xb0a   :  { %v12745_v0 = vpop.eup %12744 }
 0xb0b   :  { %v3956_v47 = vmul.f32 %v12745_v0, %v3908_v4 }
 0xb0c   :  { %v12747_v57 = vpop.eup %12746 }
 0xb0d   :  { %v3965_v31 = vadd.f32 %v11470_v1, %v3956_v47  ;;  %v3957_v30 = vmul.f32 %v12747_v57, %v3909_v48 }
 0xb0f   :  { %v3966_v13 = vadd.f32 %v11470_v1, %v3957_v30  ;;  %v3967_v23 = vmax.f32 %v3965_v31, 0.0 }
 0xb11   :  { %v3968_v24 = vmax.f32 %v3966_v13, 0.0 }
 0xb13   :  { %v3969_v6 = vpack.c.bf16 %v3968_v24, %v3967_v23 }
 0xb15   :  { %11967 = vmatmul.mubr.bf16.vlgmr.msra.gmra.mrb[32].mxu1 %v3969_v6 }
 0xb16   :  { %12036 = vmatprep.mubr.msk.bf16.mxu1 %vm17955_vm11, %v18269_v15 }
 0xbe8   :  { %v4075_v7 = vpop.f32.mrb[32].mxu1 }
 0xbe9   :  { %v4076_v33 = vadd.f32 %v11471_v37, %v4075_v7  ;;  %v11968_v20 = vpop.f32.mrb[33].mxu1 }
 0xbea   :  { %v4078_v53 = vpop.f32.mrb[34].mxu1 }
 0xbeb   :  { %v14956_v27 = vadd.f32 %v11471_v37, %v4078_v53  ;;  %4262 = vrot.lane.b32.xlu1 %v4076_v33, %s13114_s0  ;;  %v11969_v56 = vpop.f32.mrb[35].mxu1  ;;  %v4091_v32 = vrot.slane %v4076_v33, %v18290_v42  ;;  %v4084_v3 = vcombine.high %v4076_v33, %v4076_v33 }
 0xbed   :  { %v14960_v14 = vpack.c.bf16 %v14956_v27, %v4076_v33  ;;  %v4099_v9 = vcombine.high %v4091_v32, %v4091_v32  ;;  %v4107_v2 = vrot.slane %v4091_v32, %v18290_v42  ;;  %v4098_v44 = vrot.slane %v4084_v3, %v18290_v42 }
 0xbef   :  { %18289 = vst [vmem:[#allocation78_spill] sm:$0xff] %v14960_v14  ;;  %4264 = vrot.lane.b32.xlu1 %v14956_v27, %s13114_s0  ;;  %12035 = vmatpush3.bf16.msra.mxu1 %v14960_v14  ;;  %v4121_v52 = vrot.slane %v4099_v9, %v18290_v42  ;;  %v4129_v62 = vcombine.high %v4107_v2, %v4107_v2 }
 0xbf0   :  { %12040 = vmatprep.subr.bf16.mxu1 %v18269_v15  ;;  %v4185_v63 = vrot.slane %v4107_v2, %v13304_v35  ;;  %v4100_v57 = vcombine.high %v4098_v44, %v4098_v44  ;;  %v4114_v30 = vrot.slane %v4098_v44, %v18290_v42 }
 0xbf1   :  { %v4189_v29 = vrot.slane %v4121_v52, %v13304_v35  ;;  %v4193_v49 = vrot.slane %v4129_v62, %v13304_v35  ;;  %v4131_v51 = vcombine.high %v4121_v52, %v4121_v52  ;;  %v4140_v52 = vrot.slane %v14956_v27, %v18290_v42 }
 0xbf2   :  { %v4201_v20 = vrot.slane %v4114_v30, %v13304_v35  ;;  %v4128_v53 = vrot.slane %v4100_v57, %v18290_v42  ;;  %v4130_v10 = vcombine.high %v4114_v30, %v4114_v30 }
 0xbf3   :  { %v4197_v31 = vrot.slane %v4131_v51, %v13304_v35  ;;  %v4156_v51 = vrot.slane %v4140_v52, %v18290_v42 }
 0xbf4   :  { %v4205_v50 = vrot.slane %v4128_v53, %v13304_v35  ;;  %v4209_v60 = vrot.slane %v4130_v10, %v13304_v35  ;;  %v4132_v2 = vcombine.high %v4128_v53, %v4128_v53 }
 0xbf5   :  { %v4217_v57 = vrot.slane %v4156_v51, %v13304_v35 }
 0xbf6   :  { %v4213_v44 = vrot.slane %v4132_v2, %v13304_v35 }
 0xc5d   :  { %v14980_v55 = vpop.permute.xlu1 %4262 }
 0xc5e   :  { %v4268_v26 = vadd.f32 %v14980_v55, %v4185_v63  ;;  %v4270_v59 = vadd.f32 %v14980_v55, %v4189_v29  ;;  %v4272_v4 = vadd.f32 %v14980_v55, %v4193_v49  ;;  %v4274_v24 = vadd.f32 %v14980_v55, %v4197_v31 }
 0xc5f   :  { %v4276_v40 = vadd.f32 %v14980_v55, %v4201_v20  ;;  %v4278_v12 = vadd.f32 %v14980_v55, %v4205_v50  ;;  %v4280_v62 = vadd.f32 %v14980_v55, %v4209_v60 }
 0xc60   :  { %vm4300_vm9 = vcmp.gt.f32.partialorder %v4268_v26, 0.0  ;;  %v4332_v39 = vmul.f32 0.2, %v4268_v26  ;;  %v4334_v1 = vmul.f32 0.2, %v4270_v59  ;;  %vm4302_vm0 = vcmp.gt.f32.partialorder %v4270_v59, 0.0 }
 0xc61   :  { %v14986_v41 = vpop.permute.xlu1 %4264  ;;  %v4336_v23 = vmul.f32 0.2, %v4272_v4  ;;  %vm4306_vm10 = vcmp.gt.f32.partialorder %v4274_v24, 0.0  ;;  %v4338_v56 = vmul.f32 0.2, %v4274_v24 }
 0xc62   :  { %v4364_v0 = vsel %vm4300_vm9, %v4268_v26, %v4332_v39  ;;  %v4269_v48 = vadd.f32 %v14986_v41, %v4185_v63  ;;  %v4271_v47 = vadd.f32 %v14986_v41, %v4189_v29  ;;  %v4366_v6 = vsel %vm4302_vm0, %v4270_v59, %v4334_v1 }
 0xc63   :  { %4436 = vrot.lane.b32.xlu0 %v4364_v0, %s13114_s0  ;;  %v4273_v33 = vadd.f32 %v14986_v41, %v4193_v49  ;;  %vm4304_vm9 = vcmp.gt.f32.partialorder %v4272_v4, 0.0  ;;  %v4275_v16 = vadd.f32 %v14986_v41, %v4197_v31  ;;  %v4370_v28 = vsel %vm4306_vm10, %v4274_v24, %v4338_v56 }
 0xc64   :  { %vm4301_vm14 = vcmp.gt.f32.partialorder %v4269_v48, 0.0  ;;  %v4333_v13 = vmul.f32 0.2, %v4269_v48  ;;  %v4335_v7 = vmul.f32 0.2, %v4271_v47  ;;  %vm4303_vm13 = vcmp.gt.f32.partialorder %v4271_v47, 0.0 }
 0xc65   :  { %v4368_v18 = vsel %vm4304_vm9, %v4272_v4, %v4336_v23  ;;  %v4337_v25 = vmul.f32 0.2, %v4273_v33  ;;  %v4340_v9 = vmul.f32 0.2, %v4276_v40  ;;  %v4339_v5 = vmul.f32 0.2, %v4275_v16 }
 0xc66   :  { %v4365_v37 = vsel %vm4301_vm14, %v4269_v48, %v4333_v13  ;;  %v4367_v54 = vsel %vm4303_vm13, %v4271_v47, %v4335_v7  ;;  %vm4305_vm14 = vcmp.gt.f32.partialorder %v4273_v33, 0.0  ;;  %v4277_v17 = vadd.f32 %v14986_v41, %v4201_v20 }
 0xc67   :  { %4440 = vrot.lane.b32.xlu0 %v4366_v6, %s13114_s0  ;;  %4438 = vrot.lane.b32.xlu1 %v4365_v37, %s13114_s0  ;;  %v4369_v32 = vsel %vm4305_vm14, %v4273_v33, %v4337_v25  ;;  %vm4308_vm13 = vcmp.gt.f32.partialorder %v4276_v40, 0.0  ;;  %vm4307_vm0 = vcmp.gt.f32.partialorder %v4275_v16, 0.0  ;;  %vm4310_vm10 = vcmp.gt.f32.partialorder %v4278_v12, 0.0 }
 0xc68   :  { %v4342_v3 = vmul.f32 0.2, %v4278_v12  ;;  %v4372_v63 = vsel %vm4308_vm13, %v4276_v40, %v4340_v9  ;;  %v4371_v29 = vsel %vm4307_vm0, %v4275_v16, %v4339_v5  ;;  %v4341_v26 = vmul.f32 0.2, %v4277_v17 }
 0xc69   :  { %v4279_v59 = vadd.f32 %v14986_v41, %v4205_v50  ;;  %vm4309_vm9 = vcmp.gt.f32.partialorder %v4277_v17, 0.0  ;;  %v4148_v49 = vcombine.high %v4140_v52, %v4140_v52  ;;  %v4282_v4 = vadd.f32 %v14980_v55, %v4213_v44 }
 0xc6a   :  { %v4374_v39 = vsel %vm4310_vm10, %v4278_v12, %v4342_v3  ;;  %v4373_v0 = vsel %vm4309_vm9, %v4277_v17, %v4341_v26  ;;  %v4344_v1 = vmul.f32 0.2, %v4280_v62  ;;  %v4281_v47 = vadd.f32 %v14986_v41, %v4209_v60 }
 0xc6b   :  { %4444 = vrot.lane.b32.xlu0 %v4368_v18, %s13114_s0  ;;  %4442 = vrot.lane.b32.xlu1 %v4367_v54, %s13114_s0  ;;  %v4343_v48 = vmul.f32 0.2, %v4279_v59  ;;  %vm4312_vm14 = vcmp.gt.f32.partialorder %v4280_v62, 0.0  ;;  %vm4311_vm13 = vcmp.gt.f32.partialorder %v4279_v59, 0.0  ;;  %v4170_v31 = vrot.slane %v4148_v49, %v18290_v42 }
 0xc6c   :  { %vm4314_vm0 = vcmp.gt.f32.partialorder %v4282_v4, 0.0  ;;  %v4346_v30 = vmul.f32 0.2, %v4282_v4  ;;  %v4283_v13 = vadd.f32 %v14986_v41, %v4213_v44  ;;  %v4376_v23 = vsel %vm4312_vm14, %v4280_v62, %v4344_v1 }
 0xc6d   :  { %v4375_v24 = vsel %vm4311_vm13, %v4279_v59, %v4343_v48  ;;  %v4345_v6 = vmul.f32 0.2, %v4281_v47  ;;  %v4284_v37 = vadd.f32 %v14980_v55, %v4217_v57  ;;  %vm4313_vm10 = vcmp.gt.f32.partialorder %v4281_v47, 0.0 }
 0xc6e   :  { %v4133_v7 = vcombine.high %v14956_v27, %v14956_v27  ;;  %v4221_v33 = vrot.slane %v4170_v31, %v13304_v35  ;;  %v4178_v20 = vcombine.high %v4156_v51, %v4156_v51  ;;  %v4378_v53 = vsel %vm4314_vm0, %v4282_v4, %v4346_v30 }
 0xc6f   :  { %4448 = vrot.lane.b32.xlu0 %v4370_v28, %s13114_s0  ;;  %4446 = vrot.lane.b32.xlu1 %v4369_v32, %s13114_s0  ;;  %v4347_v56 = vmul.f32 0.2, %v4283_v13  ;;  %v4285_v40 = vadd.f32 %v14986_v41, %v4217_v57  ;;  %v4377_v18 = vsel %vm4313_vm10, %v4281_v47, %v4345_v6  ;;  %vm4315_vm9 = vcmp.gt.f32.partialorder %v4283_v13, 0.0 }
 0xc70   :  { %v4348_v54 = vmul.f32 0.2, %v4284_v37  ;;  %v4286_v25 = vadd.f32 %v14980_v55, %v4221_v33  ;;  %vm4316_vm14 = vcmp.gt.f32.partialorder %v4284_v37, 0.0  ;;  %v4147_v16 = vrot.slane %v4133_v7, %v18290_v42 }
 0xc71   :  { %v4225_v27 = vrot.slane %v4178_v20, %v13304_v35  ;;  %v4180_v50 = vcombine.high %v4170_v31, %v4170_v31  ;;  %v4379_v10 = vsel %vm4315_vm9, %v4283_v13, %v4347_v56  ;;  %v4349_v28 = vmul.f32 0.2, %v4285_v40 }
 0xc72   :  { %v4287_v12 = vadd.f32 %v14986_v41, %v4221_v33  ;;  %v4380_v32 = vsel %vm4316_vm14, %v4284_v37, %v4348_v54  ;;  %vm4317_vm13 = vcmp.gt.f32.partialorder %v4285_v40, 0.0  ;;  %v4350_v9 = vmul.f32 0.2, %v4286_v25 }
 0xc73   :  { %4452 = vrot.lane.b32.xlu0 %v4372_v63, %s13114_s0  ;;  %4450 = vrot.lane.b32.xlu1 %v4371_v29, %s13114_s0  ;;  %v4288_v5 = vadd.f32 %v14980_v55, %v4225_v27  ;;  %vm4318_vm0 = vcmp.gt.f32.partialorder %v4286_v25, 0.0  ;;  %v4149_v17 = vcombine.high %v4147_v16, %v4147_v16  ;;  %v4229_v60 = vrot.slane %v4180_v50, %v13304_v35 }
 0xc74   :  { %v4163_v2 = vrot.slane %v4147_v16, %v18290_v42  ;;  %v4381_v52 = vsel %vm4317_vm13, %v4285_v40, %v4349_v28  ;;  %v4351_v3 = vmul.f32 0.2, %v4287_v12  ;;  %v4289_v62 = vadd.f32 %v14986_v41, %v4225_v27 }
 0xc75   :  { %v4382_v63 = vsel %vm4318_vm0, %v4286_v25, %v4350_v9  ;;  %vm4319_vm10 = vcmp.gt.f32.partialorder %v4287_v12, 0.0  ;;  %v4352_v29 = vmul.f32 0.2, %v4288_v5  ;;  %v4290_v26 = vadd.f32 %v14980_v55, %v4229_v60 }
 0xc76   :  { %vm4320_vm9 = vcmp.gt.f32.partialorder %v4288_v5, 0.0  ;;  %v4233_v59 = vrot.slane %v4163_v2, %v13304_v35  ;;  %v4177_v44 = vrot.slane %v4149_v17, %v18290_v42  ;;  %v4383_v49 = vsel %vm4319_vm10, %v4287_v12, %v4351_v3 }
 0xc77   :  { %4456 = vrot.lane.b32.xlu0 %v4374_v39, %s13114_s0  ;;  %4454 = vrot.lane.b32.xlu1 %v4373_v0, %s13114_s0  ;;  %v4353_v51 = vmul.f32 0.2, %v4289_v62  ;;  %v4291_v39 = vadd.f32 %v14986_v41, %v4229_v60  ;;  %v4384_v4 = vsel %vm4320_vm9, %v4288_v5, %v4352_v29  ;;  %vm4321_vm14 = vcmp.gt.f32.partialorder %v4289_v62, 0.0 }
 0xc78   :  { %v4354_v0 = vmul.f32 0.2, %v4290_v26  ;;  %v4292_v1 = vadd.f32 %v14980_v55, %v4233_v59  ;;  %vm4322_vm13 = vcmp.gt.f32.partialorder %v4290_v26, 0.0  ;;  %v4237_v48 = vrot.slane %v4177_v44, %v13304_v35 }
 0xc79   :  { %v4179_v47 = vcombine.high %v4163_v2, %v4163_v2  ;;  %v4385_v57 = vsel %vm4321_vm14, %v4289_v62, %v4353_v51  ;;  %v4355_v31 = vmul.f32 0.2, %v4291_v39  ;;  %v4293_v30 = vadd.f32 %v14986_v41, %v4233_v59 }
 0xc7a   :  { %v4386_v13 = vsel %vm4322_vm13, %v4290_v26, %v4354_v0  ;;  %vm4323_vm0 = vcmp.gt.f32.partialorder %v4291_v39, 0.0  ;;  %vm4324_vm10 = vcmp.gt.f32.partialorder %v4292_v1, 0.0  ;;  %v4181_v37 = vcombine.high %v4177_v44, %v4177_v44 }
 0xc7b   :  { %4460 = vrot.lane.b32.xlu0 %v4376_v23, %s13114_s0  ;;  %4458 = vrot.lane.b32.xlu1 %v4375_v24, %s13114_s0  ;;  %v4356_v23 = vmul.f32 0.2, %v4292_v1  ;;  %v4294_v24 = vadd.f32 %v14980_v55, %v4237_v48  ;;  %v4241_v6 = vrot.slane %v4179_v47, %v13304_v35  ;;  %v4387_v7 = vsel %vm4323_vm0, %v4291_v39, %v4355_v31 }
 0xc7c   :  { %v4357_v33 = vmul.f32 0.2, %v4293_v30  ;;  %v4295_v20 = vadd.f32 %v14986_v41, %v4237_v48  ;;  %vm4325_vm9 = vcmp.gt.f32.partialorder %v4293_v30, 0.0 }
 0xc7d   :  { %v4358_v56 = vmul.f32 0.2, %v4294_v24  ;;  %v4296_v40 = vadd.f32 %v14980_v55, %v4241_v6  ;;  %vm4326_vm14 = vcmp.gt.f32.partialorder %v4294_v24, 0.0  ;;  %v4297_v50 = vadd.f32 %v14986_v41, %v4241_v6 }
 0xc7e   :  { %v4389_v54 = vsel %vm4325_vm9, %v4293_v30, %v4357_v33  ;;  %vm4327_vm13 = vcmp.gt.f32.partialorder %v4295_v20, 0.0  ;;  %v4359_v25 = vmul.f32 0.2, %v4295_v20 }
 0xc7f   :  { %4464 = vrot.lane.b32.xlu0 %v4378_v53, %s13114_s0  ;;  %4462 = vrot.lane.b32.xlu1 %v4377_v18, %s13114_s0  ;;  %v4388_v53 = vsel %vm4324_vm10, %v4292_v1, %v4356_v23  ;;  %v4245_v18 = vrot.slane %v4181_v37, %v13304_v35  ;;  %v4390_v16 = vsel %vm4326_vm14, %v4294_v24, %v4358_v56  ;;  %v4360_v27 = vmul.f32 0.2, %v4296_v40 }
 0xc80   :  { %vm4328_vm0 = vcmp.gt.f32.partialorder %v4296_v40, 0.0  ;;  %v4391_v28 = vsel %vm4327_vm13, %v4295_v20, %v4359_v25  ;;  %vm4329_vm10 = vcmp.gt.f32.partialorder %v4297_v50, 0.0  ;;  %v18291_v25 = vld [vmem:[#allocation30_spill] sm:$0xff]  ;;  %vm18336_vm13 = vcmask 1045509  }
 0xc81   :  { %v4392_v12 = vsel %vm4328_vm0, %v4296_v40, %v4360_v27  ;;  %v4299_v5 = vadd.f32 %v14986_v41, %v4245_v18  ;;  %vm18337_vm0 = vmmov %vm18336_vm13 }
 0xc83   :  { %4466 = vrot.lane.b32.xlu1 %v4379_v10, %s13114_s0  ;;  %4468 = vrot.lane.b32.xlu0 %v4380_v32, %s13114_s0  ;;  %v4298_v10 = vadd.f32 %v14980_v55, %v4245_v18  ;;  %v4361_v32 = vmul.f32 0.2, %v4297_v50  ;;  %v4363_v55 = vmul.f32 0.2, %v4299_v5  ;;  %vm4331_vm14 = vcmp.gt.f32.partialorder %v4299_v5, 0.0 }
 0xc85   :  { %v4362_v9 = vmul.f32 0.2, %v4298_v10  ;;  %vm4330_vm9 = vcmp.gt.f32.partialorder %v4298_v10, 0.0  ;;  %v4393_v17 = vsel %vm4329_vm10, %v4297_v50, %v4361_v32  ;;  %v4395_v2 = vsel %vm4331_vm14, %v4299_v5, %v4363_v55  ;;  %v18292_v50 = vld [vmem:[#allocation28_spill] sm:$0xff]  ;;  %v18293_v5 = vld [vmem:[#allocation29_spill] sm:$0xff] }
 0xc86   :  { %vm18338_vm10 = vcmask 1046534   ;;  %vm18340_vm14 = vcmask 1047559  }
 0xc87   :  { %4470 = vrot.lane.b32.xlu1 %v4381_v52, %s13114_s0  ;;  %4472 = vrot.lane.b32.xlu0 %v4382_v63, %s13114_s0  ;;  %v4394_v60 = vsel %vm4330_vm9, %v4298_v10, %v4362_v9  ;;  %vm18339_vm9 = vmmov %vm18338_vm10 }
 0xc8b   :  { %4474 = vrot.lane.b32.xlu1 %v4383_v49, %s13114_s0  ;;  %4476 = vrot.lane.b32.xlu0 %v4384_v4, %s13114_s0 }
 0xc8f   :  { %4478 = vrot.lane.b32.xlu1 %v4385_v57, %s13114_s0  ;;  %4480 = vrot.lane.b32.xlu0 %v4386_v13, %s13114_s0 }
 0xc93   :  { %4482 = vrot.lane.b32.xlu1 %v4387_v7, %s13114_s0  ;;  %4484 = vrot.lane.b32.xlu0 %v4388_v53, %s13114_s0 }
 0xc97   :  { %4486 = vrot.lane.b32.xlu1 %v4389_v54, %s13114_s0  ;;  %4488 = vrot.lane.b32.xlu0 %v4390_v16, %s13114_s0 }
 0xc9b   :  { %4490 = vrot.lane.b32.xlu1 %v4391_v28, %s13114_s0  ;;  %4492 = vrot.lane.b32.xlu0 %v4392_v12, %s13114_s0 }
 0xc9f   :  { %4494 = vrot.lane.b32.xlu1 %v4393_v17, %s13114_s0  ;;  %4496 = vrot.lane.b32.xlu0 %v4394_v60, %s13114_s0 }
 0xca3   :  { %4498 = vrot.lane.b32.xlu1 %v4395_v2, %s13114_s0  ;;  %v18294_v2 = vld [vmem:[#allocation27_spill] sm:$0xff] }
 0xcd5   :  { %v4437_v52 = vpop.permute.xlu0 %4436 }
 0xcd6   :  { %11986 = vmatprep.mubr.msk.f32.mxu0 %vm17954_vm7, %v4437_v52 }
 0xcd9   :  { %v4441_v41 = vpop.permute.xlu0 %4440  ;;  %v4439_v3 = vpop.permute.xlu1 %4438 }
 0xcda   :  { %11987 = vmatmul.mubr.msk.f32.vlgmr.msra.gmra.mrb[14].mxu0 %vm17954_vm7, %v4439_v3 }
 0xcdb   :  { %11989 = vmatprep.mubr.msk.f32.mxu0 %vm17954_vm7, %v4441_v41 }
 0xcdd   :  { %v4445_v62 = vpop.permute.xlu0 %4444  ;;  %v4443_v63 = vpop.permute.xlu1 %4442 }
 0xcde   :  { %11990 = vmatmul.mubr.msk.f32.gmra.mrb[32].mxu0 %vm17954_vm7, %v4443_v63  ;;  %v18295_v63 = vld [vmem:[#allocation35_spill] sm:$0xff] }
 0xcdf   :  { %11992 = vmatprep.mubr.msk.f32.mxu0 %vm17954_vm7, %v4445_v62 }
 0xce1   :  { %v4449_v29 = vpop.permute.xlu0 %4448  ;;  %v4447_v26 = vpop.permute.xlu1 %4446 }
 0xce2   :  { %11993 = vmatmul.mubr.msk.f32.gmra.mrb[34].mxu0 %vm17954_vm7, %v4447_v26 }
 0xce3   :  { %11995 = vmatprep.mubr.msk.f32.mxu0 %vm17954_vm7, %v4449_v29 }
 0xce5   :  { %v4453_v59 = vpop.permute.xlu0 %4452  ;;  %v4451_v44 = vpop.permute.xlu1 %4450 }
 0xce6   :  { %11996 = vmatmul.mubr.msk.f32.gmra.mrb[36].mxu0 %vm17954_vm7, %v4451_v44 }
 0xce7   :  { %11998 = vmatprep.mubr.msk.f32.mxu0 %vm17954_vm7, %v4453_v59 }
 0xce9   :  { %v4457_v49 = vpop.permute.xlu0 %4456  ;;  %v4455_v51 = vpop.permute.xlu1 %4454 }
 0xcea   :  { %11999 = vmatmul.mubr.msk.f32.gmra.mrb[38].mxu0 %vm17954_vm7, %v4455_v51 }
 0xceb   :  { %12001 = vmatprep.mubr.msk.f32.mxu0 %vm17954_vm7, %v4457_v49  ;;  %v18296_v49 = vld [vmem:[#allocation36_spill] sm:$0xff] }
 0xced   :  { %v4461_v39 = vpop.permute.xlu0 %4460  ;;  %v4459_v4 = vpop.permute.xlu1 %4458 }
 0xcee   :  { %12002 = vmatmul.mubr.msk.f32.gmra.mrb[40].mxu0 %vm17954_vm7, %v4459_v4 }
 0xcef   :  { %12004 = vmatprep.mubr.msk.f32.mxu0 %vm17954_vm7, %v4461_v39 }
 0xcf1   :  { %v4465_v0 = vpop.permute.xlu0 %4464  ;;  %v4463_v1 = vpop.permute.xlu1 %4462 }
 0xcf2   :  { %12005 = vmatmul.mubr.msk.f32.gmra.mrb[42].mxu0 %vm17954_vm7, %v4463_v1 }
 0xcf3   :  { %12007 = vmatprep.mubr.msk.f32.mxu0 %vm17954_vm7, %v4465_v0  ;;  %v18297_v0 = vld [vmem:[#allocation39_spill] sm:$0xff] }
 0xcf5   :  { %v4467_v48 = vpop.permute.xlu1 %4466  ;;  %v4469_v47 = vpop.permute.xlu0 %4468 }
 0xcf6   :  { %12008 = vmatmul.mubr.msk.f32.gmra.mrb[44].mxu0 %vm17954_vm7, %v4467_v48 }
 0xcf7   :  { %12010 = vmatprep.mubr.msk.f32.mxu0 %vm17954_vm7, %v4469_v47 }
 0xcf9   :  { %v4471_v57 = vpop.permute.xlu1 %4470  ;;  %v4473_v31 = vpop.permute.xlu0 %4472 }
 0xcfa   :  { %12011 = vmatmul.mubr.msk.f32.gmra.mrb[46].mxu0 %vm17954_vm7, %v4471_v57  ;;  %v18298_v57 = vld [vmem:[#allocation40_spill] sm:$0xff] }
 0xcfb   :  { %12013 = vmatprep.mubr.msk.f32.mxu0 %vm17954_vm7, %v4473_v31 }
 0xcfd   :  { %v4475_v30 = vpop.permute.xlu1 %4474  ;;  %v4477_v13 = vpop.permute.xlu0 %4476 }
 0xcfe   :  { %12014 = vmatmul.mubr.msk.f32.gmra.mrb[48].mxu0 %vm17954_vm7, %v4475_v30 }
 0xcff   :  { %12016 = vmatprep.mubr.msk.f32.mxu0 %vm17954_vm7, %v4477_v13 }
 0xd01   :  { %v4479_v23 = vpop.permute.xlu1 %4478  ;;  %v4481_v24 = vpop.permute.xlu0 %4480 }
 0xd02   :  { %12017 = vmatmul.mubr.msk.f32.gmra.mrb[50].mxu0 %vm17954_vm7, %v4479_v23 }
 0xd03   :  { %12019 = vmatprep.mubr.msk.f32.mxu0 %vm17954_vm7, %v4481_v24  ;;  %v18299_v24 = vld [vmem:[#allocation43_spill] sm:$0xff] }
 0xd05   :  { %v4483_v6 = vpop.permute.xlu1 %4482  ;;  %v4485_v37 = vpop.permute.xlu0 %4484 }
 0xd06   :  { %12020 = vmatmul.mubr.msk.f32.gmra.mrb[52].mxu0 %vm17954_vm7, %v4483_v6 }
 0xd07   :  { %12022 = vmatprep.mubr.msk.f32.mxu0 %vm17954_vm7, %v4485_v37 }
 0xd09   :  { %v4487_v7 = vpop.permute.xlu1 %4486  ;;  %v4489_v33 = vpop.permute.xlu0 %4488 }
 0xd0a   :  { %12023 = vmatmul.mubr.msk.f32.gmra.mrb[54].mxu0 %vm17954_vm7, %v4487_v7 }
 0xd0b   :  { %12025 = vmatprep.mubr.msk.f32.mxu0 %vm17954_vm7, %v4489_v33 }
 0xd0d   :  { %v4491_v20 = vpop.permute.xlu1 %4490  ;;  %v4493_v53 = vpop.permute.xlu0 %4492 }
 0xd0e   :  { %12026 = vmatmul.mubr.msk.f32.gmra.mrb[56].mxu0 %vm17954_vm7, %v4491_v20  ;;  %v18300_v20 = vld [vmem:[#allocation44_spill] sm:$0xff] }
 0xd0f   :  { %12028 = vmatprep.mubr.msk.f32.mxu0 %vm17954_vm7, %v4493_v53 }
 0xd11   :  { %v4495_v56 = vpop.permute.xlu1 %4494  ;;  %v4497_v40 = vpop.permute.xlu0 %4496 }
 0xd12   :  { %12029 = vmatmul.mubr.msk.f32.gmra.mrb[58].mxu0 %vm17954_vm7, %v4495_v56 }
 0xd13   :  { %12031 = vmatprep.mubr.msk.f32.mxu0 %vm17954_vm7, %v4497_v40 }
 0xd15   :  { %v4499_v18 = vpop.permute.xlu1 %4498 }
 0xd16   :  { %12032 = vmatmul.mubr.msk.f32.gmra.mrb[60].mxu0 %vm17954_vm7, %v4499_v18  ;;  %v18301_v18 = vld [vmem:[#allocation47_spill] sm:$0xff]  ;;  %vm18341_vm7 = vmmov %vm18340_vm14 }
 0xd17   :  { %12100 = vmatprep.mubr.msk.bf16.mxu0 %vm17955_vm11, %v18269_v15  ;;  %vm18342_vm11 = vcmask 130048  }
 0xdad   :  { %v11988_v54 = vpop.f32.mrb[14].mxu0 }
 0xdae   :  { %v15109_v16 = vadd.f32 %v11988_v54, %v18291_v25  ;;  %v4630_v27 = vpop.f32.mrb[15].mxu0 }
 0xdaf   :  { %v15112_v10 = vadd.f32 %v4630_v27, %v18292_v50  ;;  %v18334_v50 = vld [vmem:[#allocation70_spill] sm:$0xff] }
 0xdb0   :  { %4890 = vperm.xlu1 %12442, %v15109_v16  }
 0xdb1   :  { %4887 = vperm.xlu0 %12441, %v15112_v10   ;;  %v11991_v28 = vpop.f32.mrb[32].mxu0 }
 0xdb2   :  { %v4640_v12 = vpop.f32.mrb[33].mxu0  ;;  %v15121_v17 = vadd.f32 %v11991_v28, %v18293_v5 }
 0xdb3   :  { %v15127_v52 = vadd.f32 %v4640_v12, %v18294_v2  ;;  %v18302_v12 = vld [vmem:[#allocation48_spill] sm:$0xff] }
 0xdb4   :  { %12443 = vset.pattern.permute.xlu1 %v18227_v58 }
 0xdb5   :  { %6103 = vperm.xlu1 %12443, %v15109_v16   ;;  %12444 = vset.pattern.permute.xlu0 %v18227_v58  ;;  %v11994_v32 = vpop.f32.mrb[34].mxu0 }
 0xdb6   :  { %6100 = vperm.xlu0 %12444, %v15112_v10   ;;  %v4650_v9 = vpop.f32.mrb[35].mxu0  ;;  %v15134_v29 = vadd.f32 %v11994_v32, %v18295_v63  ;;  %v18332_v63 = vld [vmem:[#allocation69_spill] sm:$0xff] }
 0xdb7   :  { %v15141_v51 = vadd.f32 %v4650_v9, %v18296_v49  ;;  %v18330_v49 = vld [vmem:[#allocation54_spill] sm:$0xff] }
 0xdb9   :  { %12445 = vset.pattern.permute.xlu1 %v18244_v21  ;;  %v11997_v60 = vpop.f32.mrb[36].mxu0 }
 0xdba   :  { %6109 = vperm.xlu0 %12444, %v15121_v17   ;;  %4896 = vperm.xlu1 %12445, %v15121_v17   ;;  %v4660_v55 = vpop.f32.mrb[37].mxu0  ;;  %v15148_v1 = vadd.f32 %v11997_v60, %v18297_v0 }
 0xdbb   :  { %v15159_v31 = vadd.f32 %v4660_v55, %v18298_v57  ;;  %v18328_v57 = vld [vmem:[#allocation53_spill] sm:$0xff] }
 0xdbd   :  { %v12000_v41 = vpop.f32.mrb[38].mxu0 }
 0xdbe   :  { %12446 = vset.pattern.permute.xlu0 %v18244_v21  ;;  %12447 = vset.pattern.permute.xlu1 %v18227_v58  ;;  %v4670_v3 = vpop.f32.mrb[39].mxu0  ;;  %v15172_v6 = vadd.f32 %v12000_v41, %v18299_v24  ;;  %v18303_v41 = vld [vmem:[#allocation51_spill] sm:$0xff] }
 0xdbf   :  { %6106 = vperm.xlu1 %12447, %v15127_v52   ;;  %4893 = vperm.xlu0 %12446, %v15127_v52   ;;  %v15185_v53 = vadd.f32 %v4670_v3, %v18300_v20 }
 0xdc1   :  { %v12003_v62 = vpop.f32.mrb[40].mxu0 }
 0xdc2   :  { %v4680_v26 = vpop.f32.mrb[41].mxu0  ;;  %v15196_v54 = vadd.f32 %v12003_v62, %v18301_v18 }
 0xdc3   :  { %12448 = vset.pattern.permute.xlu1 %v18244_v21  ;;  %12449 = vset.pattern.permute.xlu0 %v18227_v58  ;;  %v15207_v32 = vadd.f32 %v4680_v26, %v18302_v12  ;;  %v18304_v26 = vld [vmem:[#allocation52_spill] sm:$0xff] }
 0xdc4   :  { %6115 = vperm.xlu0 %12449, %v15134_v29   ;;  %4902 = vperm.xlu1 %12448, %v15134_v29  }
 0xdc5   :  { %v12006_v59 = vpop.f32.mrb[42].mxu0 }
 0xdc6   :  { %v4690_v44 = vpop.f32.mrb[43].mxu0  ;;  %v15220_v3 = vadd.f32 %v12006_v59, %v18303_v41  ;;  %v18305_v59 = vld [vmem:[#allocation55_spill] sm:$0xff] }
 0xdc7   :  { %v15229_v38 = vadd.f32 %v4690_v44, %v18304_v26  ;;  %v18306_v44 = vld [vmem:[#allocation57_spill] sm:$0xff] }
 0xdc8   :  { %12450 = vset.pattern.permute.xlu0 %v18244_v21  ;;  %12451 = vset.pattern.permute.xlu1 %v18227_v58 }
 0xdc9   :  { %6112 = vperm.xlu1 %12451, %v15141_v51   ;;  %4899 = vperm.xlu0 %12450, %v15141_v51   ;;  %v12009_v39 = vpop.f32.mrb[44].mxu0 }
 0xdca   :  { %v4700_v4 = vpop.f32.mrb[45].mxu0  ;;  %v15236_v41 = vadd.f32 %v12009_v39, %v18305_v59  ;;  %v18307_v39 = vld [vmem:[#allocation31_spill] sm:$0xff] }
 0xdcb   :  { %v15243_v26 = vadd.f32 %v4700_v4, %v18306_v44  ;;  %v18308_v4 = vld [vmem:[#allocation32_spill] sm:$0xff] }
 0xdcd   :  { %12452 = vset.pattern.permute.xlu1 %v18244_v21  ;;  %12453 = vset.pattern.permute.xlu0 %v18227_v58  ;;  %v15152_v48 = vpop.f32.mrb[46].mxu0 }
 0xdce   :  { %6121 = vperm.xlu0 %12453, %v15148_v1   ;;  %4908 = vperm.xlu1 %12452, %v15148_v1   ;;  %v15156_v47 = vpop.f32.mrb[47].mxu0  ;;  %v15251_v59 = vadd.f32 %v15152_v48, %v18307_v39  ;;  %v18309_v48 = vld [vmem:[#allocation33_spill] sm:$0xff] }
 0xdcf   :  { %v15259_v44 = vadd.f32 %v15156_v47, %v18308_v4  ;;  %v18311_v47 = vld [vmem:[#allocation34_spill] sm:$0xff] }
 0xdd1   :  { %v15161_v30 = vpop.f32.mrb[48].mxu0 }
 0xdd2   :  { %12454 = vset.pattern.permute.xlu0 %v18244_v21  ;;  %12455 = vset.pattern.permute.xlu1 %v18227_v58  ;;  %v15165_v13 = vpop.f32.mrb[49].mxu0  ;;  %v15267_v39 = vadd.f32 %v15161_v30, %v18309_v48  ;;  %v18313_v30 = vld [vmem:[#allocation37_spill] sm:$0xff] }
 0xdd3   :  { %6118 = vperm.xlu1 %12455, %v15159_v31   ;;  %4905 = vperm.xlu0 %12454, %v15159_v31   ;;  %v15275_v4 = vadd.f32 %v15165_v13, %v18311_v47  ;;  %v18314_v13 = vld [vmem:[#allocation38_spill] sm:$0xff] }
 0xdd4   :  { %18310 = vst [vmem:[#allocation86_spill] sm:$0xff] %v15267_v39 }
 0xdd5   :  { %v15169_v23 = vpop.f32.mrb[50].mxu0  ;;  %18312 = vst [vmem:[#allocation79_spill] sm:$0xff] %v15275_v4 }
 0xdd6   :  { %v15174_v37 = vpop.f32.mrb[51].mxu0  ;;  %v15283_v48 = vadd.f32 %v15169_v23, %v18313_v30  ;;  %v18316_v23 = vld [vmem:[#allocation41_spill] sm:$0xff] }
 0xdd7   :  { %12456 = vset.pattern.permute.xlu1 %v18244_v21  ;;  %12457 = vset.pattern.permute.xlu0 %v18227_v58  ;;  %v15291_v47 = vadd.f32 %v15174_v37, %v18314_v13  ;;  %v18318_v37 = vld [vmem:[#allocation42_spill] sm:$0xff] }
 0xdd8   :  { %6127 = vperm.xlu0 %12457, %v15172_v6   ;;  %4914 = vperm.xlu1 %12456, %v15172_v6  }
 0xdd9   :  { %v15180_v7 = vpop.f32.mrb[52].mxu0  ;;  %18315 = vst [vmem:[#allocation87_spill] sm:$0xff] %v15291_v47 }
 0xdda   :  { %v15182_v33 = vpop.f32.mrb[53].mxu0  ;;  %v15299_v30 = vadd.f32 %v15180_v7, %v18316_v23  ;;  %v18320_v7 = vld [vmem:[#allocation45_spill] sm:$0xff] }
 0xddb   :  { %v15307_v13 = vadd.f32 %v15182_v33, %v18318_v37  ;;  %v18322_v33 = vld [vmem:[#allocation46_spill] sm:$0xff] }
 0xddc   :  { %12458 = vset.pattern.permute.xlu0 %v18244_v21  ;;  %12459 = vset.pattern.permute.xlu1 %v18227_v58  ;;  %18317 = vst [vmem:[#allocation81_spill] sm:$0xff] %v15299_v30 }
 0xddd   :  { %6124 = vperm.xlu1 %12459, %v15185_v53   ;;  %4911 = vperm.xlu0 %12458, %v15185_v53   ;;  %v15191_v56 = vpop.f32.mrb[54].mxu0  ;;  %18319 = vst [vmem:[#allocation88_spill] sm:$0xff] %v15307_v13 }
 0xdde   :  { %v15193_v40 = vpop.f32.mrb[55].mxu0  ;;  %v15315_v23 = vadd.f32 %v15191_v56, %v18320_v7  ;;  %v18324_v7 = vld [vmem:[#allocation49_spill] sm:$0xff] }
 0xddf   :  { %v15323_v37 = vadd.f32 %v15193_v40, %v18322_v33  ;;  %v18326_v33 = vld [vmem:[#allocation50_spill] sm:$0xff] }
 0xde0   :  { %18321 = vst [vmem:[#allocation83_spill] sm:$0xff] %v15315_v23 }
 0xde1   :  { %12460 = vset.pattern.permute.xlu1 %v18244_v21  ;;  %12461 = vset.pattern.permute.xlu0 %v18227_v58  ;;  %v15200_v27 = vpop.f32.mrb[56].mxu0  ;;  %18323 = vst [vmem:[#allocation89_spill] sm:$0xff] %v15323_v37 }
 0xde2   :  { %6133 = vperm.xlu0 %12461, %v15196_v54   ;;  %4920 = vperm.xlu1 %12460, %v15196_v54   ;;  %v15204_v28 = vpop.f32.mrb[57].mxu0  ;;  %v15333_v12 = vadd.f32 %v15200_v27, %v18324_v7 }
 0xde3   :  { %v15345_v20 = vadd.f32 %v15204_v28, %v18326_v33 }
 0xde4   :  { %18325 = vst [vmem:[#allocation85_spill] sm:$0xff] %v15333_v12 }
 0xde5   :  { %v15209_v9 = vpop.f32.mrb[58].mxu0  ;;  %18327 = vst [vmem:[#allocation63_spill] sm:$0xff] %v15345_v20 }
 0xde6   :  { %12462 = vset.pattern.permute.xlu0 %v18244_v21  ;;  %12463 = vset.pattern.permute.xlu1 %v18227_v58  ;;  %v15213_v60 = vpop.f32.mrb[59].mxu0  ;;  %v15355_v0 = vadd.f32 %v15209_v9, %v18328_v57 }
 0xde7   :  { %6130 = vperm.xlu1 %12463, %v15207_v32   ;;  %4917 = vperm.xlu0 %12462, %v15207_v32   ;;  %v15363_v2 = vadd.f32 %v15213_v60, %v18330_v49 }
 0xde8   :  { %18329 = vst [vmem:[#allocation62_spill] sm:$0xff] %v15355_v0 }
 0xde9   :  { %v15217_v55 = vpop.f32.mrb[60].mxu0  ;;  %18331 = vst [vmem:[#allocation65_spill] sm:$0xff] %v15363_v2 }
 0xdea   :  { %v15222_v62 = vpop.f32.mrb[61].mxu0  ;;  %v15371_v5 = vadd.f32 %v15217_v55, %v18332_v63 }
 0xdeb   :  { %12464 = vset.pattern.permute.xlu1 %v18244_v21  ;;  %12465 = vset.pattern.permute.xlu0 %v18227_v58  ;;  %v15379_v25 = vadd.f32 %v15222_v62, %v18334_v50 }
 0xdec   :  { %6139 = vperm.xlu0 %12465, %v15220_v3   ;;  %4926 = vperm.xlu1 %12464, %v15220_v3   ;;  %18333 = vst [vmem:[#allocation64_spill] sm:$0xff] %v15371_v5 }
 0xded   :  { %18335 = vst [vmem:[#allocation59_spill] sm:$0xff] %v15379_v25 }
 0xdf0   :  { %12466 = vset.pattern.permute.xlu0 %v18244_v21  ;;  %12467 = vset.pattern.permute.xlu1 %v18227_v58 }
 0xdf1   :  { %6136 = vperm.xlu1 %12467, %v15229_v38   ;;  %4923 = vperm.xlu0 %12466, %v15229_v38  }
 0xdf5   :  { %12468 = vset.pattern.permute.xlu1 %v18244_v21  ;;  %12469 = vset.pattern.permute.xlu0 %v18227_v58 }
 0xdf6   :  { %6145 = vperm.xlu0 %12469, %v15236_v41   ;;  %4932 = vperm.xlu1 %12468, %v15236_v41  }
 0xdfa   :  { %12470 = vset.pattern.permute.xlu0 %v18244_v21  ;;  %12471 = vset.pattern.permute.xlu1 %v18227_v58 }
 0xdfb   :  { %6142 = vperm.xlu1 %12471, %v15243_v26   ;;  %4929 = vperm.xlu0 %12470, %v15243_v26  }
 0xdff   :  { %12472 = vset.pattern.permute.xlu1 %v18244_v21  ;;  %12473 = vset.pattern.permute.xlu0 %v18227_v58 }
 0xe00   :  { %6151 = vperm.xlu0 %12473, %v15251_v59   ;;  %4938 = vperm.xlu1 %12472, %v15251_v59  }
 0xe04   :  { %12474 = vset.pattern.permute.xlu0 %v18244_v21  ;;  %12475 = vset.pattern.permute.xlu1 %v18227_v58 }
 0xe05   :  { %6148 = vperm.xlu1 %12475, %v15259_v44   ;;  %4935 = vperm.xlu0 %12474, %v15259_v44  }
 0xe09   :  { %12476 = vset.pattern.permute.xlu1 %v18244_v21  ;;  %12477 = vset.pattern.permute.xlu0 %v18227_v58 }
 0xe0a   :  { %6157 = vperm.xlu0 %12477, %v15267_v39   ;;  %4944 = vperm.xlu1 %12476, %v15267_v39  }
 0xe0e   :  { %12478 = vset.pattern.permute.xlu0 %v18244_v21  ;;  %12479 = vset.pattern.permute.xlu1 %v18227_v58 }
 0xe0f   :  { %6154 = vperm.xlu1 %12479, %v15275_v4   ;;  %4941 = vperm.xlu0 %12478, %v15275_v4  }
 0xe13   :  { %12480 = vset.pattern.permute.xlu1 %v18244_v21  ;;  %12481 = vset.pattern.permute.xlu0 %v18227_v58 }
 0xe14   :  { %6163 = vperm.xlu0 %12481, %v15283_v48   ;;  %4950 = vperm.xlu1 %12480, %v15283_v48  }
 0xe18   :  { %12482 = vset.pattern.permute.xlu0 %v18244_v21  ;;  %12483 = vset.pattern.permute.xlu1 %v18227_v58 }
 0xe19   :  { %6160 = vperm.xlu1 %12483, %v15291_v47   ;;  %4947 = vperm.xlu0 %12482, %v15291_v47  }
 0xe1d   :  { %12484 = vset.pattern.permute.xlu1 %v18244_v21  ;;  %12485 = vset.pattern.permute.xlu0 %v18227_v58 }
 0xe1e   :  { %6169 = vperm.xlu0 %12485, %v15299_v30   ;;  %4956 = vperm.xlu1 %12484, %v15299_v30  }
 0xe22   :  { %12486 = vset.pattern.permute.xlu0 %v18244_v21  ;;  %12487 = vset.pattern.permute.xlu1 %v18227_v58 }
 0xe23   :  { %6166 = vperm.xlu1 %12487, %v15307_v13   ;;  %4953 = vperm.xlu0 %12486, %v15307_v13  }
 0xe27   :  { %12488 = vset.pattern.permute.xlu1 %v18244_v21  ;;  %12489 = vset.pattern.permute.xlu0 %v18227_v58 }
 0xe28   :  { %6175 = vperm.xlu0 %12489, %v15315_v23   ;;  %4962 = vperm.xlu1 %12488, %v15315_v23  }
 0xe2c   :  { %12490 = vset.pattern.permute.xlu0 %v18244_v21  ;;  %12491 = vset.pattern.permute.xlu1 %v18227_v58 }
 0xe2d   :  { %6172 = vperm.xlu1 %12491, %v15323_v37   ;;  %4959 = vperm.xlu0 %12490, %v15323_v37  }
 0xe2f   :  { %v15329_v56 = vpop.permute.xlu1 %4890 }
 0xe30   :  { %v15335_v18 = vpop.permute.xlu0 %4887  ;;  %v4989_v37 = vrot.slane %v15329_v56, %v13860_v22 }
 0xe31   :  { %12492 = vset.pattern.permute.xlu1 %v18244_v21  ;;  %12493 = vset.pattern.permute.xlu0 %v18227_v58 }
 0xe32   :  { %6181 = vperm.xlu0 %12493, %v15333_v12   ;;  %4968 = vperm.xlu1 %12492, %v15333_v12  }
 0xe34   :  { %v15341_v40 = vpop.permute.xlu1 %6103 }
 0xe35   :  { %v15347_v24 = vpop.permute.xlu0 %6100  ;;  %v6202_v13 = vrot.slane %v15341_v40, %v13860_v22 }
 0xe36   :  { %12494 = vset.pattern.permute.xlu0 %v18244_v21  ;;  %12495 = vset.pattern.permute.xlu1 %v18227_v58  ;;  %v6198_v12 = vrot.slane %v15347_v24, %v13853_v19 }
 0xe37   :  { %6178 = vperm.xlu1 %12495, %v15345_v20   ;;  %4965 = vperm.xlu0 %12494, %v15345_v20  }
 0xe38   :  { %v6203_v40 = vsel %vm1233_vm2, %v6202_v13, %v6198_v12 }
 0xe39   :  { %v6110_v27 = vpop.permute.xlu0 %6109  ;;  %v4897_v7 = vpop.permute.xlu1 %4896 }
 0xe3a   :  { %v6211_v47 = vrot.slane %v6110_v27, %v13860_v22  ;;  %v4998_v23 = vrot.slane %v4897_v7, %v13860_v22 }
 0xe3b   :  { %12496 = vset.pattern.permute.xlu1 %v18244_v21  ;;  %12497 = vset.pattern.permute.xlu0 %v18227_v58 }
 0xe3c   :  { %6187 = vperm.xlu0 %12497, %v15355_v0   ;;  %4974 = vperm.xlu1 %12496, %v15355_v0   ;;  %v4985_v0 = vrot.slane %v15335_v18, %v13853_v19 }
 0xe3e   :  { %v6107_v28 = vpop.permute.xlu1 %6106  ;;  %v4894_v33 = vpop.permute.xlu0 %4893  ;;  %v4990_v4 = vsel %vm1233_vm2, %v4989_v37, %v4985_v0 }
 0xe40   :  { %12498 = vset.pattern.permute.xlu0 %v18244_v21  ;;  %12499 = vset.pattern.permute.xlu1 %v18227_v58 }
 0xe41   :  { %6184 = vperm.xlu1 %12499, %v15363_v2   ;;  %4971 = vperm.xlu0 %12498, %v15363_v2  }
 0xe43   :  { %v6116_v9 = vpop.permute.xlu0 %6115  ;;  %v4903_v57 = vpop.permute.xlu1 %4902 }
 0xe44   :  { %v6220_v24 = vrot.slane %v6116_v9, %v13860_v22  ;;  %v5007_v27 = vrot.slane %v4903_v57, %v13860_v22 }
 0xe45   :  { %12500 = vset.pattern.permute.xlu1 %v18244_v21  ;;  %12501 = vset.pattern.permute.xlu0 %v18227_v58 }
 0xe46   :  { %6193 = vperm.xlu0 %12501, %v15371_v5   ;;  %4980 = vperm.xlu1 %12500, %v15371_v5   ;;  %v6207_v5 = vrot.slane %v6107_v28, %v13853_v19 }
 0xe48   :  { %v6113_v60 = vpop.permute.xlu1 %6112  ;;  %v4900_v49 = vpop.permute.xlu0 %4899  ;;  %v6212_v28 = vsel %vm1233_vm2, %v6211_v47, %v6207_v5 }
 0xe49   :  { %v6216_v39 = vrot.slane %v6113_v60, %v13853_v19  ;;  %v5003_v56 = vrot.slane %v4900_v49, %v13853_v19 }
 0xe4a   :  { %12502 = vset.pattern.permute.xlu0 %v18244_v21  ;;  %12503 = vset.pattern.permute.xlu1 %v18227_v58 }
 0xe4b   :  { %6190 = vperm.xlu1 %12503, %v15379_v25   ;;  %4977 = vperm.xlu0 %12502, %v15379_v25   ;;  %v4994_v25 = vrot.slane %v4894_v33, %v13853_v19  ;;  %v6221_v0 = vsel %vm1233_vm2, %v6220_v24, %v6216_v39  ;;  %v5008_v12 = vsel %vm1233_vm2, %v5007_v27, %v5003_v56 }
 0xe4d   :  { %v6122_v55 = vpop.permute.xlu0 %6121  ;;  %v4909_v63 = vpop.permute.xlu1 %4908  ;;  %v4999_v33 = vsel %vm1233_vm2, %v4998_v23, %v4994_v25  ;;  %v6339_v25 = vsel %vm1370_vm3, %v6212_v28, %v6203_v40 }
 0xe4e   :  { %v5126_v47 = vsel %vm1370_vm3, %v4999_v33, %v4990_v4  ;;  %v6229_v13 = vrot.slane %v6122_v55, %v13860_v22  ;;  %v5016_v57 = vrot.slane %v4909_v63, %v13860_v22 }
 0xe4f   :  { %12504 = vset.pattern.permute.xlu1 %v18244_v21  ;;  %v5127_v28 = vsel %vm1372_vm4, %v5008_v12, %v5126_v47 }
 0xe52   :  { %v6119_v42 = vpop.permute.xlu1 %6118  ;;  %v4906_v8 = vpop.permute.xlu0 %4905 }
 0xe53   :  { %v6225_v7 = vrot.slane %v6119_v42, %v13853_v19  ;;  %v5012_v5 = vrot.slane %v4906_v8, %v13853_v19 }
 0xe55   :  { %v5017_v39 = vsel %vm1233_vm2, %v5016_v57, %v5012_v5 }
 0xe57   :  { %v6128_v11 = vpop.permute.xlu0 %6127  ;;  %v4915_v61 = vpop.permute.xlu1 %4914 }
 0xe58   :  { %v6238_v42 = vrot.slane %v6128_v11, %v13860_v22  ;;  %v5025_v8 = vrot.slane %v4915_v61, %v13860_v22 }
 0xe5c   :  { %v6125_v45 = vpop.permute.xlu1 %6124  ;;  %v4912_v34 = vpop.permute.xlu0 %4911 }
 0xe5d   :  { %v6234_v49 = vrot.slane %v6125_v45, %v13853_v19  ;;  %v5021_v23 = vrot.slane %v4912_v34, %v13853_v19  ;;  %v6230_v34 = vsel %vm1233_vm2, %v6229_v13, %v6225_v7 }
 0xe5f   :  { %v6239_v63 = vsel %vm1233_vm2, %v6238_v42, %v6234_v49  ;;  %v5026_v11 = vsel %vm1233_vm2, %v5025_v8, %v5021_v23 }
 0xe61   :  { %v6134_v62 = vpop.permute.xlu0 %6133  ;;  %v4921_v50 = vpop.permute.xlu1 %4920 }
 0xe62   :  { %v6247_v61 = vrot.slane %v6134_v62, %v13860_v22 }
 0xe66   :  { %v6131_v15 = vpop.permute.xlu1 %6130  ;;  %v4918_v14 = vpop.permute.xlu0 %4917 }
 0xe67   :  { %v6243_v37 = vrot.slane %v6131_v15, %v13853_v19  ;;  %v5030_v4 = vrot.slane %v4918_v14, %v13853_v19  ;;  %v5034_v15 = vrot.slane %v4921_v50, %v13860_v22  ;;  %v6340_v14 = vsel %vm1372_vm4, %v6221_v0, %v6339_v25 }
 0xe69   :  { %v6248_v40 = vsel %vm1233_vm2, %v6247_v61, %v6243_v37  ;;  %v5035_v24 = vsel %vm1233_vm2, %v5034_v15, %v5030_v4 }
 0xe6b   :  { %v6140_v2 = vpop.permute.xlu0 %6139  ;;  %v4927_v20 = vpop.permute.xlu1 %4926 }
 0xe6c   :  { %v6256_v33 = vrot.slane %v6140_v2, %v13860_v22  ;;  %v5043_v56 = vrot.slane %v4927_v20, %v13860_v22 }
 0xe70   :  { %v6137_v30 = vpop.permute.xlu1 %6136  ;;  %v4924_v18 = vpop.permute.xlu0 %4923 }
 0xe71   :  { %v6252_v60 = vrot.slane %v6137_v30, %v13853_v19  ;;  %v5039_v55 = vrot.slane %v4924_v18, %v13853_v19  ;;  %v6341_v30 = vsel %vm1374_vm5, %v6230_v34, %v6340_v14  ;;  %v5128_v18 = vsel %vm1374_vm5, %v5017_v39, %v5127_v28 }
 0xe72   :  { %v6342_v62 = vsel %vm17957_vm6, %v6239_v63, %v6341_v30  ;;  %v5129_v50 = vsel %vm17957_vm6, %v5026_v11, %v5128_v18  ;;  %vm18343_vm6 = vmmov %vm18342_vm11 }
 0xe73   :  { %v6257_v27 = vsel %vm1233_vm2, %v6256_v33, %v6252_v60  ;;  %v5044_v7 = vsel %vm1233_vm2, %v5043_v56, %v5039_v55  ;;  %v5130_v23 = vsel %vm18336_vm13, %v5035_v24, %v5129_v50  ;;  %v6343_v0 = vsel %vm18337_vm0, %v6248_v40, %v6342_v62  ;;  %vm18347_vm13 = vmmov %vm18337_vm0 }
 0xe74   :  { %v5131_v13 = vsel %vm18338_vm10, %v5044_v7, %v5130_v23  ;;  %v6344_v42 = vsel %vm18339_vm9, %v6257_v27, %v6343_v0 }
 0xe75   :  { %v6146_v9 = vpop.permute.xlu0 %6145  ;;  %v4933_v45 = vpop.permute.xlu1 %4932 }
 0xe76   :  { %v6265_v20 = vrot.slane %v6146_v9, %v13860_v22  ;;  %v5052_v25 = vrot.slane %v4933_v45, %v13860_v22 }
 0xe7a   :  { %v6143_v5 = vpop.permute.xlu1 %6142  ;;  %v4930_v2 = vpop.permute.xlu0 %4929 }
 0xe7b   :  { %v6261_v47 = vrot.slane %v6143_v5, %v13853_v19  ;;  %v5048_v49 = vrot.slane %v4930_v2, %v13853_v19 }
 0xe7d   :  { %v5053_v12 = vsel %vm1233_vm2, %v5052_v25, %v5048_v49  ;;  %v6266_v57 = vsel %vm1233_vm2, %v6265_v20, %v6261_v47 }
 0xe7e   :  { %v5132_v8 = vsel %vm18340_vm14, %v5053_v12, %v5131_v13  ;;  %v6345_v37 = vsel %vm18341_vm7, %v6266_v57, %v6344_v42  ;;  %vm18346_vm7 = vmmov %vm18337_vm0 }
 0xe7f   :  { %v6152_v4 = vpop.permute.xlu0 %6151  ;;  %v4939_v9 = vpop.permute.xlu1 %4938  ;;  %v5142_v45 = vsel %vm18342_vm11, %v5132_v8, -inf  ;;  %v6355_v34 = vsel %vm18343_vm6, %v6345_v37, -inf  ;;  %vm18344_vm6 = vcmask 1044484   ;;  %vm18348_vm0 = vmmov %vm18339_vm9 }
 0xe80   :  { %5143 = vmax.xlane.f32.xlu1 %v5142_v45  ;;  %6356 = vmax.xlane.f32.xlu0 %v6355_v34  ;;  %v6274_v42 = vrot.slane %v6152_v4, %v13860_v22  ;;  %v5061_v8 = vrot.slane %v4939_v9, %v13860_v22  ;;  %vm18345_vm11 = vmmov %vm18344_vm6 }
 0xe81   :  { %vm18349_vm10 = vmmov %vm18348_vm0 }
 0xe82   :  { %vm18350_vm9 = vmmov %vm18340_vm14 }
 0xe83   :  { %vm18351_vm14 = vmmov %vm18350_vm9 }
 0xe84   :  { %v6149_v39 = vpop.permute.xlu1 %6148  ;;  %v4936_v60 = vpop.permute.xlu0 %4935 }
 0xe85   :  { %v6270_v0 = vrot.slane %v6149_v39, %v13853_v19  ;;  %v5057_v12 = vrot.slane %v4936_v60, %v13853_v19 }
 0xe87   :  { %v6275_v60 = vsel %vm1233_vm2, %v6274_v42, %v6270_v0 }
 0xe89   :  { %v6158_v55 = vpop.permute.xlu0 %6157  ;;  %v4945_v63 = vpop.permute.xlu1 %4944 }
 0xe8a   :  { %v6283_v13 = vrot.slane %v6158_v55, %v13860_v22  ;;  %v5070_v57 = vrot.slane %v4945_v63, %v13860_v22  ;;  %v5062_v55 = vsel %vm1233_vm2, %v5061_v8, %v5057_v12 }
 0xe8e   :  { %v6155_v11 = vpop.permute.xlu1 %6154  ;;  %v4942_v61 = vpop.permute.xlu0 %4941 }
 0xe8f   :  { %v6279_v49 = vrot.slane %v6155_v11, %v13853_v19  ;;  %v5066_v23 = vrot.slane %v4942_v61, %v13853_v19 }
 0xe91   :  { %v6284_v37 = vsel %vm1233_vm2, %v6283_v13, %v6279_v49  ;;  %v5071_v45 = vsel %vm1233_vm2, %v5070_v57, %v5066_v23 }
 0xe92   :  { %v6346_v23 = vsel %vm1370_vm3, %v6284_v37, %v6275_v60 }
 0xe93   :  { %v6164_v15 = vpop.permute.xlu0 %6163  ;;  %v4951_v14 = vpop.permute.xlu1 %4950 }
 0xe94   :  { %v6292_v63 = vrot.slane %v6164_v15, %v13860_v22  ;;  %v5079_v4 = vrot.slane %v4951_v14, %v13860_v22 }
 0xe98   :  { %v6161_v28 = vpop.permute.xlu1 %6160  ;;  %v4948_v33 = vpop.permute.xlu0 %4947 }
 0xe99   :  { %v6288_v34 = vrot.slane %v6161_v28, %v13853_v19  ;;  %v5075_v11 = vrot.slane %v4948_v33, %v13853_v19  ;;  %v5133_v28 = vsel %vm1370_vm3, %v5071_v45, %v5062_v55 }
 0xe9b   :  { %v6293_v0 = vsel %vm1233_vm2, %v6292_v63, %v6288_v34  ;;  %v5080_v12 = vsel %vm1233_vm2, %v5079_v4, %v5075_v11 }
 0xe9c   :  { %v5134_v34 = vsel %vm1372_vm4, %v5080_v12, %v5133_v28 }
 0xe9d   :  { %v6170_v56 = vpop.permute.xlu0 %6169  ;;  %v4957_v30 = vpop.permute.xlu1 %4956 }
 0xe9e   :  { %v6301_v15 = vrot.slane %v6170_v56, %v13860_v22  ;;  %v5088_v14 = vrot.slane %v4957_v30, %v13860_v22 }
 0xea2   :  { %v6167_v18 = vpop.permute.xlu1 %6166  ;;  %v4954_v40 = vpop.permute.xlu0 %4953 }
 0xea3   :  { %v6297_v9 = vrot.slane %v6167_v18, %v13853_v19  ;;  %v5084_v49 = vrot.slane %v4954_v40, %v13853_v19 }
 0xea5   :  { %v5089_v37 = vsel %vm1233_vm2, %v5088_v14, %v5084_v49 }
 0xea7   :  { %v6176_v24 = vpop.permute.xlu0 %6175  ;;  %v4963_v62 = vpop.permute.xlu1 %4962 }
 0xea8   :  { %v6310_v18 = vrot.slane %v6176_v24, %v13860_v22  ;;  %v5097_v40 = vrot.slane %v4963_v62, %v13860_v22 }
 0xeac   :  { %v6173_v50 = vpop.permute.xlu1 %6172  ;;  %v4960_v27 = vpop.permute.xlu0 %4959 }
 0xead   :  { %v6306_v33 = vrot.slane %v6173_v50, %v13853_v19  ;;  %v5093_v13 = vrot.slane %v4960_v27, %v13853_v19  ;;  %v6302_v27 = vsel %vm1233_vm2, %v6301_v15, %v6297_v9 }
 0xeaf   :  { %v6311_v30 = vsel %vm1233_vm2, %v6310_v18, %v6306_v33  ;;  %v5098_v24 = vsel %vm1233_vm2, %v5097_v40, %v5093_v13 }
 0xeb1   :  { %v6182_v7 = vpop.permute.xlu0 %6181  ;;  %v4969_v5 = vpop.permute.xlu1 %4968 }
 0xeb2   :  { %v6319_v62 = vrot.slane %v6182_v7, %v13860_v22 }
 0xeb6   :  { %v6179_v2 = vpop.permute.xlu1 %6178  ;;  %v4966_v20 = vpop.permute.xlu0 %4965 }
 0xeb7   :  { %v6315_v57 = vrot.slane %v6179_v2, %v13853_v19  ;;  %v5102_v42 = vrot.slane %v4966_v20, %v13853_v19  ;;  %v5106_v2 = vrot.slane %v4969_v5, %v13860_v22  ;;  %v6347_v20 = vsel %vm1372_vm4, %v6293_v0, %v6346_v23 }
 0xeb9   :  { %v6320_v55 = vsel %vm1233_vm2, %v6319_v62, %v6315_v57  ;;  %v5107_v63 = vsel %vm1233_vm2, %v5106_v2, %v5102_v42 }
 0xebb   :  { %v6188_v25 = vpop.permute.xlu0 %6187  ;;  %v4975_v47 = vpop.permute.xlu1 %4974 }
 0xebc   :  { %v6328_v11 = vrot.slane %v6188_v25, %v13860_v22  ;;  %v5115_v60 = vrot.slane %v4975_v47, %v13860_v22 }
 0xec0   :  { %v6185_v61 = vpop.permute.xlu1 %6184  ;;  %v4972_v39 = vpop.permute.xlu0 %4971 }
 0xec1   :  { %v6324_v45 = vrot.slane %v6185_v61, %v13853_v19  ;;  %v5111_v56 = vrot.slane %v4972_v39, %v13853_v19  ;;  %v6348_v61 = vsel %vm1374_vm5, %v6302_v27, %v6347_v20  ;;  %v5135_v39 = vsel %vm1374_vm5, %v5089_v37, %v5134_v34 }
 0xec2   :  { %v6349_v7 = vsel %vm18344_vm6, %v6311_v30, %v6348_v61  ;;  %v5136_v5 = vsel %vm18345_vm11, %v5098_v24, %v5135_v39  ;;  %vm18352_vm6 = vcmask 130048   ;;  %v18354_v61 = vld [vmem:[#allocation21_spill] sm:$0xff] }
 0xec3   :  { %v6329_v4 = vsel %vm1233_vm2, %v6328_v11, %v6324_v45  ;;  %v5116_v9 = vsel %vm1233_vm2, %v5115_v60, %v5111_v56  ;;  %v6350_v13 = vsel %vm18346_vm7, %v6320_v55, %v6349_v7  ;;  %v5137_v0 = vsel %vm18347_vm13, %v5107_v63, %v5136_v5  ;;  %vm18353_vm11 = vmmov %vm18352_vm6 }
 0xec4   :  { %v6351_v15 = vsel %vm18348_vm0, %v6329_v4, %v6350_v13  ;;  %v5138_v18 = vsel %vm18349_vm10, %v5116_v9, %v5137_v0  ;;  %v18355_v4 = vld [vmem:[#allocation22_spill] sm:$0xff]  ;;  %vm18413_vm7 = vcmask 1044484   ;;  %vm18414_vm10 = vmmov %vm18350_vm9 }
 0xec5   :  { %v6194_v8 = vpop.permute.xlu0 %6193  ;;  %v4981_v50 = vpop.permute.xlu1 %4980 }
 0xec6   :  { %v6337_v47 = vrot.slane %v6194_v8, %v13860_v22  ;;  %v5124_v23 = vrot.slane %v4981_v50, %v13860_v22 }
 0xeca   :  { %v6191_v49 = vpop.permute.xlu1 %6190  ;;  %v4978_v25 = vpop.permute.xlu0 %4977 }
 0xecb   :  { %v6333_v28 = vrot.slane %v6191_v49, %v13853_v19  ;;  %v5120_v33 = vrot.slane %v4978_v25, %v13853_v19 }
 0xecd   :  { %v6338_v12 = vsel %vm1233_vm2, %v6337_v47, %v6333_v28  ;;  %v5125_v14 = vsel %vm1233_vm2, %v5124_v23, %v5120_v33  ;;  %v18356_v28 = vld [vmem:[#allocation23_spill] sm:$0xff] }
 0xece   :  { %v6352_v40 = vsel %vm18350_vm9, %v6338_v12, %v6351_v15  ;;  %v5139_v57 = vsel %vm18351_vm14, %v5125_v14, %v5138_v18  ;;  %vm18415_vm9 = vmmov %vm18352_vm6 }
 0xecf   :  { %v6358_v42 = vsel %vm18352_vm6, %v6352_v40, -inf  ;;  %v5145_v8 = vsel %vm18353_vm11, %v5139_v57, -inf  ;;  %v18357_v40 = vld [vmem:[#allocation25_spill] sm:$0xff]  ;;  %vm18416_vm14 = vmmov %vm18413_vm7 }
 0xed0   :  { %6359 = vmax.xlane.f32.xlu1 %v6358_v42  ;;  %5146 = vmax.xlane.f32.xlu0 %v5145_v8  ;;  %vm18417_vm6 = vmmov %vm18347_vm13 }
 0xed1   :  { %vm18418_vm11 = vmmov %vm18348_vm0 }
 0xf0d   :  { %v5144_v50 = vpop.xlane.xlu1 %5143 }
 0xf0e   :  { %v5153_v27 = vrot.slane %v5144_v50, %v13304_v35  ;;  %v5157_v37 = vrot.slane %v5144_v50, %v13307_v36  ;;  %v5161_v45 = vrot.slane %v5144_v50, %v13324_v43  ;;  %v5165_v62 = vrot.slane %v5144_v50, %v13331_v46 }
 0xf0f   :  { %v5169_v39 = vrot.slane %v5144_v50, %v18354_v61  ;;  %v5173_v9 = vrot.slane %v5144_v50, %v18355_v4  ;;  %v5177_v33 = vrot.slane %v5144_v50, %v18356_v28  ;;  %v5181_v57 = vrot.slane %v5144_v50, %v18357_v40 }
 0xf10   :  { %v5230_v56 = vsub.f32 %v15112_v10, %v5153_v27  ;;  %v5231_v30 = vsub.f32 %v15109_v16, %v5153_v27  ;;  %v5232_v24 = vsub.f32 %v15127_v52, %v5157_v37  ;;  %v5235_v2 = vsub.f32 %v15134_v29, %v5161_v45 }
 0xf11   :  { %v5233_v11 = vsub.f32 %v15121_v17, %v5157_v37  ;;  %v5237_v55 = vsub.f32 %v15148_v1, %v5165_v62  ;;  %v5234_v7 = vsub.f32 %v15141_v51, %v5161_v45  ;;  %v5239_v49 = vsub.f32 %v15172_v6, %v5169_v39  ;;  %v15548_v45 = vpop.xlane.xlu0 %6356 }
 0xf12   :  { %v5262_v20 = vmul.f32 1.442695, %v5230_v56  ;;  %v5264_v34 = vmul.f32 1.442695, %v5231_v30  ;;  %v5266_v60 = vmul.f32 1.442695, %v5232_v24  ;;  %v5236_v47 = vsub.f32 %v15159_v31, %v5165_v62 }
 0xf13   :  { %v5272_v63 = vmul.f32 1.442695, %v5235_v2  ;;  %v5268_v5 = vmul.f32 1.442695, %v5233_v11  ;;  %v5276_v25 = vmul.f32 1.442695, %v5237_v55  ;;  %v5241_v13 = vsub.f32 %v15196_v54, %v5173_v9 }
 0xf14   :  { %12748 = vpow2.f32 %v5262_v20  ;;  %v5270_v23 = vmul.f32 1.442695, %v5234_v7  ;;  %v5280_v0 = vmul.f32 1.442695, %v5239_v49  ;;  %v5238_v14 = vsub.f32 %v15185_v53, %v5169_v39 }
 0xf15   :  { %12750 = vpow2.f32 %v5264_v34  ;;  %v5274_v18 = vmul.f32 1.442695, %v5236_v47  ;;  %v5243_v42 = vsub.f32 %v15220_v3, %v5177_v33  ;;  %v5284_v8 = vmul.f32 1.442695, %v5241_v13 }
 0xf16   :  { %12752 = vpow2.f32 %v5266_v60  ;;  %v5240_v56 = vsub.f32 %v15207_v32, %v5173_v9  ;;  %v5278_v30 = vmul.f32 1.442695, %v5238_v14  ;;  %v5245_v50 = vsub.f32 %v15236_v41, %v5181_v57 }
 0xf17   :  { %12754 = vpow2.f32 %v5272_v63  ;;  %v5288_v24 = vmul.f32 1.442695, %v5243_v42  ;;  %v6366_v2 = vrot.slane %v15548_v45, %v13304_v35  ;;  %v5242_v11 = vsub.f32 %v15229_v38, %v5177_v33 }
 0xf18   :  { %12756 = vpow2.f32 %v5268_v5  ;;  %v5282_v34 = vmul.f32 1.442695, %v5240_v56  ;;  %v5292_v60 = vmul.f32 1.442695, %v5245_v50  ;;  %v15567_v55 = vrot.slane %v15548_v45, %v13324_v43 }
 0xf19   :  { %12758 = vpow2.f32 %v5276_v25  ;;  %v6444_v63 = vsub.f32 %v15109_v16, %v6366_v2  ;;  %v5244_v5 = vsub.f32 %v15243_v26, %v5181_v57  ;;  %v5286_v9 = vmul.f32 1.442695, %v5242_v11 }
 0xf1a   :  { %12760 = vpow2.f32 %v5270_v23  ;;  %v6378_v25 = vrot.slane %v15548_v45, %v13331_v46  ;;  %v6447_v47 = vsub.f32 %v15141_v51, %v15567_v55  ;;  %v6370_v13 = vrot.slane %v15548_v45, %v13307_v36 }
 0xf1b   :  { %12762 = vpow2.f32 %v5280_v0  ;;  %v6477_v16 = vmul.f32 1.442695, %v6444_v63  ;;  %v5290_v33 = vmul.f32 1.442695, %v5244_v5  ;;  %v6443_v0 = vsub.f32 %v15112_v10, %v6366_v2 }
 0xf1c   :  { %12764 = vpow2.f32 %v5274_v18  ;;  %v15592_v18 = vrot.slane %v15548_v45, %v18354_v61  ;;  %v6449_v51 = vsub.f32 %v15159_v31, %v6378_v25  ;;  %v6483_v57 = vmul.f32 1.442695, %v6447_v47 }
 0xf1d   :  { %12766 = vpow2.f32 %v5284_v8  ;;  %v6445_v8 = vsub.f32 %v15127_v52, %v6370_v13  ;;  %v6475_v10 = vmul.f32 1.442695, %v6443_v0  ;;  %v6446_v2 = vsub.f32 %v15121_v17, %v6370_v13 }
 0xf1e   :  { %v15535_v12 = vpop.eup %12748  ;;  %12768 = vpow2.f32 %v5278_v30  ;;  %v6386_v30 = vrot.slane %v15548_v45, %v18355_v4  ;;  %v6451_v31 = vsub.f32 %v15185_v53, %v15592_v18  ;;  %v6487_v50 = vmul.f32 1.442695, %v6449_v51 }
 0xf1f   :  { %v15537_v15 = vpop.eup %12750  ;;  %5359 = vperm.xlu0 %12502, %v15535_v12   ;;  %12770 = vpow2.f32 %v5288_v24  ;;  %v6479_v52 = vmul.f32 1.442695, %v6445_v8  ;;  %v6448_v17 = vsub.f32 %v15134_v29, %v15567_v55  ;;  %v6481_v5 = vmul.f32 1.442695, %v6446_v2 }
 0xf20   :  { %5362 = vperm.xlu1 %12504, %v15537_v15   ;;  %v15544_v27 = vpop.eup %12752  ;;  %12772 = vpow2.f32 %v5282_v34  ;;  %v6390_v34 = vrot.slane %v15548_v45, %v18356_v28  ;;  %v6453_v11 = vsub.f32 %v15207_v32, %v6386_v30  ;;  %v6394_v32 = vrot.slane %v15548_v45, %v18357_v40 }
 0xf21   :  { %v15546_v37 = vpop.eup %12754  ;;  %12774 = vpow2.f32 %v5292_v60  ;;  %v6491_v60 = vmul.f32 1.442695, %v6451_v31  ;;  %v6450_v13 = vsub.f32 %v15148_v1, %v6378_v25  ;;  %v6485_v29 = vmul.f32 1.442695, %v6448_v17 }
 0xf22   :  { %v15554_v62 = vpop.eup %12756  ;;  %12776 = vpow2.f32 %v5286_v9  ;;  %v6455_v9 = vsub.f32 %v15229_v38, %v6390_v34  ;;  %v6495_v47 = vmul.f32 1.442695, %v6453_v11  ;;  %v6457_v55 = vsub.f32 %v15243_v26, %v6394_v32 }
 0xf23   :  { %5374 = vperm.xlu0 %12502, %v15546_v37   ;;  %v15558_v20 = vpop.eup %12758  ;;  %12778 = vpow2.f32 %v6477_v16  ;;  %v6489_v51 = vmul.f32 1.442695, %v6450_v13  ;;  %v6452_v1 = vsub.f32 %v15172_v6, %v15592_v18  ;;  %v6454_v8 = vsub.f32 %v15196_v54, %v6386_v30 }
 0xf24   :  { %5365 = vperm.xlu1 %12504, %v15544_v27   ;;  %v15563_v39 = vpop.eup %12760  ;;  %12780 = vpow2.f32 %v5290_v33  ;;  %v6499_v45 = vmul.f32 1.442695, %v6455_v9  ;;  %v6503_v25 = vmul.f32 1.442695, %v6457_v55  ;;  %v6456_v6 = vsub.f32 %v15220_v3, %v6390_v34 }
 0xf25   :  { %v15570_v7 = vpop.eup %12762  ;;  %12782 = vpow2.f32 %v6483_v57  ;;  %v6497_v18 = vmul.f32 1.442695, %v6454_v8  ;;  %v6458_v54 = vsub.f32 %v15236_v41, %v6394_v32 }
 0xf26   :  { %v15575_v49 = vpop.eup %12764  ;;  %12784 = vpow2.f32 %v6475_v10  ;;  %v6493_v10 = vmul.f32 1.442695, %v6452_v1  ;;  %v6501_v30 = vmul.f32 1.442695, %v6456_v6 }
 0xf27   :  { %5380 = vperm.xlu0 %12502, %v15558_v20   ;;  %v15581_v23 = vpop.eup %12766  ;;  %12786 = vpow2.f32 %v6487_v50  ;;  %v6505_v3 = vmul.f32 1.442695, %v6458_v54 }
 0xf28   :  { %5368 = vperm.xlu1 %12504, %v15554_v62   ;;  %v15588_v14 = vpop.eup %12768  ;;  %12788 = vpow2.f32 %v6479_v52 }
 0xf29   :  { %v15595_v42 = vpop.eup %12770  ;;  %12790 = vpow2.f32 %v6491_v60 }
 0xf2a   :  { %v15600_v56 = vpop.eup %12772  ;;  %12792 = vpow2.f32 %v6481_v5 }
 0xf2b   :  { %5386 = vperm.xlu0 %12502, %v15570_v7   ;;  %v15606_v24 = vpop.eup %12774  ;;  %12794 = vpow2.f32 %v6495_v47 }
 0xf2c   :  { %5371 = vperm.xlu1 %12504, %v15563_v39   ;;  %v15614_v53 = vpop.eup %12776  ;;  %12796 = vpow2.f32 %v6485_v29 }
 0xf2d   :  { %v15616_v63 = vpop.eup %12778  ;;  %12798 = vpow2.f32 %v6499_v45 }
 0xf2e   :  { %v15626_v16 = vpop.eup %12780  ;;  %12800 = vpow2.f32 %v6489_v51 }
 0xf2f   :  { %5392 = vperm.xlu0 %12502, %v15581_v23   ;;  %v15628_v33 = vpop.eup %12782  ;;  %12802 = vpow2.f32 %v6503_v25  ;;  %v18371_v25 = vld [vmem:[#allocation79_spill] sm:$0xff] }
 0xf30   :  { %5377 = vperm.xlu1 %12504, %v15575_v49   ;;  %v15634_v0 = vpop.eup %12784  ;;  %12804 = vpow2.f32 %v6493_v10 }
 0xf31   :  { %v15636_v38 = vpop.eup %12786  ;;  %12806 = vpow2.f32 %v6497_v18  ;;  %v18372_v18 = vld [vmem:[#allocation81_spill] sm:$0xff] }
 0xf32   :  { %18358 = vst [vmem:[#allocation58_spill] sm:$0xff] %v15636_v38  ;;  %v15643_v26 = vpop.eup %12788  ;;  %12808 = vpow2.f32 %v6501_v30 }
 0xf33   :  { %5398 = vperm.xlu0 %12502, %v15595_v42   ;;  %18359 = vst [vmem:[#allocation67_spill] sm:$0xff] %v15643_v26  ;;  %v15645_v57 = vpop.eup %12790  ;;  %12810 = vpow2.f32 %v6505_v3  ;;  %v18373_v3 = vld [vmem:[#allocation86_spill] sm:$0xff] }
 0xf34   :  { %5383 = vperm.xlu1 %12504, %v15588_v14   ;;  %18360 = vst [vmem:[#allocation66_spill] sm:$0xff] %v15645_v57  ;;  %v15650_v31 = vpop.eup %12792 }
 0xf35   :  { %18361 = vst [vmem:[#allocation71_spill] sm:$0xff] %v15650_v31  ;;  %v15652_v50 = vpop.eup %12794 }
 0xf36   :  { %18362 = vst [vmem:[#allocation68_spill] sm:$0xff] %v15652_v50  ;;  %v15657_v2 = vpop.eup %12796 }
 0xf37   :  { %5404 = vperm.xlu0 %12502, %v15606_v24   ;;  %18363 = vst [vmem:[#allocation61_spill] sm:$0xff] %v15657_v2  ;;  %v15659_v52 = vpop.eup %12798 }
 0xf38   :  { %5389 = vperm.xlu1 %12504, %v15600_v56   ;;  %18364 = vst [vmem:[#allocation60_spill] sm:$0xff] %v15659_v52  ;;  %v15664_v11 = vpop.eup %12800 }
 0xf39   :  { %18365 = vst [vmem:[#allocation73_spill] sm:$0xff] %v15664_v11  ;;  %v15666_v60 = vpop.eup %12802 }
 0xf3a   :  { %18366 = vst [vmem:[#allocation74_spill] sm:$0xff] %v15666_v60  ;;  %v15670_v34 = vpop.eup %12804 }
 0xf3b   :  { %12506 = vset.pattern.permute.xlu0 %v18227_v58  ;;  %18367 = vst [vmem:[#allocation75_spill] sm:$0xff] %v15670_v34  ;;  %v15674_v41 = vpop.eup %12806 }
 0xf3c   :  { %5395 = vperm.xlu1 %12504, %v15614_v53   ;;  %6575 = vperm.xlu0 %12506, %v15616_v63   ;;  %18368 = vst [vmem:[#allocation91_spill] sm:$0xff] %v15674_v41  ;;  %v15677_v17 = vpop.eup %12808 }
 0xf3d   :  { %18369 = vst [vmem:[#allocation93_spill] sm:$0xff] %v15677_v17  ;;  %v15680_v5 = vpop.eup %12810 }
 0xf3e   :  { %18370 = vst [vmem:[#allocation72_spill] sm:$0xff] %v15680_v5 }
 0xf40   :  { %5401 = vperm.xlu1 %12504, %v15626_v16   ;;  %6584 = vperm.xlu0 %12506, %v15628_v33  }
 0xf44   :  { %12505 = vset.pattern.permute.xlu1 %v18227_v58  ;;  %6590 = vperm.xlu0 %12506, %v15636_v38  }
 0xf45   :  { %6572 = vperm.xlu1 %12505, %v15634_v0  }
 0xf48   :  { %6596 = vperm.xlu0 %12506, %v15645_v57  }
 0xf49   :  { %6578 = vperm.xlu1 %12505, %v15643_v26  }
 0xf4c   :  { %6602 = vperm.xlu0 %12506, %v15652_v50  }
 0xf4d   :  { %6581 = vperm.xlu1 %12505, %v15650_v31  }
 0xf50   :  { %6608 = vperm.xlu0 %12506, %v15659_v52  }
 0xf51   :  { %6587 = vperm.xlu1 %12505, %v15657_v2  }
 0xf54   :  { %6614 = vperm.xlu0 %12506, %v15666_v60  }
 0xf55   :  { %6593 = vperm.xlu1 %12505, %v15664_v11  }
 0xf58   :  { %12508 = vset.pattern.permute.xlu0 %v18244_v21 }
 0xf59   :  { %6599 = vperm.xlu1 %12505, %v15670_v34   ;;  %v18376_v34 = vld [vmem:[#allocation85_spill] sm:$0xff] }
 0xf5d   :  { %6605 = vperm.xlu1 %12505, %v15674_v41   ;;  %v5147_v32 = vpop.xlane.xlu0 %5146  ;;  %v18375_v41 = vld [vmem:[#allocation87_spill] sm:$0xff] }
 0xf5e   :  { %v5185_v9 = vrot.slane %v5147_v32, %v13304_v35  ;;  %v5193_v13 = vrot.slane %v5147_v32, %v13324_v43  ;;  %v5189_v29 = vrot.slane %v5147_v32, %v13307_v36  ;;  %v5197_v51 = vrot.slane %v5147_v32, %v13331_v46 }
 0xf5f   :  { %v5201_v6 = vrot.slane %v5147_v32, %v18354_v61 }
 0xf60   :  { %v5246_v47 = vsub.f32 %v15259_v44, %v5185_v9  ;;  %v5247_v55 = vsub.f32 %v15251_v59, %v5185_v9  ;;  %v5251_v1 = vsub.f32 %v15283_v48, %v5193_v13  ;;  %v5248_v8 = vsub.f32 %v18371_v25, %v5189_v29 }
 0xf61   :  { %6611 = vperm.xlu1 %12505, %v15677_v17   ;;  %v5253_v54 = vsub.f32 %v18372_v18, %v5197_v51  ;;  %v5205_v9 = vrot.slane %v5147_v32, %v18355_v4  ;;  %v5250_v50 = vsub.f32 %v18375_v41, %v5193_v13 }
 0xf62   :  { %v5294_v45 = vmul.f32 1.442695, %v5246_v47  ;;  %v5296_v10 = vmul.f32 1.442695, %v5247_v55  ;;  %v5304_v30 = vmul.f32 1.442695, %v5251_v1  ;;  %v5209_v55 = vrot.slane %v5147_v32, %v18356_v28 }
 0xf63   :  { %v5298_v60 = vmul.f32 1.442695, %v5248_v8  ;;  %v18374_v47 = vld [vmem:[#allocation83_spill] sm:$0xff]  ;;  %v5308_v52 = vmul.f32 1.442695, %v5253_v54  ;;  %v5257_v57 = vsub.f32 %v18376_v34, %v5205_v9  ;;  %v5213_v54 = vrot.slane %v5147_v32, %v18357_v40 }
 0xf64   :  { %12812 = vpow2.f32 %v5294_v45  ;;  %v5255_v17 = vsub.f32 %v18374_v47, %v5201_v6 }
 0xf65   :  { %6617 = vperm.xlu1 %12505, %v15680_v5   ;;  %v5249_v5 = vsub.f32 %v18373_v3, %v5189_v29  ;;  %12814 = vpow2.f32 %v5296_v10  ;;  %v18378_v29 = vld [vmem:[#allocation88_spill] sm:$0xff]  ;;  %v5302_v10 = vmul.f32 1.442695, %v5250_v50 }
 0xf66   :  { %12816 = vpow2.f32 %v5304_v30  ;;  %v5312_v1 = vmul.f32 1.442695, %v5255_v17  ;;  %v5252_v8 = vsub.f32 %v18378_v29, %v5197_v51  ;;  %v18379_v30 = vld [vmem:[#allocation62_spill] sm:$0xff]  ;;  %v18382_v17 = vld [vmem:[#allocation89_spill] sm:$0xff]  ;;  %v18383_v50 = vld [vmem:[#allocation64_spill] sm:$0xff] }
 0xf67   :  { %12818 = vpow2.f32 %v5298_v60  ;;  %v5300_v45 = vmul.f32 1.442695, %v5249_v5  ;;  %v5259_v13 = vsub.f32 %v18379_v30, %v5209_v55  ;;  %v5316_v60 = vmul.f32 1.442695, %v5257_v57 }
 0xf68   :  { %12820 = vpow2.f32 %v5308_v52  ;;  %v15710_v52 = vpop.xlane.xlu1 %6359  ;;  %v5306_v51 = vmul.f32 1.442695, %v5252_v8  ;;  %v5261_v32 = vsub.f32 %v18383_v50, %v5213_v54 }
 0xf69   :  { %12507 = vset.pattern.permute.xlu1 %v18244_v21  ;;  %12822 = vpow2.f32 %v5300_v45  ;;  %v5320_v45 = vmul.f32 1.442695, %v5259_v13  ;;  %v6398_v57 = vrot.slane %v15710_v52, %v13304_v35  ;;  %v6402_v13 = vrot.slane %v15710_v52, %v13307_v36 }
 0xf6a   :  { %12824 = vpow2.f32 %v5312_v1  ;;  %v5324_v8 = vmul.f32 1.442695, %v5261_v32 }
 0xf6b   :  { %12826 = vpow2.f32 %v5302_v10  ;;  %v6461_v32 = vsub.f32 %v18371_v25, %v6402_v13 }
 0xf6c   :  { %12828 = vpow2.f32 %v5316_v60  ;;  %v6459_v60 = vsub.f32 %v15259_v44, %v6398_v57 }
 0xf6d   :  { %12830 = vpow2.f32 %v5306_v51  ;;  %v6406_v51 = vrot.slane %v15710_v52, %v13324_v43  ;;  %v6511_v25 = vmul.f32 1.442695, %v6461_v32 }
 0xf6e   :  { %v15700_v31 = vpop.eup %12812  ;;  %12832 = vpow2.f32 %v5320_v45  ;;  %v6507_v45 = vmul.f32 1.442695, %v6459_v60 }
 0xf6f   :  { %18377 = vst [vmem:[#allocation95_spill] sm:$0xff] %v15700_v31  ;;  %5407 = vperm.xlu1 %12507, %v15700_v31   ;;  %v15706_v5 = vpop.eup %12814  ;;  %v5254_v31 = vsub.f32 %v18382_v17, %v5201_v6 }
 0xf70   :  { %18380 = vst [vmem:[#allocation90_spill] sm:$0xff] %v15706_v5  ;;  %v15708_v26 = vpop.eup %12816 }
 0xf71   :  { %18381 = vst [vmem:[#allocation97_spill] sm:$0xff] %v15708_v26  ;;  %5422 = vperm.xlu0 %12508, %v15708_v26   ;;  %v15716_v1 = vpop.eup %12818  ;;  %v5310_v6 = vmul.f32 1.442695, %v5254_v31 }
 0xf72   :  { %18384 = vst [vmem:[#allocation92_spill] sm:$0xff] %v15716_v1  ;;  %v15720_v11 = vpop.eup %12820 }
 0xf73   :  { %5410 = vperm.xlu1 %12507, %v15706_v5   ;;  %18385 = vst [vmem:[#allocation99_spill] sm:$0xff] %v15720_v11  ;;  %v18386_v5 = vld [vmem:[#allocation63_spill] sm:$0xff]  ;;  %v15725_v10 = vpop.eup %12822  ;;  %12834 = vpow2.f32 %v5310_v6  ;;  %v6410_v6 = vrot.slane %v15710_v52, %v13331_v46 }
 0xf74   :  { %v5256_v38 = vsub.f32 %v18386_v5, %v5205_v9  ;;  %18387 = vst [vmem:[#allocation94_spill] sm:$0xff] %v15725_v10  ;;  %v15730_v26 = vpop.eup %12824  ;;  %12836 = vpow2.f32 %v5324_v8  ;;  %v6463_v8 = vsub.f32 %v18375_v41, %v6406_v51 }
 0xf75   :  { %5428 = vperm.xlu0 %12508, %v15720_v11   ;;  %18388 = vst [vmem:[#allocation101_spill] sm:$0xff] %v15730_v26  ;;  %v15735_v31 = vpop.eup %12826 }
 0xf76   :  { %v5314_v9 = vmul.f32 1.442695, %v5256_v38  ;;  %v15740_v44 = vpop.eup %12828  ;;  %v6515_v41 = vmul.f32 1.442695, %v6463_v8 }
 0xf77   :  { %5413 = vperm.xlu1 %12507, %v15716_v1   ;;  %v18389_v1 = vld [vmem:[#allocation65_spill] sm:$0xff]  ;;  %18390 = vst [vmem:[#allocation96_spill] sm:$0xff] %v15740_v44  ;;  %v15745_v38 = vpop.eup %12830 }
 0xf78   :  { %v5258_v2 = vsub.f32 %v18389_v1, %v5209_v55  ;;  %12838 = vpow2.f32 %v5314_v9  ;;  %v15750_v60 = vpop.eup %12832  ;;  %v6414_v9 = vrot.slane %v15710_v52, %v18354_v61 }
 0xf79   :  { %5434 = vperm.xlu0 %12508, %v15730_v26   ;;  %12840 = vpow2.f32 %v6507_v45  ;;  %18392 = vst [vmem:[#allocation103_spill] sm:$0xff] %v15750_v60 }
 0xf7a   :  { %v5318_v55 = vmul.f32 1.442695, %v5258_v2  ;;  %v6460_v2 = vsub.f32 %v15251_v59, %v6398_v57  ;;  %v6418_v57 = vrot.slane %v15710_v52, %v18355_v4 }
 0xf7b   :  { %5416 = vperm.xlu1 %12507, %v15725_v10   ;;  %v18391_v10 = vld [vmem:[#allocation59_spill] sm:$0xff] }
 0xf7c   :  { %v5260_v11 = vsub.f32 %v18391_v10, %v5213_v54  ;;  %12842 = vpow2.f32 %v5318_v55  ;;  %v6509_v45 = vmul.f32 1.442695, %v6460_v2  ;;  %v6467_v55 = vsub.f32 %v18382_v17, %v6414_v9 }
 0xf7d   :  { %5440 = vperm.xlu0 %12508, %v15740_v44   ;;  %v15755_v54 = vpop.eup %12834  ;;  %v6465_v44 = vsub.f32 %v18378_v29, %v6410_v6  ;;  %12844 = vpow2.f32 %v6511_v25  ;;  %v6422_v25 = vrot.slane %v15710_v52, %v18356_v28  ;;  %v6469_v17 = vsub.f32 %v18386_v5, %v6418_v57 }
 0xf7e   :  { %v5322_v26 = vmul.f32 1.442695, %v5260_v11  ;;  %v15760_v32 = vpop.eup %12836  ;;  %v6462_v11 = vsub.f32 %v18373_v3, %v6402_v13  ;;  %v6426_v5 = vrot.slane %v15710_v52, %v18357_v40 }
 0xf7f   :  { %5419 = vperm.xlu1 %12507, %v15735_v31   ;;  %18393 = vst [vmem:[#allocation98_spill] sm:$0xff] %v15760_v32  ;;  %v6519_v29 = vmul.f32 1.442695, %v6465_v44  ;;  %v6523_v44 = vmul.f32 1.442695, %v6467_v55  ;;  %v6471_v55 = vsub.f32 %v18389_v1, %v6422_v25 }
 0xf80   :  { %12846 = vpow2.f32 %v5322_v26  ;;  %v6464_v26 = vsub.f32 %v15283_v48, %v6406_v51  ;;  %v6513_v3 = vmul.f32 1.442695, %v6462_v11  ;;  %v6466_v51 = vsub.f32 %v18372_v18, %v6410_v6 }
 0xf81   :  { %5446 = vperm.xlu0 %12508, %v15750_v60   ;;  %12848 = vpow2.f32 %v6515_v41  ;;  %v6468_v6 = vsub.f32 %v18374_v47, %v6414_v9  ;;  %v6473_v52 = vsub.f32 %v18391_v10, %v6426_v5  ;;  %v6531_v1 = vmul.f32 1.442695, %v6471_v55 }
 0xf82   :  { %v15765_v59 = vpop.eup %12838  ;;  %12850 = vpow2.f32 %v6509_v45  ;;  %v6517_v11 = vmul.f32 1.442695, %v6464_v26  ;;  %v6521_v26 = vmul.f32 1.442695, %v6466_v51  ;;  %v6470_v47 = vsub.f32 %v18376_v34, %v6418_v57 }
 0xf83   :  { %5425 = vperm.xlu1 %12507, %v15745_v38   ;;  %18394 = vst [vmem:[#allocation104_spill] sm:$0xff] %v15765_v59  ;;  %v15771_v8 = vpop.eup %12840  ;;  %12852 = vpow2.f32 %v6519_v29  ;;  %v6527_v29 = vmul.f32 1.442695, %v6469_v17  ;;  %v6525_v9 = vmul.f32 1.442695, %v6468_v6 }
 0xf84   :  { %18395 = vst [vmem:[#allocation100_spill] sm:$0xff] %v15771_v8  ;;  %12854 = vpow2.f32 %v6513_v3  ;;  %v6535_v10 = vmul.f32 1.442695, %v6473_v52  ;;  %v6474_v52 = vsub.f32 %v18383_v50, %v6426_v5 }
 0xf85   :  { %5452 = vperm.xlu0 %12508, %v15760_v32   ;;  %12856 = vpow2.f32 %v6523_v44 }
 0xf86   :  { %v15776_v13 = vpop.eup %12842  ;;  %12858 = vpow2.f32 %v6517_v11 }
 0xf87   :  { %5431 = vperm.xlu1 %12507, %v15755_v54   ;;  %18396 = vst [vmem:[#allocation105_spill] sm:$0xff] %v15776_v13  ;;  %v15786_v48 = vpop.eup %12844  ;;  %12860 = vpow2.f32 %v6527_v29 }
 0xf88   :  { %18397 = vst [vmem:[#allocation102_spill] sm:$0xff] %v15786_v48  ;;  %12862 = vpow2.f32 %v6521_v26 }
 0xf89   :  { %12509 = vset.pattern.permute.xlu0 %v18227_v58  ;;  %12864 = vpow2.f32 %v6531_v1 }
 0xf8a   :  { %6620 = vperm.xlu0 %12509, %v15771_v8   ;;  %v15790_v45 = vpop.eup %12846  ;;  %12866 = vpow2.f32 %v6525_v9 }
 0xf8b   :  { %5437 = vperm.xlu1 %12507, %v15765_v59   ;;  %18398 = vst [vmem:[#allocation26_spill] sm:$0xff] %v15790_v45  ;;  %v15800_v18 = vpop.eup %12848  ;;  %12868 = vpow2.f32 %v6535_v10  ;;  %v6537_v10 = vmul.f32 1.442695, %v6474_v52 }
 0xf8c   :  { %18399 = vst [vmem:[#allocation20_spill] sm:$0xff] %v15800_v18  ;;  %v15805_v3 = vpop.eup %12850 }
 0xf8d   :  { %18400 = vst [vmem:[#allocation76_spill] sm:$0xff] %v15805_v3 }
 0xf8e   :  { %6626 = vperm.xlu0 %12509, %v15786_v48   ;;  %v15812_v48 = vpop.eup %12852 }
 0xf8f   :  { %5443 = vperm.xlu1 %12507, %v15776_v13   ;;  %18401 = vst [vmem:[#allocation21_spill] sm:$0xff] %v15812_v48  ;;  %v15817_v51 = vpop.eup %12854 }
 0xf90   :  { %18402 = vst [vmem:[#allocation22_spill] sm:$0xff] %v15817_v51  ;;  %v15821_v29 = vpop.eup %12856 }
 0xf91   :  { %18403 = vst [vmem:[#allocation23_spill] sm:$0xff] %v15821_v29  ;;  %v15826_v34 = vpop.eup %12858 }
 0xf92   :  { %6632 = vperm.xlu0 %12509, %v15800_v18   ;;  %v6472_v18 = vsub.f32 %v18379_v30, %v6422_v25  ;;  %18404 = vst [vmem:[#allocation79_spill] sm:$0xff] %v15826_v34  ;;  %v15828_v26 = vpop.eup %12860 }
 0xf93   :  { %5449 = vperm.xlu1 %12507, %v15790_v45   ;;  %18405 = vst [vmem:[#allocation81_spill] sm:$0xff] %v15828_v26  ;;  %v15833_v30 = vpop.eup %12862 }
 0xf94   :  { %v6533_v1 = vmul.f32 1.442695, %v6472_v18  ;;  %18406 = vst [vmem:[#allocation86_spill] sm:$0xff] %v15833_v30  ;;  %v15835_v9 = vpop.eup %12864 }
 0xf95   :  { %18407 = vst [vmem:[#allocation83_spill] sm:$0xff] %v15835_v9 }
 0xf96   :  { %6638 = vperm.xlu0 %12509, %v15812_v48  }
 0xf97   :  { %12510 = vset.pattern.permute.xlu1 %v18227_v58 }
 0xf98   :  { %6623 = vperm.xlu1 %12510, %v15805_v3   ;;  %v6529_v3 = vmul.f32 1.442695, %v6470_v47 }
 0xf9a   :  { %6644 = vperm.xlu0 %12509, %v15821_v29   ;;  %12870 = vpow2.f32 %v6529_v3  ;;  %v15839_v29 = vpop.eup %12866 }
 0xf9b   :  { %12872 = vpow2.f32 %v6533_v1  ;;  %18408 = vst [vmem:[#allocation87_spill] sm:$0xff] %v15839_v29  ;;  %v15841_v50 = vpop.eup %12868 }
 0xf9c   :  { %6629 = vperm.xlu1 %12510, %v15817_v51   ;;  %18409 = vst [vmem:[#allocation85_spill] sm:$0xff] %v15841_v50  ;;  %12874 = vpow2.f32 %v6537_v10 }
 0xf9e   :  { %v15781_v2 = vpop.permute.xlu0 %5359  ;;  %6650 = vperm.xlu0 %12509, %v15828_v26  }
 0xf9f   :  { %v15784_v41 = vpop.permute.xlu1 %5362 }
 0xfa0   :  { %6635 = vperm.xlu1 %12510, %v15826_v34   ;;  %v5457_v34 = vrot.slane %v15781_v2, %v13853_v19 }
 0xfa2   :  { %v15798_v32 = vpop.permute.xlu0 %5374  ;;  %6656 = vperm.xlu0 %12509, %v15835_v9  }
 0xfa3   :  { %v15796_v8 = vpop.permute.xlu1 %5365 }
 0xfa4   :  { %6641 = vperm.xlu1 %12510, %v15833_v30   ;;  %v15845_v18 = vpop.eup %12870  ;;  %v5461_v30 = vrot.slane %v15784_v41, %v13860_v22 }
 0xfa5   :  { %18410 = vst [vmem:[#allocation88_spill] sm:$0xff] %v15845_v18  ;;  %v15851_v1 = vpop.eup %12872 }
 0xfa6   :  { %v15810_v44 = vpop.permute.xlu0 %5380  ;;  %6662 = vperm.xlu0 %12509, %v15841_v50   ;;  %18411 = vst [vmem:[#allocation62_spill] sm:$0xff] %v15851_v1  ;;  %v15854_v26 = vpop.eup %12874 }
 0xfa7   :  { %v15808_v17 = vpop.permute.xlu1 %5368  ;;  %18412 = vst [vmem:[#allocation89_spill] sm:$0xff] %v15854_v26  ;;  %v5488_v41 = vrot.slane %v15810_v44, %v13860_v22 }
 0xfa8   :  { %6647 = vperm.xlu1 %12510, %v15839_v29   ;;  %v5470_v29 = vrot.slane %v15808_v17, %v13860_v22 }
 0xfaa   :  { %v15819_v55 = vpop.permute.xlu0 %5386  ;;  %12512 = vset.pattern.permute.xlu0 %v18244_v21 }
 0xfab   :  { %v5372_v11 = vpop.permute.xlu1 %5371 }
 0xfac   :  { %6653 = vperm.xlu1 %12510, %v15845_v18   ;;  %v5475_v18 = vrot.slane %v5372_v11, %v13853_v19 }
 0xfae   :  { %v5393_v6 = vpop.permute.xlu0 %5392 }
 0xfaf   :  { %v5378_v57 = vpop.permute.xlu1 %5377  ;;  %v5506_v59 = vrot.slane %v5393_v6, %v13860_v22 }
 0xfb0   :  { %6659 = vperm.xlu1 %12510, %v15851_v1   ;;  %v5466_v1 = vrot.slane %v15796_v8, %v13853_v19  ;;  %v5484_v51 = vrot.slane %v5378_v57, %v13853_v19  ;;  %v5497_v8 = vrot.slane %v15819_v55, %v13860_v22 }
 0xfb2   :  { %v5399_v47 = vpop.permute.xlu0 %5398  ;;  %v5471_v17 = vsel %vm1233_vm2, %v5470_v29, %v5466_v1  ;;  %v5489_v13 = vsel %vm1233_vm2, %v5488_v41, %v5484_v51 }
 0xfb3   :  { %v5384_v25 = vpop.permute.xlu1 %5383 }
 0xfb4   :  { %6665 = vperm.xlu1 %12510, %v15854_v26   ;;  %v5479_v26 = vrot.slane %v15798_v32, %v13860_v22  ;;  %v5493_v45 = vrot.slane %v5384_v25, %v13853_v19  ;;  %v5462_v25 = vsel %vm1233_vm2, %v5461_v30, %v5457_v34 }
 0xfb5   :  { %v5598_v44 = vsel %vm1370_vm3, %v5471_v17, %v5462_v25 }
 0xfb6   :  { %v5405_v5 = vpop.permute.xlu0 %5404  ;;  %v5480_v11 = vsel %vm1233_vm2, %v5479_v26, %v5475_v18  ;;  %v5515_v26 = vrot.slane %v5399_v47, %v13860_v22 }
 0xfb7   :  { %v5390_v48 = vpop.permute.xlu1 %5389  ;;  %v5599_v55 = vsel %vm1372_vm4, %v5480_v11, %v5598_v44  ;;  %v5524_v1 = vrot.slane %v5405_v5, %v13860_v22 }
 0xfb8   :  { %12511 = vset.pattern.permute.xlu1 %v18244_v21  ;;  %v5502_v2 = vrot.slane %v5390_v48, %v13853_v19  ;;  %v5498_v48 = vsel %vm1233_vm2, %v5497_v8, %v5493_v45  ;;  %v5600_v34 = vsel %vm1374_vm5, %v5489_v13, %v5599_v55 }
 0xfb9   :  { %v5601_v6 = vsel %vm18413_vm7, %v5498_v48, %v5600_v34  ;;  %vm18419_vm7 = vmmov %vm18414_vm10 }
 0xfbb   :  { %v5396_v3 = vpop.permute.xlu1 %5395  ;;  %v15849_v52 = vpop.permute.xlu0 %6575 }
 0xfbc   :  { %v5511_v57 = vrot.slane %v5396_v3, %v13853_v19  ;;  %v5507_v3 = vsel %vm1233_vm2, %v5506_v59, %v5502_v2 }
 0xfbe   :  { %v5516_v51 = vsel %vm1233_vm2, %v5515_v26, %v5511_v57 }
 0xfbf   :  { %v5402_v9 = vpop.permute.xlu1 %5401  ;;  %v6585_v10 = vpop.permute.xlu0 %6584 }
 0xfc0   :  { %v5520_v29 = vrot.slane %v5402_v9, %v13853_v19  ;;  %v5602_v9 = vsel %vm18347_vm13, %v5507_v3, %v5601_v6  ;;  %v6688_v26 = vrot.slane %v6585_v10, %v13853_v19  ;;  %v6674_v3 = vrot.slane %v15849_v52, %v13860_v22  ;;  %vm18420_vm13 = vmmov %vm18415_vm9 }
 0xfc1   :  { %v5603_v47 = vsel %vm18348_vm0, %v5516_v51, %v5602_v9  ;;  %vm18421_vm0 = vmmov %vm18416_vm14 }
 0xfc2   :  { %v5525_v30 = vsel %vm1233_vm2, %v5524_v1, %v5520_v29 }
 0xfc3   :  { %v6591_v32 = vpop.permute.xlu0 %6590  ;;  %v5604_v41 = vsel %vm18414_vm10, %v5525_v30, %v5603_v47  ;;  %vm18422_vm10 = vmmov %vm18417_vm6 }
 0xfc4   :  { %v6573_v50 = vpop.permute.xlu1 %6572  ;;  %v5614_v59 = vsel %vm18415_vm9, %v5604_v41, 0.0  ;;  %v6697_v1 = vrot.slane %v6591_v32, %v13853_v19  ;;  %vm18423_vm9 = vmmov %vm18418_vm11 }
 0xfc5   :  { %5615 = vadd.xlane.f32.xlu0 %v5614_v59  ;;  %v6670_v29 = vrot.slane %v6573_v50, %v13853_v19 }
 0xfc7   :  { %v6597_v45 = vpop.permute.xlu0 %6596  ;;  %v6675_v6 = vsel %vm1233_vm2, %v6674_v3, %v6670_v29 }
 0xfc8   :  { %v6579_v60 = vpop.permute.xlu1 %6578  ;;  %v6706_v51 = vrot.slane %v6597_v45, %v13853_v19 }
 0xfc9   :  { %v6679_v44 = vrot.slane %v6579_v60, %v13853_v19 }
 0xfcb   :  { %v6603_v5 = vpop.permute.xlu0 %6602 }
 0xfcc   :  { %v6582_v18 = vpop.permute.xlu1 %6581  ;;  %v6715_v10 = vrot.slane %v6603_v5, %v13853_v19 }
 0xfcd   :  { %v6683_v2 = vrot.slane %v6582_v18, %v13860_v22 }
 0xfcf   :  { %v6609_v57 = vpop.permute.xlu0 %6608  ;;  %v6684_v18 = vsel %vm1233_vm2, %v6683_v2, %v6679_v44 }
 0xfd0   :  { %v6588_v17 = vpop.permute.xlu1 %6587  ;;  %v6811_v52 = vsel %vm1370_vm3, %v6684_v18, %v6675_v6  ;;  %v6724_v32 = vrot.slane %v6609_v57, %v13853_v19 }
 0xfd1   :  { %v6692_v8 = vrot.slane %v6588_v17, %v13860_v22 }
 0xfd3   :  { %v6693_v50 = vsel %vm1233_vm2, %v6692_v8, %v6688_v26  ;;  %v6615_v17 = vpop.permute.xlu0 %6614 }
 0xfd4   :  { %v6594_v11 = vpop.permute.xlu1 %6593  ;;  %v6812_v45 = vsel %vm1372_vm4, %v6693_v50, %v6811_v52 }
 0xfd5   :  { %v6701_v48 = vrot.slane %v6594_v11, %v13860_v22 }
 0xfd7   :  { %v6702_v30 = vsel %vm1233_vm2, %v6701_v48, %v6697_v1 }
 0xfd8   :  { %v6600_v13 = vpop.permute.xlu1 %6599  ;;  %v6813_v11 = vsel %vm1374_vm5, %v6702_v30, %v6812_v45 }
 0xfd9   :  { %v6710_v55 = vrot.slane %v6600_v13, %v13860_v22  ;;  %v6733_v13 = vrot.slane %v6615_v17, %v13853_v19 }
 0xfdb   :  { %v6711_v47 = vsel %vm1233_vm2, %v6710_v55, %v6706_v51 }
 0xfdc   :  { %v6606_v25 = vpop.permute.xlu1 %6605  ;;  %v6814_v2 = vsel %vm18416_vm14, %v6711_v47, %v6813_v11  ;;  %vm18424_vm14 = vmmov %vm18419_vm7 }
 0xfdd   :  { %v6719_v34 = vrot.slane %v6606_v25, %v13860_v22 }
 0xfdf   :  { %v6720_v41 = vsel %vm1233_vm2, %v6719_v34, %v6715_v10 }
 0xfe0   :  { %v6612_v60 = vpop.permute.xlu1 %6611  ;;  %v6815_v57 = vsel %vm18417_vm6, %v6720_v41, %v6814_v2  ;;  %vm18425_vm6 = vmmov %vm18420_vm13 }
 0xfe1   :  { %v6728_v9 = vrot.slane %v6612_v60, %v13860_v22 }
 0xfe3   :  { %v6729_v59 = vsel %vm1233_vm2, %v6728_v9, %v6724_v32 }
 0xfe4   :  { %v6618_v5 = vpop.permute.xlu1 %6617  ;;  %v6816_v29 = vsel %vm18418_vm11, %v6729_v59, %v6815_v57  ;;  %vm18426_vm11 = vmmov %vm18421_vm0 }
 0xfe5   :  { %v6737_v8 = vrot.slane %v6618_v5, %v13860_v22 }
 0xfe7   :  { %v6738_v25 = vsel %vm1233_vm2, %v6737_v8, %v6733_v13 }
 0xfe8   :  { %v6817_v44 = vsel %vm18419_vm7, %v6738_v25, %v6816_v29  ;;  %vm18427_vm7 = vmmov %vm18422_vm10 }
 0xfe9   :  { %v6827_v48 = vsel %vm18420_vm13, %v6817_v44, 0.0  ;;  %vm18428_vm13 = vmmov %vm18423_vm9 }
 0xfea   :  { %6828 = vadd.xlane.f32.xlu0 %v6827_v48 }
 0xfee   :  { %v5408_v26 = vpop.permute.xlu1 %5407 }
 0xfef   :  { %v5529_v13 = vrot.slane %v5408_v26, %v13853_v19 }
 0xff0   :  { %v5423_v3 = vpop.permute.xlu0 %5422 }
 0xff1   :  { %v5551_v11 = vrot.slane %v5423_v3, %v13860_v22 }
 0xff2   :  { %v5411_v55 = vpop.permute.xlu1 %5410 }
 0xff3   :  { %v5533_v47 = vrot.slane %v5411_v55, %v13860_v22 }
 0xff4   :  { %v5429_v18 = vpop.permute.xlu0 %5428 }
 0xff5   :  { %v5560_v2 = vrot.slane %v5429_v18, %v13860_v22  ;;  %v5534_v48 = vsel %vm1233_vm2, %v5533_v47, %v5529_v13 }
 0xff6   :  { %v5414_v1 = vpop.permute.xlu1 %5413 }
 0xff7   :  { %v5538_v45 = vrot.slane %v5414_v1, %v13853_v19 }
 0xff8   :  { %v5435_v51 = vpop.permute.xlu0 %5434 }
 0xff9   :  { %v5569_v25 = vrot.slane %v5435_v51, %v13860_v22 }
 0xffa   :  { %v5417_v34 = vpop.permute.xlu1 %5416 }
 0xffb   :  { %v5542_v52 = vrot.slane %v5417_v34, %v13860_v22 }
 0xffc   :  { %v5441_v60 = vpop.permute.xlu0 %5440 }
 0xffd   :  { %v5543_v8 = vsel %vm1233_vm2, %v5542_v52, %v5538_v45  ;;  %v5578_v55 = vrot.slane %v5441_v60, %v13860_v22 }
 0xffe   :  { %v5420_v50 = vpop.permute.xlu1 %5419  ;;  %v5605_v26 = vsel %vm1370_vm3, %v5543_v8, %v5534_v48 }
 0xfff   :  { %v5547_v32 = vrot.slane %v5420_v50, %v13853_v19 }
0x1000   :  { %v5447_v10 = vpop.permute.xlu0 %5446 }
0x1001   :  { %v5552_v29 = vsel %vm1233_vm2, %v5551_v11, %v5547_v32  ;;  %v5587_v18 = vrot.slane %v5447_v10, %v13860_v22 }
0x1002   :  { %v5426_v6 = vpop.permute.xlu1 %5425  ;;  %v5606_v51 = vsel %vm1372_vm4, %v5552_v29, %v5605_v26 }
0x1003   :  { %v5556_v41 = vrot.slane %v5426_v6, %v13853_v19 }
0x1004   :  { %v5453_v9 = vpop.permute.xlu0 %5452 }
0x1005   :  { %v5561_v3 = vsel %vm1233_vm2, %v5560_v2, %v5556_v41  ;;  %v5596_v32 = vrot.slane %v5453_v9, %v13860_v22 }
0x1006   :  { %v5432_v30 = vpop.permute.xlu1 %5431 }
0x1007   :  { %v5565_v59 = vrot.slane %v5432_v30, %v13853_v19  ;;  %v5607_v30 = vsel %vm1374_vm5, %v5561_v3, %v5606_v51 }
0x1009   :  { %v6621_v5 = vpop.permute.xlu0 %6620  ;;  %v5570_v34 = vsel %vm1233_vm2, %v5569_v25, %v5565_v59 }
0x100a   :  { %v5438_v17 = vpop.permute.xlu1 %5437 }
0x100b   :  { %v5574_v57 = vrot.slane %v5438_v17, %v13853_v19  ;;  %v5608_v17 = vsel %vm18421_vm0, %v5570_v34, %v5607_v30  ;;  %vm18429_vm0 = vmmov %vm18424_vm14 }
0x100d   :  { %v6627_v50 = vpop.permute.xlu0 %6626  ;;  %v5579_v6 = vsel %vm1233_vm2, %v5578_v55, %v5574_v57 }
0x100e   :  { %v5444_v44 = vpop.permute.xlu1 %5443  ;;  %v5609_v10 = vsel %vm18422_vm10, %v5579_v6, %v5608_v17  ;;  %vm18430_vm10 = vmmov %vm18425_vm6 }
0x100f   :  { %v5583_v1 = vrot.slane %v5444_v44, %v13853_v19 }
0x1011   :  { %v5588_v52 = vsel %vm1233_vm2, %v5587_v18, %v5583_v1  ;;  %v6633_v45 = vpop.permute.xlu0 %6632  ;;  %v6751_v18 = vrot.slane %v6627_v50, %v13853_v19 }
0x1012   :  { %v5450_v60 = vpop.permute.xlu1 %5449  ;;  %v5610_v11 = vsel %vm18423_vm9, %v5588_v52, %v5609_v10  ;;  %v6760_v6 = vrot.slane %v6633_v45, %v13853_v19  ;;  %v6742_v52 = vrot.slane %v6621_v5, %v13853_v19  ;;  %vm18474_vm9 = vmmov %vm18426_vm11 }
0x1013   :  { %v5592_v47 = vrot.slane %v5450_v60, %v13853_v19 }
0x1015   :  { %v5597_v41 = vsel %vm1233_vm2, %v5596_v32, %v5592_v47  ;;  %v6639_v8 = vpop.permute.xlu0 %6638 }
0x1016   :  { %v5611_v59 = vsel %vm18424_vm14, %v5597_v41, %v5610_v11  ;;  %v6769_v60 = vrot.slane %v6639_v8, %v13853_v19  ;;  %vm18475_vm14 = vmmov %vm18474_vm9 }
0x1017   :  { %v6624_v13 = vpop.permute.xlu1 %6623  ;;  %v5617_v2 = vsel %vm18425_vm6, %v5611_v59, 0.0  ;;  %vm18476_vm6 = vmmov %vm18427_vm7 }
0x1018   :  { %5618 = vadd.xlane.f32.xlu1 %v5617_v2  ;;  %v6746_v34 = vrot.slane %v6624_v13, %v13860_v22 }
0x1019   :  { %v6645_v9 = vpop.permute.xlu0 %6644 }
0x101a   :  { %v6778_v47 = vrot.slane %v6645_v9, %v13853_v19  ;;  %v6747_v41 = vsel %vm1233_vm2, %v6746_v34, %v6742_v52 }
0x101b   :  { %v6630_v57 = vpop.permute.xlu1 %6629 }
0x101c   :  { %v6755_v55 = vrot.slane %v6630_v57, %v13860_v22 }
0x101d   :  { %v6651_v44 = vpop.permute.xlu0 %6650 }
0x101e   :  { %v6756_v32 = vsel %vm1233_vm2, %v6755_v55, %v6751_v18  ;;  %v6787_v11 = vrot.slane %v6651_v44, %v13853_v19 }
0x101f   :  { %v6636_v25 = vpop.permute.xlu1 %6635  ;;  %v6818_v5 = vsel %vm1370_vm3, %v6756_v32, %v6747_v41 }
0x1020   :  { %v6764_v3 = vrot.slane %v6636_v25, %v13860_v22 }
0x1021   :  { %v6657_v1 = vpop.permute.xlu0 %6656 }
0x1022   :  { %v6765_v50 = vsel %vm1233_vm2, %v6764_v3, %v6760_v6  ;;  %v6796_v13 = vrot.slane %v6657_v1, %v13853_v19 }
0x1023   :  { %v6642_v29 = vpop.permute.xlu1 %6641  ;;  %v6819_v57 = vsel %vm1372_vm4, %v6765_v50, %v6818_v5 }
0x1024   :  { %v6773_v51 = vrot.slane %v6642_v29, %v13860_v22 }
0x1025   :  { %v6663_v2 = vpop.permute.xlu0 %6662 }
0x1026   :  { %v6774_v45 = vsel %vm1233_vm2, %v6773_v51, %v6769_v60 }
0x1027   :  { %v6648_v48 = vpop.permute.xlu1 %6647  ;;  %v6820_v25 = vsel %vm1374_vm5, %v6774_v45, %v6819_v57 }
0x1028   :  { %v6782_v30 = vrot.slane %v6648_v48, %v13860_v22  ;;  %v6805_v48 = vrot.slane %v6663_v2, %v13853_v19 }
0x102a   :  { %v6783_v8 = vsel %vm1233_vm2, %v6782_v30, %v6778_v47 }
0x102b   :  { %v6654_v26 = vpop.permute.xlu1 %6653  ;;  %v6821_v55 = vsel %vm18426_vm11, %v6783_v8, %v6820_v25  ;;  %vm18477_vm11 = vmmov %vm18476_vm6 }
0x102c   :  { %v6791_v17 = vrot.slane %v6654_v26, %v13860_v22 }
0x102e   :  { %v6792_v9 = vsel %vm1233_vm2, %v6791_v17, %v6787_v11 }
0x102f   :  { %v6660_v10 = vpop.permute.xlu1 %6659  ;;  %v6822_v1 = vsel %vm18427_vm7, %v6792_v9, %v6821_v55  ;;  %vm18478_vm7 = vmmov %vm18428_vm13 }
0x1030   :  { %v6800_v59 = vrot.slane %v6660_v10, %v13860_v22 }
0x1032   :  { %v6801_v29 = vsel %vm1233_vm2, %v6800_v59, %v6796_v13 }
0x1033   :  { %v6666_v44 = vpop.permute.xlu1 %6665  ;;  %v6823_v18 = vsel %vm18428_vm13, %v6801_v29, %v6822_v1  ;;  %vm18479_vm13 = vmmov %vm18478_vm7 }
0x1034   :  { %v6809_v3 = vrot.slane %v6666_v44, %v13860_v22 }
0x1036   :  { %v6810_v26 = vsel %vm1233_vm2, %v6809_v3, %v6805_v48 }
0x1037   :  { %v6824_v34 = vsel %vm18429_vm0, %v6810_v26, %v6823_v18 }
0x1038   :  { %v6830_v51 = vsel %vm18430_vm10, %v6824_v34, 0.0  ;;  %vm18480_vm10 = vmmov %vm18429_vm0 }
0x1039   :  { %6831 = vadd.xlane.f32.xlu0 %v6830_v51 }
0x1052   :  { %v5616_v6 = vpop.xlane.xlu0 %5615 }
0x1053   :  { %12876 = vrcp.f32 %v5616_v6 }
0x105d   :  { %v12877_v30 = vpop.eup %12876 }
0x105e   :  { %v5627_v52 = vrot.slane %v12877_v30, %v13304_v35  ;;  %v5635_v60 = vrot.slane %v12877_v30, %v13324_v43  ;;  %v5631_v32 = vrot.slane %v12877_v30, %v13307_v36  ;;  %v5639_v17 = vrot.slane %v12877_v30, %v13331_v46 }
0x105f   :  { %v5643_v2 = vrot.slane %v12877_v30, %v18354_v61  ;;  %v5651_v29 = vrot.slane %v12877_v30, %v18356_v28  ;;  %v5655_v1 = vrot.slane %v12877_v30, %v18357_v40 }
0x1060   :  { %v5704_v47 = vmul.f32 %v15535_v12, %v5627_v52  ;;  %v5705_v50 = vmul.f32 %v15537_v15, %v5627_v52  ;;  %v5708_v10 = vmul.f32 %v15563_v39, %v5635_v60  ;;  %v5709_v41 = vmul.f32 %v15546_v37, %v5635_v60 }
0x1061   :  { %v5706_v11 = vmul.f32 %v15544_v27, %v5631_v32  ;;  %v5707_v45 = vmul.f32 %v15554_v62, %v5631_v32  ;;  %v5710_v5 = vmul.f32 %v15575_v49, %v5639_v17  ;;  %v5711_v13 = vmul.f32 %v15558_v20, %v5639_v17 }
0x1062   :  { %v5736_v59 = vpack.c.bf16 %v5705_v50, %v5704_v47  ;;  %v5738_v12 = vpack.c.bf16 %v5709_v41, %v5708_v10  ;;  %v5712_v37 = vmul.f32 %v15588_v14, %v5643_v2  ;;  %v5647_v27 = vrot.slane %v12877_v30, %v18355_v4 }
0x1063   :  { %v5737_v9 = vpack.c.bf16 %v5707_v45, %v5706_v11  ;;  %v5739_v25 = vpack.c.bf16 %v5711_v13, %v5710_v5  ;;  %v5713_v49 = vmul.f32 %v15570_v7, %v5643_v2  ;;  %v5716_v34 = vmul.f32 %v15614_v53, %v5651_v29 }
0x1064   :  { %v5769_v8 = vunpack.c.h.b16 %v5736_v59  ;;  %v5768_v57 = vunpack.c.l.b16 %v5736_v59  ;;  %v5773_v62 = vunpack.c.h.b16 %v5738_v12  ;;  %v5714_v20 = vmul.f32 %v15600_v56, %v5647_v27 }
0x1065   :  { %v5770_v39 = vunpack.c.l.b16 %v5737_v9  ;;  %v5775_v44 = vunpack.c.h.b16 %v5739_v25  ;;  %v5771_v48 = vunpack.c.h.b16 %v5737_v9  ;;  %v5740_v55 = vpack.c.bf16 %v5713_v49, %v5712_v37  ;;  %v18437_v49 = vld [vmem:[#allocation75_spill] sm:$0xff] }
0x1066   :  { %5804 = vperm.xlu0 %12512, %v5769_v8   ;;  %5801 = vperm.xlu1 %12511, %v5768_v57   ;;  %v5715_v3 = vmul.f32 %v15581_v23, %v5647_v27  ;;  %v5772_v14 = vunpack.c.l.b16 %v5738_v12  ;;  %v5717_v56 = vmul.f32 %v15595_v42, %v5651_v29  ;;  %v5774_v51 = vunpack.c.l.b16 %v5739_v25  ;;  %v18432_v8 = vld [vmem:[#allocation58_spill] sm:$0xff]  ;;  %v18433_v12 = vld [vmem:[#allocation73_spill] sm:$0xff]  ;;  %v18435_v27 = vld [vmem:[#allocation71_spill] sm:$0xff] }
0x1067   :  { %v5777_v18 = vunpack.c.h.b16 %v5740_v55  ;;  %v5718_v60 = vmul.f32 %v15626_v16, %v5655_v1  ;;  %v5719_v30 = vmul.f32 %v15606_v24, %v5655_v1  ;;  %v5776_v42 = vunpack.c.l.b16 %v5740_v55  ;;  %v18431_v24 = vld [vmem:[#allocation61_spill] sm:$0xff] }
0x1068   :  { %v5741_v7 = vpack.c.bf16 %v5715_v3, %v5714_v20  ;;  %v5742_v52 = vpack.c.bf16 %v5717_v56, %v5716_v34  ;;  %v18439_v34 = vld [vmem:[#allocation91_spill] sm:$0xff] }
0x1069   :  { %v5743_v47 = vpack.c.bf16 %v5719_v30, %v5718_v60  ;;  %v18440_v60 = vld [vmem:[#allocation60_spill] sm:$0xff] }
0x106a   :  { %5816 = vperm.xlu0 %12512, %v5773_v62   ;;  %5807 = vperm.xlu1 %12511, %v5770_v39   ;;  %v5779_v23 = vunpack.c.h.b16 %v5741_v7  ;;  %v5781_v17 = vunpack.c.h.b16 %v5742_v52  ;;  %v5778_v11 = vunpack.c.l.b16 %v5741_v7  ;;  %v5780_v59 = vunpack.c.l.b16 %v5742_v52  ;;  %v18436_v39 = vld [vmem:[#allocation66_spill] sm:$0xff] }
0x106b   :  { %v5783_v41 = vunpack.c.h.b16 %v5743_v47  ;;  %v5782_v9 = vunpack.c.l.b16 %v5743_v47 }
0x106e   :  { %5822 = vperm.xlu0 %12512, %v5775_v44   ;;  %5810 = vperm.xlu1 %12511, %v5771_v48  }
0x1072   :  { %5828 = vperm.xlu0 %12512, %v5777_v18   ;;  %5813 = vperm.xlu1 %12511, %v5772_v14   ;;  %v18438_v18 = vld [vmem:[#allocation68_spill] sm:$0xff] }
0x1076   :  { %5834 = vperm.xlu0 %12512, %v5779_v23   ;;  %5819 = vperm.xlu1 %12511, %v5774_v51  }
0x1077   :  { %v6829_v15 = vpop.xlane.xlu0 %6828 }
0x1078   :  { %12878 = vrcp.f32 %v6829_v15  ;;  %v18434_v15 = vld [vmem:[#allocation67_spill] sm:$0xff] }
0x107a   :  { %5840 = vperm.xlu0 %12512, %v5781_v17   ;;  %5825 = vperm.xlu1 %12511, %v5776_v42  }
0x107e   :  { %5846 = vperm.xlu0 %12512, %v5783_v41   ;;  %5831 = vperm.xlu1 %12511, %v5778_v11   ;;  %v18443_v11 = vld [vmem:[#allocation72_spill] sm:$0xff] }
0x1082   :  { %v16014_v26 = vpop.eup %12878  ;;  %5837 = vperm.xlu1 %12511, %v5780_v59   ;;  %12514 = vset.pattern.permute.xlu0 %v18227_v58 }
0x1083   :  { %v6840_v6 = vrot.slane %v16014_v26, %v13304_v35  ;;  %v6848_v50 = vrot.slane %v16014_v26, %v13324_v43  ;;  %v6844_v5 = vrot.slane %v16014_v26, %v13307_v36  ;;  %v6856_v13 = vrot.slane %v16014_v26, %v18354_v61 }
0x1084   :  { %v6860_v48 = vrot.slane %v16014_v26, %v18355_v4  ;;  %v6864_v51 = vrot.slane %v16014_v26, %v18356_v28  ;;  %v6868_v17 = vrot.slane %v16014_v26, %v18357_v40 }
0x1085   :  { %v6917_v32 = vmul.f32 %v15634_v0, %v6840_v6  ;;  %v6918_v53 = vmul.f32 %v15616_v63, %v6840_v6  ;;  %v6921_v16 = vmul.f32 %v15628_v33, %v6848_v50  ;;  %v6922_v45 = vmul.f32 %v18431_v24, %v6848_v50 }
0x1086   :  { %v6852_v0 = vrot.slane %v16014_v26, %v13331_v46  ;;  %v6919_v37 = vmul.f32 %v18434_v15, %v6844_v5  ;;  %v6920_v62 = vmul.f32 %v18435_v27, %v6844_v5  ;;  %v6925_v25 = vmul.f32 %v18436_v39, %v6856_v13  ;;  %5843 = vperm.xlu1 %12511, %v5782_v9  }
0x1087   :  { %v6949_v10 = vpack.c.bf16 %v6918_v53, %v6917_v32  ;;  %v6951_v2 = vpack.c.bf16 %v6922_v45, %v6921_v16  ;;  %v6926_v20 = vmul.f32 %v18437_v49, %v6856_v13  ;;  %v6927_v7 = vmul.f32 %v18438_v18, %v6860_v48  ;;  %v18441_v32 = vld [vmem:[#allocation93_spill] sm:$0xff] }
0x1088   :  { %v6923_v57 = vmul.f32 %v18432_v8, %v6852_v0  ;;  %v6924_v33 = vmul.f32 %v18433_v12, %v6852_v0  ;;  %v6950_v3 = vpack.c.bf16 %v6920_v62, %v6919_v37  ;;  %v6928_v56 = vmul.f32 %v18439_v34, %v6860_v48  ;;  %v18444_v62 = vld [vmem:[#allocation97_spill] sm:$0xff]  ;;  %v18447_v48 = vld [vmem:[#allocation99_spill] sm:$0xff]  ;;  %v18449_v34 = vld [vmem:[#allocation92_spill] sm:$0xff] }
0x1089   :  { %v6982_v63 = vunpack.c.h.b16 %v6949_v10  ;;  %v6985_v29 = vunpack.c.l.b16 %v6951_v2  ;;  %v6981_v55 = vunpack.c.l.b16 %v6949_v10  ;;  %v6953_v14 = vpack.c.bf16 %v6926_v20, %v6925_v25  ;;  %v18442_v10 = vld [vmem:[#allocation74_spill] sm:$0xff]  ;;  %v18445_v25 = vld [vmem:[#allocation95_spill] sm:$0xff]  ;;  %v18448_v18 = vld [vmem:[#allocation101_spill] sm:$0xff] }
0x108a   :  { %v6952_v44 = vpack.c.bf16 %v6924_v33, %v6923_v57  ;;  %12513 = vset.pattern.permute.xlu1 %v18227_v58  ;;  %v6983_v6 = vunpack.c.l.b16 %v6950_v3  ;;  %v6954_v52 = vpack.c.bf16 %v6928_v56, %v6927_v7  ;;  %v6929_v30 = vmul.f32 %v18440_v60, %v6864_v51  ;;  %v18446_v20 = vld [vmem:[#allocation90_spill] sm:$0xff] }
0x108b   :  { %7017 = vperm.xlu0 %12514, %v6982_v63   ;;  %7014 = vperm.xlu1 %12513, %v6981_v55   ;;  %v6989_v23 = vunpack.c.l.b16 %v6953_v14  ;;  %v6930_v53 = vmul.f32 %v18441_v32, %v6864_v51  ;;  %v6984_v42 = vunpack.c.h.b16 %v6950_v3  ;;  %v6931_v41 = vmul.f32 %v18442_v10, %v6868_v17 }
0x108c   :  { %v6987_v1 = vunpack.c.l.b16 %v6952_v44  ;;  %v6991_v47 = vunpack.c.l.b16 %v6954_v52  ;;  %v6932_v16 = vmul.f32 %v18443_v11, %v6868_v17  ;;  %v6986_v24 = vunpack.c.h.b16 %v6951_v2 }
0x108d   :  { %v6955_v50 = vpack.c.bf16 %v6930_v53, %v6929_v30  ;;  %v6988_v63 = vunpack.c.h.b16 %v6952_v44  ;;  %v6990_v26 = vunpack.c.h.b16 %v6953_v14  ;;  %v6992_v5 = vunpack.c.h.b16 %v6954_v52  ;;  %v18450_v52 = vld [vmem:[#allocation94_spill] sm:$0xff]  ;;  %v18451_v30 = vld [vmem:[#allocation104_spill] sm:$0xff] }
0x108e   :  { %v6956_v0 = vpack.c.bf16 %v6932_v16, %v6931_v41 }
0x108f   :  { %7026 = vperm.xlu0 %12514, %v6985_v29   ;;  %7020 = vperm.xlu1 %12513, %v6983_v6   ;;  %v6993_v45 = vunpack.c.l.b16 %v6955_v50  ;;  %v6994_v8 = vunpack.c.h.b16 %v6955_v50 }
0x1090   :  { %v6995_v59 = vunpack.c.l.b16 %v6956_v0  ;;  %v6996_v57 = vunpack.c.h.b16 %v6956_v0  ;;  %v18454_v0 = vld [vmem:[#allocation103_spill] sm:$0xff] }
0x1093   :  { %7032 = vperm.xlu0 %12514, %v6987_v1   ;;  %7023 = vperm.xlu1 %12513, %v6984_v42  }
0x1097   :  { %7038 = vperm.xlu0 %12514, %v6989_v23   ;;  %7029 = vperm.xlu1 %12513, %v6986_v24   ;;  %v18453_v24 = vld [vmem:[#allocation105_spill] sm:$0xff] }
0x109b   :  { %7044 = vperm.xlu0 %12514, %v6991_v47   ;;  %7035 = vperm.xlu1 %12513, %v6988_v63   ;;  %v18452_v47 = vld [vmem:[#allocation96_spill] sm:$0xff] }
0x109f   :  { %7050 = vperm.xlu0 %12514, %v6993_v45   ;;  %7041 = vperm.xlu1 %12513, %v6990_v26  }
0x10a3   :  { %7056 = vperm.xlu0 %12514, %v6995_v59   ;;  %7047 = vperm.xlu1 %12513, %v6992_v5  }
0x10a5   :  { %v5619_v13 = vpop.xlane.xlu1 %5618 }
0x10a6   :  { %12880 = vrcp.f32 %v5619_v13  ;;  %v18455_v13 = vld [vmem:[#allocation26_spill] sm:$0xff] }
0x10a7   :  { %12516 = vset.pattern.permute.xlu0 %v18244_v21  ;;  %7053 = vperm.xlu1 %12513, %v6994_v8  }
0x10ab   :  { %7059 = vperm.xlu1 %12513, %v6996_v57   ;;  %v18456_v57 = vld [vmem:[#allocation98_spill] sm:$0xff] }
0x10af   :  { %12515 = vset.pattern.permute.xlu1 %v18244_v21 }
0x10b0   :  { %v12881_v2 = vpop.eup %12880 }
0x10b1   :  { %v5667_v12 = vrot.slane %v12881_v2, %v13324_v43  ;;  %v5659_v33 = vrot.slane %v12881_v2, %v13304_v35  ;;  %v5671_v9 = vrot.slane %v12881_v2, %v13331_v46  ;;  %v5675_v15 = vrot.slane %v12881_v2, %v18354_v61 }
0x10b2   :  { %v5663_v37 = vrot.slane %v12881_v2, %v13307_v36  ;;  %v5683_v53 = vrot.slane %v12881_v2, %v18356_v28  ;;  %v5687_v41 = vrot.slane %v12881_v2, %v18357_v40 }
0x10b3   :  { %v5724_v27 = vmul.f32 %v15735_v31, %v5667_v12  ;;  %v5725_v39 = vmul.f32 %v18444_v62, %v5667_v12  ;;  %v5720_v49 = vmul.f32 %v18445_v25, %v5659_v33  ;;  %v5721_v29 = vmul.f32 %v18446_v20, %v5659_v33 }
0x10b4   :  { %v5726_v44 = vmul.f32 %v15745_v38, %v5671_v9  ;;  %v5727_v55 = vmul.f32 %v18447_v48, %v5671_v9  ;;  %v5728_v1 = vmul.f32 %v15755_v54, %v5675_v15  ;;  %v5729_v7 = vmul.f32 %v18448_v18, %v5675_v15  ;;  %v18460_v18 = vld [vmem:[#allocation22_spill] sm:$0xff] }
0x10b5   :  { %v5746_v3 = vpack.c.bf16 %v5725_v39, %v5724_v27  ;;  %v5744_v14 = vpack.c.bf16 %v5721_v29, %v5720_v49  ;;  %v5722_v56 = vmul.f32 %v18449_v34, %v5663_v37  ;;  %v5679_v31 = vrot.slane %v12881_v2, %v18355_v4 }
0x10b6   :  { %v5747_v23 = vpack.c.bf16 %v5727_v55, %v5726_v44  ;;  %v5723_v60 = vmul.f32 %v18450_v52, %v5663_v37  ;;  %v5748_v38 = vpack.c.bf16 %v5729_v7, %v5728_v1  ;;  %v5732_v45 = vmul.f32 %v18453_v24, %v5683_v53  ;;  %v18457_v44 = vld [vmem:[#allocation100_spill] sm:$0xff] }
0x10b7   :  { %v5789_v51 = vunpack.c.h.b16 %v5746_v3  ;;  %v5784_v6 = vunpack.c.l.b16 %v5744_v14  ;;  %v5730_v32 = vmul.f32 %v18451_v30, %v5679_v31  ;;  %v5785_v54 = vunpack.c.h.b16 %v5744_v14  ;;  %v18458_v55 = vld [vmem:[#allocation76_spill] sm:$0xff]  ;;  %v18459_v14 = vld [vmem:[#allocation102_spill] sm:$0xff] }
0x10b8   :  { %v5791_v17 = vunpack.c.h.b16 %v5747_v23  ;;  %v5745_v42 = vpack.c.bf16 %v5723_v60, %v5722_v56  ;;  %v5731_v50 = vmul.f32 %v18452_v47, %v5679_v31  ;;  %v5793_v10 = vunpack.c.h.b16 %v5748_v38  ;;  %v18462_v60 = vld [vmem:[#allocation79_spill] sm:$0xff]  ;;  %v18464_v47 = vld [vmem:[#allocation86_spill] sm:$0xff] }
0x10b9   :  { %5864 = vperm.xlu0 %12516, %v5789_v51   ;;  %5849 = vperm.xlu1 %12515, %v5784_v6   ;;  %v5733_v63 = vmul.f32 %v18454_v0, %v5683_v53  ;;  %v5734_v8 = vmul.f32 %v18455_v13, %v5687_v41  ;;  %v5735_v12 = vmul.f32 %v18456_v57, %v5687_v41  ;;  %v5788_v9 = vunpack.c.l.b16 %v5746_v3  ;;  %v18466_v0 = vld [vmem:[#allocation87_spill] sm:$0xff] }
0x10ba   :  { %v5786_v11 = vunpack.c.l.b16 %v5745_v42  ;;  %v5749_v16 = vpack.c.bf16 %v5731_v50, %v5730_v32  ;;  %v5787_v59 = vunpack.c.h.b16 %v5745_v42  ;;  %v5790_v27 = vunpack.c.l.b16 %v5747_v23  ;;  %v18461_v23 = vld [vmem:[#allocation20_spill] sm:$0xff] }
0x10bb   :  { %v5750_v5 = vpack.c.bf16 %v5733_v63, %v5732_v45  ;;  %v5751_v15 = vpack.c.bf16 %v5735_v12, %v5734_v8  ;;  %v5792_v62 = vunpack.c.l.b16 %v5748_v38  ;;  %v18468_v12 = vld [vmem:[#allocation88_spill] sm:$0xff] }
0x10bc   :  { %v5795_v26 = vunpack.c.h.b16 %v5749_v16  ;;  %v5794_v20 = vunpack.c.l.b16 %v5749_v16 }
0x10bd   :  { %5870 = vperm.xlu0 %12516, %v5791_v17   ;;  %5852 = vperm.xlu1 %12515, %v5785_v54   ;;  %v5797_v2 = vunpack.c.h.b16 %v5750_v5  ;;  %v5799_v37 = vunpack.c.h.b16 %v5751_v15  ;;  %v5796_v56 = vunpack.c.l.b16 %v5750_v5  ;;  %v5798_v30 = vunpack.c.l.b16 %v5751_v15  ;;  %v18463_v54 = vld [vmem:[#allocation21_spill] sm:$0xff] }
0x10c1   :  { %5876 = vperm.xlu0 %12516, %v5793_v10   ;;  %5855 = vperm.xlu1 %12515, %v5786_v11   ;;  %v18465_v10 = vld [vmem:[#allocation23_spill] sm:$0xff] }
0x10c5   :  { %5882 = vperm.xlu0 %12516, %v5795_v26   ;;  %5858 = vperm.xlu1 %12515, %v5787_v59   ;;  %v18467_v59 = vld [vmem:[#allocation81_spill] sm:$0xff] }
0x10c6   :  { %v6832_v33 = vpop.xlane.xlu0 %6831 }
0x10c7   :  { %12882 = vrcp.f32 %v6832_v33 }
0x10c9   :  { %5888 = vperm.xlu0 %12516, %v5797_v2   ;;  %5861 = vperm.xlu1 %12515, %v5788_v9  }
0x10cd   :  { %5894 = vperm.xlu0 %12516, %v5799_v37   ;;  %5867 = vperm.xlu1 %12515, %v5790_v27  }
0x10d1   :  { %v12883_v39 = vpop.eup %12882  ;;  %5873 = vperm.xlu1 %12515, %v5792_v62   ;;  %12517 = vset.pattern.permute.xlu0 %v18227_v58 }
0x10d2   :  { %v6872_v25 = vrot.slane %v12883_v39, %v13304_v35  ;;  %v6876_v49 = vrot.slane %v12883_v39, %v13307_v36  ;;  %v6880_v29 = vrot.slane %v12883_v39, %v13324_v43  ;;  %v6884_v31 = vrot.slane %v12883_v39, %v13331_v46 }
0x10d3   :  { %v6888_v32 = vrot.slane %v12883_v39, %v18354_v61  ;;  %v6892_v11 = vrot.slane %v12883_v39, %v18355_v4  ;;  %v6896_v5 = vrot.slane %v12883_v39, %v18356_v28  ;;  %v6900_v9 = vrot.slane %v12883_v39, %v18357_v40  ;;  %v18472_v39 = vld [vmem:[#allocation89_spill] sm:$0xff] }
0x10d4   :  { %v6933_v48 = vmul.f32 %v18457_v44, %v6872_v25  ;;  %v6934_v3 = vmul.f32 %v18458_v55, %v6872_v25  ;;  %v6935_v1 = vmul.f32 %v18459_v14, %v6876_v49  ;;  %v6936_v7 = vmul.f32 %v18460_v18, %v6876_v49  ;;  %v18469_v25 = vld [vmem:[#allocation83_spill] sm:$0xff]  ;;  %v18471_v14 = vld [vmem:[#allocation85_spill] sm:$0xff] }
0x10d5   :  { %5879 = vperm.xlu1 %12515, %v5794_v20   ;;  %v6937_v52 = vmul.f32 %v18461_v23, %v6880_v29  ;;  %v6938_v38 = vmul.f32 %v18462_v60, %v6880_v29  ;;  %v6939_v42 = vmul.f32 %v18463_v54, %v6884_v31  ;;  %v6940_v50 = vmul.f32 %v18464_v47, %v6884_v31  ;;  %v18470_v20 = vld [vmem:[#allocation62_spill] sm:$0xff] }
0x10d6   :  { %v6957_v34 = vpack.c.bf16 %v6934_v3, %v6933_v48  ;;  %v6958_v6 = vpack.c.bf16 %v6936_v7, %v6935_v1  ;;  %v6941_v41 = vmul.f32 %v18465_v10, %v6888_v32  ;;  %v6942_v63 = vmul.f32 %v18466_v0, %v6888_v32 }
0x10d7   :  { %v6959_v17 = vpack.c.bf16 %v6938_v38, %v6937_v52  ;;  %v6960_v45 = vpack.c.bf16 %v6940_v50, %v6939_v42  ;;  %v6943_v26 = vmul.f32 %v18467_v59, %v6892_v11  ;;  %v6944_v33 = vmul.f32 %v18468_v12, %v6892_v11 }
0x10d8   :  { %v6997_v51 = vunpack.c.l.b16 %v6957_v34  ;;  %v6999_v53 = vunpack.c.l.b16 %v6958_v6  ;;  %v6998_v16 = vunpack.c.h.b16 %v6957_v34  ;;  %v7000_v13 = vunpack.c.h.b16 %v6958_v6 }
0x10d9   :  { %5885 = vperm.xlu1 %12515, %v5796_v56   ;;  %v7001_v24 = vunpack.c.l.b16 %v6959_v17  ;;  %v7003_v8 = vunpack.c.l.b16 %v6960_v45  ;;  %v6961_v57 = vpack.c.bf16 %v6942_v63, %v6941_v41  ;;  %v7002_v2 = vunpack.c.h.b16 %v6959_v17 }
0x10da   :  { %7062 = vperm.xlu0 %12517, %v6997_v51   ;;  %v6962_v62 = vpack.c.bf16 %v6944_v33, %v6943_v26  ;;  %v6945_v49 = vmul.f32 %v18469_v25, %v6896_v5  ;;  %v6946_v29 = vmul.f32 %v18470_v20, %v6896_v5  ;;  %v7004_v44 = vunpack.c.h.b16 %v6960_v45 }
0x10db   :  { %v7005_v27 = vunpack.c.l.b16 %v6961_v57  ;;  %v6947_v1 = vmul.f32 %v18471_v14, %v6900_v9  ;;  %v6948_v18 = vmul.f32 %v18472_v39, %v6900_v9  ;;  %v7006_v56 = vunpack.c.h.b16 %v6961_v57 }
0x10dc   :  { %v7007_v55 = vunpack.c.l.b16 %v6962_v62  ;;  %v6963_v3 = vpack.c.bf16 %v6946_v29, %v6945_v49  ;;  %v7008_v52 = vunpack.c.h.b16 %v6962_v62 }
0x10dd   :  { %5891 = vperm.xlu1 %12515, %v5798_v30   ;;  %v6964_v51 = vpack.c.bf16 %v6948_v18, %v6947_v1 }
0x10de   :  { %7068 = vperm.xlu0 %12517, %v6999_v53   ;;  %v7009_v31 = vunpack.c.l.b16 %v6963_v3  ;;  %v7010_v30 = vunpack.c.h.b16 %v6963_v3  ;;  %v18473_v53 = vld [vmem:[#allocation78_spill] sm:$0xff] }
0x10df   :  { %v7011_v60 = vunpack.c.l.b16 %v6964_v51  ;;  %v7012_v54 = vunpack.c.h.b16 %v6964_v51 }
0x10e1   :  { %12518 = vset.pattern.permute.xlu1 %v18227_v58 }
0x10e2   :  { %7065 = vperm.xlu1 %12518, %v6998_v16   ;;  %7074 = vperm.xlu0 %12517, %v7001_v24  }
0x10e5   :  { %v16102_v15 = vpop.permute.xlu1 %5801  ;;  %v16104_v37 = vpop.permute.xlu0 %5804 }
0x10e6   :  { %7071 = vperm.xlu1 %12518, %v7000_v13   ;;  %7080 = vperm.xlu0 %12517, %v7003_v8  }
0x10e9   :  { %v16108_v48 = vpop.permute.xlu1 %5807  ;;  %v16112_v7 = vpop.permute.xlu0 %5816 }
0x10ea   :  { %7077 = vperm.xlu1 %12518, %v7002_v2   ;;  %7086 = vperm.xlu0 %12517, %v7005_v27   ;;  %v5908_v51 = vrot.slane %v16108_v48, %v13853_v19 }
0x10ed   :  { %v16114_v34 = vpop.permute.xlu1 %5810  ;;  %v5823_v6 = vpop.permute.xlu0 %5822 }
0x10ee   :  { %7083 = vperm.xlu1 %12518, %v7004_v44   ;;  %7092 = vperm.xlu0 %12517, %v7007_v55   ;;  %v5912_v1 = vrot.slane %v16114_v34, %v13860_v22 }
0x10f0   :  { %v5913_v34 = vsel %vm1233_vm2, %v5912_v1, %v5908_v51 }
0x10f1   :  { %v5814_v23 = vpop.permute.xlu1 %5813  ;;  %v16116_v32 = vpop.permute.xlu0 %5828 }
0x10f2   :  { %7089 = vperm.xlu1 %12518, %v7006_v56   ;;  %7098 = vperm.xlu0 %12517, %v7009_v31   ;;  %v5917_v18 = vrot.slane %v5814_v23, %v13853_v19  ;;  %v5899_v56 = vrot.slane %v16102_v15, %v13853_v19  ;;  %v5903_v31 = vrot.slane %v16104_v37, %v13860_v22 }
0x10f3   :  { %v5939_v1 = vrot.slane %v16116_v32, %v13860_v22 }
0x10f4   :  { %v5904_v15 = vsel %vm1233_vm2, %v5903_v31, %v5899_v56 }
0x10f5   :  { %v5820_v38 = vpop.permute.xlu1 %5819  ;;  %v16122_v42 = vpop.permute.xlu0 %5834 }
0x10f6   :  { %7095 = vperm.xlu1 %12518, %v7008_v52   ;;  %7104 = vperm.xlu0 %12517, %v7011_v60   ;;  %v5926_v52 = vrot.slane %v5820_v38, %v13853_v19  ;;  %v5921_v60 = vrot.slane %v16112_v7, %v13860_v22  ;;  %v6040_v38 = vsel %vm1370_vm3, %v5913_v34, %v5904_v15 }
0x10f9   :  { %v16120_v17 = vpop.permute.xlu1 %5825  ;;  %v16128_v10 = vpop.permute.xlu0 %5840 }
0x10fa   :  { %7101 = vperm.xlu1 %12518, %v7010_v30   ;;  %7269 = vrot.lane.b32.xlu0 %v18473_v53, %s13116_s9  ;;  %v5930_v53 = vrot.slane %v5823_v6, %v13860_v22  ;;  %v5935_v48 = vrot.slane %v16120_v17, %v13853_v19  ;;  %v5948_v6 = vrot.slane %v16122_v42, %v13860_v22 }
0x10fc   :  { %v5931_v37 = vsel %vm1233_vm2, %v5930_v53, %v5926_v52 }
0x10fd   :  { %v16124_v47 = vpop.permute.xlu1 %5831  ;;  %v16132_v11 = vpop.permute.xlu0 %5846 }
0x10fe   :  { %7107 = vperm.xlu1 %12518, %v7012_v54   ;;  %v5922_v54 = vsel %vm1233_vm2, %v5921_v60, %v5917_v18  ;;  %v5940_v60 = vsel %vm1233_vm2, %v5939_v1, %v5935_v48  ;;  %v5944_v32 = vrot.slane %v16124_v47, %v13853_v19 }
0x10ff   :  { %v6041_v7 = vsel %vm1372_vm4, %v5922_v54, %v6040_v38 }
0x1100   :  { %v6042_v31 = vsel %vm1374_vm5, %v5931_v37, %v6041_v7  ;;  %v5949_v38 = vsel %vm1233_vm2, %v5948_v6, %v5944_v32 }
0x1101   :  { %v16126_v50 = vpop.permute.xlu1 %5837 }
0x1105   :  { %v16130_v41 = vpop.permute.xlu1 %5843 }
0x1106   :  { %v5962_v54 = vrot.slane %v16130_v41, %v13853_v19 }
0x110a   :  { %v16134_v16 = vpop.permute.xlu1 %7014  ;;  %v16136_v24 = vpop.permute.xlu0 %7017 }
0x110e   :  { %v16138_v45 = vpop.permute.xlu1 %7020  ;;  %v16142_v63 = vpop.permute.xlu0 %7026 }
0x1112   :  { %v16140_v0 = vpop.permute.xlu1 %7023  ;;  %v16146_v26 = vpop.permute.xlu0 %7032 }
0x1116   :  { %v16144_v59 = vpop.permute.xlu1 %7029  ;;  %v16150_v13 = vpop.permute.xlu0 %7038 }
0x111a   :  { %v16148_v5 = vpop.permute.xlu1 %7035  ;;  %v16154_v57 = vpop.permute.xlu0 %7044 }
0x111e   :  { %v16152_v8 = vpop.permute.xlu1 %7041  ;;  %v16158_v33 = vpop.permute.xlu0 %7050 }
0x1122   :  { %v16156_v12 = vpop.permute.xlu1 %7047  ;;  %v16162_v9 = vpop.permute.xlu0 %7056 }
0x1126   :  { %v16160_v2 = vpop.permute.xlu1 %7053 }
0x112a   :  { %v16164_v27 = vpop.permute.xlu1 %7059 }
0x1138   :  { %v5850_v62 = vpop.permute.xlu1 %5849  ;;  %v5865_v25 = vpop.permute.xlu0 %5864 }
0x1139   :  { %v5993_v34 = vrot.slane %v5865_v25, %v13860_v22 }
0x113c   :  { %v5853_v49 = vpop.permute.xlu1 %5852  ;;  %v5871_v20 = vpop.permute.xlu0 %5870 }
0x113d   :  { %v5975_v51 = vrot.slane %v5853_v49, %v13860_v22  ;;  %v6002_v53 = vrot.slane %v5871_v20, %v13860_v22 }
0x1140   :  { %v5856_v29 = vpop.permute.xlu1 %5855  ;;  %v5877_v44 = vpop.permute.xlu0 %5876 }
0x1141   :  { %v5980_v17 = vrot.slane %v5856_v29, %v13853_v19  ;;  %v6011_v47 = vrot.slane %v5877_v44, %v13860_v22 }
0x1144   :  { %v5859_v55 = vpop.permute.xlu1 %5858  ;;  %v5883_v14 = vpop.permute.xlu0 %5882 }
0x1145   :  { %v5984_v40 = vrot.slane %v5859_v55, %v13860_v22 }
0x1147   :  { %v5985_v49 = vsel %vm1233_vm2, %v5984_v40, %v5980_v17 }
0x1148   :  { %v5862_v3 = vpop.permute.xlu1 %5861  ;;  %v5889_v30 = vpop.permute.xlu0 %5888 }
0x1149   :  { %v5989_v18 = vrot.slane %v5862_v3, %v13853_v19  ;;  %v5971_v3 = vrot.slane %v5850_v62, %v13853_v19  ;;  %v6020_v62 = vrot.slane %v5883_v14, %v13860_v22  ;;  %v6029_v44 = vrot.slane %v5889_v30, %v13860_v22 }
0x114a   :  { %v5966_v14 = vrot.slane %v16132_v11, %v13860_v22 }
0x114b   :  { %v5994_v25 = vsel %vm1233_vm2, %v5993_v34, %v5989_v18  ;;  %v6043_v18 = vsel %vm18474_vm9, %v5940_v60, %v6042_v31  ;;  %vm18481_vm9 = vcmask 130048  }
0x114c   :  { %v5868_v39 = vpop.permute.xlu1 %5867  ;;  %v5895_v55 = vpop.permute.xlu0 %5894  ;;  %v5967_v17 = vsel %vm1233_vm2, %v5966_v14, %v5962_v54  ;;  %v6044_v34 = vsel %vm18476_vm6, %v5949_v38, %v6043_v18  ;;  %v18482_v54 = vmov 0.0   ;;  %v7130_v38 = vrot.slane %v16142_v63, %v13853_v19 }
0x114d   :  { %v5998_v52 = vrot.slane %v5868_v39, %v13853_v19  ;;  %v5953_v39 = vrot.slane %v16126_v50, %v13853_v19  ;;  %v5957_v50 = vrot.slane %v16128_v10, %v13860_v22  ;;  %v6038_v6 = vrot.slane %v5895_v55, %v13860_v22 }
0x114e   :  { %v7148_v63 = vrot.slane %v16150_v13, %v13853_v19  ;;  %vm18486_vm6 = vcmask 1044484  }
0x114f   :  { %v6003_v20 = vsel %vm1233_vm2, %v6002_v53, %v5998_v52 }
0x1150   :  { %v5874_v23 = vpop.permute.xlu1 %5873 }
0x1151   :  { %v6007_v42 = vrot.slane %v5874_v23, %v13853_v19  ;;  %v5976_v23 = vsel %vm1233_vm2, %v5975_v51, %v5971_v3 }
0x1152   :  { %v6047_v41 = vsel %vm1370_vm3, %v5985_v49, %v5976_v23 }
0x1153   :  { %v6012_v48 = vsel %vm1233_vm2, %v6011_v47, %v6007_v42  ;;  %v6048_v7 = vsel %vm1372_vm4, %v5994_v25, %v6047_v41  ;;  %v7112_v41 = vrot.slane %v16134_v16, %v13853_v19 }
0x1154   :  { %v5880_v56 = vpop.permute.xlu1 %5879  ;;  %v6049_v10 = vsel %vm1374_vm5, %v6003_v20, %v6048_v7 }
0x1155   :  { %v6016_v29 = vrot.slane %v5880_v56, %v13853_v19  ;;  %v5958_v56 = vsel %vm1233_vm2, %v5957_v50, %v5953_v39  ;;  %v6050_v52 = vsel %vm18475_vm14, %v6012_v48, %v6049_v10  ;;  %vm18483_vm14 = vmmov 0  }
0x1156   :  { %v6045_v60 = vsel %vm18478_vm7, %v5958_v56, %v6044_v34  ;;  %v7134_v50 = vrot.slane %v16144_v59, %v13860_v22  ;;  %v7121_v48 = vrot.slane %v16138_v45, %v13853_v19  ;;  %v7143_v59 = vrot.slane %v16148_v5, %v13860_v22 }
0x1157   :  { %v6021_v1 = vsel %vm1233_vm2, %v6020_v62, %v6016_v29  ;;  %v6046_v53 = vsel %vm18429_vm0, %v5967_v17, %v6045_v60  ;;  %v7125_v62 = vrot.slane %v16140_v0, %v13860_v22  ;;  %v7139_v45 = vrot.slane %v16146_v26, %v13853_v19 }
0x1158   :  { %v5886_v15 = vpop.permute.xlu1 %5885  ;;  %v6051_v31 = vsel %vm18477_vm11, %v6021_v1, %v6050_v52  ;;  %v7135_v1 = vsel %vm1233_vm2, %v7134_v50, %v7130_v38  ;;  %v7157_v5 = vrot.slane %v16154_v57, %v13853_v19  ;;  %v7161_v57 = vrot.slane %v16156_v12, %v13860_v22  ;;  %vm18487_vm11 = vmmov %vm18486_vm6 }
0x1159   :  { %v6025_v40 = vrot.slane %v5886_v15, %v13853_v19  ;;  %v16216_v37 = vpop.permute.xlu0 %7062  ;;  %v7126_v14 = vsel %vm1233_vm2, %v7125_v62, %v7121_v48  ;;  %v18484_v62 = vmov 1.0|1.0   ;;  %vm18488_vm7 = vcmask 1045509  }
0x115a   :  { %vm18490_vm0 = vcmask 1046534  }
0x115b   :  { %v6030_v51 = vsel %vm1233_vm2, %v6029_v44, %v6025_v40  ;;  %v7116_v44 = vrot.slane %v16136_v24, %v13860_v22  ;;  %v7152_v24 = vrot.slane %v16152_v8, %v13860_v22 }
0x115c   :  { %v5892_v30 = vpop.permute.xlu1 %5891  ;;  %v6052_v42 = vsel %vm18479_vm13, %v6030_v51, %v6051_v31  ;;  %v7166_v51 = vrot.slane %v16158_v33, %v13853_v19  ;;  %v7184_v31 = vrot.slane %v16216_v37, %v13853_v19  ;;  %vm18489_vm13 = vmmov %vm18488_vm7 }
0x115d   :  { %v6034_v11 = vrot.slane %v5892_v30, %v13853_v19  ;;  %v7069_v32 = vpop.permute.xlu0 %7068  ;;  %v7117_v16 = vsel %vm1233_vm2, %v7116_v44, %v7112_v41 }
0x115e   :  { %v7253_v18 = vsel %vm1370_vm3, %v7126_v14, %v7117_v16  ;;  %v7193_v26 = vrot.slane %v7069_v32, %v13853_v19 }
0x115f   :  { %v6039_v3 = vsel %vm1233_vm2, %v6038_v6, %v6034_v11  ;;  %v7254_v10 = vsel %vm1372_vm4, %v7135_v1, %v7253_v18  ;;  %v7144_v6 = vsel %vm1233_vm2, %v7143_v59, %v7139_v45  ;;  %v7153_v11 = vsel %vm1233_vm2, %v7152_v24, %v7148_v63 }
0x1160   :  { %v6053_v49 = vsel %vm18480_vm10, %v6039_v3, %v6052_v42  ;;  %v7170_v3 = vrot.slane %v16160_v2, %v13860_v22  ;;  %v7175_v2 = vrot.slane %v16162_v9, %v13853_v19  ;;  %v7255_v50 = vsel %vm1374_vm5, %v7144_v6, %v7254_v10  ;;  %vm18491_vm10 = vmmov %vm18490_vm0 }
0x1161   :  { %v6054_v55 = vpack.c.b16 %v6053_v49, %v6046_v53  ;;  %v7066_v29 = vpop.permute.xlu1 %7065  ;;  %v7075_v39 = vpop.permute.xlu0 %7074  ;;  %v7179_v53 = vrot.slane %v16164_v27, %v13860_v22  ;;  %v7256_v9 = vsel %vm18486_vm6, %v7153_v11, %v7255_v50 }
0x1162   :  { %v7188_v13 = vrot.slane %v7066_v29, %v13860_v22  ;;  %v7202_v34 = vrot.slane %v7075_v39, %v13853_v19  ;;  %v7171_v48 = vsel %vm1233_vm2, %v7170_v3, %v7166_v51 }
0x1163   :  { %12037 = vmatmul.mubr.msk.bf16.vlgmr.msra.gmra.mrb[36].mxu1 %vm18481_vm9, %v6054_v55  ;;  %vm18492_vm9 = vcmask 1047559  }
0x1164   :  { %12042 = vmatprep.mubr.msk.bf16.mxu1 %vm18483_vm14, %v18482_v54  ;;  %v7189_v37 = vsel %vm1233_vm2, %v7188_v13, %v7184_v31  ;;  %vm18493_vm6 = vmmov %vm18492_vm9  ;;  %v11526_v31 = vld [vmem:[%s18497_s21] ss:$0 sm:$0xff] }
0x1165   :  { %v7072_v47 = vpop.permute.xlu1 %7071  ;;  %v7081_v25 = vpop.permute.xlu0 %7080 }
0x1166   :  { %v7197_v56 = vrot.slane %v7072_v47, %v13860_v22  ;;  %v7211_v32 = vrot.slane %v7081_v25, %v13853_v19 }
0x1168   :  { %v7198_v60 = vsel %vm1233_vm2, %v7197_v56, %v7193_v26 }
0x1169   :  { %v7078_v15 = vpop.permute.xlu1 %7077  ;;  %v7087_v23 = vpop.permute.xlu0 %7086  ;;  %v7260_v27 = vsel %vm1370_vm3, %v7198_v60, %v7189_v37 }
0x116a   :  { %v7206_v8 = vrot.slane %v7078_v15, %v13860_v22  ;;  %v7220_v49 = vrot.slane %v7087_v23, %v13853_v19 }
0x116c   :  { %v7207_v12 = vsel %vm1233_vm2, %v7206_v8, %v7202_v34 }
0x116d   :  { %v7084_v20 = vpop.permute.xlu1 %7083  ;;  %v7093_v40 = vpop.permute.xlu0 %7092  ;;  %v7261_v41 = vsel %vm1372_vm4, %v7207_v12, %v7260_v27  ;;  %v13028_v12 = vld [vmem:[%s13140_s13] sm:$0x1] }
0x116e   :  { %v7215_v52 = vrot.slane %v7084_v20, %v13860_v22  ;;  %v7229_v47 = vrot.slane %v7093_v40, %v13853_v19  ;;  %v7162_v40 = vsel %vm1233_vm2, %v7161_v57, %v7157_v5  ;;  %v13029_v27 = vld [vmem:[%s13145_s17] sm:$0xff]  }
0x116f   :  { %v7257_v24 = vsel %vm18488_vm7, %v7162_v40, %v7256_v9  ;;  %vm7316_vm7 = vcmask 261120  }
0x1170   :  { %v7216_v39 = vsel %vm1233_vm2, %v7215_v52, %v7211_v32  ;;  %v7258_v45 = vsel %vm18490_vm0, %v7171_v48, %v7257_v24 }
0x1171   :  { %v7090_v0 = vpop.permute.xlu1 %7089  ;;  %v7099_v7 = vpop.permute.xlu0 %7098  ;;  %v7262_v38 = vsel %vm1374_vm5, %v7216_v39, %v7261_v41 }
0x1172   :  { %v7224_v33 = vrot.slane %v7090_v0, %v13860_v22  ;;  %v7238_v23 = vrot.slane %v7099_v7, %v13853_v19  ;;  %v7180_v7 = vsel %vm1233_vm2, %v7179_v53, %v7175_v2 }
0x1173   :  { %v7259_v10 = vsel %vm18492_vm9, %v7180_v7, %v7258_v45  ;;  %v12605_v7 = vld [vmem:[%s18504_s29 + $0x8] sm:$0xff]  }
0x1174   :  { %v7225_v15 = vsel %vm1233_vm2, %v7224_v33, %v7220_v49 }
0x1175   :  { %v7096_v30 = vpop.permute.xlu1 %7095  ;;  %v7105_v17 = vpop.permute.xlu0 %7104  ;;  %v7263_v1 = vsel %vm18487_vm11, %v7225_v15, %v7262_v38  ;;  %vm18494_vm11 = vcmask 130048   ;;  %v11529_v15 = vld [vmem:[%s18499_s25] ss:$0 sm:$0xff] }
0x1176   :  { %v7233_v42 = vrot.slane %v7096_v30, %v13860_v22  ;;  %v7247_v59 = vrot.slane %v7105_v17, %v13853_v19 }
0x1178   :  { %v7234_v44 = vsel %vm1233_vm2, %v7233_v42, %v7229_v47 }
0x1179   :  { %v7102_v55 = vpop.permute.xlu1 %7101  ;;  %v7270_v29 = vpop.permute.xlu0 %7269  ;;  %v7264_v18 = vsel %vm18489_vm13, %v7234_v44, %v7263_v1  ;;  %v12606_v1 = vld [vmem:[%s18504_s29 + $0x10] sm:$0xff]  }
0x117a   :  { %v7242_v25 = vrot.slane %v7102_v55, %v13860_v22  ;;  %12041 = vmatpush3.bf16.msra.mxu1 %v7270_v29  ;;  %v18501_v55 = vld [vmem:[#allocation84_spill] sm:$0xff] }
0x117b   :  { %12290 = vmatprep.subr.msk.bf16.mxu1 %vm14882_vm8, %v18484_v62 }
0x117c   :  { %v7243_v14 = vsel %vm1233_vm2, %v7242_v25, %v7238_v23 }
0x117d   :  { %v7108_v0 = vpop.permute.xlu1 %7107  ;;  %v7265_v63 = vsel %vm18491_vm10, %v7243_v14, %v7264_v18  ;;  %vm18512_vm10 = vcmask 523264  }
0x117e   :  { %v7251_v16 = vrot.slane %v7108_v0, %v13860_v22  ;;  %v12604_v0 = vld [vmem:[%s18504_s29] sm:$0xff]  }
0x117f   :  { %12093 = vmatpush3.bf16.msra.mxu0 %v12604_v0 }
0x1180   :  { %v7252_v56 = vsel %vm1233_vm2, %v7251_v16, %v7247_v59  ;;  %12094 = vmatprep.subr.bf16.mxu0 %v18482_v54 }
0x1181   :  { %v7266_v5 = vsel %vm18493_vm6, %v7252_v56, %v7265_v63 }
0x1182   :  { %v7267_v51 = vpack.c.b16 %v7266_v5, %v7259_v10  ;;  %v12607_v10 = vld [vmem:[%s18504_s29 + $0x18] sm:$0xff]  }
0x1183   :  { %12095 = vmatpush3.bf16.msra.mxu0 %v12605_v7 }
0x1184   :  { %12043 = vmatmul.mubr.msk.bf16.vlgmr.msra.gmra.mrb[40].mxu1 %vm18494_vm11, %v7267_v51  ;;  %12096 = vmatprep.subr.bf16.mxu0 %v18482_v54 }
0x1185   :  { %12292 = vmatpush3.bf16.msk.msra.mxu1 %vm14882_vm8, %v18484_v62  ;;  %vm18503_vm8 = vcmask 15360  }
0x1186   :  { %12294 = vmatprep.subr.msk.bf16.mxu1 %vm14894_vm1, %v18484_v62  ;;  %vm18508_vm0 = vmmov %vm18503_vm8 }
0x1187   :  { %12097 = vmatpush3.bf16.msra.mxu0 %v12606_v1 }
0x1188   :  { %12098 = vmatprep.subr.bf16.mxu0 %v18482_v54 }
0x1189   :  { %12296 = vmatpush3.bf16.msk.msra.mxu1 %vm14894_vm1, %v18484_v62  ;;  %vm18505_vm1 = vmmov %vm18494_vm11 }
0x118a   :  { %12298 = vmatprep.subr.msk.bf16.mxu1 %vm14852_vm15, %v18484_v62 }
0x118b   :  { %12099 = vmatpush3.bf16.msra.mxu0 %v12607_v10 }
0x118c   :  { %12160 = vmatprep.subr.bf16.mxu0 %v18482_v54 }
0x1236   :  { %v6092_v17 = vpop.f32.mrb[36].mxu1 }
0x1237   :  { %v12038_v6 = vpop.f32.mrb[37].mxu1 }
0x1238   :  { %v6095_v26 = vpop.f32.mrb[38].mxu1 }
0x1239   :  { %v12039_v13 = vpop.f32.mrb[39].mxu1 }
0x1257   :  { %v7309_v52 = vpop.f32.mrb[40].mxu1 }
0x1258   :  { %v12044_v11 = vpop.f32.mrb[41].mxu1  ;;  %12054 = vmatprep.mubr.msk.f32.mxu1 %vm7316_vm7, %v7309_v52 }
0x1259   :  { %v7312_v57 = vpop.f32.mrb[42].mxu1  ;;  %v11533_v11 = vld [vmem:[%s18509_s8] ss:$0 sm:$0xff] }
0x125a   :  { %v12045_v34 = vpop.f32.mrb[43].mxu1  ;;  %12055 = vmatmul.mubr.msk.f32.vlgmr.msra.gmra.mrb[44].mxu1 %vm7316_vm7, %v7312_v57 }
0x125b   :  { %12300 = vmatpush3.bf16.msk.msra.mxu1 %vm14852_vm15, %v18484_v62  ;;  %12065 = vmatprep.mubr.msk.f32.mxu1 %vm7316_vm7, %v6092_v17  ;;  %vm18500_vm15 = vmmov %vm18494_vm11 }
0x125c   :  { %12302 = vmatprep.subr.msk.bf16.mxu1 %vm14866_vm12, %v18484_v62 }
0x125f   :  { %12304 = vmatpush3.bf16.msk.msra.mxu1 %vm14866_vm12, %v18484_v62  ;;  %vm18502_vm12 = vcmask 1040384  }
0x1260   :  { %12068 = vmatprep.subr.bf16.mxu1 %v18482_v54  ;;  %vm18507_vm13 = vmmov %vm18502_vm12 }
0x1262   :  { %12066 = vmatmul.mubr.msk.f32.vlgmr.msra.gmra.mrb[44].mxu1 %vm7316_vm7, %v6095_v26  ;;  %v11531_v26 = vld [vmem:[%s18506_s3] ss:$0 sm:$0xff] }
0x1263   :  { %12070 = vmatprep.mubr.msk.bf16.mxu1 %vm18483_vm14, %v18482_v54 }
0x1335   :  { %v12067_v60 = vpop.f32.mrb[44].mxu1 }
0x1336   :  { %v7487_v32 = vadd.f32 %v12067_v60, %v11526_v31  ;;  %v7470_v42 = vpop.f32.mrb[45].mxu1 }
0x1337   :  { %v7486_v3 = vadd.f32 %v11526_v31, %v7470_v42 }
0x1339   :  { %v7488_v53 = vpack.c.bf16 %v7487_v32, %v7486_v3 }
0x133b   :  { %12069 = vmatpush3.bf16.msra.mxu1 %v7488_v53 }
0x133c   :  { %12074 = vmatprep.subr.bf16.mxu1 %v18482_v54 }
0x133e   :  { %12071 = vmatmul.mubr.msk.bf16.vlgmr.msra.gmra.mrb[48].mxu1 %vm18500_vm15, %v13028_v12 }
0x133f   :  { %12076 = vmatprep.mubr.msk.bf16.mxu1 %vm18483_vm14, %v18482_v54 }
0x1411   :  { %v7523_v49 = vpop.f32.mrb[48].mxu1 }
0x1412   :  { %v7529_v29 = vmul.f32 %v7523_v49, %v18501_v55  ;;  %v12072_v37 = vpop.f32.mrb[49].mxu1 }
0x1413   :  { %v7526_v39 = vpop.f32.mrb[50].mxu1 }
0x1414   :  { %v7530_v47 = vpack.c.bf16 %v7529_v29, %v7529_v29  ;;  %v12073_v25 = vpop.f32.mrb[51].mxu1 }
0x1416   :  { %v7532_v2 = vsel %vm18502_vm12, %v7530_v47, 0 }
0x1417   :  { %12075 = vmatpush3.bf16.msra.mxu1 %v7532_v2 }
0x1418   :  { %12080 = vmatprep.subr.bf16.mxu1 %v18482_v54 }
0x141a   :  { %12077 = vmatmul.mubr.msk.bf16.vlgmr.msra.gmra.mrb[52].mxu1 %vm18503_vm8, %v13029_v27 }
0x141b   :  { %12082 = vmatprep.mubr.msk.bf16.mxu1 %vm18483_vm14, %v18482_v54 }
0x14ed   :  { %v7568_v23 = vpop.f32.mrb[52].mxu1 }
0x14ee   :  { %v7582_v62 = vmul.f32 %v11529_v15, %v7568_v23  ;;  %v12078_v20 = vpop.f32.mrb[53].mxu1  ;;  %v8099_v23 = vld [vmem:[%s18511_s19 + $0x10] sm:$0xff] }
0x14ef   :  { %v7571_v50 = vpop.f32.mrb[54].mxu1  ;;  %v8100_v20 = vld [vmem:[%s18511_s19 + $0x18] sm:$0xff] }
0x14f0   :  { %v7584_v40 = vsub.f32 %v7486_v3, %v7582_v62  ;;  %v7583_v41 = vmul.f32 %v11529_v15, %v7571_v50  ;;  %v12079_v44 = vpop.f32.mrb[55].mxu1  ;;  %v8098_v15 = vld [vmem:[%s18511_s19 + $0x8] sm:$0xff]  ;;  %v12309_v50 = vpack.c.bf16 %v8100_v20, %v8099_v23 }
0x14f2   :  { %v7585_v9 = vsub.f32 %v7487_v32, %v7583_v41  ;;  %v7586_v48 = vmul.f32 %v7584_v40, %v7584_v40  ;;  %v7638_v13 = vmul.f32 %v11531_v26, %v7584_v40  ;;  %v18514_v40 = vld [vmem:[#allocation24_spill] sm:$0xff] }
0x14f4   :  { %v7587_v38 = vmul.f32 %v7585_v9, %v7585_v9  ;;  %v7639_v57 = vmul.f32 %v11531_v26, %v7585_v9 }
0x14f6   :  { %v7588_v14 = vpack.c.bf16 %v7587_v38, %v7586_v48 }
0x14f8   :  { %12081 = vmatpush3.bf16.msra.mxu1 %v7588_v14 }
0x14f9   :  { %12086 = vmatprep.subr.bf16.mxu1 %v18482_v54 }
0x14fb   :  { %12083 = vmatmul.mubr.msk.bf16.vlgmr.msra.gmra.mrb[56].mxu1 %vm18505_vm1, %v13028_v12  ;;  %v11534_v12 = vld [vmem:[%s18510_s14] ss:$0 sm:$0xff] }
0x14fc   :  { %12088 = vmatprep.mubr.msk.bf16.mxu1 %vm18483_vm14, %v18482_v54 }
0x15ce   :  { %v7623_v59 = vpop.f32.mrb[56].mxu1 }
0x15cf   :  { %v7629_v16 = vmul.f32 %v7623_v59, %v18501_v55  ;;  %v12084_v24 = vpop.f32.mrb[57].mxu1 }
0x15d0   :  { %v7626_v18 = vpop.f32.mrb[58].mxu1 }
0x15d1   :  { %v7630_v45 = vpack.c.bf16 %v7629_v16, %v7629_v16  ;;  %v12085_v63 = vpop.f32.mrb[59].mxu1 }
0x15d3   :  { %v7641_v56 = vsel %vm18507_vm13, %v7630_v45, 0 }
0x15d4   :  { %12087 = vmatpush3.bf16.msra.mxu1 %v7641_v56 }
0x15d7   :  { %12089 = vmatmul.mubr.msk.bf16.vlgmr.msra.gmra.mrb[60].mxu1 %vm18508_vm0, %v13029_v27  ;;  %v8097_v27 = vld [vmem:[%s18511_s19] sm:$0xff] }
0x15d8   :  { %v12305_v62 = vpack.c.bf16 %v8098_v15, %v8097_v27 }
0x15da   :  { %12306 = vmatprep.subr.bf16.mxu1 %v12305_v62 }
0x15db   :  { %12308 = vmatpush3.bf16.msra.mxu1 %v12305_v62 }
0x15dc   :  { %12310 = vmatprep.subr.bf16.mxu1 %v12309_v50 }
0x15df   :  { %12312 = vmatpush3.bf16.msra.mxu1 %v12309_v50 }
0x16aa   :  { %v7677_v5 = vpop.f32.mrb[60].mxu1 }
0x16ab   :  { %v7678_v51 = vadd.f32 1e-05, %v7677_v5  ;;  %v12090_v8 = vpop.f32.mrb[61].mxu1 }
0x16ac   :  { %v7680_v30 = vpop.f32.mrb[62].mxu1 }
0x16ad   :  { %12884 = vrsqrt.f32 %v7678_v51  ;;  %v7681_v17 = vadd.f32 1e-05, %v7680_v30  ;;  %v12091_v6 = vpop.f32.mrb[63].mxu1 }
0x16af   :  { %12886 = vrsqrt.f32 %v7681_v17 }
0x16b7   :  { %v12885_v52 = vpop.eup %12884 }
0x16b8   :  { %v7686_v34 = vmul.f32 %v12885_v52, %v7638_v13 }
0x16b9   :  { %v12887_v33 = vpop.eup %12886 }
0x16ba   :  { %v7695_v31 = vadd.f32 %v11533_v11, %v7686_v34  ;;  %v7687_v60 = vmul.f32 %v12887_v33, %v7639_v57 }
0x16bc   :  { %v7696_v32 = vadd.f32 %v11533_v11, %v7687_v60  ;;  %v7697_v42 = vmax.f32 %v7695_v31, 0.0 }
0x16be   :  { %v7698_v3 = vmax.f32 %v7696_v32, 0.0 }
0x16c0   :  { %v7699_v53 = vpack.c.bf16 %v7698_v3, %v7697_v42 }
0x16c2   :  { %12101 = vmatmul.mubr.msk.bf16.vlgmr.msra.gmra.mrb[64].mxu0 %vm18512_vm10, %v7699_v53 }
0x16c3   :  { %12162 = vmatprep.mubr.msk.bf16.mxu0 %vm18483_vm14, %v18482_v54 }
0x1795   :  { %v7776_v49 = vpop.f32.mrb[64].mxu0 }
0x1796   :  { %v7777_v29 = vadd.f32 %v11534_v12, %v7776_v49  ;;  %v12102_v37 = vpop.f32.mrb[65].mxu0 }
0x1797   :  { %v7779_v39 = vpop.f32.mrb[66].mxu0 }
0x1798   :  { %v16392_v47 = vadd.f32 %v11534_v12, %v7779_v39  ;;  %7963 = vrot.lane.b32.xlu1 %v7777_v29, %s13117_s24  ;;  %v12103_v25 = vpop.f32.mrb[67].mxu0  ;;  %v7792_v41 = vrot.slane %v7777_v29, %v18514_v40  ;;  %v7785_v38 = vcombine.high %v7777_v29, %v7777_v29 }
0x179a   :  { %7965 = vrot.lane.b32.xlu0 %v16392_v47, %s13117_s24  ;;  %v16396_v2 = vpack.c.bf16 %v16392_v47, %v7777_v29  ;;  %v7800_v44 = vcombine.high %v7792_v41, %v7792_v41  ;;  %v7808_v9 = vrot.slane %v7792_v41, %v18514_v40  ;;  %v7799_v24 = vrot.slane %v7785_v38, %v18514_v40 }
0x179b   :  { %v7841_v50 = vrot.slane %v16392_v47, %v18514_v40 }
0x179c   :  { %18513 = vst [vmem:[#allocation64_spill] sm:$0xff] %v16396_v2  ;;  %v7822_v48 = vrot.slane %v7800_v44, %v18514_v40  ;;  %v7830_v14 = vcombine.high %v7808_v9, %v7808_v9  ;;  %v7886_v0 = vrot.slane %v7808_v9, %v13304_v35  ;;  %v7801_v6 = vcombine.high %v7799_v24, %v7799_v24 }
0x179d   :  { %v7815_v26 = vrot.slane %v7799_v24, %v18514_v40 }
0x179e   :  { %v7890_v7 = vrot.slane %v7822_v48, %v13304_v35  ;;  %v7894_v45 = vrot.slane %v7830_v14, %v13304_v35  ;;  %v7832_v10 = vcombine.high %v7822_v48, %v7822_v48  ;;  %v7829_v60 = vrot.slane %v7801_v6, %v18514_v40 }
0x179f   :  { %v7902_v53 = vrot.slane %v7815_v26, %v13304_v35  ;;  %v7831_v37 = vcombine.high %v7815_v26, %v7815_v26 }
0x17a0   :  { %v7898_v57 = vrot.slane %v7832_v10, %v13304_v35  ;;  %v7906_v15 = vrot.slane %v7829_v60, %v13304_v35  ;;  %v7833_v41 = vcombine.high %v7829_v60, %v7829_v60 }
0x17a1   :  { %v7910_v38 = vrot.slane %v7831_v37, %v13304_v35 }
0x180a   :  { %v16407_v1 = vpop.permute.xlu1 %7963 }
0x180b   :  { %v7969_v59 = vadd.f32 %v16407_v1, %v7886_v0  ;;  %v7971_v16 = vadd.f32 %v16407_v1, %v7890_v7  ;;  %v7973_v51 = vadd.f32 %v16407_v1, %v7894_v45  ;;  %v7975_v31 = vadd.f32 %v16407_v1, %v7898_v57 }
0x180c   :  { %v16412_v18 = vpop.permute.xlu0 %7965  ;;  %v7977_v29 = vadd.f32 %v16407_v1, %v7902_v53  ;;  %v7979_v20 = vadd.f32 %v16407_v1, %v7906_v15 }
0x180d   :  { %vm8001_vm9 = vcmp.gt.f32.partialorder %v7969_v59, 0.0  ;;  %v8033_v63 = vmul.f32 0.2, %v7969_v59  ;;  %v7970_v56 = vadd.f32 %v16412_v18, %v7886_v0  ;;  %v7972_v5 = vadd.f32 %v16412_v18, %v7890_v7 }
0x180e   :  { %v8035_v17 = vmul.f32 0.2, %v7971_v16  ;;  %vm8003_vm11 = vcmp.gt.f32.partialorder %v7971_v16, 0.0  ;;  %v7974_v11 = vadd.f32 %v16412_v18, %v7894_v45  ;;  %v8037_v33 = vmul.f32 0.2, %v7973_v51 }
0x180f   :  { %v8065_v8 = vsel %vm8001_vm9, %v7969_v59, %v8033_v63  ;;  %vm8002_vm6 = vcmp.gt.f32.partialorder %v7970_v56, 0.0  ;;  %v8034_v30 = vmul.f32 0.2, %v7970_v56  ;;  %v8036_v52 = vmul.f32 0.2, %v7972_v5 }
0x1810   :  { %8133 = vrot.lane.b32.xlu1 %v8065_v8, %s13116_s9  ;;  %vm8004_vm15 = vcmp.gt.f32.partialorder %v7972_v5, 0.0  ;;  %v8067_v34 = vsel %vm8003_vm11, %v7971_v16, %v8035_v17  ;;  %vm8005_vm12 = vcmp.gt.f32.partialorder %v7973_v51, 0.0  ;;  %v8038_v42 = vmul.f32 0.2, %v7974_v11 }
0x1811   :  { %v8066_v13 = vsel %vm8002_vm6, %v7970_v56, %v8034_v30  ;;  %v8068_v32 = vsel %vm8004_vm15, %v7972_v5, %v8036_v52  ;;  %v7976_v3 = vadd.f32 %v16412_v18, %v7898_v57  ;;  %vm8006_vm8 = vcmp.gt.f32.partialorder %v7974_v11, 0.0 }
0x1812   :  { %8135 = vrot.lane.b32.xlu0 %v8066_v13, %s13116_s9  ;;  %v8069_v12 = vsel %vm8005_vm12, %v7973_v51, %v8037_v33  ;;  %v8039_v49 = vmul.f32 0.2, %v7975_v31  ;;  %vm8007_vm1 = vcmp.gt.f32.partialorder %v7975_v31, 0.0  ;;  %v8070_v39 = vsel %vm8006_vm8, %v7974_v11, %v8038_v42 }
0x1813   :  { %v8040_v25 = vmul.f32 0.2, %v7976_v3  ;;  %v7978_v27 = vadd.f32 %v16412_v18, %v7902_v53  ;;  %vm8008_vm13 = vcmp.gt.f32.partialorder %v7976_v3, 0.0  ;;  %v8041_v62 = vmul.f32 0.2, %v7977_v29 }
0x1814   :  { %8137 = vrot.lane.b32.xlu1 %v8067_v34, %s13116_s9  ;;  %v8071_v23 = vsel %vm8007_vm1, %v7975_v31, %v8039_v49  ;;  %vm8009_vm0 = vcmp.gt.f32.partialorder %v7977_v29, 0.0  ;;  %v7980_v48 = vadd.f32 %v16412_v18, %v7906_v15  ;;  %v8043_v0 = vmul.f32 0.2, %v7979_v20 }
0x1815   :  { %v8072_v44 = vsel %vm8008_vm13, %v7976_v3, %v8040_v25  ;;  %v8042_v9 = vmul.f32 0.2, %v7978_v27  ;;  %vm8010_vm10 = vcmp.gt.f32.partialorder %v7978_v27, 0.0  ;;  %v8073_v14 = vsel %vm8009_vm0, %v7977_v29, %v8041_v62 }
0x1816   :  { %8139 = vrot.lane.b32.xlu0 %v8068_v32, %s13116_s9  ;;  %v7981_v7 = vadd.f32 %v16407_v1, %v7910_v38  ;;  %v7849_v59 = vcombine.high %v7841_v50, %v7841_v50  ;;  %v7857_v16 = vrot.slane %v7841_v50, %v18514_v40  ;;  %vm8011_vm9 = vcmp.gt.f32.partialorder %v7979_v20, 0.0 }
0x1817   :  { %v8074_v24 = vsel %vm8010_vm10, %v7978_v27, %v8042_v9  ;;  %v8044_v45 = vmul.f32 0.2, %v7980_v48  ;;  %v7982_v63 = vadd.f32 %v16412_v18, %v7910_v38  ;;  %v7914_v56 = vrot.slane %v7833_v41, %v13304_v35 }
0x1818   :  { %8141 = vrot.lane.b32.xlu1 %v8069_v12, %s13116_s9  ;;  %vm8012_vm6 = vcmp.gt.f32.partialorder %v7980_v48, 0.0  ;;  %v8075_v10 = vsel %vm8011_vm9, %v7979_v20, %v8043_v0  ;;  %v8045_v5 = vmul.f32 0.2, %v7981_v7  ;;  %vm8013_vm11 = vcmp.gt.f32.partialorder %v7981_v7, 0.0 }
0x1819   :  { %v7983_v51 = vadd.f32 %v16407_v1, %v7914_v56  ;;  %v7918_v8 = vrot.slane %v7857_v16, %v13304_v35  ;;  %v8076_v30 = vsel %vm8012_vm6, %v7980_v48, %v8044_v45  ;;  %v8046_v17 = vmul.f32 0.2, %v7982_v63 }
0x181a   :  { %8143 = vrot.lane.b32.xlu0 %v8070_v39, %s13116_s9  ;;  %v7984_v6 = vadd.f32 %v16412_v18, %v7914_v56  ;;  %v7871_v26 = vrot.slane %v7849_v59, %v18514_v40  ;;  %vm8014_vm15 = vcmp.gt.f32.partialorder %v7982_v63, 0.0  ;;  %v8077_v13 = vsel %vm8013_vm11, %v7981_v7, %v8045_v5 }
0x181b   :  { %v8047_v52 = vmul.f32 0.2, %v7983_v51  ;;  %v7985_v11 = vadd.f32 %v16407_v1, %v7918_v8  ;;  %v7834_v57 = vcombine.high %v16392_v47, %v16392_v47  ;;  %vm8015_vm12 = vcmp.gt.f32.partialorder %v7983_v51, 0.0 }
0x181c   :  { %8145 = vrot.lane.b32.xlu1 %v8071_v23, %s13116_s9  ;;  %v7879_v34 = vcombine.high %v7857_v16, %v7857_v16  ;;  %v8078_v33 = vsel %vm8014_vm15, %v7982_v63, %v8046_v17  ;;  %v8048_v31 = vmul.f32 0.2, %v7984_v6  ;;  %v7986_v60 = vadd.f32 %v16412_v18, %v7918_v8 }
0x181d   :  { %v7922_v32 = vrot.slane %v7871_v26, %v13304_v35  ;;  %vm8016_vm8 = vcmp.gt.f32.partialorder %v7984_v6, 0.0  ;;  %v8079_v42 = vsel %vm8015_vm12, %v7983_v51, %v8047_v52  ;;  %v8049_v3 = vmul.f32 0.2, %v7985_v11 }
0x181e   :  { %8147 = vrot.lane.b32.xlu0 %v8072_v44, %s13116_s9  ;;  %v7848_v12 = vrot.slane %v7834_v57, %v18514_v40  ;;  %vm8017_vm1 = vcmp.gt.f32.partialorder %v7985_v11, 0.0  ;;  %v7881_v47 = vcombine.high %v7871_v26, %v7871_v26  ;;  %v8080_v49 = vsel %vm8016_vm8, %v7984_v6, %v8048_v31 }
0x181f   :  { %v7987_v53 = vadd.f32 %v16407_v1, %v7922_v32  ;;  %v8050_v29 = vmul.f32 0.2, %v7986_v60  ;;  %v7988_v37 = vadd.f32 %v16412_v18, %v7922_v32  ;;  %v7926_v39 = vrot.slane %v7879_v34, %v13304_v35 }
0x1820   :  { %8149 = vrot.lane.b32.xlu1 %v8073_v14, %s13116_s9  ;;  %vm8018_vm13 = vcmp.gt.f32.partialorder %v7986_v60, 0.0  ;;  %v8081_v25 = vsel %vm8017_vm1, %v7985_v11, %v8049_v3  ;;  %v7850_v23 = vcombine.high %v7848_v12, %v7848_v12  ;;  %v7864_v62 = vrot.slane %v7848_v12, %v18514_v40 }
0x1821   :  { %v8051_v27 = vmul.f32 0.2, %v7987_v53  ;;  %v7989_v15 = vadd.f32 %v16407_v1, %v7926_v39  ;;  %vm8019_vm0 = vcmp.gt.f32.partialorder %v7987_v53, 0.0  ;;  %v8082_v20 = vsel %vm8018_vm13, %v7986_v60, %v8050_v29 }
0x1822   :  { %8151 = vrot.lane.b32.xlu0 %v8074_v24, %s13116_s9  ;;  %v8052_v50 = vmul.f32 0.2, %v7988_v37  ;;  %v7990_v41 = vadd.f32 %v16412_v18, %v7926_v39  ;;  %v7930_v44 = vrot.slane %v7881_v47, %v13304_v35  ;;  %vm8020_vm10 = vcmp.gt.f32.partialorder %v7988_v37, 0.0 }
0x1823   :  { %v8083_v9 = vsel %vm8019_vm0, %v7987_v53, %v8051_v27  ;;  %v8053_v48 = vmul.f32 0.2, %v7989_v15  ;;  %vm8021_vm9 = vcmp.gt.f32.partialorder %v7989_v15, 0.0  ;;  %v7878_v14 = vrot.slane %v7850_v23, %v18514_v40 }
0x1824   :  { %8153 = vrot.lane.b32.xlu1 %v8075_v10, %s13116_s9  ;;  %v7991_v38 = vadd.f32 %v16407_v1, %v7930_v44  ;;  %v8084_v0 = vsel %vm8020_vm10, %v7988_v37, %v8052_v50  ;;  %v8054_v7 = vmul.f32 0.2, %v7990_v41  ;;  %v7992_v59 = vadd.f32 %v16412_v18, %v7930_v44 }
0x1825   :  { %v7934_v16 = vrot.slane %v7864_v62, %v13304_v35  ;;  %vm8022_vm6 = vcmp.gt.f32.partialorder %v7990_v41, 0.0  ;;  %v8085_v24 = vsel %vm8021_vm9, %v7989_v15, %v8053_v48  ;;  %v7938_v56 = vrot.slane %v7878_v14, %v13304_v35 }
0x1826   :  { %8155 = vrot.lane.b32.xlu0 %v8076_v30, %s13116_s9  ;;  %v8055_v45 = vmul.f32 0.2, %v7991_v38  ;;  %vm8023_vm11 = vcmp.gt.f32.partialorder %v7991_v38, 0.0  ;;  %v8086_v10 = vsel %vm8022_vm6, %v7990_v41, %v8054_v7  ;;  %v8056_v40 = vmul.f32 0.2, %v7992_v59 }
0x1827   :  { %v7993_v63 = vadd.f32 %v16407_v1, %v7934_v16  ;;  %v7994_v5 = vadd.f32 %v16412_v18, %v7934_v16  ;;  %v7880_v51 = vcombine.high %v7864_v62, %v7864_v62  ;;  %vm8024_vm15 = vcmp.gt.f32.partialorder %v7992_v59, 0.0 }
0x1828   :  { %8157 = vrot.lane.b32.xlu1 %v8077_v13, %s13116_s9  ;;  %v8087_v8 = vsel %vm8023_vm11, %v7991_v38, %v8055_v45  ;;  %v7995_v17 = vadd.f32 %v16407_v1, %v7938_v56  ;;  %v7882_v6 = vcombine.high %v7878_v14, %v7878_v14  ;;  %v8088_v26 = vsel %vm8024_vm15, %v7992_v59, %v8056_v40 }
0x1829   :  { %v8057_v30 = vmul.f32 0.2, %v7993_v63  ;;  %vm8025_vm12 = vcmp.gt.f32.partialorder %v7993_v63, 0.0  ;;  %v8058_v13 = vmul.f32 0.2, %v7994_v5  ;;  %v7996_v52 = vadd.f32 %v16412_v18, %v7938_v56 }
0x182a   :  { %8159 = vrot.lane.b32.xlu0 %v8078_v33, %s13116_s9  ;;  %v7942_v11 = vrot.slane %v7880_v51, %v13304_v35  ;;  %vm8026_vm8 = vcmp.gt.f32.partialorder %v7994_v5, 0.0  ;;  %v8059_v34 = vmul.f32 0.2, %v7995_v17  ;;  %vm8027_vm1 = vcmp.gt.f32.partialorder %v7995_v17, 0.0 }
0x182b   :  { %v8089_v57 = vsel %vm8025_vm12, %v7993_v63, %v8057_v30  ;;  %v8090_v31 = vsel %vm8026_vm8, %v7994_v5, %v8058_v13  ;;  %v8060_v60 = vmul.f32 0.2, %v7996_v52  ;;  %vm8028_vm13 = vcmp.gt.f32.partialorder %v7996_v52, 0.0 }
0x182c   :  { %8161 = vrot.lane.b32.xlu1 %v8079_v42, %s13116_s9  ;;  %v7997_v33 = vadd.f32 %v16407_v1, %v7942_v11  ;;  %v7998_v32 = vadd.f32 %v16412_v18, %v7942_v11  ;;  %v7946_v42 = vrot.slane %v7882_v6, %v13304_v35  ;;  %v8091_v3 = vsel %vm8027_vm1, %v7995_v17, %v8059_v34 }
0x182d   :  { %v8092_v47 = vsel %vm8028_vm13, %v7996_v52, %v8060_v60  ;;  %vm18565_vm11 = vcmask 1045509   ;;  %vm18567_vm12 = vcmask 1046534   ;;  %vm18568_vm8 = vcmask 1047559  }
0x182e   :  { %8163 = vrot.lane.b32.xlu0 %v8080_v49, %s13116_s9  ;;  %v8061_v53 = vmul.f32 0.2, %v7997_v33  ;;  %v7999_v12 = vadd.f32 %v16407_v1, %v7946_v42  ;;  %vm8029_vm0 = vcmp.gt.f32.partialorder %v7997_v33, 0.0  ;;  %v8062_v49 = vmul.f32 0.2, %v7998_v32  ;;  %vm18569_vm1 = vmmov %vm18565_vm11 }
0x182f   :  { %v8000_v29 = vadd.f32 %v16412_v18, %v7946_v42  ;;  %vm8030_vm10 = vcmp.gt.f32.partialorder %v7998_v32, 0.0  ;;  %v18516_v42 = vld [vmem:[#allocation28_spill] sm:$0xff]  ;;  %vm18570_vm13 = vcmask 130048  }
0x1830   :  { %8165 = vrot.lane.b32.xlu1 %v8081_v25, %s13116_s9  ;;  %v8093_v37 = vsel %vm8029_vm0, %v7997_v33, %v8061_v53  ;;  %v8063_v39 = vmul.f32 0.2, %v7999_v12  ;;  %vm8031_vm9 = vcmp.gt.f32.partialorder %v7999_v12, 0.0  ;;  %v8094_v25 = vsel %vm8030_vm10, %v7998_v32, %v8062_v49  ;;  %vm18571_vm0 = vmmov %vm18567_vm12 }
0x1831   :  { %v8064_v27 = vmul.f32 0.2, %v8000_v29  ;;  %vm8032_vm6 = vcmp.gt.f32.partialorder %v8000_v29, 0.0  ;;  %vm18572_vm10 = vmmov %vm18568_vm8 }
0x1832   :  { %8167 = vrot.lane.b32.xlu0 %v8082_v20, %s13116_s9  ;;  %v8095_v1 = vsel %vm8031_vm9, %v7999_v12, %v8063_v39  ;;  %vm18573_vm9 = vmmov %vm18570_vm13 }
0x1833   :  { %v8096_v15 = vsel %vm8032_vm6, %v8000_v29, %v8064_v27  ;;  %v18517_v29 = vld [vmem:[#allocation29_spill] sm:$0xff]  ;;  %v18518_v27 = vld [vmem:[#allocation35_spill] sm:$0xff] }
0x1834   :  { %8169 = vrot.lane.b32.xlu1 %v8083_v9, %s13116_s9 }
0x1836   :  { %8171 = vrot.lane.b32.xlu0 %v8084_v0, %s13116_s9 }
0x1838   :  { %8173 = vrot.lane.b32.xlu1 %v8085_v24, %s13116_s9 }
0x183a   :  { %8175 = vrot.lane.b32.xlu0 %v8086_v10, %s13116_s9 }
0x183c   :  { %8177 = vrot.lane.b32.xlu1 %v8087_v8, %s13116_s9 }
0x183e   :  { %8179 = vrot.lane.b32.xlu0 %v8088_v26, %s13116_s9 }
0x1840   :  { %8181 = vrot.lane.b32.xlu1 %v8089_v57, %s13116_s9 }
0x1842   :  { %8183 = vrot.lane.b32.xlu0 %v8090_v31, %s13116_s9  ;;  %v18515_v31 = vld [vmem:[#allocation30_spill] sm:$0xff] }
0x1844   :  { %8185 = vrot.lane.b32.xlu1 %v8091_v3, %s13116_s9 }
0x1846   :  { %8187 = vrot.lane.b32.xlu0 %v8092_v47, %s13116_s9 }
0x1848   :  { %8189 = vrot.lane.b32.xlu1 %v8093_v37, %s13116_s9 }
0x184a   :  { %8191 = vrot.lane.b32.xlu0 %v8094_v25, %s13116_s9 }
0x184c   :  { %8193 = vrot.lane.b32.xlu1 %v8095_v1, %s13116_s9 }
0x184e   :  { %8195 = vrot.lane.b32.xlu0 %v8096_v15, %s13116_s9  ;;  %v18519_v15 = vld [vmem:[#allocation27_spill] sm:$0xff] }
0x1850   :  { %10619 = vrot.lane.b32.xlu1 %v16396_v2, %s13118_s30 }
0x1882   :  { %v8134_v18 = vpop.permute.xlu1 %8133 }
0x1883   :  { %12112 = vmatprep.mubr.msk.f32.mxu1 %vm7316_vm7, %v8134_v18 }
0x1884   :  { %v8136_v23 = vpop.permute.xlu0 %8135 }
0x1885   :  { %12113 = vmatmul.mubr.msk.f32.vlgmr.msra.gmra.mrb[46].mxu1 %vm7316_vm7, %v8136_v23 }
0x1886   :  { %v8138_v62 = vpop.permute.xlu1 %8137 }
0x1887   :  { %12115 = vmatprep.mubr.msk.f32.mxu1 %vm7316_vm7, %v8138_v62 }
0x1888   :  { %v8140_v20 = vpop.permute.xlu0 %8139 }
0x1889   :  { %12116 = vmatmul.mubr.msk.f32.gmra.mrb[64].mxu1 %vm7316_vm7, %v8140_v20  ;;  %v18520_v20 = vld [vmem:[#allocation36_spill] sm:$0xff] }
0x188a   :  { %v8142_v50 = vpop.permute.xlu1 %8141 }
0x188b   :  { %12118 = vmatprep.mubr.msk.f32.mxu1 %vm7316_vm7, %v8142_v50 }
0x188c   :  { %v8144_v41 = vpop.permute.xlu0 %8143 }
0x188d   :  { %12119 = vmatmul.mubr.msk.f32.gmra.mrb[66].mxu1 %vm7316_vm7, %v8144_v41 }
0x188e   :  { %v8146_v44 = vpop.permute.xlu1 %8145 }
0x188f   :  { %12121 = vmatprep.mubr.msk.f32.mxu1 %vm7316_vm7, %v8146_v44 }
0x1890   :  { %v8148_v9 = vpop.permute.xlu0 %8147 }
0x1891   :  { %12122 = vmatmul.mubr.msk.f32.gmra.mrb[68].mxu1 %vm7316_vm7, %v8148_v9 }
0x1892   :  { %v8150_v48 = vpop.permute.xlu1 %8149 }
0x1893   :  { %12124 = vmatprep.mubr.msk.f32.mxu1 %vm7316_vm7, %v8150_v48  ;;  %v18521_v48 = vld [vmem:[#allocation39_spill] sm:$0xff] }
0x1894   :  { %v8152_v38 = vpop.permute.xlu0 %8151 }
0x1895   :  { %12125 = vmatmul.mubr.msk.f32.gmra.mrb[70].mxu1 %vm7316_vm7, %v8152_v38 }
0x1896   :  { %v8154_v14 = vpop.permute.xlu1 %8153 }
0x1897   :  { %12127 = vmatprep.mubr.msk.f32.mxu1 %vm7316_vm7, %v8154_v14 }
0x1898   :  { %v8156_v0 = vpop.permute.xlu0 %8155 }
0x1899   :  { %12128 = vmatmul.mubr.msk.f32.gmra.mrb[72].mxu1 %vm7316_vm7, %v8156_v0 }
0x189a   :  { %v8158_v7 = vpop.permute.xlu1 %8157 }
0x189b   :  { %12130 = vmatprep.mubr.msk.f32.mxu1 %vm7316_vm7, %v8158_v7 }
0x189c   :  { %v8160_v59 = vpop.permute.xlu0 %8159 }
0x189d   :  { %12131 = vmatmul.mubr.msk.f32.gmra.mrb[74].mxu1 %vm7316_vm7, %v8160_v59  ;;  %v18522_v59 = vld [vmem:[#allocation40_spill] sm:$0xff] }
0x189e   :  { %v8162_v16 = vpop.permute.xlu1 %8161 }
0x189f   :  { %12133 = vmatprep.mubr.msk.f32.mxu1 %vm7316_vm7, %v8162_v16 }
0x18a0   :  { %v8164_v24 = vpop.permute.xlu0 %8163 }
0x18a1   :  { %12134 = vmatmul.mubr.msk.f32.gmra.mrb[76].mxu1 %vm7316_vm7, %v8164_v24 }
0x18a2   :  { %v8166_v45 = vpop.permute.xlu1 %8165 }
0x18a3   :  { %12136 = vmatprep.mubr.msk.f32.mxu1 %vm7316_vm7, %v8166_v45 }
0x18a4   :  { %v8168_v63 = vpop.permute.xlu0 %8167 }
0x18a5   :  { %12137 = vmatmul.mubr.msk.f32.gmra.mrb[78].mxu1 %vm7316_vm7, %v8168_v63  ;;  %v18523_v63 = vld [vmem:[#allocation43_spill] sm:$0xff] }
0x18a6   :  { %v8170_v56 = vpop.permute.xlu1 %8169 }
0x18a7   :  { %12139 = vmatprep.mubr.msk.f32.mxu1 %vm7316_vm7, %v8170_v56 }
0x18a8   :  { %v8172_v10 = vpop.permute.xlu0 %8171 }
0x18a9   :  { %12140 = vmatmul.mubr.msk.f32.gmra.mrb[80].mxu1 %vm7316_vm7, %v8172_v10 }
0x18aa   :  { %v8174_v40 = vpop.permute.xlu1 %8173 }
0x18ab   :  { %12142 = vmatprep.mubr.msk.f32.mxu1 %vm7316_vm7, %v8174_v40 }
0x18ac   :  { %v8176_v5 = vpop.permute.xlu0 %8175 }
0x18ad   :  { %12143 = vmatmul.mubr.msk.f32.gmra.mrb[82].mxu1 %vm7316_vm7, %v8176_v5  ;;  %v18524_v5 = vld [vmem:[#allocation44_spill] sm:$0xff] }
0x18ae   :  { %v8178_v51 = vpop.permute.xlu1 %8177 }
0x18af   :  { %12145 = vmatprep.mubr.msk.f32.mxu1 %vm7316_vm7, %v8178_v51 }
0x18b0   :  { %v8180_v8 = vpop.permute.xlu0 %8179 }
0x18b1   :  { %12146 = vmatmul.mubr.msk.f32.gmra.mrb[84].mxu1 %vm7316_vm7, %v8180_v8 }
0x18b2   :  { %v8182_v30 = vpop.permute.xlu1 %8181 }
0x18b3   :  { %12148 = vmatprep.mubr.msk.f32.mxu1 %vm7316_vm7, %v8182_v30 }
0x18b4   :  { %v8184_v17 = vpop.permute.xlu0 %8183 }
0x18b5   :  { %12149 = vmatmul.mubr.msk.f32.gmra.mrb[86].mxu1 %vm7316_vm7, %v8184_v17 }
0x18b6   :  { %v8186_v6 = vpop.permute.xlu1 %8185 }
0x18b7   :  { %12151 = vmatprep.mubr.msk.f32.mxu1 %vm7316_vm7, %v8186_v6  ;;  %v18525_v6 = vld [vmem:[#allocation47_spill] sm:$0xff] }
0x18b8   :  { %v8188_v26 = vpop.permute.xlu0 %8187 }
0x18b9   :  { %12152 = vmatmul.mubr.msk.f32.gmra.mrb[88].mxu1 %vm7316_vm7, %v8188_v26 }
0x18ba   :  { %v8190_v13 = vpop.permute.xlu1 %8189 }
0x18bb   :  { %12154 = vmatprep.mubr.msk.f32.mxu1 %vm7316_vm7, %v8190_v13 }
0x18bc   :  { %v8192_v52 = vpop.permute.xlu0 %8191 }
0x18bd   :  { %12155 = vmatmul.mubr.msk.f32.gmra.mrb[90].mxu1 %vm7316_vm7, %v8192_v52 }
0x18be   :  { %v8194_v11 = vpop.permute.xlu1 %8193 }
0x18bf   :  { %12157 = vmatprep.mubr.msk.f32.mxu1 %vm7316_vm7, %v8194_v11 }
0x18c0   :  { %v8196_v57 = vpop.permute.xlu0 %8195 }
0x18c1   :  { %12158 = vmatmul.mubr.msk.f32.gmra.mrb[92].mxu1 %vm7316_vm7, %v8196_v57  ;;  %v18526_v57 = vld [vmem:[#allocation48_spill] sm:$0xff]  ;;  %vm18564_vm7 = vcmask 1044484  }
0x18c2   :  { %v10620_v34 = vpop.permute.xlu1 %10619  ;;  %vm18566_vm15 = vmmov %vm18564_vm7 }
0x18c3   :  { %12161 = vmatpush3.bf16.msra.mxu0 %v10620_v34  ;;  %vm18574_vm6 = vmmov %vm18564_vm7 }
0x18c4   :  { %12166 = vmatprep.subr.bf16.mxu0 %v18482_v54 }
0x1958   :  { %v12114_v33 = vpop.f32.mrb[46].mxu1 }
0x1959   :  { %v16536_v60 = vadd.f32 %v12114_v33, %v18515_v31  ;;  %v8327_v32 = vpop.f32.mrb[47].mxu1 }
0x195a   :  { %v16539_v3 = vadd.f32 %v8327_v32, %v18516_v42  ;;  %v18527_v32 = vld [vmem:[#allocation51_spill] sm:$0xff] }
0x195b   :  { %9453 = vperm.xlu0 %12517, %v16536_v60  }
0x195c   :  { %9450 = vperm.xlu1 %12518, %v16539_v3   ;;  %v12117_v53 = vpop.f32.mrb[64].mxu1 }
0x195d   :  { %v8337_v12 = vpop.f32.mrb[65].mxu1  ;;  %v16548_v37 = vadd.f32 %v12117_v53, %v18517_v29 }
0x195e   :  { %v16557_v18 = vadd.f32 %v8337_v12, %v18519_v15  ;;  %v18531_v15 = vld [vmem:[#allocation57_spill] sm:$0xff] }
0x195f   :  { %12519 = vset.pattern.permute.xlu0 %v18244_v21 }
0x1960   :  { %8587 = vperm.xlu0 %12519, %v16536_v60   ;;  %12520 = vset.pattern.permute.xlu1 %v18244_v21  ;;  %v12120_v47 = vpop.f32.mrb[66].mxu1 }
0x1961   :  { %8584 = vperm.xlu1 %12520, %v16539_v3   ;;  %v8347_v49 = vpop.f32.mrb[67].mxu1  ;;  %v16554_v1 = vadd.f32 %v12120_v47, %v18518_v27  ;;  %v18528_v47 = vld [vmem:[#allocation52_spill] sm:$0xff] }
0x1962   :  { %v16563_v50 = vadd.f32 %v8347_v49, %v18520_v20 }
0x1964   :  { %12521 = vset.pattern.permute.xlu0 %v18227_v58  ;;  %v12123_v39 = vpop.f32.mrb[68].mxu1 }
0x1965   :  { %8593 = vperm.xlu1 %12520, %v16548_v37   ;;  %9459 = vperm.xlu0 %12521, %v16548_v37   ;;  %v8357_v25 = vpop.f32.mrb[69].mxu1  ;;  %v16570_v38 = vadd.f32 %v12123_v39, %v18521_v48 }
0x1966   :  { %v16576_v16 = vadd.f32 %v8357_v25, %v18522_v59  ;;  %v18529_v25 = vld [vmem:[#allocation55_spill] sm:$0xff] }
0x1968   :  { %v12126_v23 = vpop.f32.mrb[70].mxu1 }
0x1969   :  { %12522 = vset.pattern.permute.xlu1 %v18227_v58  ;;  %9465 = vperm.xlu0 %12521, %v16554_v1   ;;  %v8367_v62 = vpop.f32.mrb[71].mxu1  ;;  %v16583_v56 = vadd.f32 %v12126_v23, %v18523_v63  ;;  %v18544_v63 = vld [vmem:[#allocation41_spill] sm:$0xff] }
0x196a   :  { %9456 = vperm.xlu1 %12522, %v16557_v18   ;;  %v16592_v51 = vadd.f32 %v8367_v62, %v18524_v5  ;;  %v18532_v62 = vld [vmem:[#allocation31_spill] sm:$0xff] }
0x196c   :  { %v12129_v41 = vpop.f32.mrb[72].mxu1 }
0x196d   :  { %12525 = vset.pattern.permute.xlu0 %v18244_v21  ;;  %v8377_v44 = vpop.f32.mrb[73].mxu1  ;;  %v16605_v26 = vadd.f32 %v12129_v41, %v18525_v6  ;;  %v18534_v41 = vld [vmem:[#allocation32_spill] sm:$0xff] }
0x196e   :  { %12523 = vset.pattern.permute.xlu1 %v18244_v21  ;;  %8596 = vperm.xlu0 %12525, %v16563_v50   ;;  %v16618_v34 = vadd.f32 %v8377_v44, %v18526_v57 }
0x196f   :  { %8590 = vperm.xlu1 %12523, %v16557_v18  }
0x1970   :  { %v12132_v9 = vpop.f32.mrb[74].mxu1 }
0x1971   :  { %v8387_v14 = vpop.f32.mrb[75].mxu1  ;;  %v16629_v42 = vadd.f32 %v12132_v9, %v18527_v32  ;;  %v18536_v9 = vld [vmem:[#allocation33_spill] sm:$0xff] }
0x1972   :  { %12526 = vset.pattern.permute.xlu0 %v18227_v58  ;;  %v16640_v49 = vadd.f32 %v8387_v14, %v18528_v47  ;;  %v18538_v14 = vld [vmem:[#allocation34_spill] sm:$0xff] }
0x1973   :  { %8599 = vperm.xlu1 %12523, %v16554_v1   ;;  %9471 = vperm.xlu0 %12526, %v16570_v38  }
0x1974   :  { %v12135_v0 = vpop.f32.mrb[76].mxu1 }
0x1975   :  { %v8397_v7 = vpop.f32.mrb[77].mxu1  ;;  %v16651_v27 = vadd.f32 %v12135_v0, %v18529_v25 }
0x1976   :  { %v16658_v23 = vadd.f32 %v8397_v7, %v18531_v15  ;;  %v18540_v7 = vld [vmem:[#allocation37_spill] sm:$0xff] }
0x1977   :  { %12524 = vset.pattern.permute.xlu1 %v18227_v58  ;;  %12529 = vset.pattern.permute.xlu0 %v18244_v21  ;;  %18530 = vst [vmem:[#allocation63_spill] sm:$0xff] %v16651_v27 }
0x1978   :  { %9462 = vperm.xlu1 %12524, %v16563_v50   ;;  %8602 = vperm.xlu0 %12529, %v16576_v16   ;;  %v12138_v24 = vpop.f32.mrb[78].mxu1 }
0x1979   :  { %v8407_v45 = vpop.f32.mrb[79].mxu1  ;;  %v16665_v20 = vadd.f32 %v12138_v24, %v18532_v62  ;;  %v18542_v24 = vld [vmem:[#allocation38_spill] sm:$0xff] }
0x197a   :  { %v16672_v44 = vadd.f32 %v8407_v45, %v18534_v41  ;;  %v18558_v62 = vld [vmem:[#allocation54_spill] sm:$0xff] }
0x197b   :  { %18533 = vst [vmem:[#allocation65_spill] sm:$0xff] %v16665_v20 }
0x197c   :  { %12527 = vset.pattern.permute.xlu1 %v18244_v21  ;;  %12530 = vset.pattern.permute.xlu0 %v18227_v58  ;;  %v12141_v10 = vpop.f32.mrb[80].mxu1  ;;  %18535 = vst [vmem:[#allocation59_spill] sm:$0xff] %v16672_v44 }
0x197d   :  { %8605 = vperm.xlu1 %12527, %v16570_v38   ;;  %9477 = vperm.xlu0 %12530, %v16583_v56   ;;  %v16589_v40 = vpop.f32.mrb[81].mxu1  ;;  %v16679_v48 = vadd.f32 %v12141_v10, %v18536_v9 }
0x197e   :  { %v16687_v0 = vadd.f32 %v16589_v40, %v18538_v14  ;;  %v18546_v40 = vld [vmem:[#allocation42_spill] sm:$0xff] }
0x197f   :  { %18537 = vst [vmem:[#allocation61_spill] sm:$0xff] %v16679_v48 }
0x1980   :  { %v16594_v8 = vpop.f32.mrb[82].mxu1  ;;  %18539 = vst [vmem:[#allocation58_spill] sm:$0xff] %v16687_v0 }
0x1981   :  { %12528 = vset.pattern.permute.xlu1 %v18227_v58  ;;  %12533 = vset.pattern.permute.xlu0 %v18244_v21  ;;  %v16598_v30 = vpop.f32.mrb[83].mxu1  ;;  %v16695_v59 = vadd.f32 %v16594_v8, %v18540_v7  ;;  %v18548_v8 = vld [vmem:[#allocation45_spill] sm:$0xff] }
0x1982   :  { %9468 = vperm.xlu1 %12528, %v16576_v16   ;;  %8608 = vperm.xlu0 %12533, %v16592_v51   ;;  %v16703_v45 = vadd.f32 %v16598_v30, %v18542_v24  ;;  %v18560_v7 = vld [vmem:[#allocation69_spill] sm:$0xff] }
0x1983   :  { %18541 = vst [vmem:[#allocation73_spill] sm:$0xff] %v16695_v59 }
0x1984   :  { %v16602_v17 = vpop.f32.mrb[84].mxu1  ;;  %18543 = vst [vmem:[#allocation67_spill] sm:$0xff] %v16703_v45 }
0x1985   :  { %v16607_v13 = vpop.f32.mrb[85].mxu1  ;;  %v16711_v10 = vadd.f32 %v16602_v17, %v18544_v63  ;;  %v18550_v17 = vld [vmem:[#allocation46_spill] sm:$0xff] }
0x1986   :  { %12531 = vset.pattern.permute.xlu1 %v18244_v21  ;;  %12534 = vset.pattern.permute.xlu0 %v18227_v58  ;;  %v16719_v5 = vadd.f32 %v16607_v13, %v18546_v40  ;;  %v18552_v13 = vld [vmem:[#allocation49_spill] sm:$0xff]  ;;  %v18562_v40 = vld [vmem:[#allocation70_spill] sm:$0xff] }
0x1987   :  { %8611 = vperm.xlu1 %12531, %v16583_v56   ;;  %9483 = vperm.xlu0 %12534, %v16605_v26   ;;  %18545 = vst [vmem:[#allocation71_spill] sm:$0xff] %v16711_v10 }
0x1988   :  { %v16613_v52 = vpop.f32.mrb[86].mxu1  ;;  %18547 = vst [vmem:[#allocation66_spill] sm:$0xff] %v16719_v5 }
0x1989   :  { %v16615_v11 = vpop.f32.mrb[87].mxu1  ;;  %v16727_v30 = vadd.f32 %v16613_v52, %v18548_v8 }
0x198a   :  { %v16735_v6 = vadd.f32 %v16615_v11, %v18550_v17  ;;  %v18554_v11 = vld [vmem:[#allocation50_spill] sm:$0xff] }
0x198b   :  { %12532 = vset.pattern.permute.xlu1 %v18227_v58  ;;  %12537 = vset.pattern.permute.xlu0 %v18244_v21  ;;  %18549 = vst [vmem:[#allocation75_spill] sm:$0xff] %v16727_v30 }
0x198c   :  { %9474 = vperm.xlu1 %12532, %v16592_v51   ;;  %8614 = vperm.xlu0 %12537, %v16618_v34   ;;  %v16624_v33 = vpop.f32.mrb[88].mxu1  ;;  %18551 = vst [vmem:[#allocation68_spill] sm:$0xff] %v16735_v6 }
0x198d   :  { %v16626_v31 = vpop.f32.mrb[89].mxu1  ;;  %v16743_v52 = vadd.f32 %v16624_v33, %v18552_v13  ;;  %v18556_v33 = vld [vmem:[#allocation53_spill] sm:$0xff] }
0x198e   :  { %v16751_v57 = vadd.f32 %v16626_v31, %v18554_v11 }
0x198f   :  { %18553 = vst [vmem:[#allocation91_spill] sm:$0xff] %v16743_v52 }
0x1990   :  { %12535 = vset.pattern.permute.xlu1 %v18244_v21  ;;  %12538 = vset.pattern.permute.xlu0 %v18227_v58  ;;  %v16633_v53 = vpop.f32.mrb[90].mxu1  ;;  %18555 = vst [vmem:[#allocation60_spill] sm:$0xff] %v16751_v57 }
0x1991   :  { %8617 = vperm.xlu1 %12535, %v16605_v26   ;;  %9489 = vperm.xlu0 %12538, %v16629_v42   ;;  %v16637_v12 = vpop.f32.mrb[91].mxu1  ;;  %v16763_v25 = vadd.f32 %v16633_v53, %v18556_v33 }
0x1992   :  { %v16775_v41 = vadd.f32 %v16637_v12, %v18558_v62 }
0x1993   :  { %18557 = vst [vmem:[#allocation93_spill] sm:$0xff] %v16763_v25 }
0x1994   :  { %v16642_v29 = vpop.f32.mrb[92].mxu1  ;;  %18559 = vst [vmem:[#allocation74_spill] sm:$0xff] %v16775_v41 }
0x1995   :  { %12536 = vset.pattern.permute.xlu1 %v18227_v58  ;;  %12541 = vset.pattern.permute.xlu0 %v18244_v21  ;;  %v16646_v39 = vpop.f32.mrb[93].mxu1  ;;  %v16783_v24 = vadd.f32 %v16642_v29, %v18560_v7 }
0x1996   :  { %9480 = vperm.xlu1 %12536, %v16618_v34   ;;  %8620 = vperm.xlu0 %12541, %v16640_v49   ;;  %v16791_v8 = vadd.f32 %v16646_v39, %v18562_v40 }
0x1997   :  { %18561 = vst [vmem:[#allocation72_spill] sm:$0xff] %v16783_v24 }
0x1998   :  { %18563 = vst [vmem:[#allocation97_spill] sm:$0xff] %v16791_v8 }
0x199a   :  { %12539 = vset.pattern.permute.xlu1 %v18244_v21  ;;  %12542 = vset.pattern.permute.xlu0 %v18227_v58 }
0x199b   :  { %8623 = vperm.xlu1 %12539, %v16629_v42   ;;  %9495 = vperm.xlu0 %12542, %v16651_v27  }
0x199f   :  { %12540 = vset.pattern.permute.xlu1 %v18227_v58  ;;  %12545 = vset.pattern.permute.xlu0 %v18244_v21 }
0x19a0   :  { %9486 = vperm.xlu1 %12540, %v16640_v49   ;;  %8626 = vperm.xlu0 %12545, %v16658_v23  }
0x19a4   :  { %12543 = vset.pattern.permute.xlu1 %v18244_v21  ;;  %12546 = vset.pattern.permute.xlu0 %v18227_v58 }
0x19a5   :  { %8629 = vperm.xlu1 %12543, %v16651_v27   ;;  %9501 = vperm.xlu0 %12546, %v16665_v20  }
0x19a9   :  { %12544 = vset.pattern.permute.xlu1 %v18227_v58  ;;  %12549 = vset.pattern.permute.xlu0 %v18244_v21 }
0x19aa   :  { %9492 = vperm.xlu1 %12544, %v16658_v23   ;;  %8632 = vperm.xlu0 %12549, %v16672_v44  }
0x19ae   :  { %12547 = vset.pattern.permute.xlu1 %v18244_v21  ;;  %12550 = vset.pattern.permute.xlu0 %v18227_v58 }
0x19af   :  { %8635 = vperm.xlu1 %12547, %v16665_v20   ;;  %9507 = vperm.xlu0 %12550, %v16679_v48  }
0x19b3   :  { %12548 = vset.pattern.permute.xlu1 %v18227_v58  ;;  %12553 = vset.pattern.permute.xlu0 %v18244_v21 }
0x19b4   :  { %9498 = vperm.xlu1 %12548, %v16672_v44   ;;  %8638 = vperm.xlu0 %12553, %v16687_v0  }
0x19b8   :  { %12551 = vset.pattern.permute.xlu1 %v18244_v21  ;;  %12554 = vset.pattern.permute.xlu0 %v18227_v58 }
0x19b9   :  { %8641 = vperm.xlu1 %12551, %v16679_v48   ;;  %9513 = vperm.xlu0 %12554, %v16695_v59  }
0x19bd   :  { %12552 = vset.pattern.permute.xlu1 %v18227_v58  ;;  %12557 = vset.pattern.permute.xlu0 %v18244_v21 }
0x19be   :  { %9504 = vperm.xlu1 %12552, %v16687_v0   ;;  %8644 = vperm.xlu0 %12557, %v16703_v45  }
0x19c2   :  { %12555 = vset.pattern.permute.xlu1 %v18244_v21  ;;  %12558 = vset.pattern.permute.xlu0 %v18227_v58 }
0x19c3   :  { %8647 = vperm.xlu1 %12555, %v16695_v59   ;;  %9519 = vperm.xlu0 %12558, %v16711_v10  }
0x19c7   :  { %12556 = vset.pattern.permute.xlu1 %v18227_v58  ;;  %12561 = vset.pattern.permute.xlu0 %v18244_v21 }
0x19c8   :  { %9510 = vperm.xlu1 %12556, %v16703_v45   ;;  %8650 = vperm.xlu0 %12561, %v16719_v5  }
0x19cc   :  { %12559 = vset.pattern.permute.xlu1 %v18244_v21  ;;  %12562 = vset.pattern.permute.xlu0 %v18227_v58 }
0x19cd   :  { %8653 = vperm.xlu1 %12559, %v16711_v10   ;;  %9525 = vperm.xlu0 %12562, %v16727_v30  }
0x19d1   :  { %12560 = vset.pattern.permute.xlu1 %v18227_v58  ;;  %12565 = vset.pattern.permute.xlu0 %v18244_v21 }
0x19d2   :  { %9516 = vperm.xlu1 %12560, %v16719_v5   ;;  %8656 = vperm.xlu0 %12565, %v16735_v6  }
0x19d6   :  { %12563 = vset.pattern.permute.xlu1 %v18244_v21  ;;  %12566 = vset.pattern.permute.xlu0 %v18227_v58 }
0x19d7   :  { %8659 = vperm.xlu1 %12563, %v16727_v30   ;;  %9531 = vperm.xlu0 %12566, %v16743_v52  }
0x19da   :  { %v16753_v32 = vpop.permute.xlu0 %9453 }
0x19db   :  { %v16755_v47 = vpop.permute.xlu1 %9450  ;;  %12564 = vset.pattern.permute.xlu1 %v18227_v58  ;;  %12569 = vset.pattern.permute.xlu0 %v18244_v21 }
0x19dc   :  { %9522 = vperm.xlu1 %12564, %v16735_v6   ;;  %8662 = vperm.xlu0 %12569, %v16751_v57   ;;  %v9548_v5 = vrot.slane %v16755_v47, %v13853_v19 }
0x19df   :  { %v16765_v15 = vpop.permute.xlu0 %8587 }
0x19e0   :  { %v16767_v31 = vpop.permute.xlu1 %8584  ;;  %12567 = vset.pattern.permute.xlu1 %v18244_v21  ;;  %12570 = vset.pattern.permute.xlu0 %v18227_v58  ;;  %v8686_v0 = vrot.slane %v16765_v15, %v13860_v22 }
0x19e1   :  { %8665 = vperm.xlu1 %12567, %v16743_v52   ;;  %9537 = vperm.xlu0 %12570, %v16763_v25   ;;  %v8682_v45 = vrot.slane %v16767_v31, %v13853_v19 }
0x19e4   :  { %v8594_v9 = vpop.permute.xlu1 %8593  ;;  %v9460_v14 = vpop.permute.xlu0 %9459 }
0x19e5   :  { %12568 = vset.pattern.permute.xlu1 %v18227_v58  ;;  %12573 = vset.pattern.permute.xlu0 %v18244_v21  ;;  %v8695_v20 = vrot.slane %v8594_v9, %v13860_v22 }
0x19e6   :  { %9528 = vperm.xlu1 %12568, %v16751_v57   ;;  %8668 = vperm.xlu0 %12573, %v16775_v41  }
0x19e8   :  { %v9466_v53 = vpop.permute.xlu0 %9465 }
0x19e9   :  { %v9457_v63 = vpop.permute.xlu1 %9456  ;;  %v9570_v47 = vrot.slane %v9466_v53, %v13860_v22 }
0x19ea   :  { %12571 = vset.pattern.permute.xlu1 %v18244_v21  ;;  %12574 = vset.pattern.permute.xlu0 %v18227_v58  ;;  %v9557_v6 = vrot.slane %v9457_v63, %v13853_v19 }
0x19eb   :  { %8671 = vperm.xlu1 %12571, %v16763_v25   ;;  %9543 = vperm.xlu0 %12574, %v16783_v24  }
0x19ed   :  { %v8597_v12 = vpop.permute.xlu0 %8596 }
0x19ee   :  { %v8591_v17 = vpop.permute.xlu1 %8590  ;;  %v8700_v44 = vrot.slane %v8597_v12, %v13853_v19 }
0x19ef   :  { %12572 = vset.pattern.permute.xlu1 %v18227_v58  ;;  %12577 = vset.pattern.permute.xlu0 %v18244_v21  ;;  %v8691_v59 = vrot.slane %v8591_v17, %v13853_v19  ;;  %v9561_v17 = vrot.slane %v9460_v14, %v13860_v22  ;;  %v8687_v14 = vsel %vm1233_vm2, %v8686_v0, %v8682_v45 }
0x19f0   :  { %9534 = vperm.xlu1 %12572, %v16775_v41   ;;  %8674 = vperm.xlu0 %12577, %v16791_v8  }
0x19f2   :  { %v8600_v29 = vpop.permute.xlu1 %8599  ;;  %v9472_v13 = vpop.permute.xlu0 %9471 }
0x19f3   :  { %v8704_v48 = vrot.slane %v8600_v29, %v13860_v22  ;;  %v8696_v29 = vsel %vm1233_vm2, %v8695_v20, %v8691_v59  ;;  %v9579_v27 = vrot.slane %v9472_v13, %v13860_v22 }
0x19f4   :  { %12575 = vset.pattern.permute.xlu1 %v18244_v21  ;;  %12578 = vset.pattern.permute.xlu0 %v18227_v58  ;;  %v9562_v21 = vsel %vm1233_vm2, %v9561_v17, %v9557_v6 }
0x19f5   :  { %8677 = vperm.xlu1 %12575, %v16783_v24   ;;  %v8705_v15 = vsel %vm1233_vm2, %v8704_v48, %v8700_v44 }
0x19f7   :  { %v9463_v11 = vpop.permute.xlu1 %9462  ;;  %v8603_v39 = vpop.permute.xlu0 %8602 }
0x19f9   :  { %12576 = vset.pattern.permute.xlu1 %v18227_v58 }
0x19fa   :  { %9540 = vperm.xlu1 %12576, %v16791_v8   ;;  %v9552_v8 = vrot.slane %v16753_v32, %v13860_v22  ;;  %v9566_v32 = vrot.slane %v9463_v11, %v13853_v19  ;;  %v8823_v11 = vsel %vm1370_vm3, %v8696_v29, %v8687_v14 }
0x19fb   :  { %v8824_v44 = vsel %vm1372_vm4, %v8705_v15, %v8823_v11 }
0x19fc   :  { %v8606_v33 = vpop.permute.xlu1 %8605  ;;  %v9478_v62 = vpop.permute.xlu0 %9477  ;;  %v9553_v9 = vsel %vm1233_vm2, %v9552_v8, %v9548_v5  ;;  %v9571_v20 = vsel %vm1233_vm2, %v9570_v47, %v9566_v32 }
0x19fd   :  { %v8713_v59 = vrot.slane %v8606_v33, %v13860_v22  ;;  %v9689_v6 = vsel %vm1370_vm3, %v9562_v21, %v9553_v9  ;;  %v9588_v48 = vrot.slane %v9478_v62, %v13860_v22 }
0x19fe   :  { %v9690_v33 = vsel %vm1372_vm4, %v9571_v20, %v9689_v6 }
0x1a01   :  { %v9469_v7 = vpop.permute.xlu1 %9468  ;;  %v8609_v40 = vpop.permute.xlu0 %8608 }
0x1a02   :  { %v9575_v31 = vrot.slane %v9469_v7, %v13853_v19  ;;  %v8718_v17 = vrot.slane %v8609_v40, %v13853_v19 }
0x1a04   :  { %v9580_v45 = vsel %vm1233_vm2, %v9579_v27, %v9575_v31 }
0x1a06   :  { %v8612_v55 = vpop.permute.xlu1 %8611  ;;  %v9484_v54 = vpop.permute.xlu0 %9483 }
0x1a07   :  { %v8722_v8 = vrot.slane %v8612_v55, %v13860_v22  ;;  %v9597_v21 = vrot.slane %v9484_v54, %v13860_v22  ;;  %v9691_v55 = vsel %vm1374_vm5, %v9580_v45, %v9690_v33 }
0x1a09   :  { %v8723_v29 = vsel %vm1233_vm2, %v8722_v8, %v8718_v17 }
0x1a0b   :  { %v9475_v2 = vpop.permute.xlu1 %9474  ;;  %v8615_v25 = vpop.permute.xlu0 %8614 }
0x1a0c   :  { %v9584_v12 = vrot.slane %v9475_v2, %v13853_v19  ;;  %v8709_v2 = vrot.slane %v8603_v39, %v13853_v19  ;;  %v8727_v32 = vrot.slane %v8615_v25, %v13853_v19 }
0x1a0e   :  { %v9589_v7 = vsel %vm1233_vm2, %v9588_v48, %v9584_v12 }
0x1a10   :  { %v8618_v52 = vpop.permute.xlu1 %8617  ;;  %v9490_v30 = vpop.permute.xlu0 %9489 }
0x1a11   :  { %v8731_v62 = vrot.slane %v8618_v52, %v13860_v22  ;;  %v9606_v39 = vrot.slane %v9490_v30, %v13860_v22  ;;  %v9692_v52 = vsel %vm18564_vm7, %v9589_v7, %v9691_v55  ;;  %vm18575_vm7 = vmmov %vm18569_vm1 }
0x1a15   :  { %v9481_v41 = vpop.permute.xlu1 %9480  ;;  %v16802_v10 = vpop.permute.xlu0 %8620 }
0x1a16   :  { %v9593_v5 = vrot.slane %v9481_v41, %v13853_v19  ;;  %v8714_v41 = vsel %vm1233_vm2, %v8713_v59, %v8709_v2  ;;  %v8736_v47 = vrot.slane %v16802_v10, %v13853_v19 }
0x1a17   :  { %v8825_v14 = vsel %vm1374_vm5, %v8714_v41, %v8824_v44 }
0x1a18   :  { %v8826_v10 = vsel %vm18566_vm15, %v8723_v29, %v8825_v14  ;;  %vm18577_vm15 = vmmov %vm18568_vm8 }
0x1a1a   :  { %v8624_v24 = vpop.permute.xlu1 %8623  ;;  %v16804_v57 = vpop.permute.xlu0 %9495 }
0x1a1b   :  { %v8740_v27 = vrot.slane %v8624_v24, %v13860_v22  ;;  %v8732_v24 = vsel %vm1233_vm2, %v8731_v62, %v8727_v32  ;;  %v9615_v25 = vrot.slane %v16804_v57, %v13860_v22 }
0x1a1d   :  { %v8741_v12 = vsel %vm1233_vm2, %v8740_v27, %v8736_v47 }
0x1a1f   :  { %v9487_v63 = vpop.permute.xlu1 %9486  ;;  %v8627_v58 = vpop.permute.xlu0 %8626 }
0x1a20   :  { %v9602_v13 = vrot.slane %v9487_v63, %v13853_v19  ;;  %v9598_v63 = vsel %vm1233_vm2, %v9597_v21, %v9593_v5  ;;  %v8745_v31 = vrot.slane %v8627_v58, %v13853_v19  ;;  %v8827_v58 = vsel %vm18569_vm1, %v8732_v24, %v8826_v10 }
0x1a21   :  { %v9693_v11 = vsel %vm18565_vm11, %v9598_v63, %v9692_v52  ;;  %vm18576_vm11 = vmmov %vm18571_vm0 }
0x1a22   :  { %v9607_v40 = vsel %vm1233_vm2, %v9606_v39, %v9602_v13 }
0x1a23   :  { %v9694_v59 = vsel %vm18567_vm12, %v9607_v40, %v9693_v11  ;;  %vm18578_vm12 = vmmov %vm18573_vm9 }
0x1a24   :  { %v8630_v53 = vpop.permute.xlu1 %8629  ;;  %v16837_v0 = vpop.permute.xlu0 %9501 }
0x1a25   :  { %v8749_v54 = vrot.slane %v8630_v53, %v13860_v22  ;;  %v8828_v53 = vsel %vm18571_vm0, %v8741_v12, %v8827_v58 }
0x1a27   :  { %v8750_v6 = vsel %vm1233_vm2, %v8749_v54, %v8745_v31 }
0x1a28   :  { %v8829_v2 = vsel %vm18572_vm10, %v8750_v6, %v8828_v53 }
0x1a29   :  { %v9493_v30 = vpop.permute.xlu1 %9492  ;;  %v8633_v15 = vpop.permute.xlu0 %8632  ;;  %v8839_v45 = vsel %vm18573_vm9, %v8829_v2, -inf }
0x1a2a   :  { %v9611_v9 = vrot.slane %v9493_v30, %v13853_v19  ;;  %v8754_v10 = vrot.slane %v8633_v15, %v13853_v19 }
0x1a2c   :  { %v9616_v20 = vsel %vm1233_vm2, %v9615_v25, %v9611_v9 }
0x1a2d   :  { %v9695_v57 = vsel %vm18568_vm8, %v9616_v20, %v9694_v59  ;;  %vm18579_vm8 = vmmov %vm18574_vm6 }
0x1a2e   :  { %v8636_v48 = vpop.permute.xlu1 %8635  ;;  %v9508_v5 = vpop.permute.xlu0 %9507  ;;  %v9705_v44 = vsel %vm18570_vm13, %v9695_v57, -inf  ;;  %v9624_v57 = vrot.slane %v16837_v0, %v13860_v22  ;;  %vm18580_vm13 = vmmov %vm18571_vm0 }
0x1a2f   :  { %9706 = vmax.xlane.f32.xlu0 %v9705_v44  ;;  %v8758_v9 = vrot.slane %v8636_v48, %v13860_v22  ;;  %v9633_v58 = vrot.slane %v9508_v5, %v13860_v22  ;;  %vm18581_vm0 = vmmov %vm18572_vm10 }
0x1a30   :  { %vm18582_vm10 = vmmov %vm18573_vm9 }
0x1a31   :  { %v8759_v53 = vsel %vm1233_vm2, %v8758_v9, %v8754_v10  ;;  %vm18649_vm9 = vmmov %vm18574_vm6 }
0x1a33   :  { %v9499_v8 = vpop.permute.xlu1 %9498  ;;  %v8639_v13 = vpop.permute.xlu0 %8638  ;;  %8840 = vmax.xlane.f32.xlu0 %v8839_v45 }
0x1a34   :  { %v9620_v11 = vrot.slane %v9499_v8, %v13853_v19  ;;  %v8763_v20 = vrot.slane %v8639_v13, %v13853_v19 }
0x1a36   :  { %v9625_v8 = vsel %vm1233_vm2, %v9624_v57, %v9620_v11 }
0x1a38   :  { %v8642_v33 = vpop.permute.xlu1 %8641  ;;  %v9514_v21 = vpop.permute.xlu0 %9513 }
0x1a39   :  { %v8767_v14 = vrot.slane %v8642_v33, %v13860_v22 }
0x1a3b   :  { %v8768_v2 = vsel %vm1233_vm2, %v8767_v14, %v8763_v20 }
0x1a3d   :  { %v9505_v7 = vpop.permute.xlu1 %9504  ;;  %v8645_v62 = vpop.permute.xlu0 %8644 }
0x1a3e   :  { %v9629_v44 = vrot.slane %v9505_v7, %v13853_v19  ;;  %v8772_v15 = vrot.slane %v8645_v62, %v13853_v19  ;;  %v9642_v7 = vrot.slane %v9514_v21, %v13860_v22  ;;  %v8830_v62 = vsel %vm1370_vm3, %v8768_v2, %v8759_v53 }
0x1a42   :  { %v8648_v41 = vpop.permute.xlu1 %8647  ;;  %v16878_v17 = vpop.permute.xlu0 %9519 }
0x1a43   :  { %v8776_v59 = vrot.slane %v8648_v41, %v13860_v22 }
0x1a45   :  { %v8777_v41 = vsel %vm1233_vm2, %v8776_v59, %v8772_v15 }
0x1a47   :  { %v9511_v39 = vpop.permute.xlu1 %9510  ;;  %v8651_v27 = vpop.permute.xlu0 %8650 }
0x1a48   :  { %v9638_v13 = vrot.slane %v9511_v39, %v13853_v19  ;;  %v8781_v0 = vrot.slane %v8651_v27, %v13853_v19  ;;  %v9651_v27 = vrot.slane %v16878_v17, %v13860_v22 }
0x1a4a   :  { %v9643_v10 = vsel %vm1233_vm2, %v9642_v7, %v9638_v13 }
0x1a4c   :  { %v8654_v55 = vpop.permute.xlu1 %8653  ;;  %v16880_v32 = vpop.permute.xlu0 %9525 }
0x1a4d   :  { %v8785_v48 = vrot.slane %v8654_v55, %v13860_v22  ;;  %v9660_v17 = vrot.slane %v16880_v32, %v13860_v22 }
0x1a4f   :  { %v8786_v14 = vsel %vm1233_vm2, %v8785_v48, %v8781_v0 }
0x1a51   :  { %v9517_v63 = vpop.permute.xlu1 %9516  ;;  %v8657_v54 = vpop.permute.xlu0 %8656 }
0x1a52   :  { %v8790_v55 = vrot.slane %v8657_v54, %v13853_v19 }
0x1a56   :  { %v8660_v29 = vpop.permute.xlu1 %8659  ;;  %v16882_v52 = vpop.permute.xlu0 %9531 }
0x1a57   :  { %v8794_v45 = vrot.slane %v8660_v29, %v13860_v22  ;;  %v9634_v29 = vsel %vm1233_vm2, %v9633_v58, %v9629_v44  ;;  %v9669_v32 = vrot.slane %v16882_v52, %v13860_v22 }
0x1a58   :  { %v9696_v53 = vsel %vm1370_vm3, %v9634_v29, %v9625_v8 }
0x1a59   :  { %v8795_v21 = vsel %vm1233_vm2, %v8794_v45, %v8790_v55 }
0x1a5b   :  { %v9523_v47 = vpop.permute.xlu1 %9522  ;;  %v8663_v40 = vpop.permute.xlu0 %8662 }
0x1a5c   :  { %v8799_v39 = vrot.slane %v8663_v40, %v13853_v19  ;;  %v9656_v20 = vrot.slane %v9523_v47, %v13853_v19 }
0x1a5e   :  { %v9661_v15 = vsel %vm1233_vm2, %v9660_v17, %v9656_v20 }
0x1a60   :  { %v8666_v30 = vpop.permute.xlu1 %8665  ;;  %v16884_v24 = vpop.permute.xlu0 %9537 }
0x1a61   :  { %v8803_v5 = vrot.slane %v8666_v30, %v13860_v22  ;;  %v9647_v30 = vrot.slane %v9517_v63, %v13853_v19  ;;  %v9678_v45 = vrot.slane %v16884_v24, %v13860_v22 }
0x1a63   :  { %v8804_v59 = vsel %vm1233_vm2, %v8803_v5, %v8799_v39  ;;  %v9652_v2 = vsel %vm1233_vm2, %v9651_v27, %v9647_v30  ;;  %v9697_v5 = vsel %vm1372_vm4, %v9643_v10, %v9696_v53 }
0x1a64   :  { %v9698_v7 = vsel %vm1374_vm5, %v9652_v2, %v9697_v5  ;;  %v18583_v5 = vld [vmem:[#allocation25_spill] sm:$0xff] }
0x1a65   :  { %v9529_v25 = vpop.permute.xlu1 %9528  ;;  %v8669_v31 = vpop.permute.xlu0 %8668 }
0x1a66   :  { %v8808_v11 = vrot.slane %v8669_v31, %v13853_v19  ;;  %v9665_v63 = vrot.slane %v9529_v25, %v13853_v19 }
0x1a68   :  { %v9670_v8 = vsel %vm1233_vm2, %v9669_v32, %v9665_v63 }
0x1a6a   :  { %v8672_v12 = vpop.permute.xlu1 %8671  ;;  %v9544_v6 = vpop.permute.xlu0 %9543 }
0x1a6b   :  { %v8812_v9 = vrot.slane %v8672_v12, %v13860_v22  ;;  %v8831_v12 = vsel %vm1372_vm4, %v8777_v41, %v8830_v62  ;;  %v9687_v24 = vrot.slane %v9544_v6, %v13860_v22 }
0x1a6c   :  { %v8832_v40 = vsel %vm1374_vm5, %v8786_v14, %v8831_v12 }
0x1a6d   :  { %v8813_v57 = vsel %vm1233_vm2, %v8812_v9, %v8808_v11  ;;  %v8833_v31 = vsel %vm18574_vm6, %v8795_v21, %v8832_v40  ;;  %v9699_v9 = vsel %vm18579_vm8, %v9661_v15, %v9698_v7  ;;  %vm18650_vm6 = vmmov %vm18569_vm1 }
0x1a6e   :  { %v8834_v25 = vsel %vm18575_vm7, %v8804_v59, %v8833_v31  ;;  %v9700_v29 = vsel %vm18569_vm1, %v9670_v8, %v9699_v9  ;;  %vm18651_vm7 = vmmov %vm18576_vm11 }
0x1a6f   :  { %v9535_v33 = vpop.permute.xlu1 %9534  ;;  %v8675_v54 = vpop.permute.xlu0 %8674  ;;  %v8835_v0 = vsel %vm18576_vm11, %v8813_v57, %v8834_v25  ;;  %vm18652_vm11 = vmmov %vm18581_vm0 }
0x1a70   :  { %v9674_v44 = vrot.slane %v9535_v33, %v13853_v19  ;;  %v8817_v48 = vrot.slane %v8675_v54, %v13853_v19 }
0x1a72   :  { %v9679_v52 = vsel %vm1233_vm2, %v9678_v45, %v9674_v44 }
0x1a73   :  { %v9701_v39 = vsel %vm18580_vm13, %v9679_v52, %v9700_v29  ;;  %vm18657_vm13 = vmmov %vm18581_vm0 }
0x1a74   :  { %v8678_v58 = vpop.permute.xlu1 %8677 }
0x1a75   :  { %v8821_v47 = vrot.slane %v8678_v58, %v13860_v22 }
0x1a77   :  { %v8822_v13 = vsel %vm1233_vm2, %v8821_v47, %v8817_v48 }
0x1a78   :  { %v8836_v33 = vsel %vm18577_vm15, %v8822_v13, %v8835_v0  ;;  %vm18653_vm15 = vmmov %vm18582_vm10 }
0x1a79   :  { %v9541_v41 = vpop.permute.xlu1 %9540  ;;  %v8842_v55 = vsel %vm18578_vm12, %v8836_v33, -inf  ;;  %vm18654_vm12 = vmmov %vm18579_vm8 }
0x1a7a   :  { %v9683_v62 = vrot.slane %v9541_v41, %v13853_v19  ;;  %8843 = vmax.xlane.f32.xlu0 %v8842_v55  ;;  %vm18655_vm8 = vmmov %vm18569_vm1 }
0x1a7b   :  { %vm18656_vm1 = vmmov %vm18651_vm7 }
0x1a7c   :  { %v9688_v14 = vsel %vm1233_vm2, %v9687_v24, %v9683_v62 }
0x1a7d   :  { %v9702_v27 = vsel %vm18581_vm0, %v9688_v14, %v9701_v39  ;;  %vm18658_vm0 = vmmov %vm18582_vm10 }
0x1a7e   :  { %v9708_v30 = vsel %vm18582_vm10, %v9702_v27, -inf  ;;  %vm18659_vm10 = vmmov %vm18649_vm9 }
0x1a7f   :  { %9709 = vmax.xlane.f32.xlu1 %v9708_v30 }
0x1abc   :  { %v9707_v21 = vpop.xlane.xlu0 %9706 }
0x1abd   :  { %v9716_v11 = vrot.slane %v9707_v21, %v13304_v35  ;;  %v9720_v54 = vrot.slane %v9707_v21, %v13307_v36  ;;  %v9728_v6 = vrot.slane %v9707_v21, %v13331_v46  ;;  %v9732_v59 = vrot.slane %v9707_v21, %v18354_v61 }
0x1abe   :  { %v9724_v57 = vrot.slane %v9707_v21, %v13324_v43  ;;  %v9736_v44 = vrot.slane %v9707_v21, %v18355_v4  ;;  %v9740_v32 = vrot.slane %v9707_v21, %v18356_v28  ;;  %v16974_v8 = vrot.slane %v9707_v21, %v18583_v5 }
0x1abf   :  { %v9793_v12 = vsub.f32 %v16539_v3, %v9716_v11  ;;  %v9794_v10 = vsub.f32 %v16536_v60, %v9716_v11  ;;  %v9795_v20 = vsub.f32 %v16557_v18, %v9720_v54  ;;  %v9799_v40 = vsub.f32 %v16576_v16, %v9728_v6 }
0x1ac0   :  { %v9796_v58 = vsub.f32 %v16548_v37, %v9720_v54  ;;  %v9801_v48 = vsub.f32 %v16592_v51, %v9732_v59  ;;  %v9797_v53 = vsub.f32 %v16563_v50, %v9724_v57  ;;  %v9803_v25 = vsub.f32 %v16618_v34, %v9736_v44  ;;  %v16981_v9 = vpop.xlane.xlu0 %8840 }
0x1ac1   :  { %v9825_v17 = vmul.f32 1.442695, %v9793_v12  ;;  %v9827_v63 = vmul.f32 1.442695, %v9794_v10  ;;  %v9829_v31 = vmul.f32 1.442695, %v9795_v20  ;;  %v9798_v45 = vsub.f32 %v16554_v1, %v9724_v57 }
0x1ac2   :  { %v9837_v47 = vmul.f32 1.442695, %v9799_v40  ;;  %v9831_v2 = vmul.f32 1.442695, %v9796_v58  ;;  %v9841_v15 = vmul.f32 1.442695, %v9801_v48  ;;  %v9805_v33 = vsub.f32 %v16640_v49, %v9740_v32 }
0x1ac3   :  { %12888 = vpow2.f32 %v9825_v17  ;;  %v9833_v13 = vmul.f32 1.442695, %v9797_v53  ;;  %v9845_v7 = vmul.f32 1.442695, %v9803_v25  ;;  %v9800_v41 = vsub.f32 %v16570_v38, %v9728_v6  ;;  %v18584_v53 = vld [vmem:[#allocation63_spill] sm:$0xff] }
0x1ac4   :  { %12890 = vpow2.f32 %v9827_v63  ;;  %v9835_v55 = vmul.f32 1.442695, %v9798_v45  ;;  %v9807_v62 = vsub.f32 %v16658_v23, %v16974_v8  ;;  %v9849_v29 = vmul.f32 1.442695, %v9805_v33 }
0x1ac5   :  { %12892 = vpow2.f32 %v9829_v31  ;;  %v8850_v14 = vrot.slane %v16981_v9, %v13304_v35  ;;  %v9802_v27 = vsub.f32 %v16583_v56, %v9732_v59  ;;  %v9839_v30 = vmul.f32 1.442695, %v9800_v41 }
0x1ac6   :  { %12894 = vpow2.f32 %v9837_v47  ;;  %v9853_v11 = vmul.f32 1.442695, %v9807_v62  ;;  %v8854_v54 = vrot.slane %v16981_v9, %v13307_v36  ;;  %v9804_v10 = vsub.f32 %v16605_v26, %v9736_v44 }
0x1ac7   :  { %12896 = vpow2.f32 %v9831_v2  ;;  %v8927_v6 = vsub.f32 %v16539_v3, %v8850_v14  ;;  %v9843_v20 = vmul.f32 1.442695, %v9802_v27  ;;  %v17009_v40 = vrot.slane %v16981_v9, %v13324_v43 }
0x1ac8   :  { %12898 = vpow2.f32 %v9841_v15  ;;  %v8930_v17 = vsub.f32 %v16548_v37, %v8854_v54  ;;  %v9806_v57 = vsub.f32 %v16629_v42, %v9740_v32  ;;  %v9847_v58 = vmul.f32 1.442695, %v9804_v10 }
0x1ac9   :  { %12900 = vpow2.f32 %v9833_v13  ;;  %v8959_v3 = vmul.f32 1.442695, %v8927_v6  ;;  %v17021_v44 = vrot.slane %v16981_v9, %v13331_v46  ;;  %v8932_v37 = vsub.f32 %v16554_v1, %v17009_v40 }
0x1aca   :  { %12902 = vpow2.f32 %v9845_v7  ;;  %v8965_v48 = vmul.f32 1.442695, %v8930_v17  ;;  %v9808_v2 = vsub.f32 %v18584_v53, %v16974_v8  ;;  %v9851_v32 = vmul.f32 1.442695, %v9806_v57 }
0x1acb   :  { %12904 = vpow2.f32 %v9835_v55  ;;  %v8866_v15 = vrot.slane %v16981_v9, %v18354_v61  ;;  %v8934_v1 = vsub.f32 %v16570_v38, %v17021_v44  ;;  %v8969_v45 = vmul.f32 1.442695, %v8932_v37 }
0x1acc   :  { %12906 = vpow2.f32 %v9849_v29  ;;  %v9855_v8 = vmul.f32 1.442695, %v9808_v2  ;;  %v8928_v33 = vsub.f32 %v16536_v60, %v8850_v14  ;;  %v8870_v41 = vrot.slane %v16981_v9, %v18355_v4 }
0x1acd   :  { %v16971_v0 = vpop.eup %12888  ;;  %12908 = vpow2.f32 %v9839_v30  ;;  %v8936_v55 = vsub.f32 %v16583_v56, %v8866_v15  ;;  %v8973_v38 = vmul.f32 1.442695, %v8934_v1  ;;  %v8929_v29 = vsub.f32 %v16557_v18, %v8854_v54 }
0x1ace   :  { %v16977_v52 = vpop.eup %12890  ;;  %9922 = vperm.xlu1 %12576, %v16971_v0   ;;  %12910 = vpow2.f32 %v9853_v11  ;;  %v8961_v27 = vmul.f32 1.442695, %v8928_v33  ;;  %v18585_v60 = vmov 0   ;;  %v8874_v30 = vrot.slane %v16981_v9, %v18356_v28 }
0x1acf   :  { %9925 = vperm.xlu0 %12578, %v16977_v52   ;;  %v16984_v24 = vpop.eup %12892  ;;  %12912 = vpow2.f32 %v9843_v20  ;;  %v8938_v56 = vsub.f32 %v16605_v26, %v8870_v41  ;;  %v8977_v11 = vmul.f32 1.442695, %v8936_v55  ;;  %v8931_v18 = vsub.f32 %v16563_v50, %v17009_v40 }
0x1ad0   :  { %v16991_v39 = vpop.eup %12894  ;;  %12914 = vpow2.f32 %v8959_v3  ;;  %v8963_v54 = vmul.f32 1.442695, %v8929_v29  ;;  %v8878_v20 = vrot.slane %v16981_v9, %v18583_v5  ;;  %v8940_v26 = vsub.f32 %v16629_v42, %v8874_v30 }
0x1ad1   :  { %v16995_v21 = vpop.eup %12896  ;;  %12916 = vpow2.f32 %v9847_v58  ;;  %v8981_v17 = vmul.f32 1.442695, %v8938_v56  ;;  %v8933_v50 = vsub.f32 %v16576_v16, %v17021_v44  ;;  %v8967_v40 = vmul.f32 1.442695, %v8931_v18 }
0x1ad2   :  { %9928 = vperm.xlu1 %12576, %v16984_v24   ;;  %v17001_v12 = vpop.eup %12898  ;;  %12918 = vpow2.f32 %v8965_v48  ;;  %v8942_v58 = vsub.f32 %v18584_v53, %v8878_v20  ;;  %v8985_v9 = vmul.f32 1.442695, %v8940_v26  ;;  %v8935_v37 = vsub.f32 %v16592_v51, %v8866_v15 }
0x1ad3   :  { %9940 = vperm.xlu0 %12578, %v16991_v39   ;;  %v17005_v59 = vpop.eup %12900  ;;  %12920 = vpow2.f32 %v9851_v32  ;;  %v8971_v48 = vmul.f32 1.442695, %v8933_v50  ;;  %v8937_v2 = vsub.f32 %v16618_v34, %v8870_v41  ;;  %v8939_v1 = vsub.f32 %v16640_v49, %v8874_v30  ;;  %v18602_v50 = vld [vmem:[#allocation65_spill] sm:$0xff] }
0x1ad4   :  { %v17013_v63 = vpop.eup %12902  ;;  %12922 = vpow2.f32 %v8969_v45  ;;  %v8989_v44 = vmul.f32 1.442695, %v8942_v58  ;;  %v8975_v32 = vmul.f32 1.442695, %v8935_v37  ;;  %v8941_v33 = vsub.f32 %v16658_v23, %v8878_v20  ;;  %v18601_v20 = vld [vmem:[#allocation59_spill] sm:$0xff] }
0x1ad5   :  { %v17017_v31 = vpop.eup %12904  ;;  %12924 = vpow2.f32 %v9855_v8  ;;  %v8979_v45 = vmul.f32 1.442695, %v8937_v2  ;;  %v8983_v41 = vmul.f32 1.442695, %v8939_v1  ;;  %v18597_v23 = vmov 1  }
0x1ad6   :  { %9931 = vperm.xlu1 %12576, %v16995_v21   ;;  %v17026_v47 = vpop.eup %12906  ;;  %12926 = vpow2.f32 %v8973_v38  ;;  %v8987_v38 = vmul.f32 1.442695, %v8941_v33 }
0x1ad7   :  { %9946 = vperm.xlu0 %12578, %v17001_v12   ;;  %v17031_v25 = vpop.eup %12908  ;;  %12928 = vpow2.f32 %v8961_v27 }
0x1ad8   :  { %v17038_v13 = vpop.eup %12910  ;;  %12930 = vpow2.f32 %v8977_v11 }
0x1ad9   :  { %v17042_v7 = vpop.eup %12912  ;;  %12932 = vpow2.f32 %v8963_v54 }
0x1ada   :  { %9934 = vperm.xlu1 %12576, %v17005_v59   ;;  %v17048_v62 = vpop.eup %12914  ;;  %12934 = vpow2.f32 %v8981_v17 }
0x1adb   :  { %9952 = vperm.xlu0 %12578, %v17013_v63   ;;  %v17052_v14 = vpop.eup %12916  ;;  %12936 = vpow2.f32 %v8967_v40 }
0x1adc   :  { %v17059_v6 = vpop.eup %12918  ;;  %12938 = vpow2.f32 %v8985_v9  ;;  %v18603_v9 = vld [vmem:[#allocation67_spill] sm:$0xff] }
0x1add   :  { %18586 = vst [vmem:[#allocation95_spill] sm:$0xff] %v17059_v6  ;;  %v17063_v10 = vpop.eup %12920  ;;  %12940 = vpow2.f32 %v8971_v48 }
0x1ade   :  { %9937 = vperm.xlu1 %12576, %v17017_v31   ;;  %v17070_v3 = vpop.eup %12922  ;;  %12942 = vpow2.f32 %v8989_v44  ;;  %v18604_v44 = vld [vmem:[#allocation58_spill] sm:$0xff] }
0x1adf   :  { %9958 = vperm.xlu0 %12578, %v17026_v47   ;;  %18587 = vst [vmem:[#allocation90_spill] sm:$0xff] %v17070_v3  ;;  %v17074_v57 = vpop.eup %12924  ;;  %12944 = vpow2.f32 %v8975_v32 }
0x1ae0   :  { %v17079_v42 = vpop.eup %12926  ;;  %12946 = vpow2.f32 %v8979_v45  ;;  %v18605_v45 = vld [vmem:[#allocation66_spill] sm:$0xff] }
0x1ae1   :  { %18588 = vst [vmem:[#allocation99_spill] sm:$0xff] %v17079_v42  ;;  %v17083_v16 = vpop.eup %12928  ;;  %12948 = vpow2.f32 %v8983_v41 }
0x1ae2   :  { %9943 = vperm.xlu1 %12576, %v17031_v25   ;;  %v17087_v53 = vpop.eup %12930  ;;  %12950 = vpow2.f32 %v8987_v38  ;;  %v18606_v38 = vld [vmem:[#allocation61_spill] sm:$0xff] }
0x1ae3   :  { %9964 = vperm.xlu0 %12578, %v17038_v13   ;;  %18589 = vst [vmem:[#allocation101_spill] sm:$0xff] %v17087_v53  ;;  %v17091_v51 = vpop.eup %12932 }
0x1ae4   :  { %18590 = vst [vmem:[#allocation92_spill] sm:$0xff] %v17091_v51  ;;  %v17094_v15 = vpop.eup %12934 }
0x1ae5   :  { %18591 = vst [vmem:[#allocation94_spill] sm:$0xff] %v17094_v15  ;;  %v17098_v8 = vpop.eup %12936 }
0x1ae6   :  { %9949 = vperm.xlu1 %12576, %v17042_v7   ;;  %18592 = vst [vmem:[#allocation104_spill] sm:$0xff] %v17098_v8  ;;  %v17101_v34 = vpop.eup %12938 }
0x1ae7   :  { %12579 = vset.pattern.permute.xlu0 %v18585_v60  ;;  %18593 = vst [vmem:[#allocation96_spill] sm:$0xff] %v17101_v34  ;;  %v17105_v55 = vpop.eup %12940 }
0x1ae8   :  { %9056 = vperm.xlu0 %12579, %v17048_v62   ;;  %18594 = vst [vmem:[#allocation105_spill] sm:$0xff] %v17105_v55  ;;  %v17108_v49 = vpop.eup %12942 }
0x1ae9   :  { %18595 = vst [vmem:[#allocation103_spill] sm:$0xff] %v17108_v49  ;;  %v17111_v29 = vpop.eup %12944 }
0x1aea   :  { %9955 = vperm.xlu1 %12576, %v17052_v14   ;;  %18596 = vst [vmem:[#allocation26_spill] sm:$0xff] %v17111_v29  ;;  %v17115_v27 = vpop.eup %12946 }
0x1aeb   :  { %18598 = vst [vmem:[#allocation98_spill] sm:$0xff] %v17115_v27  ;;  %v17118_v30 = vpop.eup %12948 }
0x1aec   :  { %9065 = vperm.xlu0 %12579, %v17059_v6   ;;  %18599 = vst [vmem:[#allocation100_spill] sm:$0xff] %v17118_v30  ;;  %v17121_v11 = vpop.eup %12950 }
0x1aed   :  { %18600 = vst [vmem:[#allocation76_spill] sm:$0xff] %v17121_v11 }
0x1aee   :  { %9961 = vperm.xlu1 %12576, %v17063_v10  }
0x1af0   :  { %9071 = vperm.xlu0 %12579, %v17070_v3  }
0x1af2   :  { %9967 = vperm.xlu1 %12576, %v17074_v57  }
0x1af4   :  { %9077 = vperm.xlu0 %12579, %v17079_v42  }
0x1af6   :  { %12580 = vset.pattern.permute.xlu1 %v18585_v60 }
0x1af7   :  { %9059 = vperm.xlu1 %12580, %v17083_v16  }
0x1af8   :  { %9083 = vperm.xlu0 %12579, %v17087_v53  }
0x1afb   :  { %9062 = vperm.xlu1 %12580, %v17091_v51  }
0x1afc   :  { %9089 = vperm.xlu0 %12579, %v17094_v15  }
0x1aff   :  { %9068 = vperm.xlu1 %12580, %v17098_v8  }
0x1b00   :  { %9095 = vperm.xlu0 %12579, %v17101_v34   ;;  %v18607_v34 = vld [vmem:[#allocation68_spill] sm:$0xff] }
0x1b03   :  { %9074 = vperm.xlu1 %12580, %v17105_v55  }
0x1b04   :  { %9101 = vperm.xlu0 %12579, %v17108_v49  }
0x1b07   :  { %9080 = vperm.xlu1 %12580, %v17111_v29   ;;  %v18609_v29 = vld [vmem:[#allocation60_spill] sm:$0xff] }
0x1b08   :  { %12582 = vset.pattern.permute.xlu0 %v18597_v23 }
0x1b0b   :  { %9086 = vperm.xlu1 %12580, %v17115_v27  }
0x1b0c   :  { %v9710_v56 = vpop.xlane.xlu1 %9709 }
0x1b0d   :  { %v9748_v18 = vrot.slane %v9710_v56, %v13304_v35  ;;  %v9756_v54 = vrot.slane %v9710_v56, %v13324_v43  ;;  %v9752_v17 = vrot.slane %v9710_v56, %v13307_v36  ;;  %v9760_v58 = vrot.slane %v9710_v56, %v13331_v46 }
0x1b0e   :  { %v9764_v1 = vrot.slane %v9710_v56, %v18354_v61  ;;  %v9772_v53 = vrot.slane %v9710_v56, %v18356_v28 }
0x1b0f   :  { %9092 = vperm.xlu1 %12580, %v17118_v30   ;;  %v9809_v26 = vsub.f32 %v18601_v20, %v9748_v18  ;;  %v9810_v40 = vsub.f32 %v18602_v50, %v9748_v18  ;;  %v9813_v37 = vsub.f32 %v18603_v9, %v9756_v54  ;;  %v9811_v2 = vsub.f32 %v18604_v44, %v9752_v17 }
0x1b10   :  { %v9815_v33 = vsub.f32 %v18605_v45, %v9760_v58  ;;  %v9812_v49 = vsub.f32 %v18606_v38, %v9752_v17  ;;  %v9768_v18 = vrot.slane %v9710_v56, %v18355_v4  ;;  %v9817_v30 = vsub.f32 %v18607_v34, %v9764_v1  ;;  %v18611_v17 = vld [vmem:[#allocation71_spill] sm:$0xff] }
0x1b11   :  { %v9857_v48 = vmul.f32 1.442695, %v9809_v26  ;;  %v9859_v32 = vmul.f32 1.442695, %v9810_v40  ;;  %v9865_v41 = vmul.f32 1.442695, %v9813_v37 }
0x1b12   :  { %v9869_v15 = vmul.f32 1.442695, %v9815_v33  ;;  %v18608_v26 = vld [vmem:[#allocation73_spill] sm:$0xff]  ;;  %v9863_v40 = vmul.f32 1.442695, %v9812_v49  ;;  %v9819_v42 = vsub.f32 %v18609_v29, %v9768_v18  ;;  %v9776_v33 = vrot.slane %v9710_v56, %v18583_v5 }
0x1b13   :  { %9098 = vperm.xlu1 %12580, %v17121_v11   ;;  %12952 = vpow2.f32 %v9857_v48  ;;  %v9861_v11 = vmul.f32 1.442695, %v9811_v2  ;;  %v9814_v27 = vsub.f32 %v18608_v26, %v9756_v54  ;;  %v9873_v37 = vmul.f32 1.442695, %v9817_v30  ;;  %v18615_v30 = vld [vmem:[#allocation75_spill] sm:$0xff] }
0x1b14   :  { %12954 = vpow2.f32 %v9859_v32  ;;  %v9816_v2 = vsub.f32 %v18611_v17, %v9760_v58  ;;  %v9877_v49 = vmul.f32 1.442695, %v9819_v42  ;;  %v9818_v3 = vsub.f32 %v18615_v30, %v9764_v1  ;;  %v18619_v1 = vld [vmem:[#allocation91_spill] sm:$0xff] }
0x1b15   :  { %12956 = vpow2.f32 %v9865_v41  ;;  %v9867_v32 = vmul.f32 1.442695, %v9814_v27  ;;  %v18612_v41 = vld [vmem:[#allocation74_spill] sm:$0xff]  ;;  %v18616_v27 = vld [vmem:[#allocation97_spill] sm:$0xff] }
0x1b16   :  { %12958 = vpow2.f32 %v9861_v11  ;;  %v9821_v54 = vsub.f32 %v18612_v41, %v9772_v53  ;;  %v9871_v58 = vmul.f32 1.442695, %v9816_v2  ;;  %v9823_v56 = vsub.f32 %v18616_v27, %v9776_v33 }
0x1b17   :  { %12581 = vset.pattern.permute.xlu1 %v18597_v23  ;;  %12960 = vpow2.f32 %v9869_v15  ;;  %v17151_v15 = vpop.xlane.xlu0 %8843  ;;  %v9875_v8 = vmul.f32 1.442695, %v9818_v3  ;;  %v9820_v2 = vsub.f32 %v18619_v1, %v9768_v18  ;;  %v18622_v3 = vld [vmem:[#allocation93_spill] sm:$0xff] }
0x1b18   :  { %12962 = vpow2.f32 %v9863_v40  ;;  %v9881_v40 = vmul.f32 1.442695, %v9821_v54  ;;  %v8882_v42 = vrot.slane %v17151_v15, %v13304_v35  ;;  %v8886_v54 = vrot.slane %v17151_v15, %v13307_v36 }
0x1b19   :  { %12964 = vpow2.f32 %v9873_v37 }
0x1b1a   :  { %12966 = vpow2.f32 %v9867_v32  ;;  %v9885_v32 = vmul.f32 1.442695, %v9823_v56  ;;  %v8890_v56 = vrot.slane %v17151_v15, %v13324_v43 }
0x1b1b   :  { %12968 = vpow2.f32 %v9877_v49  ;;  %v8944_v49 = vsub.f32 %v18602_v50, %v8882_v42 }
0x1b1c   :  { %12970 = vpow2.f32 %v9871_v58  ;;  %v9822_v58 = vsub.f32 %v18622_v3, %v9772_v53 }
0x1b1d   :  { %v17141_v48 = vpop.eup %12952  ;;  %12972 = vpow2.f32 %v9881_v40  ;;  %v8946_v40 = vsub.f32 %v18606_v38, %v8886_v54 }
0x1b1e   :  { %18610 = vst [vmem:[#allocation102_spill] sm:$0xff] %v17141_v48  ;;  %9970 = vperm.xlu1 %12581, %v17141_v48   ;;  %v17147_v11 = vpop.eup %12954  ;;  %12974 = vpow2.f32 %v9875_v8  ;;  %v18625_v8 = vld [vmem:[#allocation72_spill] sm:$0xff]  ;;  %v9883_v53 = vmul.f32 1.442695, %v9822_v58  ;;  %v8898_v58 = vrot.slane %v17151_v15, %v18354_v61 }
0x1b1f   :  { %18613 = vst [vmem:[#allocation22_spill] sm:$0xff] %v17147_v11  ;;  %v17149_v55 = vpop.eup %12956  ;;  %12976 = vpow2.f32 %v9885_v32  ;;  %v8894_v32 = vrot.slane %v17151_v15, %v13331_v46  ;;  %v8997_v38 = vmul.f32 1.442695, %v8946_v40  ;;  %v8945_v40 = vsub.f32 %v18604_v44, %v8886_v54 }
0x1b20   :  { %18614 = vst [vmem:[#allocation20_spill] sm:$0xff] %v17149_v55  ;;  %9982 = vperm.xlu0 %12582, %v17149_v55   ;;  %v17157_v37 = vpop.eup %12958  ;;  %v8906_v54 = vrot.slane %v17151_v15, %v18356_v28 }
0x1b21   :  { %18617 = vst [vmem:[#allocation79_spill] sm:$0xff] %v17157_v37  ;;  %v17161_v48 = vpop.eup %12960  ;;  %v8995_v44 = vmul.f32 1.442695, %v8945_v40 }
0x1b22   :  { %9973 = vperm.xlu1 %12581, %v17147_v11   ;;  %18618 = vst [vmem:[#allocation21_spill] sm:$0xff] %v17161_v48  ;;  %v17166_v11 = vpop.eup %12962  ;;  %v8956_v40 = vsub.f32 %v18622_v3, %v8906_v54 }
0x1b23   :  { %18620 = vst [vmem:[#allocation86_spill] sm:$0xff] %v17166_v11  ;;  %v17171_v55 = vpop.eup %12964 }
0x1b24   :  { %9988 = vperm.xlu0 %12582, %v17161_v48   ;;  %18621 = vst [vmem:[#allocation23_spill] sm:$0xff] %v17171_v55  ;;  %v17176_v18 = vpop.eup %12966  ;;  %v8993_v48 = vmul.f32 1.442695, %v8944_v49  ;;  %v9017_v3 = vmul.f32 1.442695, %v8956_v40 }
0x1b25   :  { %18623 = vst [vmem:[#allocation87_spill] sm:$0xff] %v17176_v18  ;;  %v17181_v50 = vpop.eup %12968 }
0x1b26   :  { %9976 = vperm.xlu1 %12581, %v17157_v37   ;;  %v9879_v37 = vmul.f32 1.442695, %v9820_v2  ;;  %18624 = vst [vmem:[#allocation81_spill] sm:$0xff] %v17181_v50  ;;  %v17186_v2 = vpop.eup %12970 }
0x1b27   :  { %18626 = vst [vmem:[#allocation88_spill] sm:$0xff] %v17186_v2  ;;  %v17191_v49 = vpop.eup %12972 }
0x1b28   :  { %9994 = vperm.xlu0 %12582, %v17171_v55   ;;  %12978 = vpow2.f32 %v9879_v37  ;;  %v8948_v55 = vsub.f32 %v18608_v26, %v8890_v56  ;;  %18627 = vst [vmem:[#allocation83_spill] sm:$0xff] %v17191_v49  ;;  %v17196_v37 = vpop.eup %12974 }
0x1b29   :  { %12980 = vpow2.f32 %v8993_v48  ;;  %18628 = vst [vmem:[#allocation62_spill] sm:$0xff] %v17196_v37  ;;  %v17201_v48 = vpop.eup %12976 }
0x1b2a   :  { %9979 = vperm.xlu1 %12581, %v17166_v11   ;;  %v9824_v11 = vsub.f32 %v18625_v8, %v9776_v33  ;;  %12982 = vpow2.f32 %v9883_v53  ;;  %v9001_v26 = vmul.f32 1.442695, %v8948_v55  ;;  %18629 = vst [vmem:[#allocation85_spill] sm:$0xff] %v17201_v48 }
0x1b2b   :  { %12984 = vpow2.f32 %v8997_v38  ;;  %v8947_v38 = vsub.f32 %v18603_v9, %v8890_v56  ;;  %v8910_v56 = vrot.slane %v17151_v15, %v18583_v5 }
0x1b2c   :  { %10000 = vperm.xlu0 %12582, %v17181_v50   ;;  %v8943_v50 = vsub.f32 %v18601_v20, %v8882_v42  ;;  %v9887_v33 = vmul.f32 1.442695, %v9824_v11  ;;  %v8902_v11 = vrot.slane %v17151_v15, %v18355_v4  ;;  %v8952_v42 = vsub.f32 %v18615_v30, %v8898_v58 }
0x1b2d   :  { %v8999_v9 = vmul.f32 1.442695, %v8947_v38  ;;  %v8958_v15 = vsub.f32 %v18625_v8, %v8910_v56 }
0x1b2e   :  { %9985 = vperm.xlu1 %12581, %v17176_v18   ;;  %v8950_v18 = vsub.f32 %v18611_v17, %v8894_v32  ;;  %v8991_v20 = vmul.f32 1.442695, %v8943_v50  ;;  %12986 = vpow2.f32 %v9887_v33  ;;  %v8954_v30 = vsub.f32 %v18619_v1, %v8902_v11 }
0x1b2f   :  { %12988 = vpow2.f32 %v9001_v26  ;;  %v8949_v26 = vsub.f32 %v18605_v45, %v8894_v32  ;;  %v8951_v45 = vsub.f32 %v18607_v34, %v8898_v58  ;;  %v8953_v58 = vsub.f32 %v18609_v29, %v8902_v11 }
0x1b30   :  { %10006 = vperm.xlu0 %12582, %v17191_v49   ;;  %v9005_v53 = vmul.f32 1.442695, %v8950_v18  ;;  %12990 = vpow2.f32 %v8991_v20  ;;  %v9009_v18 = vmul.f32 1.442695, %v8952_v42  ;;  %v9013_v1 = vmul.f32 1.442695, %v8954_v30 }
0x1b31   :  { %v9003_v32 = vmul.f32 1.442695, %v8949_v26  ;;  %v9007_v34 = vmul.f32 1.442695, %v8951_v45  ;;  %v9021_v8 = vmul.f32 1.442695, %v8958_v15  ;;  %v8955_v45 = vsub.f32 %v18612_v41, %v8906_v54 }
0x1b32   :  { %9991 = vperm.xlu1 %12581, %v17186_v2   ;;  %v17209_v17 = vpop.eup %12978  ;;  %12992 = vpow2.f32 %v9005_v53 }
0x1b33   :  { %18630 = vst [vmem:[#allocation89_spill] sm:$0xff] %v17209_v17  ;;  %v17211_v55 = vpop.eup %12980  ;;  %12994 = vpow2.f32 %v8995_v44 }
0x1b34   :  { %10012 = vperm.xlu0 %12582, %v17201_v48   ;;  %18631 = vst [vmem:[#allocation78_spill] sm:$0xff] %v17211_v55  ;;  %v17220_v50 = vpop.eup %12982  ;;  %12996 = vpow2.f32 %v9009_v18 }
0x1b35   :  { %18632 = vst [vmem:[#allocation82_spill] sm:$0xff] %v17220_v50  ;;  %v17222_v33 = vpop.eup %12984  ;;  %12998 = vpow2.f32 %v8999_v9 }
0x1b36   :  { %9997 = vperm.xlu1 %12581, %v17196_v37   ;;  %18633 = vst [vmem:[#allocation77_spill] sm:$0xff] %v17222_v33  ;;  %13000 = vpow2.f32 %v9013_v1 }
0x1b37   :  { %13002 = vpow2.f32 %v9003_v32  ;;  %v9011_v32 = vmul.f32 1.442695, %v8953_v58 }
0x1b38   :  { %12584 = vset.pattern.permute.xlu0 %v18585_v60  ;;  %v17230_v20 = vpop.eup %12986  ;;  %13004 = vpow2.f32 %v9017_v3 }
0x1b39   :  { %9107 = vperm.xlu0 %12584, %v17211_v55   ;;  %18634 = vst [vmem:[#allocation80_spill] sm:$0xff] %v17230_v20  ;;  %v17232_v42 = vpop.eup %12988  ;;  %13006 = vpow2.f32 %v9007_v34  ;;  %v8957_v34 = vsub.f32 %v18616_v27, %v8910_v56 }
0x1b3a   :  { %10003 = vperm.xlu1 %12581, %v17209_v17   ;;  %18635 = vst [vmem:[#allocation56_spill] sm:$0xff] %v17232_v42  ;;  %v17242_v44 = vpop.eup %12990  ;;  %13008 = vpow2.f32 %v9021_v8 }
0x1b3b   :  { %18636 = vst [vmem:[#allocation24_spill] sm:$0xff] %v17242_v44  ;;  %13010 = vpow2.f32 %v9011_v32  ;;  %v9019_v8 = vmul.f32 1.442695, %v8957_v34 }
0x1b3c   :  { %v17244_v30 = vpop.eup %12992 }
0x1b3d   :  { %9113 = vperm.xlu0 %12584, %v17222_v33   ;;  %18637 = vst [vmem:[#allocation30_spill] sm:$0xff] %v17244_v30  ;;  %v17254_v9 = vpop.eup %12994 }
0x1b3e   :  { %10009 = vperm.xlu1 %12581, %v17220_v50   ;;  %18638 = vst [vmem:[#allocation28_spill] sm:$0xff] %v17254_v9  ;;  %v17256_v40 = vpop.eup %12996 }
0x1b3f   :  { %18639 = vst [vmem:[#allocation29_spill] sm:$0xff] %v17256_v40  ;;  %v17265_v11 = vpop.eup %12998 }
0x1b40   :  { %18640 = vst [vmem:[#allocation35_spill] sm:$0xff] %v17265_v11  ;;  %v17267_v15 = vpop.eup %13000 }
0x1b41   :  { %9119 = vperm.xlu0 %12584, %v17232_v42   ;;  %18641 = vst [vmem:[#allocation27_spill] sm:$0xff] %v17267_v15  ;;  %v17274_v41 = vpop.eup %13002 }
0x1b42   :  { %10015 = vperm.xlu1 %12581, %v17230_v20   ;;  %18642 = vst [vmem:[#allocation36_spill] sm:$0xff] %v17274_v41  ;;  %v17276_v54 = vpop.eup %13004 }
0x1b43   :  { %18643 = vst [vmem:[#allocation39_spill] sm:$0xff] %v17276_v54  ;;  %v17280_v42 = vpop.eup %13006 }
0x1b44   :  { %18644 = vst [vmem:[#allocation40_spill] sm:$0xff] %v17280_v42 }
0x1b45   :  { %9125 = vperm.xlu0 %12584, %v17244_v30  }
0x1b46   :  { %12583 = vset.pattern.permute.xlu1 %v18585_v60 }
0x1b47   :  { %9104 = vperm.xlu1 %12583, %v17242_v44  }
0x1b49   :  { %9131 = vperm.xlu0 %12584, %v17256_v40   ;;  %v9015_v40 = vmul.f32 1.442695, %v8955_v45 }
0x1b4b   :  { %9110 = vperm.xlu1 %12583, %v17254_v9   ;;  %13012 = vpow2.f32 %v9015_v40 }
0x1b4c   :  { %13014 = vpow2.f32 %v9019_v8 }
0x1b4d   :  { %v17235_v53 = vpop.permute.xlu1 %9922  ;;  %9137 = vperm.xlu0 %12584, %v17267_v15  }
0x1b4e   :  { %v17239_v38 = vpop.permute.xlu0 %9925 }
0x1b4f   :  { %9116 = vperm.xlu1 %12583, %v17265_v11   ;;  %v17282_v11 = vpop.eup %13008  ;;  %v10024_v50 = vrot.slane %v17239_v38, %v13860_v22 }
0x1b50   :  { %18645 = vst [vmem:[#allocation43_spill] sm:$0xff] %v17282_v11  ;;  %v17286_v45 = vpop.eup %13010 }
0x1b51   :  { %v17247_v18 = vpop.permute.xlu1 %9928  ;;  %9143 = vperm.xlu0 %12584, %v17276_v54   ;;  %18646 = vst [vmem:[#allocation44_spill] sm:$0xff] %v17286_v45 }
0x1b52   :  { %v17252_v26 = vpop.permute.xlu0 %9940  ;;  %v10029_v49 = vrot.slane %v17247_v18, %v13853_v19 }
0x1b53   :  { %9122 = vperm.xlu1 %12583, %v17274_v41  }
0x1b55   :  { %v17258_v1 = vpop.permute.xlu1 %9931  ;;  %9149 = vperm.xlu0 %12584, %v17282_v11   ;;  %v17292_v34 = vpop.eup %13012 }
0x1b56   :  { %v17263_v29 = vpop.permute.xlu0 %9946  ;;  %18647 = vst [vmem:[#allocation47_spill] sm:$0xff] %v17292_v34  ;;  %v17295_v11 = vpop.eup %13014  ;;  %v10033_v48 = vrot.slane %v17258_v1, %v13860_v22  ;;  %v10047_v1 = vrot.slane %v17252_v26, %v13853_v19 }
0x1b57   :  { %9128 = vperm.xlu1 %12583, %v17280_v42   ;;  %18648 = vst [vmem:[#allocation48_spill] sm:$0xff] %v17295_v11  ;;  %v10056_v38 = vrot.slane %v17263_v29, %v13853_v19 }
0x1b59   :  { %v9935_v3 = vpop.permute.xlu1 %9934  ;;  %12585 = vset.pattern.permute.xlu0 %v18597_v23 }
0x1b5a   :  { %v17272_v30 = vpop.permute.xlu0 %9952 }
0x1b5b   :  { %9134 = vperm.xlu1 %12583, %v17286_v45  }
0x1b5d   :  { %v9938_v58 = vpop.permute.xlu1 %9937 }
0x1b5e   :  { %v9959_v15 = vpop.permute.xlu0 %9958 }
0x1b5f   :  { %9140 = vperm.xlu1 %12583, %v17292_v34   ;;  %v10042_v34 = vrot.slane %v9938_v58, %v13860_v22  ;;  %v10034_v58 = vsel %vm1233_vm2, %v10033_v48, %v10029_v49  ;;  %v10065_v49 = vrot.slane %v17272_v30, %v13853_v19 }
0x1b61   :  { %v9944_v27 = vpop.permute.xlu1 %9943 }
0x1b62   :  { %v9965_v56 = vpop.permute.xlu0 %9964  ;;  %v10051_v17 = vrot.slane %v9944_v27, %v13860_v22 }
0x1b63   :  { %9146 = vperm.xlu1 %12583, %v17295_v11   ;;  %v10020_v11 = vrot.slane %v17235_v53, %v13853_v19 }
0x1b64   :  { %v10052_v6 = vsel %vm1233_vm2, %v10051_v17, %v10047_v1 }
0x1b65   :  { %v9950_v32 = vpop.permute.xlu1 %9949  ;;  %v10025_v27 = vsel %vm1233_vm2, %v10024_v50, %v10020_v11  ;;  %v10083_v50 = vrot.slane %v9965_v56, %v13853_v19 }
0x1b66   :  { %v10060_v2 = vrot.slane %v9950_v32, %v13860_v22  ;;  %v10161_v51 = vsel %vm1370_vm3, %v10034_v58, %v10025_v27 }
0x1b67   :  { %v17290_v40 = vpop.permute.xlu0 %9056  ;;  %12586 = vset.pattern.permute.xlu1 %v18597_v23  ;;  %v10038_v23 = vrot.slane %v9935_v3, %v13853_v19 }
0x1b68   :  { %v10061_v48 = vsel %vm1233_vm2, %v10060_v2, %v10056_v38  ;;  %v9154_v1 = vrot.slane %v17290_v40, %v13853_v19 }
0x1b69   :  { %v9956_v54 = vpop.permute.xlu1 %9955  ;;  %v10043_v53 = vsel %vm1233_vm2, %v10042_v34, %v10038_v23  ;;  %v10074_v23 = vrot.slane %v9959_v15, %v13853_v19 }
0x1b6a   :  { %v10069_v18 = vrot.slane %v9956_v54, %v13860_v22  ;;  %v10162_v29 = vsel %vm1372_vm4, %v10043_v53, %v10161_v51 }
0x1b6b   :  { %v9066_v41 = vpop.permute.xlu0 %9065  ;;  %v10163_v17 = vsel %vm1374_vm5, %v10052_v6, %v10162_v29 }
0x1b6c   :  { %v10164_v54 = vsel %vm18649_vm9, %v10061_v48, %v10163_v17  ;;  %v9167_v15 = vrot.slane %v9066_v41, %v13860_v22  ;;  %vm18660_vm9 = vmmov %vm18650_vm6 }
0x1b6d   :  { %v9962_v42 = vpop.permute.xlu1 %9961 }
0x1b6e   :  { %v10078_v3 = vrot.slane %v9962_v42, %v13860_v22  ;;  %v10070_v42 = vsel %vm1233_vm2, %v10069_v18, %v10065_v49 }
0x1b6f   :  { %v9072_v33 = vpop.permute.xlu0 %9071  ;;  %v10165_v38 = vsel %vm18650_vm6, %v10070_v42, %v10164_v54  ;;  %vm18661_vm6 = vmmov %vm18656_vm1 }
0x1b70   :  { %v10079_v30 = vsel %vm1233_vm2, %v10078_v3, %v10074_v23 }
0x1b71   :  { %v9968_v8 = vpop.permute.xlu1 %9967  ;;  %v10166_v41 = vsel %vm18651_vm7, %v10079_v30, %v10165_v38  ;;  %vm18662_vm7 = vmmov %vm18652_vm11 }
0x1b72   :  { %v10087_v26 = vrot.slane %v9968_v8, %v13860_v22 }
0x1b73   :  { %v9078_v9 = vpop.permute.xlu0 %9077 }
0x1b74   :  { %v10088_v6 = vsel %vm1233_vm2, %v10087_v26, %v10083_v50 }
0x1b75   :  { %v10167_v40 = vsel %vm18652_vm11, %v10088_v6, %v10166_v41  ;;  %vm18663_vm11 = vmmov %vm18658_vm0 }
0x1b76   :  { %v9060_v45 = vpop.permute.xlu1 %9059  ;;  %v10177_v29 = vsel %vm18653_vm15, %v10167_v40, 0.0  ;;  %vm18664_vm15 = vmmov %vm18659_vm10 }
0x1b77   :  { %v9084_v44 = vpop.permute.xlu0 %9083  ;;  %v9158_v51 = vrot.slane %v9060_v45, %v13860_v22 }
0x1b7a   :  { %v9063_v55 = vpop.permute.xlu1 %9062 }
0x1b7b   :  { %v9090_v60 = vpop.permute.xlu0 %9089  ;;  %v9163_v11 = vrot.slane %v9063_v55, %v13853_v19  ;;  %v9176_v55 = vrot.slane %v9072_v33, %v13860_v22  ;;  %v9159_v33 = vsel %vm1233_vm2, %v9158_v51, %v9154_v1 }
0x1b7c   :  { %v9203_v3 = vrot.slane %v9090_v60, %v13860_v22 }
0x1b7d   :  { %v9168_v53 = vsel %vm1233_vm2, %v9167_v15, %v9163_v11 }
0x1b7e   :  { %v9069_v20 = vpop.permute.xlu1 %9068  ;;  %v9295_v49 = vsel %vm1370_vm3, %v9168_v53, %v9159_v33 }
0x1b7f   :  { %v9096_v34 = vpop.permute.xlu0 %9095  ;;  %v9172_v2 = vrot.slane %v9069_v20, %v13853_v19  ;;  %v9185_v20 = vrot.slane %v9078_v9, %v13860_v22 }
0x1b80   :  { %v9212_v48 = vrot.slane %v9096_v34, %v13860_v22 }
0x1b81   :  { %v9177_v18 = vsel %vm1233_vm2, %v9176_v55, %v9172_v2 }
0x1b82   :  { %v9075_v37 = vpop.permute.xlu1 %9074  ;;  %v9296_v23 = vsel %vm1372_vm4, %v9177_v18, %v9295_v49 }
0x1b83   :  { %v9181_v56 = vrot.slane %v9075_v37, %v13853_v19  ;;  %v9194_v37 = vrot.slane %v9084_v44, %v13860_v22  ;;  %v9102_v26 = vpop.permute.xlu0 %9101 }
0x1b84   :  { %v9221_v11 = vrot.slane %v9102_v26, %v13860_v22 }
0x1b86   :  { %v9081_v32 = vpop.permute.xlu1 %9080 }
0x1b87   :  { %v9190_v58 = vrot.slane %v9081_v32, %v13853_v19  ;;  %v9186_v32 = vsel %vm1233_vm2, %v9185_v20, %v9181_v56  ;;  %10178 = vadd.xlane.f32.xlu1 %v10177_v29 }
0x1b88   :  { %v9297_v17 = vsel %vm1374_vm5, %v9186_v32, %v9296_v23 }
0x1b89   :  { %v9195_v44 = vsel %vm1233_vm2, %v9194_v37, %v9190_v58 }
0x1b8a   :  { %v9087_v8 = vpop.permute.xlu1 %9086  ;;  %v9298_v54 = vsel %vm18654_vm12, %v9195_v44, %v9297_v17  ;;  %vm18665_vm12 = vmmov %vm18655_vm8 }
0x1b8b   :  { %v9199_v45 = vrot.slane %v9087_v8, %v13853_v19 }
0x1b8d   :  { %v9204_v50 = vsel %vm1233_vm2, %v9203_v3, %v9199_v45 }
0x1b8e   :  { %v9093_v27 = vpop.permute.xlu1 %9092  ;;  %v9299_v34 = vsel %vm18655_vm8, %v9204_v50, %v9298_v54  ;;  %vm18666_vm8 = vmmov %vm18656_vm1 }
0x1b8f   :  { %v9208_v9 = vrot.slane %v9093_v27, %v13853_v19 }
0x1b91   :  { %v9213_v60 = vsel %vm1233_vm2, %v9212_v48, %v9208_v9 }
0x1b92   :  { %v9099_v42 = vpop.permute.xlu1 %9098  ;;  %v9300_v8 = vsel %vm18656_vm1, %v9213_v60, %v9299_v34  ;;  %vm18667_vm1 = vmmov %vm18662_vm7 }
0x1b93   :  { %v9217_v30 = vrot.slane %v9099_v42, %v13853_v19 }
0x1b95   :  { %v9222_v2 = vsel %vm1233_vm2, %v9221_v11, %v9217_v30 }
0x1b96   :  { %v9301_v15 = vsel %vm18657_vm13, %v9222_v2, %v9300_v8  ;;  %vm18668_vm13 = vmmov %vm18658_vm0 }
0x1b97   :  { %v9311_v51 = vsel %vm18658_vm0, %v9301_v15, 0.0  ;;  %vm18717_vm0 = vmmov %vm18659_vm10 }
0x1b98   :  { %9312 = vadd.xlane.f32.xlu0 %v9311_v51 }
0x1b9d   :  { %v9971_v56 = vpop.permute.xlu1 %9970 }
0x1b9e   :  { %v10092_v23 = vrot.slane %v9971_v56, %v13853_v19 }
0x1b9f   :  { %v9983_v6 = vpop.permute.xlu0 %9982 }
0x1ba0   :  { %v10110_v26 = vrot.slane %v9983_v6, %v13853_v19 }
0x1ba1   :  { %v9974_v1 = vpop.permute.xlu1 %9973 }
0x1ba2   :  { %v10096_v32 = vrot.slane %v9974_v1, %v13860_v22 }
0x1ba3   :  { %v9989_v55 = vpop.permute.xlu0 %9988 }
0x1ba4   :  { %v10119_v29 = vrot.slane %v9989_v55, %v13853_v19  ;;  %v10097_v54 = vsel %vm1233_vm2, %v10096_v32, %v10092_v23 }
0x1ba5   :  { %v9977_v58 = vpop.permute.xlu1 %9976 }
0x1ba6   :  { %v10101_v9 = vrot.slane %v9977_v58, %v13853_v19 }
0x1ba7   :  { %v9995_v38 = vpop.permute.xlu0 %9994 }
0x1ba8   :  { %v10128_v60 = vrot.slane %v9995_v38, %v13853_v19 }
0x1ba9   :  { %v9980_v20 = vpop.permute.xlu1 %9979 }
0x1baa   :  { %v10105_v27 = vrot.slane %v9980_v20, %v13860_v22 }
0x1bab   :  { %v10001_v53 = vpop.permute.xlu0 %10000 }
0x1bac   :  { %v10106_v50 = vsel %vm1233_vm2, %v10105_v27, %v10101_v9  ;;  %v10137_v30 = vrot.slane %v10001_v53, %v13853_v19 }
0x1bad   :  { %v9986_v41 = vpop.permute.xlu1 %9985  ;;  %v10168_v15 = vsel %vm1370_vm3, %v10106_v50, %v10097_v54 }
0x1bae   :  { %v10114_v33 = vrot.slane %v9986_v41, %v13860_v22 }
0x1baf   :  { %v10007_v45 = vpop.permute.xlu0 %10006 }
0x1bb0   :  { %v10115_v42 = vsel %vm1233_vm2, %v10114_v33, %v10110_v26  ;;  %v10146_v51 = vrot.slane %v10007_v45, %v13853_v19 }
0x1bb1   :  { %v9992_v37 = vpop.permute.xlu1 %9991  ;;  %v10169_v6 = vsel %vm1372_vm4, %v10115_v42, %v10168_v15 }
0x1bb2   :  { %v10123_v49 = vrot.slane %v9992_v37, %v13860_v22 }
0x1bb3   :  { %v10013_v18 = vpop.permute.xlu0 %10012 }
0x1bb4   :  { %v10124_v34 = vsel %vm1233_vm2, %v10123_v49, %v10119_v29  ;;  %v10155_v20 = vrot.slane %v10013_v18, %v13853_v19 }
0x1bb5   :  { %v9998_v40 = vpop.permute.xlu1 %9997  ;;  %v10170_v55 = vsel %vm1374_vm5, %v10124_v34, %v10169_v6 }
0x1bb6   :  { %v10132_v44 = vrot.slane %v9998_v40, %v13860_v22 }
0x1bb8   :  { %v9108_v48 = vpop.permute.xlu0 %9107  ;;  %v10133_v56 = vsel %vm1233_vm2, %v10132_v44, %v10128_v60 }
0x1bb9   :  { %v10004_v3 = vpop.permute.xlu1 %10003  ;;  %v10171_v53 = vsel %vm18659_vm10, %v10133_v56, %v10170_v55  ;;  %v9230_v15 = vrot.slane %v9108_v48, %v13860_v22  ;;  %vm18718_vm10 = vmmov %vm18660_vm9 }
0x1bba   :  { %v10141_v17 = vrot.slane %v10004_v3, %v13860_v22 }
0x1bbc   :  { %v9114_v2 = vpop.permute.xlu0 %9113  ;;  %v10142_v1 = vsel %vm1233_vm2, %v10141_v17, %v10137_v30 }
0x1bbd   :  { %v10010_v11 = vpop.permute.xlu1 %10009  ;;  %v10172_v45 = vsel %vm18660_vm9, %v10142_v1, %v10171_v53  ;;  %vm18719_vm9 = vmmov %vm18661_vm6 }
0x1bbe   :  { %v10150_v8 = vrot.slane %v10010_v11, %v13860_v22  ;;  %v9239_v11 = vrot.slane %v9114_v2, %v13860_v22 }
0x1bc0   :  { %v10151_v58 = vsel %vm1233_vm2, %v10150_v8, %v10146_v51  ;;  %v9120_v41 = vpop.permute.xlu0 %9119 }
0x1bc1   :  { %v10016_v38 = vpop.permute.xlu1 %10015  ;;  %v10173_v27 = vsel %vm18661_vm6, %v10151_v58, %v10172_v45  ;;  %v9248_v34 = vrot.slane %v9120_v41, %v13860_v22  ;;  %vm18720_vm6 = vmmov %vm18667_vm1 }
0x1bc2   :  { %v10159_v37 = vrot.slane %v10016_v38, %v13860_v22 }
0x1bc4   :  { %v10160_v40 = vsel %vm1233_vm2, %v10159_v37, %v10155_v20  ;;  %v9126_v9 = vpop.permute.xlu0 %9125 }
0x1bc5   :  { %v10174_v33 = vsel %vm18662_vm7, %v10160_v40, %v10173_v27  ;;  %v9257_v51 = vrot.slane %v9126_v9, %v13860_v22  ;;  %vm18721_vm7 = vmmov %vm18717_vm0 }
0x1bc6   :  { %v9105_v3 = vpop.permute.xlu1 %9104  ;;  %v10180_v32 = vsel %vm18663_vm11, %v10174_v33, 0.0  ;;  %vm18722_vm11 = vmmov %vm18718_vm10 }
0x1bc7   :  { %10181 = vadd.xlane.f32.xlu0 %v10180_v32  ;;  %v9226_v54 = vrot.slane %v9105_v3, %v13853_v19 }
0x1bc8   :  { %v9132_v18 = vpop.permute.xlu0 %9131 }
0x1bc9   :  { %v9266_v1 = vrot.slane %v9132_v18, %v13860_v22  ;;  %v9231_v58 = vsel %vm1233_vm2, %v9230_v15, %v9226_v54 }
0x1bca   :  { %v9111_v49 = vpop.permute.xlu1 %9110 }
0x1bcb   :  { %v9235_v50 = vrot.slane %v9111_v49, %v13853_v19 }
0x1bcc   :  { %v9138_v23 = vpop.permute.xlu0 %9137 }
0x1bcd   :  { %v9240_v56 = vsel %vm1233_vm2, %v9239_v11, %v9235_v50  ;;  %v9275_v38 = vrot.slane %v9138_v23, %v13860_v22 }
0x1bce   :  { %v9117_v26 = vpop.permute.xlu1 %9116  ;;  %v9302_v48 = vsel %vm1370_vm3, %v9240_v56, %v9231_v58 }
0x1bcf   :  { %v9244_v60 = vrot.slane %v9117_v26, %v13853_v19 }
0x1bd0   :  { %v9144_v17 = vpop.permute.xlu0 %9143 }
0x1bd1   :  { %v9249_v2 = vsel %vm1233_vm2, %v9248_v34, %v9244_v60  ;;  %v9284_v41 = vrot.slane %v9144_v17, %v13860_v22 }
0x1bd2   :  { %v9123_v44 = vpop.permute.xlu1 %9122  ;;  %v9303_v40 = vsel %vm1372_vm4, %v9249_v2, %v9302_v48 }
0x1bd3   :  { %v9253_v30 = vrot.slane %v9123_v44, %v13853_v19 }
0x1bd4   :  { %v9150_v37 = vpop.permute.xlu0 %9149 }
0x1bd5   :  { %v9258_v20 = vsel %vm1233_vm2, %v9257_v51, %v9253_v30  ;;  %v9293_v9 = vrot.slane %v9150_v37, %v13860_v22 }
0x1bd6   :  { %v9129_v29 = vpop.permute.xlu1 %9128  ;;  %v9304_v33 = vsel %vm1374_vm5, %v9258_v20, %v9303_v40 }
0x1bd7   :  { %v9262_v8 = vrot.slane %v9129_v29, %v13853_v19 }
0x1bd9   :  { %v9267_v45 = vsel %vm1233_vm2, %v9266_v1, %v9262_v8 }
0x1bda   :  { %v9135_v42 = vpop.permute.xlu1 %9134  ;;  %v9305_v49 = vsel %vm18664_vm15, %v9267_v45, %v9304_v33  ;;  %vm18723_vm15 = vmmov %vm18666_vm8 }
0x1bdb   :  { %v9271_v6 = vrot.slane %v9135_v42, %v13853_v19 }
0x1bdd   :  { %v9276_v27 = vsel %vm1233_vm2, %v9275_v38, %v9271_v6 }
0x1bde   :  { %v9141_v55 = vpop.permute.xlu1 %9140  ;;  %v9306_v26 = vsel %vm18665_vm12, %v9276_v27, %v9305_v49  ;;  %vm18724_vm12 = vmmov %vm18667_vm1 }
0x1bdf   :  { %v9280_v53 = vrot.slane %v9141_v55, %v13853_v19 }
0x1be1   :  { %v9285_v3 = vsel %vm1233_vm2, %v9284_v41, %v9280_v53 }
0x1be2   :  { %v9147_v32 = vpop.permute.xlu1 %9146  ;;  %v9307_v23 = vsel %vm18666_vm8, %v9285_v3, %v9306_v26  ;;  %vm18725_vm8 = vmmov %vm18717_vm0 }
0x1be3   :  { %v9289_v18 = vrot.slane %v9147_v32, %v13853_v19 }
0x1be5   :  { %v9294_v44 = vsel %vm1233_vm2, %v9293_v9, %v9289_v18 }
0x1be6   :  { %v9308_v29 = vsel %vm18667_vm1, %v9294_v44, %v9307_v23  ;;  %vm18726_vm1 = vmmov %vm18718_vm10 }
0x1be7   :  { %v9314_v50 = vsel %vm18668_vm13, %v9308_v29, 0.0  ;;  %vm18727_vm13 = vmmov %vm18719_vm9 }
0x1be8   :  { %9315 = vadd.xlane.f32.xlu1 %v9314_v50 }
0x1c14   :  { %v10179_v17 = vpop.xlane.xlu1 %10178 }
0x1c15   :  { %13016 = vrcp.f32 %v10179_v17 }
0x1c1f   :  { %v13017_v60 = vpop.eup %13016 }
0x1c20   :  { %v10190_v42 = vrot.slane %v13017_v60, %v13304_v35  ;;  %v10194_v11 = vrot.slane %v13017_v60, %v13307_v36  ;;  %v10198_v54 = vrot.slane %v13017_v60, %v13324_v43  ;;  %v10202_v30 = vrot.slane %v13017_v60, %v13331_v46 }
0x1c21   :  { %v10206_v58 = vrot.slane %v13017_v60, %v18354_v61  ;;  %v10214_v41 = vrot.slane %v13017_v60, %v18356_v28  ;;  %v10218_v33 = vrot.slane %v13017_v60, %v18583_v5 }
0x1c22   :  { %v10267_v34 = vmul.f32 %v16971_v0, %v10190_v42  ;;  %v10268_v8 = vmul.f32 %v16977_v52, %v10190_v42  ;;  %v10269_v15 = vmul.f32 %v16984_v24, %v10194_v11  ;;  %v10270_v51 = vmul.f32 %v16995_v21, %v10194_v11  ;;  %v18669_v11 = vld [vmem:[#allocation92_spill] sm:$0xff] }
0x1c23   :  { %v10271_v56 = vmul.f32 %v17005_v59, %v10198_v54  ;;  %v10272_v6 = vmul.f32 %v17017_v31, %v10198_v54  ;;  %v10273_v2 = vmul.f32 %v16991_v39, %v10202_v30  ;;  %v10274_v55 = vmul.f32 %v17031_v25, %v10202_v30  ;;  %v18670_v30 = vld [vmem:[#allocation95_spill] sm:$0xff] }
0x1c24   :  { %v10299_v1 = vpack.c.bf16 %v10268_v8, %v10267_v34  ;;  %v10300_v53 = vpack.c.bf16 %v10270_v51, %v10269_v15  ;;  %v10275_v24 = vmul.f32 %v17001_v12, %v10206_v58  ;;  %v10210_v21 = vrot.slane %v13017_v60, %v18355_v4 }
0x1c25   :  { %v9313_v38 = vpop.xlane.xlu0 %9312  ;;  %v10301_v52 = vpack.c.bf16 %v10272_v6, %v10271_v56  ;;  %v10302_v48 = vpack.c.bf16 %v10274_v55, %v10273_v2  ;;  %v10276_v39 = vmul.f32 %v17042_v7, %v10206_v58  ;;  %v10279_v7 = vmul.f32 %v17026_v47, %v10214_v41  ;;  %v18671_v56 = vld [vmem:[#allocation104_spill] sm:$0xff] }
0x1c26   :  { %v10332_v20 = vunpack.c.h.b16 %v10299_v1  ;;  %v10331_v0 = vunpack.c.l.b16 %v10299_v1  ;;  %13018 = vrcp.f32 %v9313_v38  ;;  %v10333_v59 = vunpack.c.l.b16 %v10300_v53  ;;  %v18672_v1 = vld [vmem:[#allocation90_spill] sm:$0xff]  ;;  %v18674_v38 = vld [vmem:[#allocation105_spill] sm:$0xff] }
0x1c27   :  { %v10335_v31 = vunpack.c.l.b16 %v10301_v52  ;;  %v10277_v25 = vmul.f32 %v17013_v63, %v10210_v21  ;;  %v10334_v37 = vunpack.c.h.b16 %v10300_v53  ;;  %v10337_v45 = vunpack.c.l.b16 %v10302_v48 }
0x1c28   :  { %10367 = vperm.xlu1 %12586, %v10332_v20   ;;  %10364 = vperm.xlu0 %12585, %v10331_v0   ;;  %v10303_v40 = vpack.c.bf16 %v10276_v39, %v10275_v24  ;;  %v10278_v27 = vmul.f32 %v17052_v14, %v10210_v21  ;;  %v10336_v12 = vunpack.c.h.b16 %v10301_v52  ;;  %v10280_v9 = vmul.f32 %v17063_v10, %v10214_v41  ;;  %v18675_v52 = vld [vmem:[#allocation99_spill] sm:$0xff] }
0x1c29   :  { %v10338_v63 = vunpack.c.h.b16 %v10302_v48  ;;  %v10281_v14 = vmul.f32 %v17038_v13, %v10218_v33  ;;  %v10282_v44 = vmul.f32 %v17074_v57, %v10218_v33  ;;  %v18673_v55 = vmov 0  }
0x1c2a   :  { %v10339_v3 = vunpack.c.l.b16 %v10303_v40  ;;  %v10304_v32 = vpack.c.bf16 %v10278_v27, %v10277_v25  ;;  %v10305_v26 = vpack.c.bf16 %v10280_v9, %v10279_v7  ;;  %v10340_v29 = vunpack.c.h.b16 %v10303_v40  ;;  %v18676_v25 = vld [vmem:[#allocation26_spill] sm:$0xff] }
0x1c2b   :  { %v10306_v50 = vpack.c.bf16 %v10282_v44, %v10281_v14  ;;  %v18679_v7 = vld [vmem:[#allocation94_spill] sm:$0xff] }
0x1c2c   :  { %10370 = vperm.xlu1 %12586, %v10333_v59   ;;  %10376 = vperm.xlu0 %12585, %v10335_v31   ;;  %v10341_v18 = vunpack.c.l.b16 %v10304_v32  ;;  %v10343_v47 = vunpack.c.l.b16 %v10305_v26  ;;  %v10342_v13 = vunpack.c.h.b16 %v10304_v32 }
0x1c2d   :  { %v10345_v42 = vunpack.c.l.b16 %v10306_v50  ;;  %v10346_v58 = vunpack.c.h.b16 %v10306_v50 }
0x1c30   :  { %10373 = vperm.xlu1 %12586, %v10334_v37   ;;  %10382 = vperm.xlu0 %12585, %v10337_v45   ;;  %v17457_v49 = vpop.eup %13018  ;;  %v18677_v37 = vld [vmem:[#allocation101_spill] sm:$0xff] }
0x1c31   :  { %v9324_v23 = vrot.slane %v17457_v49, %v13304_v35  ;;  %v9328_v60 = vrot.slane %v17457_v49, %v13307_v36  ;;  %v9332_v8 = vrot.slane %v17457_v49, %v13324_v43  ;;  %v9340_v21 = vrot.slane %v17457_v49, %v18354_v61 }
0x1c32   :  { %v9344_v31 = vrot.slane %v17457_v49, %v18355_v4  ;;  %v9348_v27 = vrot.slane %v17457_v49, %v18356_v28 }
0x1c33   :  { %v9401_v10 = vmul.f32 %v17048_v62, %v9324_v23  ;;  %v9402_v17 = vmul.f32 %v17083_v16, %v9324_v23  ;;  %v9403_v54 = vmul.f32 %v18669_v11, %v9328_v60  ;;  %v9404_v34 = vmul.f32 %v18670_v30, %v9328_v60  ;;  %v18681_v23 = vld [vmem:[#allocation96_spill] sm:$0xff] }
0x1c34   :  { %10379 = vperm.xlu1 %12586, %v10336_v12   ;;  %10388 = vperm.xlu0 %12585, %v10339_v3   ;;  %v10344_v62 = vunpack.c.h.b16 %v10305_v26  ;;  %v9336_v16 = vrot.slane %v17457_v49, %v13331_v46  ;;  %v9405_v6 = vmul.f32 %v18671_v56, %v9332_v8  ;;  %v9406_v2 = vmul.f32 %v18672_v1, %v9332_v8  ;;  %v18678_v3 = vld [vmem:[#allocation98_spill] sm:$0xff] }
0x1c35   :  { %v9433_v57 = vpack.c.bf16 %v9402_v17, %v9401_v10  ;;  %v9434_v51 = vpack.c.bf16 %v9404_v34, %v9403_v54  ;;  %v9409_v41 = vmul.f32 %v18676_v25, %v9340_v21  ;;  %v9410_v45 = vmul.f32 %v18677_v37, %v9340_v21  ;;  %v18688_v21 = vld [vmem:[#allocation102_spill] sm:$0xff] }
0x1c36   :  { %v9407_v20 = vmul.f32 %v18674_v38, %v9336_v16  ;;  %v9435_v53 = vpack.c.bf16 %v9406_v2, %v9405_v6  ;;  %v9408_v24 = vmul.f32 %v18675_v52, %v9336_v16  ;;  %v9411_v32 = vmul.f32 %v18678_v3, %v9344_v31  ;;  %v18684_v6 = vld [vmem:[#allocation20_spill] sm:$0xff]  ;;  %v18685_v2 = vld [vmem:[#allocation87_spill] sm:$0xff]  ;;  %v18686_v38 = vld [vmem:[#allocation21_spill] sm:$0xff] }
0x1c37   :  { %v10682_v15 = vunpack.c.l.b16 %v9433_v57  ;;  %v10685_v0 = vunpack.c.h.b16 %v9434_v51  ;;  %v10683_v59 = vunpack.c.h.b16 %v9433_v57  ;;  %v10684_v40 = vunpack.c.l.b16 %v9434_v51  ;;  %v18683_v57 = vld [vmem:[#allocation103_spill] sm:$0xff] }
0x1c38   :  { %10385 = vperm.xlu1 %12586, %v10338_v63   ;;  %10394 = vperm.xlu0 %12585, %v10341_v18   ;;  %v10687_v48 = vunpack.c.h.b16 %v9435_v53  ;;  %v9436_v39 = vpack.c.bf16 %v9408_v24, %v9407_v20  ;;  %v9437_v33 = vpack.c.bf16 %v9410_v45, %v9409_v41  ;;  %v9412_v9 = vmul.f32 %v18679_v7, %v9344_v31  ;;  %v18680_v18 = vld [vmem:[#allocation100_spill] sm:$0xff]  ;;  %v18689_v31 = vld [vmem:[#allocation22_spill] sm:$0xff]  ;;  %v18691_v45 = vld [vmem:[#allocation23_spill] sm:$0xff] }
0x1c39   :  { %v10686_v63 = vunpack.c.l.b16 %v9435_v53  ;;  %v9413_v26 = vmul.f32 %v18680_v18, %v9348_v27  ;;  %v18693_v7 = vld [vmem:[#allocation81_spill] sm:$0xff] }
0x1c3a   :  { %v10689_v12 = vunpack.c.h.b16 %v9436_v39  ;;  %v10691_v14 = vunpack.c.h.b16 %v9437_v33  ;;  %v9438_v44 = vpack.c.bf16 %v9412_v9, %v9411_v32  ;;  %v10688_v10 = vunpack.c.l.b16 %v9436_v39 }
0x1c3b   :  { %v10690_v54 = vunpack.c.l.b16 %v9437_v33  ;;  %v18690_v39 = vmov 1  }
0x1c3c   :  { %10391 = vperm.xlu1 %12586, %v10340_v29   ;;  %10400 = vperm.xlu0 %12585, %v10343_v47   ;;  %v9414_v29 = vmul.f32 %v18681_v23, %v9348_v27  ;;  %v9352_v47 = vrot.slane %v17457_v49, %v18583_v5  ;;  %v10692_v17 = vunpack.c.l.b16 %v9438_v44  ;;  %v10693_v49 = vunpack.c.h.b16 %v9438_v44  ;;  %v18692_v27 = vld [vmem:[#allocation62_spill] sm:$0xff] }
0x1c3e   :  { %v9439_v60 = vpack.c.bf16 %v9414_v29, %v9413_v26  ;;  %v9416_v11 = vmul.f32 %v18683_v57, %v9352_v47  ;;  %v18695_v29 = vld [vmem:[#allocation79_spill] sm:$0xff]  ;;  %v18698_v57 = vld [vmem:[#allocation82_spill] sm:$0xff] }
0x1c40   :  { %10397 = vperm.xlu1 %12586, %v10342_v13   ;;  %10406 = vperm.xlu0 %12585, %v10345_v42   ;;  %v18682_v13 = vld [vmem:[#allocation76_spill] sm:$0xff]  ;;  %v10694_v30 = vunpack.c.l.b16 %v9439_v60  ;;  %v10695_v52 = vunpack.c.h.b16 %v9439_v60 }
0x1c41   :  { %v9415_v42 = vmul.f32 %v18682_v13, %v9352_v47  ;;  %v18697_v13 = vld [vmem:[#allocation83_spill] sm:$0xff] }
0x1c43   :  { %v9440_v34 = vpack.c.bf16 %v9416_v11, %v9415_v42 }
0x1c44   :  { %10403 = vperm.xlu1 %12586, %v10344_v62   ;;  %12587 = vset.pattern.permute.xlu0 %v18673_v55 }
0x1c45   :  { %10715 = vperm.xlu0 %12587, %v10682_v15   ;;  %v10696_v62 = vunpack.c.l.b16 %v9440_v34  ;;  %v10697_v33 = vunpack.c.h.b16 %v9440_v34 }
0x1c48   :  { %10409 = vperm.xlu1 %12586, %v10346_v58  }
0x1c49   :  { %10724 = vperm.xlu0 %12587, %v10685_v0   ;;  %v18687_v0 = vld [vmem:[#allocation88_spill] sm:$0xff] }
0x1c4c   :  { %12588 = vset.pattern.permute.xlu1 %v18673_v55 }
0x1c4d   :  { %10718 = vperm.xlu1 %12588, %v10683_v59   ;;  %10730 = vperm.xlu0 %12587, %v10687_v48  }
0x1c51   :  { %10721 = vperm.xlu1 %12588, %v10684_v40   ;;  %10736 = vperm.xlu0 %12587, %v10689_v12  }
0x1c54   :  { %v10182_v50 = vpop.xlane.xlu0 %10181 }
0x1c55   :  { %13020 = vrcp.f32 %v10182_v50  ;;  %10727 = vperm.xlu1 %12588, %v10686_v63   ;;  %10742 = vperm.xlu0 %12587, %v10691_v14   ;;  %v18694_v63 = vld [vmem:[#allocation89_spill] sm:$0xff]  ;;  %v18696_v50 = vld [vmem:[#allocation86_spill] sm:$0xff] }
0x1c59   :  { %10733 = vperm.xlu1 %12588, %v10688_v10   ;;  %10745 = vperm.xlu0 %12587, %v10692_v17  }
0x1c5d   :  { %10739 = vperm.xlu1 %12588, %v10690_v54   ;;  %10751 = vperm.xlu0 %12587, %v10694_v30  }
0x1c5f   :  { %v13021_v8 = vpop.eup %13020 }
0x1c60   :  { %v10230_v16 = vrot.slane %v13021_v8, %v13324_v43  ;;  %v10234_v15 = vrot.slane %v13021_v8, %v13331_v46  ;;  %v10222_v51 = vrot.slane %v13021_v8, %v13304_v35  ;;  %v10238_v56 = vrot.slane %v13021_v8, %v18354_v61 }
0x1c61   :  { %10748 = vperm.xlu1 %12588, %v10693_v49   ;;  %10757 = vperm.xlu0 %12587, %v10696_v62   ;;  %v10242_v25 = vrot.slane %v13021_v8, %v18355_v4  ;;  %v10226_v32 = vrot.slane %v13021_v8, %v13307_v36  ;;  %v10246_v44 = vrot.slane %v13021_v8, %v18356_v28 }
0x1c62   :  { %v10287_v1 = vmul.f32 %v18684_v6, %v10230_v16  ;;  %v10288_v58 = vmul.f32 %v18685_v2, %v10230_v16  ;;  %v10289_v20 = vmul.f32 %v18686_v38, %v10234_v15  ;;  %v10290_v53 = vmul.f32 %v18687_v0, %v10234_v15  ;;  %v18699_v16 = vld [vmem:[#allocation85_spill] sm:$0xff] }
0x1c63   :  { %v10283_v59 = vmul.f32 %v18688_v21, %v10222_v51  ;;  %v10284_v48 = vmul.f32 %v18689_v31, %v10222_v51  ;;  %v10291_v40 = vmul.f32 %v18691_v45, %v10238_v56  ;;  %v10292_v12 = vmul.f32 %v18692_v27, %v10238_v56  ;;  %v18700_v51 = vld [vmem:[#allocation80_spill] sm:$0xff] }
0x1c64   :  { %v10309_v24 = vpack.c.bf16 %v10288_v58, %v10287_v1  ;;  %v10310_v37 = vpack.c.bf16 %v10290_v53, %v10289_v20  ;;  %v10293_v9 = vmul.f32 %v18693_v7, %v10242_v25  ;;  %v10294_v18 = vmul.f32 %v18694_v63, %v10242_v25  ;;  %v18701_v31 = vld [vmem:[#allocation24_spill] sm:$0xff] }
0x1c65   :  { %10754 = vperm.xlu1 %12588, %v10695_v52   ;;  %12590 = vset.pattern.permute.xlu0 %v18690_v39  ;;  %v10307_v3 = vpack.c.bf16 %v10284_v48, %v10283_v59  ;;  %v10311_v14 = vpack.c.bf16 %v10292_v12, %v10291_v40  ;;  %v10285_v47 = vmul.f32 %v18695_v29, %v10226_v32  ;;  %v18704_v40 = vld [vmem:[#allocation77_spill] sm:$0xff] }
0x1c66   :  { %v10351_v41 = vunpack.c.l.b16 %v10309_v24  ;;  %v10353_v26 = vunpack.c.l.b16 %v10310_v37  ;;  %v10286_v10 = vmul.f32 %v18696_v50, %v10226_v32  ;;  %v10312_v17 = vpack.c.bf16 %v10294_v18, %v10293_v9  ;;  %v18706_v32 = vld [vmem:[#allocation56_spill] sm:$0xff] }
0x1c67   :  { %v10347_v23 = vunpack.c.l.b16 %v10307_v3  ;;  %v10355_v60 = vunpack.c.l.b16 %v10311_v14  ;;  %v10295_v42 = vmul.f32 %v18697_v13, %v10246_v44  ;;  %v10296_v11 = vmul.f32 %v18698_v57, %v10246_v44 }
0x1c68   :  { %10424 = vperm.xlu0 %12590, %v10351_v41   ;;  %v10250_v54 = vrot.slane %v13021_v8, %v18583_v5  ;;  %v10348_v30 = vunpack.c.h.b16 %v10307_v3  ;;  %v10308_v34 = vpack.c.bf16 %v10286_v10, %v10285_v47  ;;  %v10357_v49 = vunpack.c.l.b16 %v10312_v17  ;;  %v18703_v41 = vld [vmem:[#allocation28_spill] sm:$0xff]  ;;  %v18705_v3 = vld [vmem:[#allocation35_spill] sm:$0xff] }
0x1c69   :  { %10760 = vperm.xlu1 %12588, %v10697_v33   ;;  %v10313_v62 = vpack.c.bf16 %v10296_v11, %v10295_v42  ;;  %v10352_v20 = vunpack.c.h.b16 %v10309_v24  ;;  %v10354_v53 = vunpack.c.h.b16 %v10310_v37  ;;  %v10356_v27 = vunpack.c.h.b16 %v10311_v14  ;;  %v18708_v14 = vld [vmem:[#allocation30_spill] sm:$0xff]  ;;  %v18709_v10 = vld [vmem:[#allocation40_spill] sm:$0xff] }
0x1c6a   :  { %v10297_v15 = vmul.f32 %v18699_v16, %v10250_v54  ;;  %v10298_v56 = vmul.f32 %v18700_v51, %v10250_v54  ;;  %v10349_v6 = vunpack.c.l.b16 %v10308_v34  ;;  %v10350_v38 = vunpack.c.h.b16 %v10308_v34  ;;  %v18711_v54 = vld [vmem:[#allocation44_spill] sm:$0xff]  ;;  %v18712_v34 = vld [vmem:[#allocation27_spill] sm:$0xff] }
0x1c6b   :  { %v10359_v2 = vunpack.c.l.b16 %v10313_v62  ;;  %v10360_v29 = vunpack.c.h.b16 %v10313_v62  ;;  %v18713_v51 = vld [vmem:[#allocation47_spill] sm:$0xff] }
0x1c6c   :  { %10430 = vperm.xlu0 %12590, %v10353_v26   ;;  %v10314_v58 = vpack.c.bf16 %v10298_v56, %v10297_v15  ;;  %v18707_v26 = vld [vmem:[#allocation36_spill] sm:$0xff] }
0x1c6d   :  { %12589 = vset.pattern.permute.xlu1 %v18690_v39  ;;  %v18702_v39 = vld [vmem:[#allocation78_spill] sm:$0xff] }
0x1c6e   :  { %10412 = vperm.xlu1 %12589, %v10347_v23   ;;  %v10361_v8 = vunpack.c.l.b16 %v10314_v58  ;;  %v10362_v42 = vunpack.c.h.b16 %v10314_v58 }
0x1c70   :  { %10436 = vperm.xlu0 %12590, %v10355_v60  }
0x1c72   :  { %10415 = vperm.xlu1 %12589, %v10348_v30  }
0x1c74   :  { %10442 = vperm.xlu0 %12590, %v10357_v49  }
0x1c75   :  { %v9316_v1 = vpop.xlane.xlu1 %9315 }
0x1c76   :  { %13022 = vrcp.f32 %v9316_v1  ;;  %10418 = vperm.xlu1 %12589, %v10349_v6   ;;  %v18714_v6 = vld [vmem:[#allocation39_spill] sm:$0xff] }
0x1c78   :  { %10448 = vperm.xlu0 %12590, %v10359_v2  }
0x1c7a   :  { %10421 = vperm.xlu1 %12589, %v10350_v38   ;;  %v18715_v38 = vld [vmem:[#allocation48_spill] sm:$0xff] }
0x1c7c   :  { %10454 = vperm.xlu0 %12590, %v10361_v8  }
0x1c7e   :  { %10427 = vperm.xlu1 %12589, %v10352_v20   ;;  %v18716_v20 = vld [vmem:[#allocation43_spill] sm:$0xff] }
0x1c80   :  { %v13023_v0 = vpop.eup %13022  ;;  %12592 = vset.pattern.permute.xlu0 %v18673_v55 }
0x1c81   :  { %v9356_v52 = vrot.slane %v13023_v0, %v13304_v35  ;;  %v9360_v21 = vrot.slane %v13023_v0, %v13307_v36  ;;  %v9364_v59 = vrot.slane %v13023_v0, %v13324_v43  ;;  %v9368_v37 = vrot.slane %v13023_v0, %v13331_v46 }
0x1c82   :  { %10433 = vperm.xlu1 %12589, %v10354_v53   ;;  %v10358_v43 = vunpack.c.h.b16 %v10312_v17  ;;  %v9372_v9 = vrot.slane %v13023_v0, %v18354_v61  ;;  %v9376_v46 = vrot.slane %v13023_v0, %v18355_v4  ;;  %v18710_v17 = vld [vmem:[#allocation29_spill] sm:$0xff]  ;;  %v9380_v61 = vrot.slane %v13023_v0, %v18356_v28 }
0x1c83   :  { %v9417_v48 = vmul.f32 %v18701_v31, %v9356_v52  ;;  %v9418_v25 = vmul.f32 %v18702_v39, %v9356_v52  ;;  %v9419_v45 = vmul.f32 %v18703_v41, %v9360_v21  ;;  %v9420_v24 = vmul.f32 %v18704_v40, %v9360_v21 }
0x1c84   :  { %v9421_v36 = vmul.f32 %v18705_v3, %v9364_v59  ;;  %v9422_v7 = vmul.f32 %v18706_v32, %v9364_v59  ;;  %v9423_v44 = vmul.f32 %v18707_v26, %v9368_v37  ;;  %v9424_v23 = vmul.f32 %v18708_v14, %v9368_v37 }
0x1c85   :  { %v9441_v12 = vpack.c.bf16 %v9418_v25, %v9417_v48  ;;  %v9442_v35 = vpack.c.bf16 %v9420_v24, %v9419_v45  ;;  %v9425_v60 = vmul.f32 %v18709_v10, %v9372_v9  ;;  %v9426_v13 = vmul.f32 %v18710_v17, %v9372_v9 }
0x1c86   :  { %10439 = vperm.xlu1 %12589, %v10356_v27   ;;  %v9443_v18 = vpack.c.bf16 %v9422_v7, %v9421_v36  ;;  %v9444_v50 = vpack.c.bf16 %v9424_v23, %v9423_v44  ;;  %v9427_v30 = vmul.f32 %v18711_v54, %v9376_v46  ;;  %v9428_v49 = vmul.f32 %v18712_v34, %v9376_v46 }
0x1c87   :  { %v10699_v33 = vunpack.c.h.b16 %v9441_v12  ;;  %v10701_v63 = vunpack.c.h.b16 %v9442_v35  ;;  %v9445_v11 = vpack.c.bf16 %v9426_v13, %v9425_v60  ;;  %v10698_v62 = vunpack.c.l.b16 %v9441_v12 }
0x1c88   :  { %v10703_v47 = vunpack.c.h.b16 %v9443_v18  ;;  %v10705_v57 = vunpack.c.h.b16 %v9444_v50  ;;  %v9384_v4 = vrot.slane %v13023_v0, %v18583_v5  ;;  %v9446_v15 = vpack.c.bf16 %v9428_v49, %v9427_v30 }
0x1c89   :  { %10766 = vperm.xlu0 %12592, %v10699_v33   ;;  %v10707_v16 = vunpack.c.h.b16 %v9445_v11  ;;  %v9429_v56 = vmul.f32 %v18713_v51, %v9380_v61  ;;  %v9430_v1 = vmul.f32 %v18714_v6, %v9380_v61  ;;  %v10700_v28 = vunpack.c.l.b16 %v9442_v35 }
0x1c8a   :  { %10445 = vperm.xlu1 %12589, %v10358_v43   ;;  %v10708_v2 = vunpack.c.l.b16 %v9446_v15  ;;  %v9431_v8 = vmul.f32 %v18715_v38, %v9384_v4  ;;  %v9432_v53 = vmul.f32 %v18716_v20, %v9384_v4  ;;  %v10704_v52 = vunpack.c.l.b16 %v9444_v50 }
0x1c8b   :  { %v9447_v58 = vpack.c.bf16 %v9430_v1, %v9429_v56  ;;  %v10706_v59 = vunpack.c.l.b16 %v9445_v11  ;;  %v10709_v41 = vunpack.c.h.b16 %v9446_v15 }
0x1c8c   :  { %v9448_v0 = vpack.c.bf16 %v9432_v53, %v9431_v8 }
0x1c8d   :  { %10772 = vperm.xlu0 %12592, %v10701_v63   ;;  %v10710_v5 = vunpack.c.l.b16 %v9447_v58  ;;  %v10711_v27 = vunpack.c.h.b16 %v9447_v58 }
0x1c8e   :  { %10451 = vperm.xlu1 %12589, %v10360_v29   ;;  %v10712_v21 = vunpack.c.l.b16 %v9448_v0  ;;  %v10713_v3 = vunpack.c.h.b16 %v9448_v0 }
0x1c91   :  { %10778 = vperm.xlu0 %12592, %v10703_v47  }
0x1c92   :  { %10457 = vperm.xlu1 %12589, %v10362_v42  }
0x1c95   :  { %10784 = vperm.xlu0 %12592, %v10705_v57  }
0x1c96   :  { %12591 = vset.pattern.permute.xlu1 %v18673_v55  ;;  %v10702_v55 = vunpack.c.l.b16 %v9443_v18 }
0x1c97   :  { %10763 = vperm.xlu1 %12591, %v10698_v62  }
0x1c99   :  { %10790 = vperm.xlu0 %12592, %v10707_v16  }
0x1c9b   :  { %10769 = vperm.xlu1 %12591, %v10700_v28  }
0x1c9d   :  { %10793 = vperm.xlu0 %12592, %v10708_v2  }
0x1c9f   :  { %10775 = vperm.xlu1 %12591, %v10702_v55  }
0x1ca1   :  { %10799 = vperm.xlu0 %12592, %v10710_v5  }
0x1ca3   :  { %10781 = vperm.xlu1 %12591, %v10704_v52  }
0x1ca5   :  { %10805 = vperm.xlu0 %12592, %v10712_v21  }
0x1ca7   :  { %v10365_v31 = vpop.permute.xlu0 %10364  ;;  %10787 = vperm.xlu1 %12591, %v10706_v59   ;;  %v10368_v48 = vpop.permute.xlu1 %10367 }
0x1ca8   :  { %v10462_v39 = vrot.slane %v10365_v31, %v13853_v19  ;;  %v10466_v25 = vrot.slane %v10368_v48, %v13860_v22 }
0x1caa   :  { %v10467_v45 = vsel %vm1233_vm2, %v10466_v25, %v10462_v39 }
0x1cab   :  { %v10377_v40 = vpop.permute.xlu0 %10376  ;;  %10796 = vperm.xlu1 %12591, %v10709_v41   ;;  %v10371_v24 = vpop.permute.xlu1 %10370 }
0x1cac   :  { %v10471_v33 = vrot.slane %v10371_v24, %v13853_v19  ;;  %v10480_v9 = vrot.slane %v10377_v40, %v13853_v19 }
0x1caf   :  { %v10383_v12 = vpop.permute.xlu0 %10382  ;;  %10802 = vperm.xlu1 %12591, %v10711_v27   ;;  %v10374_v37 = vpop.permute.xlu1 %10373 }
0x1cb0   :  { %v10475_v35 = vrot.slane %v10374_v37, %v13860_v22  ;;  %v10489_v23 = vrot.slane %v10383_v12, %v13853_v19 }
0x1cb2   :  { %v10476_v36 = vsel %vm1233_vm2, %v10475_v35, %v10471_v33 }
0x1cb3   :  { %v10603_v32 = vsel %vm1370_vm3, %v10476_v36, %v10467_v45  ;;  %v10389_v7 = vpop.permute.xlu0 %10388  ;;  %10808 = vperm.xlu1 %12591, %v10713_v3   ;;  %v10380_v43 = vpop.permute.xlu1 %10379 }
0x1cb4   :  { %v10484_v63 = vrot.slane %v10380_v43, %v13860_v22  ;;  %v10498_v60 = vrot.slane %v10389_v7, %v13853_v19 }
0x1cb6   :  { %v10485_v18 = vsel %vm1233_vm2, %v10484_v63, %v10480_v9 }
0x1cb7   :  { %v10604_v26 = vsel %vm1372_vm4, %v10485_v18, %v10603_v32  ;;  %v10395_v44 = vpop.permute.xlu0 %10394  ;;  %v10386_v14 = vpop.permute.xlu1 %10385 }
0x1cb8   :  { %v10493_v29 = vrot.slane %v10386_v14, %v13860_v22  ;;  %v10507_v11 = vrot.slane %v10395_v44, %v13853_v19 }
0x1cba   :  { %v10494_v46 = vsel %vm1233_vm2, %v10493_v29, %v10489_v23 }
0x1cbb   :  { %v10605_v47 = vsel %vm1374_vm5, %v10494_v46, %v10604_v26  ;;  %v10401_v50 = vpop.permute.xlu0 %10400  ;;  %v10392_v10 = vpop.permute.xlu1 %10391 }
0x1cbc   :  { %v10502_v17 = vrot.slane %v10392_v10, %v13860_v22  ;;  %v10516_v62 = vrot.slane %v10401_v50, %v13853_v19 }
0x1cbe   :  { %v10503_v13 = vsel %vm1233_vm2, %v10502_v17, %v10498_v60 }
0x1cbf   :  { %v10606_v42 = vsel %vm18717_vm0, %v10503_v13, %v10605_v47  ;;  %v10407_v61 = vpop.permute.xlu0 %10406  ;;  %v10398_v57 = vpop.permute.xlu1 %10397  ;;  %vm18728_vm0 = vmmov %vm18720_vm6 }
0x1cc0   :  { %v10511_v54 = vrot.slane %v10398_v57, %v13860_v22  ;;  %v10525_v6 = vrot.slane %v10407_v61, %v13853_v19 }
0x1cc2   :  { %v10512_v30 = vsel %vm1233_vm2, %v10511_v54, %v10507_v11 }
0x1cc3   :  { %v10607_v34 = vsel %vm18718_vm10, %v10512_v30, %v10606_v42  ;;  %v10404_v49 = vpop.permute.xlu1 %10403  ;;  %vm18729_vm10 = vcmask 130048  }
0x1cc4   :  { %v10520_v4 = vrot.slane %v10404_v49, %v13860_v22  ;;  %v10716_v16 = vpop.permute.xlu0 %10715 }
0x1cc5   :  { %v10813_v20 = vrot.slane %v10716_v16, %v13853_v19 }
0x1cc6   :  { %v10521_v15 = vsel %vm1233_vm2, %v10520_v4, %v10516_v62 }
0x1cc7   :  { %v10608_v51 = vsel %vm18719_vm9, %v10521_v15, %v10607_v34  ;;  %v10410_v56 = vpop.permute.xlu1 %10409  ;;  %vm18733_vm9 = vmmov %vm18721_vm7 }
0x1cc8   :  { %v10529_v1 = vrot.slane %v10410_v56, %v13860_v22  ;;  %v10725_v28 = vpop.permute.xlu0 %10724 }
0x1cc9   :  { %v10826_v52 = vrot.slane %v10725_v28, %v13860_v22 }
0x1cca   :  { %v10530_v2 = vsel %vm1233_vm2, %v10529_v1, %v10525_v6 }
0x1ccb   :  { %v17578_v58 = vsel %vm18720_vm6, %v10530_v2, %v10608_v51  ;;  %vm18735_vm6 = vmmov %vm18727_vm13 }
0x1ccc   :  { %v10731_v38 = vpop.permute.xlu0 %10730  ;;  %v10719_v8 = vpop.permute.xlu1 %10718 }
0x1ccd   :  { %v10817_v53 = vrot.slane %v10719_v8, %v13860_v22  ;;  %v10835_v25 = vrot.slane %v10731_v38, %v13860_v22 }
0x1ccf   :  { %v10818_v55 = vsel %vm1233_vm2, %v10817_v53, %v10813_v20 }
0x1cd0   :  { %v10737_v5 = vpop.permute.xlu0 %10736  ;;  %v10722_v0 = vpop.permute.xlu1 %10721 }
0x1cd1   :  { %v10822_v21 = vrot.slane %v10722_v0, %v13853_v19  ;;  %v10844_v12 = vrot.slane %v10737_v5, %v13860_v22 }
0x1cd3   :  { %v10827_v59 = vsel %vm1233_vm2, %v10826_v52, %v10822_v21 }
0x1cd4   :  { %v10954_v31 = vsel %vm1370_vm3, %v10827_v59, %v10818_v55  ;;  %v10743_v48 = vpop.permute.xlu0 %10742  ;;  %v10728_v39 = vpop.permute.xlu1 %10727 }
0x1cd5   :  { %v10831_v41 = vrot.slane %v10728_v39, %v13853_v19  ;;  %v10853_v36 = vrot.slane %v10743_v48, %v13860_v22 }
0x1cd7   :  { %v10836_v45 = vsel %vm1233_vm2, %v10835_v25, %v10831_v41 }
0x1cd8   :  { %v10955_v40 = vsel %vm1372_vm4, %v10836_v45, %v10954_v31  ;;  %v10746_v24 = vpop.permute.xlu0 %10745  ;;  %v10734_v27 = vpop.permute.xlu1 %10733 }
0x1cd9   :  { %v10840_v37 = vrot.slane %v10734_v27, %v13853_v19  ;;  %v10858_v18 = vrot.slane %v10746_v24, %v13853_v19 }
0x1cdb   :  { %v10845_v33 = vsel %vm1233_vm2, %v10844_v12, %v10840_v37 }
0x1cdc   :  { %v10956_v35 = vsel %vm1374_vm5, %v10845_v33, %v10955_v40  ;;  %v10740_v3 = vpop.permute.xlu1 %10739  ;;  %v10752_v32 = vpop.permute.xlu0 %10751 }
0x1cdd   :  { %v10849_v7 = vrot.slane %v10740_v3, %v13853_v19  ;;  %v10867_v46 = vrot.slane %v10752_v32, %v13853_v19 }
0x1cdf   :  { %v10854_v43 = vsel %vm1233_vm2, %v10853_v36, %v10849_v7 }
0x1ce0   :  { %v10957_v9 = vsel %vm18721_vm7, %v10854_v43, %v10956_v35  ;;  %v10749_v63 = vpop.permute.xlu1 %10748  ;;  %v10758_v44 = vpop.permute.xlu0 %10757  ;;  %vm18741_vm7 = vcmask 1040384  }
0x1ce1   :  { %v10862_v26 = vrot.slane %v10749_v63, %v13860_v22  ;;  %v10876_v13 = vrot.slane %v10758_v44, %v13853_v19 }
0x1ce3   :  { %v10863_v14 = vsel %vm1233_vm2, %v10862_v26, %v10858_v18 }
0x1ce4   :  { %v10958_v23 = vsel %vm18722_vm11, %v10863_v14, %v10957_v9  ;;  %v10755_v29 = vpop.permute.xlu1 %10754  ;;  %vm18742_vm11 = vcmask 15360  }
0x1ce5   :  { %v10871_v47 = vrot.slane %v10755_v29, %v13860_v22 }
0x1ce7   :  { %v10872_v50 = vsel %vm1233_vm2, %v10871_v47, %v10867_v46  ;;  %v10425_v10 = vpop.permute.xlu0 %10424  ;;  %v18730_v47 = vld [vmem:[#allocation64_spill] sm:$0xff] }
0x1ce8   :  { %v10959_v60 = vsel %vm18723_vm15, %v10872_v50, %v10958_v23  ;;  %v10761_v17 = vpop.permute.xlu1 %10760  ;;  %v10552_v55 = vrot.slane %v10425_v10, %v13853_v19  ;;  %v18731_v50 = vmov 0.0  }
0x1ce9   :  { %v10880_v42 = vrot.slane %v10761_v17, %v13860_v22 }
0x1ceb   :  { %v10881_v61 = vsel %vm1233_vm2, %v10880_v42, %v10876_v13  ;;  %v10431_v11 = vpop.permute.xlu0 %10430 }
0x1cec   :  { %v17611_v57 = vsel %vm18724_vm12, %v10881_v61, %v10959_v60  ;;  %v10561_v0 = vrot.slane %v10431_v11, %v13853_v19  ;;  %vm18745_vm12 = vmmov %vm18741_vm7 }
0x1ced   :  { %v10413_v54 = vpop.permute.xlu1 %10412 }
0x1cee   :  { %v10534_v52 = vrot.slane %v10413_v54, %v13853_v19 }
0x1cef   :  { %v10437_v34 = vpop.permute.xlu0 %10436 }
0x1cf0   :  { %v10570_v48 = vrot.slane %v10437_v34, %v13853_v19 }
0x1cf1   :  { %v10416_v30 = vpop.permute.xlu1 %10415 }
0x1cf2   :  { %v10538_v8 = vrot.slane %v10416_v30, %v13860_v22 }
0x1cf3   :  { %v10443_v62 = vpop.permute.xlu0 %10442 }
0x1cf4   :  { %v10539_v41 = vsel %vm1233_vm2, %v10538_v8, %v10534_v52  ;;  %v10579_v45 = vrot.slane %v10443_v62, %v13853_v19 }
0x1cf5   :  { %v10419_v49 = vpop.permute.xlu1 %10418 }
0x1cf6   :  { %v10543_v20 = vrot.slane %v10419_v49, %v13853_v19 }
0x1cf7   :  { %v10449_v15 = vpop.permute.xlu0 %10448 }
0x1cf8   :  { %v10588_v27 = vrot.slane %v10449_v15, %v13853_v19 }
0x1cf9   :  { %v10422_v4 = vpop.permute.xlu1 %10421 }
0x1cfa   :  { %v10547_v1 = vrot.slane %v10422_v4, %v13860_v22 }
0x1cfb   :  { %v10455_v56 = vpop.permute.xlu0 %10454 }
0x1cfc   :  { %v10548_v21 = vsel %vm1233_vm2, %v10547_v1, %v10543_v20  ;;  %v10597_v7 = vrot.slane %v10455_v56, %v13853_v19 }
0x1cfd   :  { %v10428_v16 = vpop.permute.xlu1 %10427  ;;  %v10610_v12 = vsel %vm1370_vm3, %v10548_v21, %v10539_v41 }
0x1cfe   :  { %v10556_v2 = vrot.slane %v10428_v16, %v13860_v22 }
0x1d00   :  { %v10557_v39 = vsel %vm1233_vm2, %v10556_v2, %v10552_v55 }
0x1d01   :  { %v10434_v51 = vpop.permute.xlu1 %10433  ;;  %v10611_v33 = vsel %vm1372_vm4, %v10557_v39, %v10610_v12 }
0x1d02   :  { %v10565_v53 = vrot.slane %v10434_v51, %v13860_v22 }
0x1d04   :  { %v10566_v40 = vsel %vm1233_vm2, %v10565_v53, %v10561_v0 }
0x1d05   :  { %v10440_v6 = vpop.permute.xlu1 %10439  ;;  %v10612_v3 = vsel %vm1374_vm5, %v10566_v40, %v10611_v33 }
0x1d06   :  { %v10574_v5 = vrot.slane %v10440_v6, %v13860_v22 }
0x1d08   :  { %v17614_v28 = vpop.permute.xlu0 %10766  ;;  %v10575_v37 = vsel %vm1233_vm2, %v10574_v5, %v10570_v48 }
0x1d09   :  { %v10446_v38 = vpop.permute.xlu1 %10445  ;;  %v10613_v43 = vsel %vm18725_vm8, %v10575_v37, %v10612_v3  ;;  %v10889_v15 = vrot.slane %v17614_v28, %v13860_v22  ;;  %vm18747_vm8 = vmmov %vm18742_vm11 }
0x1d0a   :  { %v10583_v59 = vrot.slane %v10446_v38, %v13860_v22 }
0x1d0c   :  { %v10773_v31 = vpop.permute.xlu0 %10772  ;;  %v10584_v35 = vsel %vm1233_vm2, %v10583_v59, %v10579_v45 }
0x1d0d   :  { %v10452_v25 = vpop.permute.xlu1 %10451  ;;  %v10614_v18 = vsel %vm18726_vm1, %v10584_v35, %v10613_v43  ;;  %v10898_v34 = vrot.slane %v10773_v31, %v13860_v22 }
0x1d0e   :  { %v10592_v24 = vrot.slane %v10452_v25, %v13860_v22 }
0x1d10   :  { %v10593_v36 = vsel %vm1233_vm2, %v10592_v24, %v10588_v27  ;;  %v10779_v9 = vpop.permute.xlu0 %10778 }
0x1d11   :  { %v10458_v32 = vpop.permute.xlu1 %10457  ;;  %v10615_v26 = vsel %vm18727_vm13, %v10593_v36, %v10614_v18  ;;  %v10907_v4 = vrot.slane %v10779_v9, %v13860_v22  ;;  %v18740_v18 = vld [vmem:[#allocation84_spill] sm:$0xff]  ;;  %vm11277_vm13 = vcmask 123904  }
0x1d12   :  { %v10601_v63 = vrot.slane %v10458_v32, %v13860_v22 }
0x1d14   :  { %v10602_v44 = vsel %vm1233_vm2, %v10601_v63, %v10597_v7  ;;  %v10785_v46 = vpop.permute.xlu0 %10784 }
0x1d15   :  { %v10616_v14 = vsel %vm18728_vm0, %v10602_v44, %v10615_v26  ;;  %v10916_v51 = vrot.slane %v10785_v46, %v13860_v22 }
0x1d16   :  { %v10617_v23 = vpack.c.b16 %v10616_v14, %v17578_v58  ;;  %v10764_v29 = vpop.permute.xlu1 %10763 }
0x1d17   :  { %v10885_v49 = vrot.slane %v10764_v29, %v13853_v19 }
0x1d18   :  { %12163 = vmatmul.mubr.msk.bf16.vlgmr.msra.gmra.mrb[68].mxu0 %vm18729_vm10, %v10617_v23  ;;  %v10791_v60 = vpop.permute.xlu0 %10790 }
0x1d19   :  { %12167 = vmatpush3.bf16.msra.mxu0 %v18730_v47  ;;  %12168 = vmatprep.mubr.msk.bf16.mxu0 %vm18483_vm14, %v18731_v50  ;;  %v10925_v1 = vrot.slane %v10791_v60, %v13860_v22  ;;  %v10890_v8 = vsel %vm1233_vm2, %v10889_v15, %v10885_v49  ;;  %v13031_v47 = vld [vmem:[%s13145_s17] sm:$0xff]   ;;  %s18746_s17 = sld [smem:[#allocation18_spill]] }
0x1d1a   :  { %v10770_v10 = vpop.permute.xlu1 %10769  ;;  %12172 = vmatprep.subr.bf16.mxu0 %v18731_v50 }
0x1d1b   :  { %v10894_v11 = vrot.slane %v10770_v10, %v13853_v19  ;;  %v11577_v10 = vld [vmem:[%s18738_s7] ss:$0 sm:$0xff] }
0x1d1c   :  { %v10794_v42 = vpop.permute.xlu0 %10793 }
0x1d1d   :  { %v10899_v56 = vsel %vm1233_vm2, %v10898_v34, %v10894_v11  ;;  %v10930_v20 = vrot.slane %v10794_v42, %v13853_v19 }
0x1d1e   :  { %v10776_v17 = vpop.permute.xlu1 %10775  ;;  %v10961_v28 = vsel %vm1370_vm3, %v10899_v56, %v10890_v8  ;;  %vm18734_vm3 = vmmov %vm18726_vm1 }
0x1d1f   :  { %v10903_v58 = vrot.slane %v10776_v17, %v13853_v19 }
0x1d20   :  { %v10800_v54 = vpop.permute.xlu0 %10799 }
0x1d21   :  { %v10908_v2 = vsel %vm1233_vm2, %v10907_v4, %v10903_v58  ;;  %v10939_v5 = vrot.slane %v10800_v54, %v13853_v19 }
0x1d22   :  { %v10782_v13 = vpop.permute.xlu1 %10781  ;;  %v10962_v21 = vsel %vm1372_vm4, %v10908_v2, %v10961_v28  ;;  %vm18736_vm4 = vmmov %vm18728_vm0 }
0x1d23   :  { %v10912_v62 = vrot.slane %v10782_v13, %v13853_v19 }
0x1d24   :  { %v10806_v0 = vpop.permute.xlu0 %10805 }
0x1d25   :  { %v10917_v53 = vsel %vm1233_vm2, %v10916_v51, %v10912_v62  ;;  %v10948_v25 = vrot.slane %v10806_v0, %v13853_v19  ;;  %v11581_v0 = vld [vmem:[%s18746_s17] ss:$0 sm:$0xff] }
0x1d26   :  { %v10788_v61 = vpop.permute.xlu1 %10787  ;;  %v10963_v31 = vsel %vm1374_vm5, %v10917_v53, %v10962_v21  ;;  %vm18737_vm5 = vmmov %vm18729_vm10 }
0x1d27   :  { %v10921_v16 = vrot.slane %v10788_v61, %v13853_v19 }
0x1d29   :  { %v10926_v52 = vsel %vm1233_vm2, %v10925_v1, %v10921_v16 }
0x1d2a   :  { %v10797_v30 = vpop.permute.xlu1 %10796  ;;  %v10964_v41 = vsel %vm18733_vm9, %v10926_v52, %v10963_v31 }
0x1d2b   :  { %v10934_v6 = vrot.slane %v10797_v30, %v13860_v22 }
0x1d2d   :  { %v10935_v59 = vsel %vm1233_vm2, %v10934_v6, %v10930_v20 }
0x1d2e   :  { %v10803_v38 = vpop.permute.xlu1 %10802  ;;  %v10965_v40 = vsel %vm18734_vm3, %v10935_v59, %v10964_v41 }
0x1d2f   :  { %v10943_v55 = vrot.slane %v10803_v38, %v13860_v22 }
0x1d31   :  { %v10944_v48 = vsel %vm1233_vm2, %v10943_v55, %v10939_v5 }
0x1d32   :  { %v10809_v39 = vpop.permute.xlu1 %10808  ;;  %v10966_v24 = vsel %vm18735_vm6, %v10944_v48, %v10965_v40  ;;  %v13119_v40 = vmov 0.0|0.0  }
0x1d33   :  { %v10952_v45 = vrot.slane %v10809_v39, %v13860_v22  ;;  %v11574_v22 = vld [vmem:[%s18732_s6] ss:$0 sm:$0xff] }
0x1d35   :  { %v10953_v27 = vsel %vm1233_vm2, %v10952_v45, %v10948_v25  ;;  %vm18739_vm2 = vmmov %vm18737_vm5 }
0x1d36   :  { %v10967_v12 = vsel %vm18736_vm4, %v10953_v27, %v10966_v24  ;;  %vm18743_vm15 = vmmov %vm18739_vm2  ;;  %v11279_v24 = vld [vmem:[%s13260_s12] sm:$0xff]  ;;  %v11280_v27 = vld [vmem:[%s13260_s12 + $0x8] sm:$0xff] }
0x1d37   :  { %v10968_v37 = vpack.c.b16 %v10967_v12, %v17611_v57  ;;  %v17691_v57 = vld [vmem:[%s13140_s13] sm:$0x1]  ;;  %s18744_s13 = sld [smem:[#allocation17_spill]]  ;;  %vm18748_vm1 = vmmov %vm18739_vm2  ;;  %v12314_v12 = vpack.c.bf16 %v11280_v27, %v11279_v24 }
0x1d38   :  { %vm18749_vm0 = vmmov %vm18748_vm1 }
0x1d39   :  { %12169 = vmatmul.mubr.msk.bf16.vlgmr.msra.gmra.mrb[68].mxu0 %vm18737_vm5, %v10968_v37 }
0x1d3a   :  { %12174 = vmatprep.mubr.msk.bf16.mxu0 %vm18483_vm14, %v18731_v50 }
0x1d3d   :  { %v11579_v55 = vld [vmem:[%s18744_s13] ss:$0 sm:$0xff] }
0x1e0c   :  { %v11006_v19 = vpop.f32.mrb[68].mxu0 }
0x1e0d   :  { %v11013_v33 = vmul.f32 0.5, %v11006_v19  ;;  %v12170_v35 = vpop.f32.mrb[69].mxu0 }
0x1e0e   :  { %v11009_v3 = vpop.f32.mrb[70].mxu0 }
0x1e0f   :  { %v11014_v36 = vmul.f32 0.5, %v11009_v3  ;;  %v12171_v32 = vpop.f32.mrb[71].mxu0  ;;  %v11022_v7 = vadd.f32 %v11574_v22, %v11013_v33 }
0x1e11   :  { %v11023_v43 = vadd.f32 %v11574_v22, %v11014_v36 }
0x1e13   :  { %v11024_v9 = vpack.c.bf16 %v11023_v43, %v11022_v7 }
0x1e15   :  { %12173 = vmatpush3.bf16.msra.mxu0 %v11024_v9 }
0x1e16   :  { %12178 = vmatprep.subr.bf16.mxu0 %v18731_v50 }
0x1e18   :  { %12175 = vmatmul.mubr.msk.bf16.vlgmr.msra.gmra.mrb[72].mxu0 %vm18739_vm2, %v17691_v57 }
0x1e19   :  { %12180 = vmatprep.mubr.msk.bf16.mxu0 %vm18483_vm14, %v18731_v50 }
0x1eeb   :  { %v11059_v63 = vpop.f32.mrb[72].mxu0 }
0x1eec   :  { %v11065_v26 = vmul.f32 %v11059_v63, %v18740_v18  ;;  %v12176_v44 = vpop.f32.mrb[73].mxu0 }
0x1eed   :  { %v11062_v14 = vpop.f32.mrb[74].mxu0 }
0x1eee   :  { %v11066_v23 = vpack.c.bf16 %v11065_v26, %v11065_v26  ;;  %v12177_v29 = vpop.f32.mrb[75].mxu0 }
0x1ef0   :  { %v11068_v46 = vsel %vm18741_vm7, %v11066_v23, 0 }
0x1ef1   :  { %12179 = vmatpush3.bf16.msra.mxu0 %v11068_v46 }
0x1ef2   :  { %12184 = vmatprep.subr.bf16.mxu0 %v18731_v50 }
0x1ef4   :  { %12181 = vmatmul.mubr.msk.bf16.vlgmr.msra.gmra.mrb[76].mxu0 %vm18742_vm11, %v13031_v47 }
0x1ef5   :  { %12186 = vmatprep.mubr.msk.bf16.mxu0 %vm18483_vm14, %v18731_v50 }
0x1fc7   :  { %v11104_v60 = vpop.f32.mrb[76].mxu0 }
0x1fc8   :  { %v11118_v17 = vmul.f32 %v11577_v10, %v11104_v60  ;;  %v12182_v13 = vpop.f32.mrb[77].mxu0 }
0x1fc9   :  { %v11107_v42 = vpop.f32.mrb[78].mxu0 }
0x1fca   :  { %v11120_v61 = vsub.f32 %v11022_v7, %v11118_v17  ;;  %v11119_v11 = vmul.f32 %v11577_v10, %v11107_v42  ;;  %v12183_v58 = vpop.f32.mrb[79].mxu0 }
0x1fcc   :  { %v11121_v54 = vsub.f32 %v11023_v43, %v11119_v11  ;;  %v11122_v30 = vmul.f32 %v11120_v61, %v11120_v61  ;;  %v11174_v28 = vmul.f32 %v11579_v55, %v11120_v61 }
0x1fce   :  { %v11123_v34 = vmul.f32 %v11121_v54, %v11121_v54  ;;  %v11175_v52 = vmul.f32 %v11579_v55, %v11121_v54 }
0x1fd0   :  { %v11124_v49 = vpack.c.bf16 %v11123_v34, %v11122_v30 }
0x1fd2   :  { %12185 = vmatpush3.bf16.msra.mxu0 %v11124_v49 }
0x1fd3   :  { %12190 = vmatprep.subr.bf16.mxu0 %v18731_v50 }
0x1fd5   :  { %12187 = vmatmul.mubr.msk.bf16.vlgmr.msra.gmra.mrb[80].mxu0 %vm18743_vm15, %v17691_v57 }
0x1fd6   :  { %12192 = vmatprep.mubr.msk.bf16.mxu0 %vm18483_vm14, %v18731_v50 }
0x20a8   :  { %v11159_v62 = vpop.f32.mrb[80].mxu0 }
0x20a9   :  { %v11165_v4 = vmul.f32 %v11159_v62, %v18740_v18  ;;  %v12188_v16 = vpop.f32.mrb[81].mxu0 }
0x20aa   :  { %v11162_v15 = vpop.f32.mrb[82].mxu0 }
0x20ab   :  { %v11166_v51 = vpack.c.bf16 %v11165_v4, %v11165_v4  ;;  %v12189_v56 = vpop.f32.mrb[83].mxu0 }
0x20ad   :  { %v11177_v6 = vsel %vm18745_vm12, %v11166_v51, 0 }
0x20ae   :  { %12191 = vmatpush3.bf16.msra.mxu0 %v11177_v6 }
0x20af   :  { %12196 = vmatprep.subr.bf16.mxu0 %v18731_v50 }
0x20b1   :  { %12193 = vmatmul.mubr.msk.bf16.vlgmr.msra.gmra.mrb[84].mxu0 %vm18747_vm8, %v13031_v47 }
0x20b2   :  { %12198 = vmatprep.mubr.msk.bf16.mxu0 %vm18483_vm14, %v18731_v50 }
0x2184   :  { %v11213_v1 = vpop.f32.mrb[84].mxu0 }
0x2185   :  { %v11214_v2 = vadd.f32 1e-05, %v11213_v1  ;;  %v12194_v38 = vpop.f32.mrb[85].mxu0 }
0x2186   :  { %v11216_v8 = vpop.f32.mrb[86].mxu0 }
0x2187   :  { %13024 = vrsqrt.f32 %v11214_v2  ;;  %v11217_v20 = vadd.f32 1e-05, %v11216_v8  ;;  %v12195_v53 = vpop.f32.mrb[87].mxu0 }
0x2189   :  { %13026 = vrsqrt.f32 %v11217_v20 }
0x2191   :  { %v13025_v5 = vpop.eup %13024 }
0x2192   :  { %v11222_v21 = vmul.f32 %v13025_v5, %v11174_v28 }
0x2193   :  { %v13027_v59 = vpop.eup %13026 }
0x2194   :  { %v11223_v31 = vmul.f32 %v13027_v59, %v11175_v52  ;;  %v11231_v48 = vadd.f32 %v11581_v0, %v11222_v21 }
0x2196   :  { %v11232_v39 = vadd.f32 %v11581_v0, %v11223_v31  ;;  %v11233_v25 = vmax.f32 %v11231_v48, 0.0 }
0x2198   :  { %v11234_v41 = vmax.f32 %v11232_v39, 0.0 }
0x219a   :  { %v11235_v45 = vpack.c.bf16 %v11234_v41, %v11233_v25 }
0x219c   :  { %12197 = vmatpush3.bf16.msra.mxu0 %v11235_v45 }
0x219d   :  { %12313 = vmatprep.subr.bf16.mxu0 %v13119_v40 }
0x219f   :  { %12199 = vmatmul.mubr.msk.bf16.vlgmr.msra.gmra.mrb[88].mxu0 %vm18748_vm1, %v17691_v57 }
0x21a0   :  { %12206 = vmatprep.mubr.msk.f32.mxu0 %vm18483_vm14, %v18731_v50  ;;  %12315 = vmatpush3.bf16.msra.mxu0 %v12314_v12 }
0x2272   :  { %v11270_v37 = vpop.f32.mrb[88].mxu0 }
0x2273   :  { %v11276_v19 = vmul.f32 %v11270_v37, %v18740_v18  ;;  %v12200_v33 = vpop.f32.mrb[89].mxu0 }
0x2274   :  { %v11273_v35 = vpop.f32.mrb[90].mxu0 }
0x2275   :  { %12207 = vmatmul.mubr.msk.f32.vlgmr.msra.gmra.mrb[62].mxu0 %vm18749_vm0, %v11276_v19  ;;  %v12201_v22 = vpop.f32.mrb[91].mxu0  ;;  %11278 = vst.msk [vmem:[#allocation4] sm:$0x3] %vm11277_vm13, %v11276_v19 }
0x2276   :  { %13043 = shalt.err (!%p13040_p4)
}
0x2277   :  { %s13044_s12 = scalar_lea.hbm %s13275_s4, 32 }
0x2278   :  { %p13045_p5 = scmp.ne.s32.totalorder %s13275_s4, %s13044_s12  ;;  %p13048_p6 = scmp.lt.u32.totalorder %s13044_s12, %s13275_s4 }
0x227a   :  { %p13050_p7 = pnand %p13048_p6, %p13045_p5 }
0x227c   :  { %13053 = shalt.err (!%p13050_p7)
}
0x227d   :  { %11382 = dma.vmem_to_hbm [thread:$0]  %s11380_s11, 32, %s13275_s4, [#allocation5]   ;;  %v11583_v50 = vld [vmem:[%s13265_s20] ss:$0 sm:$0xff]  ;;  %vm11361_vm14 = vcmask 17408  }
0x227e   :  { %s13121_s16 = smov [#allocation2]  }
0x227f   :  { %s11369_s18 = sshll.u32 %s13121_s16, 4  ;;  %s11370_s18 = int_to_ptr.vmem [resolvable:$true] %s11369_s18 }
0x2280   :  { %s13054_s22 = scalar_lea.vmem %s11370_s18, 32  ;;  %p13059_p9 = scmp.lt.s32.totalorder %s11370_s18, %s11370_s18 }
0x2281   :  { %p13055_p8 = scmp.ne.s32.totalorder %s11370_s18, %s13054_s22  ;;  %p13060_p10 = scmp.lt.s32.totalorder %s13054_s22, %s13054_s22 }
0x2283   :  { %p13061_p11 = por %p13060_p10, %p13059_p9 }
0x2285   :  { %p13062_p12 = pnand %p13061_p11, %p13055_p8 }
0x2348   :  { %v11357_v3 = vpop.f32.mrb[62].mxu0 }
0x2349   :  { %v11358_v36 = vadd.f32 %v11583_v50, %v11357_v3  ;;  %v12208_v32 = vpop.f32.mrb[63].mxu0 }
0x234b   :  { %11362 = vst.msk [vmem:[#allocation2] sm:$0x3] %vm11361_vm14, %v11358_v36 }
0x234c   :  { %13065 = shalt.err (!%p13062_p12)
}
0x234d   :  { %s13066_s4 = scalar_lea.hbm %s13270_s27, 32 }
0x234e   :  { %p13067_p13 = scmp.ne.s32.totalorder %s13270_s27, %s13066_s4  ;;  %p13070_p0 = scmp.lt.u32.totalorder %s13066_s4, %s13270_s27 }
0x2350   :  { %p13072_p1 = pnand %p13070_p0, %p13067_p13 }
0x2352   :  { %13075 = shalt.err (!%p13072_p1)
}
0x2353   :  { %11372 = dma.vmem_to_hbm [thread:$0]  %s11370_s18, 32, %s13270_s27, [#allocation3]  }
0x2354   :  { %13076 = dma.done.wait [#allocation3], 32  }
0x2355   :  { %13077 = vsyncadd [#allocation3], 4294967264 }
0x2356   :  { %13078 = dma.done.wait [#allocation5], 32  }
0x2357   :  { %13079 = vsyncadd [#allocation5], 4294967264 }
0x2358   :  { %11389 = vsyncpa [#allocation3], 1 }
0x2359   :  { %11390 = vsyncpa [#allocation5], 1 }

</bundles_post_ra>
